<compile_context>
chip_gen: v6e
topology: v6e:2x2x1
jax: 0.10.0
libtpu: 0.0.40
codegen_flags: <defaults>
</compile_context>

<pallas_src>
import math
import jax
import jax.numpy as jnp
from jax import lax
from jax.experimental import pallas as pl
from jax.experimental.pallas import tpu as pltpu


# ---------------- config (small synthetic sizes, consistent with the module) ----
class Args:
    batch_size = 2
    max_seq_length = 8
    hidden_size = 32
    item_size = 20
    num_hidden_layers = 2
    num_attention_heads = 2
    initializer_range = 0.02
    variational_dropout = True


ARGS = Args()
B = ARGS.batch_size
S = ARGS.max_seq_length
H = ARGS.hidden_size
NH = ARGS.num_attention_heads
HS = H // NH
L = ARGS.num_hidden_layers
INTER = 4 * H
ITEM = ARGS.item_size
EPS = 1e-12

NUM_STACKS = 3        # 0 = encoder_mu, 1 = encoder_logvar, 2 = decoder
NUM_VECS = 6          # bo, ln1w, ln1b, b2, ln2w, ln2b


# ---------------- flat-index helpers (all static Python ints) -------------------
def _qkv_idx(stack, l, h, which):          # which: 0=q, 1=k, 2=v
    return ((stack * L + l) * NH + h) * 3 + which


def _wo_idx(stack, l, h):
    return (stack * L + l) * NH + h


def _sl_idx(stack, l):
    return stack * L + l


def _vec_idx(stack, l, which):             # 0=bo,1=ln1w,2=ln1b,3=b2,4=ln2w,5=ln2b
    return (stack * L + l) * NUM_VECS + which


# ---------------- in-kernel math helpers -----------------------------------------
def _layer_norm(x, w, b):
    # matches the repo's custom LayerNorm (eps=1e-12); rsqrt -> EUP path
    u = jnp.mean(x, axis=-1, keepdims=True)
    s = jnp.mean((x - u) ** 2, axis=-1, keepdims=True)
    return w * (x - u) * lax.rsqrt(s + EPS) + b


def _gelu(x):
    # exact (erf-based) GELU, as in the reference code
    return 0.5 * x * (1.0 + lax.erf(x / math.sqrt(2.0)))


# ---------------- the fused kernel ------------------------------------------------
def fused_forward_kernel(ids_col_ref, ids_bk_ref, item_ref, pos_ref, embln_ref,
                         qkv_ref, bqkv_ref, wo_ref, w1_ref, b1_ref, w2_ref, vecs_ref,
                         out_ref):
    f32 = jnp.float32

    # --- embedding gather (one-hot MXU matmul), + position embedding, LayerNorm ---
    ids_col = ids_col_ref[...]                                             # (B*S, 1) i32
    onehot = (ids_col == lax.broadcasted_iota(jnp.int32, (B * S, ITEM), 1)).astype(f32)
    item_emb = jnp.dot(onehot, item_ref[...], preferred_element_type=f32)  # (B*S, H)
    emb = item_emb.reshape(B, S, H) + pos_ref[...]                         # + pos (S, H)
    seq = _layer_norm(emb, embln_ref[0], embln_ref[1]).reshape(B * S, H)
    # hidden dropout is identity in eval mode

    # --- additive attention mask: (pad mask over keys) * (causal) -> (1-m)*-1e4 ---
    q_pos = lax.broadcasted_iota(jnp.int32, (1, S, S), 1)
    k_pos = lax.broadcasted_iota(jnp.int32, (1, S, S), 2)
    causal = (k_pos <= q_pos).astype(f32)                                  # (1, S, S)
    valid = (ids_bk_ref[...] > 0).astype(f32)                              # (B, 1, S)
    mask = (1.0 - valid * causal) * -10000.0                               # (B, S, S)

    scale = 1.0 / math.sqrt(HS)

    def layer(x, stack, l):
        """One transformer block; x: (B*S, H) flat. All ref indices are static."""
        parts = []
        for h in range(NH):   # static unroll over heads; per-head weights pre-split
            qh = (jnp.dot(x, qkv_ref[_qkv_idx(stack, l, h, 0)],
                          preferred_element_type=f32)
                  + bqkv_ref[_qkv_idx(stack, l, h, 0)]).reshape(B, S, HS)
            kh = (jnp.dot(x, qkv_ref[_qkv_idx(stack, l, h, 1)],
                          preferred_element_type=f32)
                  + bqkv_ref[_qkv_idx(stack, l, h, 1)]).reshape(B, S, HS)
            vh = (jnp.dot(x, qkv_ref[_qkv_idx(stack, l, h, 2)],
                          preferred_element_type=f32)
                  + bqkv_ref[_qkv_idx(stack, l, h, 2)]).reshape(B, S, HS)
            sc = jnp.einsum("bqd,bkd->bqk", qh, kh,
                            preferred_element_type=f32) * scale + mask
            sc = sc - jnp.max(sc, axis=-1, keepdims=True)
            p = jnp.exp(sc)
            p = p * pl.reciprocal(jnp.sum(p, axis=-1, keepdims=True), approx=True)
            ctx = jnp.einsum("bqk,bkd->bqd", p, vh,
                             preferred_element_type=f32)                  # (B, S, HS)
            # per-head output projection against pre-split wo rows (no concat)
            parts.append(jnp.dot(ctx.reshape(B * S, HS), wo_ref[_wo_idx(stack, l, h)],
                                 preferred_element_type=f32))
        attn = parts[0]
        for extra in parts[1:]:
            attn = attn + extra
        attn = attn + vecs_ref[_vec_idx(stack, l, 0)]                      # + bo

        h1 = _layer_norm(attn + x,
                         vecs_ref[_vec_idx(stack, l, 1)],
                         vecs_ref[_vec_idx(stack, l, 2)])
        inter = _gelu(jnp.dot(h1, w1_ref[_sl_idx(stack, l)],
                              preferred_element_type=f32)
                      + b1_ref[_sl_idx(stack, l)])
        ffn = jnp.dot(inter, w2_ref[_sl_idx(stack, l)],
                      preferred_element_type=f32) + vecs_ref[_vec_idx(stack, l, 3)]
        return _layer_norm(ffn + h1,
                           vecs_ref[_vec_idx(stack, l, 4)],
                           vecs_ref[_vec_idx(stack, l, 5)])

    def run_stack(stack, x):
        for l in range(L):             # static unroll; all weights resident in VMEM
            x = layer(x, stack, l)
        return x

    mu = run_stack(0, seq)
    log_var = run_stack(1, seq)
    # reparameterization1 (eval-mode reparameterization3 is identical with identity VD)
    z = mu + jnp.exp(0.5 * log_var)
    recon = run_stack(2, z)

    out_ref[0] = mu.reshape(B, S, H)
    out_ref[1] = log_var.reshape(B, S, H)
    out_ref[2] = z.reshape(B, S, H)
    out_ref[3] = recon.reshape(B, S, H)


# ---------------- wrapper ---------------------------------------------------------
def fused_forward(params, input_ids):
    """Whole ContrastVAE_VD eval forward in one pallas_call. Returns (4, B, S, H)."""
    ids_col = input_ids.reshape(B * S, 1).astype(jnp.int32)   # for one-hot gather
    ids_bk = input_ids[:, None, :].astype(jnp.int32)          # for the key-pad mask
    return pl.pallas_call(
        fused_forward_kernel,
        out_shape=jax.ShapeDtypeStruct((4, B, S, H), jnp.float32),
    )(ids_col, ids_bk,
      params["item_emb"], params["pos_emb"], params["embln"],
      params["qkv"], params["bqkv"], params["wo"],
      params["w1"], params["b1"], params["w2"], params["vecs"])


# ---------------- parameter init (deterministic, matches init_weights) ------------
def init_params(key):
    std = ARGS.initializer_range

    def make_layer(k):
        ks = jax.random.split(k, 6)
        z = lambda *s: jnp.zeros(s, jnp.float32)
        o = lambda *s: jnp.ones(s, jnp.float32)
        n = lambda kk, *s: std * jax.random.normal(kk, s, jnp.float32)
        return dict(wq=n(ks[0], H, H), wk=n(ks[1], H, H), wv=n(ks[2], H, H),
                    wo=n(ks[3], H, H), w1=n(ks[4], H, INTER), w2=n(ks[5], INTER, H),
                    bq=z(H), bk=z(H), bv=z(H), bo=z(H), b1=z(INTER), b2=z(H),
                    ln1w=o(H), ln1b=z(H), ln2w=o(H), ln2b=z(H))

    keys = jax.random.split(key, 6)
    # stacks[0]=encoder_mu, [1]=encoder_logvar, [2]=decoder; each has L layers
    stacks = [[make_layer(kk) for kk in jax.random.split(keys[i], L)]
              for i in range(NUM_STACKS)]
    layers = [stacks[s][l] for s in range(NUM_STACKS) for l in range(L)]

    def split_cols(w):  # (H, H) -> per-head column blocks, head h -> (H, HS)
        return [w[:, h * HS:(h + 1) * HS] for h in range(NH)]

    # Packed, flat-leading-dim parameter slabs (few DMA descriptors, static indexing):
    qkv = jnp.stack([split_cols(p[name])[h]
                     for p in layers for h in range(NH)
                     for name in ("wq", "wk", "wv")], axis=0)              # (3L*NH*3, H, HS)
    bqkv = jnp.stack([p[name].reshape(NH, HS)[h]
                      for p in layers for h in range(NH)
                      for name in ("bq", "bk", "bv")], axis=0)             # (3L*NH*3, HS)
    wo = jnp.stack([p["wo"][h * HS:(h + 1) * HS, :]
                    for p in layers for h in range(NH)], axis=0)           # (3L*NH, HS, H)
    w1 = jnp.stack([p["w1"] for p in layers], axis=0)                      # (3L, H, INTER)
    b1 = jnp.stack([p["b1"] for p in layers], axis=0)                      # (3L, INTER)
    w2 = jnp.stack([p["w2"] for p in layers], axis=0)                      # (3L, INTER, H)
    vecs = jnp.stack([p[name] for p in layers
                      for name in ("bo", "ln1w", "ln1b", "b2", "ln2w", "ln2b")],
                     axis=0)                                               # (3L*6, H)

    return {
        # init_weights overwrites the whole embedding (incl. padding row) with normal(0, std)
        "item_emb": std * jax.random.normal(keys[3], (ITEM, H), jnp.float32),
        "pos_emb": std * jax.random.normal(keys[4], (S, H), jnp.float32),
        "embln": jnp.stack([jnp.ones((H,), jnp.float32),
                            jnp.zeros((H,), jnp.float32)], axis=0),        # (2, H)
        "qkv": qkv, "bqkv": bqkv, "wo": wo, "w1": w1, "b1": b1, "w2": w2, "vecs": vecs,
        "vd_log_alpha": jnp.zeros((), jnp.float32),  # VariationalDropout 'layerwise' param
    }


# ---------------- ContrastVAE_VD forward (variational_dropout branch, eval) -------
def contrastvae_vd_forward(params, input_ids, augmented_input_ids, step):
    del augmented_input_ids, step  # unused in the variational_dropout branch
    # TODO(synk): base-class encode() takes 6 args but ContrastVAE_VD calls it with 2
    # (a bug in the reference); implementing the intended 2-arg (mu, logvar) encode.
    out = fused_forward(params, input_ids)
    mu1, log_var1, z1, reconstructed_seq1 = out[0], out[1], out[2], out[3]

    # eval-mode dedup: the second encode() pass is bit-identical, and with
    # VariationalDropout acting as identity on std in eval, z2 == z1 and the
    # second decode is bit-identical as well -> alias instead of recompute.
    mu2, log_var2 = mu1, log_var1
    z2, reconstructed_seq2 = z1, reconstructed_seq1

    # TODO(synk): VariationalDropout source not provided; eval-mode treated as identity
    # on std, alpha = clamp(exp(log_alpha), 0, 1) for the 'layerwise' parameterization.
    alpha = jnp.clip(jnp.exp(params["vd_log_alpha"]), 0.0, 1.0)
    return (reconstructed_seq1, reconstructed_seq2, mu1, mu2,
            log_var1, log_var2, z1, z2, alpha)


if __name__ == "__main__":
    key = jax.random.PRNGKey(0)
    pkey, ikey = jax.random.split(key)
    params = init_params(pkey)

    input_ids = jax.random.randint(ikey, (B, S), 0, ARGS.item_size, dtype=jnp.int32)
    aug_input_ids = input_ids  # unused in this branch

    outs = contrastvae_vd_forward(params, input_ids, aug_input_ids, step=0)
    outs = jax.block_until_ready(outs)

    # sanity on shapes / values
    for idx in (0, 1, 2, 3, 4, 5, 6, 7):
        assert outs[idx].shape == (B, S, H)
    assert bool(jnp.all(jnp.isfinite(outs[0])))
    assert bool(jnp.all(jnp.isfinite(outs[6])))
    print("KERNEL_OK")
</pallas_src>

<mosaic_0001>
module attributes {stable_mosaic.version = 11 : i64} {
  func.func @fused_forward_kernel(%arg0: memref<16x1xi32, #tpu.memory_space<vmem>>, %arg1: memref<2x1x8xi32, #tpu.memory_space<vmem>>, %arg2: memref<20x32xf32, #tpu.memory_space<vmem>>, %arg3: memref<8x32xf32, #tpu.memory_space<vmem>>, %arg4: memref<2x32xf32, #tpu.memory_space<vmem>>, %arg5: memref<36x32x16xf32, #tpu.memory_space<vmem>>, %arg6: memref<36x16xf32, #tpu.memory_space<vmem>>, %arg7: memref<12x16x32xf32, #tpu.memory_space<vmem>>, %arg8: memref<6x32x128xf32, #tpu.memory_space<vmem>>, %arg9: memref<6x128xf32, #tpu.memory_space<vmem>>, %arg10: memref<6x128x32xf32, #tpu.memory_space<vmem>>, %arg11: memref<36x32xf32, #tpu.memory_space<vmem>>, %arg12: memref<4x2x8x32xf32, #tpu.memory_space<vmem>>) attributes {dimension_semantics = [], scalar_prefetch = 0 : i64, scratch_operands = 0 : i64, tpu.core_type = #tpu.core_type<tc>} {
    %c0 = arith.constant 0 : index
    %c0_0 = arith.constant 0 : index
    %0 = vector.load %arg0[%c0, %c0_0] : memref<16x1xi32, #tpu.memory_space<vmem>>, vector<16x1xi32>
    %1 = tpu.iota {dimensions = array<i32: 1>} : vector<16x20xi32>
    %2 = vector.broadcast %0 : vector<16x1xi32> to vector<16x20xi32>
    %3 = arith.cmpi eq, %2, %1 : vector<16x20xi32>
    %4 = arith.extui %3 : vector<16x20xi1> to vector<16x20xi32>
    %5 = arith.sitofp %4 : vector<16x20xi32> to vector<16x20xf32>
    %c0_1 = arith.constant 0 : index
    %c0_2 = arith.constant 0 : index
    %6 = vector.load %arg2[%c0_1, %c0_2] : memref<20x32xf32, #tpu.memory_space<vmem>>, vector<20x32xf32>
    %cst = arith.constant dense<0.000000e+00> : vector<16x32xf32>
    %7 = tpu.matmul %5, %6, %cst {dimension_numbers = #tpu.dot_dimension_numbers<[1], [0], [0], [1], [0, 0, 1, 1], [], []>} : vector<16x20xf32>, vector<20x32xf32>, vector<16x32xf32> -> vector<16x32xf32>
    %8 = vector.shape_cast %7 : vector<16x32xf32> to vector<2x8x32xf32>
    %c0_3 = arith.constant 0 : index
    %c0_4 = arith.constant 0 : index
    %9 = vector.load %arg3[%c0_3, %c0_4] : memref<8x32xf32, #tpu.memory_space<vmem>>, vector<8x32xf32>
    %10 = vector.shape_cast %9 : vector<8x32xf32> to vector<1x8x32xf32>
    %11 = vector.broadcast %10 : vector<1x8x32xf32> to vector<2x8x32xf32>
    %12 = arith.addf %8, %11 : vector<2x8x32xf32>
    %c0_5 = arith.constant 0 : index
    %c0_6 = arith.constant 0 : index
    %13 = vector.load %arg4[%c0_5, %c0_6] : memref<2x32xf32, #tpu.memory_space<vmem>>, vector<1x32xf32>
    %14 = vector.shape_cast %13 : vector<1x32xf32> to vector<32xf32>
    %c1 = arith.constant 1 : index
    %c0_7 = arith.constant 0 : index
    %15 = vector.load %arg4[%c1, %c0_7] : memref<2x32xf32, #tpu.memory_space<vmem>>, vector<1x32xf32>
    %16 = vector.shape_cast %15 : vector<1x32xf32> to vector<32xf32>
    %cst_8 = arith.constant dense<0.000000e+00> : vector<2x8xf32>
    %17 = vector.multi_reduction <add>, %12, %cst_8 [2] : vector<2x8x32xf32> to vector<2x8xf32>
    %18 = vector.shape_cast %17 : vector<2x8xf32> to vector<2x8x1xf32>
    %cst_9 = arith.constant 3.200000e+01 : f32
    %19 = vector.broadcast %cst_9 : f32 to vector<2x8x1xf32>
    %20 = arith.divf %18, %19 : vector<2x8x1xf32>
    %21 = vector.broadcast %20 : vector<2x8x1xf32> to vector<2x8x32xf32>
    %22 = arith.subf %12, %21 : vector<2x8x32xf32>
    %23 = arith.mulf %22, %22 : vector<2x8x32xf32>
    %cst_10 = arith.constant dense<0.000000e+00> : vector<2x8xf32>
    %24 = vector.multi_reduction <add>, %23, %cst_10 [2] : vector<2x8x32xf32> to vector<2x8xf32>
    %25 = vector.shape_cast %24 : vector<2x8xf32> to vector<2x8x1xf32>
    %cst_11 = arith.constant 3.200000e+01 : f32
    %26 = vector.broadcast %cst_11 : f32 to vector<2x8x1xf32>
    %27 = arith.divf %25, %26 : vector<2x8x1xf32>
    %28 = vector.broadcast %20 : vector<2x8x1xf32> to vector<2x8x32xf32>
    %29 = arith.subf %12, %28 : vector<2x8x32xf32>
    %30 = vector.shape_cast %14 : vector<32xf32> to vector<1x1x32xf32>
    %31 = vector.broadcast %30 : vector<1x1x32xf32> to vector<2x8x32xf32>
    %32 = arith.mulf %31, %29 : vector<2x8x32xf32>
    %cst_12 = arith.constant 9.99999996E-13 : f32
    %33 = vector.broadcast %cst_12 : f32 to vector<2x8x1xf32>
    %34 = arith.addf %27, %33 : vector<2x8x1xf32>
    %35 = math.rsqrt %34 : vector<2x8x1xf32>
    %36 = vector.broadcast %35 : vector<2x8x1xf32> to vector<2x8x32xf32>
    %37 = arith.mulf %32, %36 : vector<2x8x32xf32>
    %38 = vector.shape_cast %16 : vector<32xf32> to vector<1x1x32xf32>
    %39 = vector.broadcast %38 : vector<1x1x32xf32> to vector<2x8x32xf32>
    %40 = arith.addf %37, %39 : vector<2x8x32xf32>
    %41 = vector.shape_cast %40 : vector<2x8x32xf32> to vector<16x32xf32>
    %42 = tpu.iota {dimensions = array<i32: 1>} : vector<1x8x8xi32>
    %43 = tpu.iota {dimensions = array<i32: 2>} : vector<1x8x8xi32>
    %44 = arith.cmpi sle, %43, %42 : vector<1x8x8xi32>
    %45 = arith.extui %44 : vector<1x8x8xi1> to vector<1x8x8xi32>
    %46 = arith.sitofp %45 : vector<1x8x8xi32> to vector<1x8x8xf32>
    %c0_13 = arith.constant 0 : index
    %c0_14 = arith.constant 0 : index
    %c0_15 = arith.constant 0 : index
    %47 = vector.load %arg1[%c0_13, %c0_14, %c0_15] : memref<2x1x8xi32, #tpu.memory_space<vmem>>, vector<2x1x8xi32>
    %c0_i32 = arith.constant 0 : i32
    %48 = vector.broadcast %c0_i32 : i32 to vector<2x1x8xi32>
    %49 = arith.cmpi sgt, %47, %48 : vector<2x1x8xi32>
    %50 = arith.extui %49 : vector<2x1x8xi1> to vector<2x1x8xi32>
    %51 = arith.sitofp %50 : vector<2x1x8xi32> to vector<2x1x8xf32>
    %52 = vector.broadcast %51 : vector<2x1x8xf32> to vector<2x8x8xf32>
    %53 = vector.broadcast %46 : vector<1x8x8xf32> to vector<2x8x8xf32>
    %54 = arith.mulf %52, %53 : vector<2x8x8xf32>
    %cst_16 = arith.constant 1.000000e+00 : f32
    %55 = vector.broadcast %cst_16 : f32 to vector<2x8x8xf32>
    %56 = arith.subf %55, %54 : vector<2x8x8xf32>
    %cst_17 = arith.constant -1.000000e+04 : f32
    %57 = vector.broadcast %cst_17 : f32 to vector<2x8x8xf32>
    %58 = arith.mulf %56, %57 : vector<2x8x8xf32>
    %c0_18 = arith.constant 0 : index
    %c0_19 = arith.constant 0 : index
    %c0_20 = arith.constant 0 : index
    %59 = vector.load %arg5[%c0_18, %c0_19, %c0_20] : memref<36x32x16xf32, #tpu.memory_space<vmem>>, vector<1x32x16xf32>
    %60 = vector.shape_cast %59 : vector<1x32x16xf32> to vector<32x16xf32>
    %cst_21 = arith.constant dense<0.000000e+00> : vector<16x16xf32>
    %61 = tpu.matmul %41, %60, %cst_21 {dimension_numbers = #tpu.dot_dimension_numbers<[1], [0], [0], [1], [0, 0, 1, 1], [], []>} : vector<16x32xf32>, vector<32x16xf32>, vector<16x16xf32> -> vector<16x16xf32>
    %c0_22 = arith.constant 0 : index
    %c0_23 = arith.constant 0 : index
    %62 = vector.load %arg6[%c0_22, %c0_23] : memref<36x16xf32, #tpu.memory_space<vmem>>, vector<1x16xf32>
    %63 = vector.shape_cast %62 : vector<1x16xf32> to vector<16xf32>
    %64 = vector.shape_cast %63 : vector<16xf32> to vector<1x16xf32>
    %65 = vector.broadcast %64 : vector<1x16xf32> to vector<16x16xf32>
    %66 = arith.addf %61, %65 : vector<16x16xf32>
    %67 = vector.shape_cast %66 : vector<16x16xf32> to vector<2x8x16xf32>
    %c1_24 = arith.constant 1 : index
    %c0_25 = arith.constant 0 : index
    %c0_26 = arith.constant 0 : index
    %68 = vector.load %arg5[%c1_24, %c0_25, %c0_26] : memref<36x32x16xf32, #tpu.memory_space<vmem>>, vector<1x32x16xf32>
    %69 = vector.shape_cast %68 : vector<1x32x16xf32> to vector<32x16xf32>
    %cst_27 = arith.constant dense<0.000000e+00> : vector<16x16xf32>
    %70 = tpu.matmul %41, %69, %cst_27 {dimension_numbers = #tpu.dot_dimension_numbers<[1], [0], [0], [1], [0, 0, 1, 1], [], []>} : vector<16x32xf32>, vector<32x16xf32>, vector<16x16xf32> -> vector<16x16xf32>
    %c1_28 = arith.constant 1 : index
    %c0_29 = arith.constant 0 : index
    %71 = vector.load %arg6[%c1_28, %c0_29] : memref<36x16xf32, #tpu.memory_space<vmem>>, vector<1x16xf32>
    %72 = vector.shape_cast %71 : vector<1x16xf32> to vector<16xf32>
    %73 = vector.shape_cast %72 : vector<16xf32> to vector<1x16xf32>
    %74 = vector.broadcast %73 : vector<1x16xf32> to vector<16x16xf32>
    %75 = arith.addf %70, %74 : vector<16x16xf32>
    %76 = vector.shape_cast %75 : vector<16x16xf32> to vector<2x8x16xf32>
    %c2 = arith.constant 2 : index
    %c0_30 = arith.constant 0 : index
    %c0_31 = arith.constant 0 : index
    %77 = vector.load %arg5[%c2, %c0_30, %c0_31] : memref<36x32x16xf32, #tpu.memory_space<vmem>>, vector<1x32x16xf32>
    %78 = vector.shape_cast %77 : vector<1x32x16xf32> to vector<32x16xf32>
    %cst_32 = arith.constant dense<0.000000e+00> : vector<16x16xf32>
    %79 = tpu.matmul %41, %78, %cst_32 {dimension_numbers = #tpu.dot_dimension_numbers<[1], [0], [0], [1], [0, 0, 1, 1], [], []>} : vector<16x32xf32>, vector<32x16xf32>, vector<16x16xf32> -> vector<16x16xf32>
    %c2_33 = arith.constant 2 : index
    %c0_34 = arith.constant 0 : index
    %80 = vector.load %arg6[%c2_33, %c0_34] : memref<36x16xf32, #tpu.memory_space<vmem>>, vector<1x16xf32>
    %81 = vector.shape_cast %80 : vector<1x16xf32> to vector<16xf32>
    %82 = vector.shape_cast %81 : vector<16xf32> to vector<1x16xf32>
    %83 = vector.broadcast %82 : vector<1x16xf32> to vector<16x16xf32>
    %84 = arith.addf %79, %83 : vector<16x16xf32>
    %85 = vector.shape_cast %84 : vector<16x16xf32> to vector<2x8x16xf32>
    "tpu.trace_start"() <{level = 10 : i32, message = "bqd,bkd->bqk"}> : () -> ()
    %cst_35 = arith.constant dense<0.000000e+00> : vector<2x8x8xf32>
    %86 = tpu.matmul %67, %76, %cst_35 {dimension_numbers = #tpu.dot_dimension_numbers<[2], [2], [1], [1], [0, 0, 0, 1, 1, 1], [0], [0]>} : vector<2x8x16xf32>, vector<2x8x16xf32>, vector<2x8x8xf32> -> vector<2x8x8xf32>
    "tpu.trace_stop"() : () -> ()
    %cst_36 = arith.constant 2.500000e-01 : f32
    %87 = vector.broadcast %cst_36 : f32 to vector<2x8x8xf32>
    %88 = arith.mulf %86, %87 : vector<2x8x8xf32>
    %89 = arith.addf %88, %58 : vector<2x8x8xf32>
    %cst_37 = arith.constant dense<0xFF800000> : vector<2x8xf32>
    %90 = vector.multi_reduction <maximumf>, %89, %cst_37 [2] : vector<2x8x8xf32> to vector<2x8xf32>
    %91 = vector.shape_cast %90 : vector<2x8xf32> to vector<2x8x1xf32>
    %92 = vector.broadcast %91 : vector<2x8x1xf32> to vector<2x8x8xf32>
    %93 = arith.subf %89, %92 : vector<2x8x8xf32>
    %94 = math.exp %93 : vector<2x8x8xf32>
    %cst_38 = arith.constant dense<0.000000e+00> : vector<2x8xf32>
    %95 = vector.multi_reduction <add>, %94, %cst_38 [2] : vector<2x8x8xf32> to vector<2x8xf32>
    %96 = vector.shape_cast %95 : vector<2x8xf32> to vector<2x8x1xf32>
    %97 = tpu.reciprocal %96 {approx = true} : vector<2x8x1xf32> -> vector<2x8x1xf32>
    %98 = vector.broadcast %97 : vector<2x8x1xf32> to vector<2x8x8xf32>
    %99 = arith.mulf %94, %98 : vector<2x8x8xf32>
    "tpu.trace_start"() <{level = 10 : i32, message = "bqk,bkd->bqd"}> : () -> ()
    %cst_39 = arith.constant dense<0.000000e+00> : vector<2x8x16xf32>
    %100 = tpu.matmul %99, %85, %cst_39 {dimension_numbers = #tpu.dot_dimension_numbers<[2], [1], [1], [2], [0, 0, 0, 1, 1, 2], [0], [0]>} : vector<2x8x8xf32>, vector<2x8x16xf32>, vector<2x8x16xf32> -> vector<2x8x16xf32>
    "tpu.trace_stop"() : () -> ()
    %101 = vector.shape_cast %100 : vector<2x8x16xf32> to vector<16x16xf32>
    %c0_40 = arith.constant 0 : index
    %c0_41 = arith.constant 0 : index
    %c0_42 = arith.constant 0 : index
    %102 = vector.load %arg7[%c0_40, %c0_41, %c0_42] : memref<12x16x32xf32, #tpu.memory_space<vmem>>, vector<1x16x32xf32>
    %103 = vector.shape_cast %102 : vector<1x16x32xf32> to vector<16x32xf32>
    %cst_43 = arith.constant dense<0.000000e+00> : vector<16x32xf32>
    %104 = tpu.matmul %101, %103, %cst_43 {dimension_numbers = #tpu.dot_dimension_numbers<[1], [0], [0], [1], [0, 0, 1, 1], [], []>} : vector<16x16xf32>, vector<16x32xf32>, vector<16x32xf32> -> vector<16x32xf32>
    %c3 = arith.constant 3 : index
    %c0_44 = arith.constant 0 : index
    %c0_45 = arith.constant 0 : index
    %105 = vector.load %arg5[%c3, %c0_44, %c0_45] : memref<36x32x16xf32, #tpu.memory_space<vmem>>, vector<1x32x16xf32>
    %106 = vector.shape_cast %105 : vector<1x32x16xf32> to vector<32x16xf32>
    %cst_46 = arith.constant dense<0.000000e+00> : vector<16x16xf32>
    %107 = tpu.matmul %41, %106, %cst_46 {dimension_numbers = #tpu.dot_dimension_numbers<[1], [0], [0], [1], [0, 0, 1, 1], [], []>} : vector<16x32xf32>, vector<32x16xf32>, vector<16x16xf32> -> vector<16x16xf32>
    %c3_47 = arith.constant 3 : index
    %c0_48 = arith.constant 0 : index
    %108 = vector.load %arg6[%c3_47, %c0_48] : memref<36x16xf32, #tpu.memory_space<vmem>>, vector<1x16xf32>
    %109 = vector.shape_cast %108 : vector<1x16xf32> to vector<16xf32>
    %110 = vector.shape_cast %109 : vector<16xf32> to vector<1x16xf32>
    %111 = vector.broadcast %110 : vector<1x16xf32> to vector<16x16xf32>
    %112 = arith.addf %107, %111 : vector<16x16xf32>
    %113 = vector.shape_cast %112 : vector<16x16xf32> to vector<2x8x16xf32>
    %c4 = arith.constant 4 : index
    %c0_49 = arith.constant 0 : index
    %c0_50 = arith.constant 0 : index
    %114 = vector.load %arg5[%c4, %c0_49, %c0_50] : memref<36x32x16xf32, #tpu.memory_space<vmem>>, vector<1x32x16xf32>
    %115 = vector.shape_cast %114 : vector<1x32x16xf32> to vector<32x16xf32>
    %cst_51 = arith.constant dense<0.000000e+00> : vector<16x16xf32>
    %116 = tpu.matmul %41, %115, %cst_51 {dimension_numbers = #tpu.dot_dimension_numbers<[1], [0], [0], [1], [0, 0, 1, 1], [], []>} : vector<16x32xf32>, vector<32x16xf32>, vector<16x16xf32> -> vector<16x16xf32>
    %c4_52 = arith.constant 4 : index
    %c0_53 = arith.constant 0 : index
    %117 = vector.load %arg6[%c4_52, %c0_53] : memref<36x16xf32, #tpu.memory_space<vmem>>, vector<1x16xf32>
    %118 = vector.shape_cast %117 : vector<1x16xf32> to vector<16xf32>
    %119 = vector.shape_cast %118 : vector<16xf32> to vector<1x16xf32>
    %120 = vector.broadcast %119 : vector<1x16xf32> to vector<16x16xf32>
    %121 = arith.addf %116, %120 : vector<16x16xf32>
    %122 = vector.shape_cast %121 : vector<16x16xf32> to vector<2x8x16xf32>
    %c5 = arith.constant 5 : index
    %c0_54 = arith.constant 0 : index
    %c0_55 = arith.constant 0 : index
    %123 = vector.load %arg5[%c5, %c0_54, %c0_55] : memref<36x32x16xf32, #tpu.memory_space<vmem>>, vector<1x32x16xf32>
    %124 = vector.shape_cast %123 : vector<1x32x16xf32> to vector<32x16xf32>
    %cst_56 = arith.constant dense<0.000000e+00> : vector<16x16xf32>
    %125 = tpu.matmul %41, %124, %cst_56 {dimension_numbers = #tpu.dot_dimension_numbers<[1], [0], [0], [1], [0, 0, 1, 1], [], []>} : vector<16x32xf32>, vector<32x16xf32>, vector<16x16xf32> -> vector<16x16xf32>
    %c5_57 = arith.constant 5 : index
    %c0_58 = arith.constant 0 : index
    %126 = vector.load %arg6[%c5_57, %c0_58] : memref<36x16xf32, #tpu.memory_space<vmem>>, vector<1x16xf32>
    %127 = vector.shape_cast %126 : vector<1x16xf32> to vector<16xf32>
    %128 = vector.shape_cast %127 : vector<16xf32> to vector<1x16xf32>
    %129 = vector.broadcast %128 : vector<1x16xf32> to vector<16x16xf32>
    %130 = arith.addf %125, %129 : vector<16x16xf32>
    %131 = vector.shape_cast %130 : vector<16x16xf32> to vector<2x8x16xf32>
    "tpu.trace_start"() <{level = 10 : i32, message = "bqd,bkd->bqk"}> : () -> ()
    %cst_59 = arith.constant dense<0.000000e+00> : vector<2x8x8xf32>
    %132 = tpu.matmul %113, %122, %cst_59 {dimension_numbers = #tpu.dot_dimension_numbers<[2], [2], [1], [1], [0, 0, 0, 1, 1, 1], [0], [0]>} : vector<2x8x16xf32>, vector<2x8x16xf32>, vector<2x8x8xf32> -> vector<2x8x8xf32>
    "tpu.trace_stop"() : () -> ()
    %cst_60 = arith.constant 2.500000e-01 : f32
    %133 = vector.broadcast %cst_60 : f32 to vector<2x8x8xf32>
    %134 = arith.mulf %132, %133 : vector<2x8x8xf32>
    %135 = arith.addf %134, %58 : vector<2x8x8xf32>
    %cst_61 = arith.constant dense<0xFF800000> : vector<2x8xf32>
    %136 = vector.multi_reduction <maximumf>, %135, %cst_61 [2] : vector<2x8x8xf32> to vector<2x8xf32>
    %137 = vector.shape_cast %136 : vector<2x8xf32> to vector<2x8x1xf32>
    %138 = vector.broadcast %137 : vector<2x8x1xf32> to vector<2x8x8xf32>
    %139 = arith.subf %135, %138 : vector<2x8x8xf32>
    %140 = math.exp %139 : vector<2x8x8xf32>
    %cst_62 = arith.constant dense<0.000000e+00> : vector<2x8xf32>
    %141 = vector.multi_reduction <add>, %140, %cst_62 [2] : vector<2x8x8xf32> to vector<2x8xf32>
    %142 = vector.shape_cast %141 : vector<2x8xf32> to vector<2x8x1xf32>
    %143 = tpu.reciprocal %142 {approx = true} : vector<2x8x1xf32> -> vector<2x8x1xf32>
    %144 = vector.broadcast %143 : vector<2x8x1xf32> to vector<2x8x8xf32>
    %145 = arith.mulf %140, %144 : vector<2x8x8xf32>
    "tpu.trace_start"() <{level = 10 : i32, message = "bqk,bkd->bqd"}> : () -> ()
    %cst_63 = arith.constant dense<0.000000e+00> : vector<2x8x16xf32>
    %146 = tpu.matmul %145, %131, %cst_63 {dimension_numbers = #tpu.dot_dimension_numbers<[2], [1], [1], [2], [0, 0, 0, 1, 1, 2], [0], [0]>} : vector<2x8x8xf32>, vector<2x8x16xf32>, vector<2x8x16xf32> -> vector<2x8x16xf32>
    "tpu.trace_stop"() : () -> ()
    %147 = vector.shape_cast %146 : vector<2x8x16xf32> to vector<16x16xf32>
    %c1_64 = arith.constant 1 : index
    %c0_65 = arith.constant 0 : index
    %c0_66 = arith.constant 0 : index
    %148 = vector.load %arg7[%c1_64, %c0_65, %c0_66] : memref<12x16x32xf32, #tpu.memory_space<vmem>>, vector<1x16x32xf32>
    %149 = vector.shape_cast %148 : vector<1x16x32xf32> to vector<16x32xf32>
    %cst_67 = arith.constant dense<0.000000e+00> : vector<16x32xf32>
    %150 = tpu.matmul %147, %149, %cst_67 {dimension_numbers = #tpu.dot_dimension_numbers<[1], [0], [0], [1], [0, 0, 1, 1], [], []>} : vector<16x16xf32>, vector<16x32xf32>, vector<16x32xf32> -> vector<16x32xf32>
    %151 = arith.addf %104, %150 : vector<16x32xf32>
    %c0_68 = arith.constant 0 : index
    %c0_69 = arith.constant 0 : index
    %152 = vector.load %arg11[%c0_68, %c0_69] : memref<36x32xf32, #tpu.memory_space<vmem>>, vector<1x32xf32>
    %153 = vector.shape_cast %152 : vector<1x32xf32> to vector<32xf32>
    %154 = vector.shape_cast %153 : vector<32xf32> to vector<1x32xf32>
    %155 = vector.broadcast %154 : vector<1x32xf32> to vector<16x32xf32>
    %156 = arith.addf %151, %155 : vector<16x32xf32>
    %157 = arith.addf %156, %41 : vector<16x32xf32>
    %c1_70 = arith.constant 1 : index
    %c0_71 = arith.constant 0 : index
    %158 = vector.load %arg11[%c1_70, %c0_71] : memref<36x32xf32, #tpu.memory_space<vmem>>, vector<1x32xf32>
    %159 = vector.shape_cast %158 : vector<1x32xf32> to vector<32xf32>
    %c2_72 = arith.constant 2 : index
    %c0_73 = arith.constant 0 : index
    %160 = vector.load %arg11[%c2_72, %c0_73] : memref<36x32xf32, #tpu.memory_space<vmem>>, vector<1x32xf32>
    %161 = vector.shape_cast %160 : vector<1x32xf32> to vector<32xf32>
    %cst_74 = arith.constant dense<0.000000e+00> : vector<16xf32>
    %162 = vector.multi_reduction <add>, %157, %cst_74 [1] : vector<16x32xf32> to vector<16xf32>
    %163 = vector.shape_cast %162 : vector<16xf32> to vector<16x1xf32>
    %cst_75 = arith.constant 3.200000e+01 : f32
    %164 = vector.broadcast %cst_75 : f32 to vector<16x1xf32>
    %165 = arith.divf %163, %164 : vector<16x1xf32>
    %166 = vector.broadcast %165 : vector<16x1xf32> to vector<16x32xf32>
    %167 = arith.subf %157, %166 : vector<16x32xf32>
    %168 = arith.mulf %167, %167 : vector<16x32xf32>
    %cst_76 = arith.constant dense<0.000000e+00> : vector<16xf32>
    %169 = vector.multi_reduction <add>, %168, %cst_76 [1] : vector<16x32xf32> to vector<16xf32>
    %170 = vector.shape_cast %169 : vector<16xf32> to vector<16x1xf32>
    %cst_77 = arith.constant 3.200000e+01 : f32
    %171 = vector.broadcast %cst_77 : f32 to vector<16x1xf32>
    %172 = arith.divf %170, %171 : vector<16x1xf32>
    %173 = vector.broadcast %165 : vector<16x1xf32> to vector<16x32xf32>
    %174 = arith.subf %157, %173 : vector<16x32xf32>
    %175 = vector.shape_cast %159 : vector<32xf32> to vector<1x32xf32>
    %176 = vector.broadcast %175 : vector<1x32xf32> to vector<16x32xf32>
    %177 = arith.mulf %176, %174 : vector<16x32xf32>
    %cst_78 = arith.constant 9.99999996E-13 : f32
    %178 = vector.broadcast %cst_78 : f32 to vector<16x1xf32>
    %179 = arith.addf %172, %178 : vector<16x1xf32>
    %180 = math.rsqrt %179 : vector<16x1xf32>
    %181 = vector.broadcast %180 : vector<16x1xf32> to vector<16x32xf32>
    %182 = arith.mulf %177, %181 : vector<16x32xf32>
    %183 = vector.shape_cast %161 : vector<32xf32> to vector<1x32xf32>
    %184 = vector.broadcast %183 : vector<1x32xf32> to vector<16x32xf32>
    %185 = arith.addf %182, %184 : vector<16x32xf32>
    %c0_79 = arith.constant 0 : index
    %c0_80 = arith.constant 0 : index
    %c0_81 = arith.constant 0 : index
    %186 = vector.load %arg8[%c0_79, %c0_80, %c0_81] : memref<6x32x128xf32, #tpu.memory_space<vmem>>, vector<1x32x128xf32>
    %187 = vector.shape_cast %186 : vector<1x32x128xf32> to vector<32x128xf32>
    %cst_82 = arith.constant dense<0.000000e+00> : vector<16x128xf32>
    %188 = tpu.matmul %185, %187, %cst_82 {dimension_numbers = #tpu.dot_dimension_numbers<[1], [0], [0], [1], [0, 0, 1, 1], [], []>} : vector<16x32xf32>, vector<32x128xf32>, vector<16x128xf32> -> vector<16x128xf32>
    %c0_83 = arith.constant 0 : index
    %c0_84 = arith.constant 0 : index
    %189 = vector.load %arg9[%c0_83, %c0_84] : memref<6x128xf32, #tpu.memory_space<vmem>>, vector<1x128xf32>
    %190 = vector.shape_cast %189 : vector<1x128xf32> to vector<128xf32>
    %191 = vector.shape_cast %190 : vector<128xf32> to vector<1x128xf32>
    %192 = vector.broadcast %191 : vector<1x128xf32> to vector<16x128xf32>
    %193 = arith.addf %188, %192 : vector<16x128xf32>
    %cst_85 = arith.constant 5.000000e-01 : f32
    %194 = vector.broadcast %cst_85 : f32 to vector<16x128xf32>
    %195 = arith.mulf %194, %193 : vector<16x128xf32>
    %cst_86 = arith.constant 1.41421354 : f32
    %196 = vector.broadcast %cst_86 : f32 to vector<16x128xf32>
    %197 = arith.divf %193, %196 : vector<16x128xf32>
    %198 = math.erf %197 : vector<16x128xf32>
    %cst_87 = arith.constant 1.000000e+00 : f32
    %199 = vector.broadcast %cst_87 : f32 to vector<16x128xf32>
    %200 = arith.addf %199, %198 : vector<16x128xf32>
    %201 = arith.mulf %195, %200 : vector<16x128xf32>
    %c0_88 = arith.constant 0 : index
    %c0_89 = arith.constant 0 : index
    %c0_90 = arith.constant 0 : index
    %202 = vector.load %arg10[%c0_88, %c0_89, %c0_90] : memref<6x128x32xf32, #tpu.memory_space<vmem>>, vector<1x128x32xf32>
    %203 = vector.shape_cast %202 : vector<1x128x32xf32> to vector<128x32xf32>
    %cst_91 = arith.constant dense<0.000000e+00> : vector<16x32xf32>
    %204 = tpu.matmul %201, %203, %cst_91 {dimension_numbers = #tpu.dot_dimension_numbers<[1], [0], [0], [1], [0, 0, 1, 1], [], []>} : vector<16x128xf32>, vector<128x32xf32>, vector<16x32xf32> -> vector<16x32xf32>
    %c3_92 = arith.constant 3 : index
    %c0_93 = arith.constant 0 : index
    %205 = vector.load %arg11[%c3_92, %c0_93] : memref<36x32xf32, #tpu.memory_space<vmem>>, vector<1x32xf32>
    %206 = vector.shape_cast %205 : vector<1x32xf32> to vector<32xf32>
    %207 = vector.shape_cast %206 : vector<32xf32> to vector<1x32xf32>
    %208 = vector.broadcast %207 : vector<1x32xf32> to vector<16x32xf32>
    %209 = arith.addf %204, %208 : vector<16x32xf32>
    %210 = arith.addf %209, %185 : vector<16x32xf32>
    %c4_94 = arith.constant 4 : index
    %c0_95 = arith.constant 0 : index
    %211 = vector.load %arg11[%c4_94, %c0_95] : memref<36x32xf32, #tpu.memory_space<vmem>>, vector<1x32xf32>
    %212 = vector.shape_cast %211 : vector<1x32xf32> to vector<32xf32>
    %c5_96 = arith.constant 5 : index
    %c0_97 = arith.constant 0 : index
    %213 = vector.load %arg11[%c5_96, %c0_97] : memref<36x32xf32, #tpu.memory_space<vmem>>, vector<1x32xf32>
    %214 = vector.shape_cast %213 : vector<1x32xf32> to vector<32xf32>
    %cst_98 = arith.constant dense<0.000000e+00> : vector<16xf32>
    %215 = vector.multi_reduction <add>, %210, %cst_98 [1] : vector<16x32xf32> to vector<16xf32>
    %216 = vector.shape_cast %215 : vector<16xf32> to vector<16x1xf32>
    %cst_99 = arith.constant 3.200000e+01 : f32
    %217 = vector.broadcast %cst_99 : f32 to vector<16x1xf32>
    %218 = arith.divf %216, %217 : vector<16x1xf32>
    %219 = vector.broadcast %218 : vector<16x1xf32> to vector<16x32xf32>
    %220 = arith.subf %210, %219 : vector<16x32xf32>
    %221 = arith.mulf %220, %220 : vector<16x32xf32>
    %cst_100 = arith.constant dense<0.000000e+00> : vector<16xf32>
    %222 = vector.multi_reduction <add>, %221, %cst_100 [1] : vector<16x32xf32> to vector<16xf32>
    %223 = vector.shape_cast %222 : vector<16xf32> to vector<16x1xf32>
    %cst_101 = arith.constant 3.200000e+01 : f32
    %224 = vector.broadcast %cst_101 : f32 to vector<16x1xf32>
    %225 = arith.divf %223, %224 : vector<16x1xf32>
    %226 = vector.broadcast %218 : vector<16x1xf32> to vector<16x32xf32>
    %227 = arith.subf %210, %226 : vector<16x32xf32>
    %228 = vector.shape_cast %212 : vector<32xf32> to vector<1x32xf32>
    %229 = vector.broadcast %228 : vector<1x32xf32> to vector<16x32xf32>
    %230 = arith.mulf %229, %227 : vector<16x32xf32>
    %cst_102 = arith.constant 9.99999996E-13 : f32
    %231 = vector.broadcast %cst_102 : f32 to vector<16x1xf32>
    %232 = arith.addf %225, %231 : vector<16x1xf32>
    %233 = math.rsqrt %232 : vector<16x1xf32>
    %234 = vector.broadcast %233 : vector<16x1xf32> to vector<16x32xf32>
    %235 = arith.mulf %230, %234 : vector<16x32xf32>
    %236 = vector.shape_cast %214 : vector<32xf32> to vector<1x32xf32>
    %237 = vector.broadcast %236 : vector<1x32xf32> to vector<16x32xf32>
    %238 = arith.addf %235, %237 : vector<16x32xf32>
    %c6 = arith.constant 6 : index
    %c0_103 = arith.constant 0 : index
    %c0_104 = arith.constant 0 : index
    %239 = vector.load %arg5[%c6, %c0_103, %c0_104] : memref<36x32x16xf32, #tpu.memory_space<vmem>>, vector<1x32x16xf32>
    %240 = vector.shape_cast %239 : vector<1x32x16xf32> to vector<32x16xf32>
    %cst_105 = arith.constant dense<0.000000e+00> : vector<16x16xf32>
    %241 = tpu.matmul %238, %240, %cst_105 {dimension_numbers = #tpu.dot_dimension_numbers<[1], [0], [0], [1], [0, 0, 1, 1], [], []>} : vector<16x32xf32>, vector<32x16xf32>, vector<16x16xf32> -> vector<16x16xf32>
    %c6_106 = arith.constant 6 : index
    %c0_107 = arith.constant 0 : index
    %242 = vector.load %arg6[%c6_106, %c0_107] : memref<36x16xf32, #tpu.memory_space<vmem>>, vector<1x16xf32>
    %243 = vector.shape_cast %242 : vector<1x16xf32> to vector<16xf32>
    %244 = vector.shape_cast %243 : vector<16xf32> to vector<1x16xf32>
    %245 = vector.broadcast %244 : vector<1x16xf32> to vector<16x16xf32>
    %246 = arith.addf %241, %245 : vector<16x16xf32>
    %247 = vector.shape_cast %246 : vector<16x16xf32> to vector<2x8x16xf32>
    %c7 = arith.constant 7 : index
    %c0_108 = arith.constant 0 : index
    %c0_109 = arith.constant 0 : index
    %248 = vector.load %arg5[%c7, %c0_108, %c0_109] : memref<36x32x16xf32, #tpu.memory_space<vmem>>, vector<1x32x16xf32>
    %249 = vector.shape_cast %248 : vector<1x32x16xf32> to vector<32x16xf32>
    %cst_110 = arith.constant dense<0.000000e+00> : vector<16x16xf32>
    %250 = tpu.matmul %238, %249, %cst_110 {dimension_numbers = #tpu.dot_dimension_numbers<[1], [0], [0], [1], [0, 0, 1, 1], [], []>} : vector<16x32xf32>, vector<32x16xf32>, vector<16x16xf32> -> vector<16x16xf32>
    %c7_111 = arith.constant 7 : index
    %c0_112 = arith.constant 0 : index
    %251 = vector.load %arg6[%c7_111, %c0_112] : memref<36x16xf32, #tpu.memory_space<vmem>>, vector<1x16xf32>
    %252 = vector.shape_cast %251 : vector<1x16xf32> to vector<16xf32>
    %253 = vector.shape_cast %252 : vector<16xf32> to vector<1x16xf32>
    %254 = vector.broadcast %253 : vector<1x16xf32> to vector<16x16xf32>
    %255 = arith.addf %250, %254 : vector<16x16xf32>
    %256 = vector.shape_cast %255 : vector<16x16xf32> to vector<2x8x16xf32>
    %c8 = arith.constant 8 : index
    %c0_113 = arith.constant 0 : index
    %c0_114 = arith.constant 0 : index
    %257 = vector.load %arg5[%c8, %c0_113, %c0_114] : memref<36x32x16xf32, #tpu.memory_space<vmem>>, vector<1x32x16xf32>
    %258 = vector.shape_cast %257 : vector<1x32x16xf32> to vector<32x16xf32>
    %cst_115 = arith.constant dense<0.000000e+00> : vector<16x16xf32>
    %259 = tpu.matmul %238, %258, %cst_115 {dimension_numbers = #tpu.dot_dimension_numbers<[1], [0], [0], [1], [0, 0, 1, 1], [], []>} : vector<16x32xf32>, vector<32x16xf32>, vector<16x16xf32> -> vector<16x16xf32>
    %c8_116 = arith.constant 8 : index
    %c0_117 = arith.constant 0 : index
    %260 = vector.load %arg6[%c8_116, %c0_117] : memref<36x16xf32, #tpu.memory_space<vmem>>, vector<1x16xf32>
    %261 = vector.shape_cast %260 : vector<1x16xf32> to vector<16xf32>
    %262 = vector.shape_cast %261 : vector<16xf32> to vector<1x16xf32>
    %263 = vector.broadcast %262 : vector<1x16xf32> to vector<16x16xf32>
    %264 = arith.addf %259, %263 : vector<16x16xf32>
    %265 = vector.shape_cast %264 : vector<16x16xf32> to vector<2x8x16xf32>
    "tpu.trace_start"() <{level = 10 : i32, message = "bqd,bkd->bqk"}> : () -> ()
    %cst_118 = arith.constant dense<0.000000e+00> : vector<2x8x8xf32>
    %266 = tpu.matmul %247, %256, %cst_118 {dimension_numbers = #tpu.dot_dimension_numbers<[2], [2], [1], [1], [0, 0, 0, 1, 1, 1], [0], [0]>} : vector<2x8x16xf32>, vector<2x8x16xf32>, vector<2x8x8xf32> -> vector<2x8x8xf32>
    "tpu.trace_stop"() : () -> ()
    %cst_119 = arith.constant 2.500000e-01 : f32
    %267 = vector.broadcast %cst_119 : f32 to vector<2x8x8xf32>
    %268 = arith.mulf %266, %267 : vector<2x8x8xf32>
    %269 = arith.addf %268, %58 : vector<2x8x8xf32>
    %cst_120 = arith.constant dense<0xFF800000> : vector<2x8xf32>
    %270 = vector.multi_reduction <maximumf>, %269, %cst_120 [2] : vector<2x8x8xf32> to vector<2x8xf32>
    %271 = vector.shape_cast %270 : vector<2x8xf32> to vector<2x8x1xf32>
    %272 = vector.broadcast %271 : vector<2x8x1xf32> to vector<2x8x8xf32>
    %273 = arith.subf %269, %272 : vector<2x8x8xf32>
    %274 = math.exp %273 : vector<2x8x8xf32>
    %cst_121 = arith.constant dense<0.000000e+00> : vector<2x8xf32>
    %275 = vector.multi_reduction <add>, %274, %cst_121 [2] : vector<2x8x8xf32> to vector<2x8xf32>
    %276 = vector.shape_cast %275 : vector<2x8xf32> to vector<2x8x1xf32>
    %277 = tpu.reciprocal %276 {approx = true} : vector<2x8x1xf32> -> vector<2x8x1xf32>
    %278 = vector.broadcast %277 : vector<2x8x1xf32> to vector<2x8x8xf32>
    %279 = arith.mulf %274, %278 : vector<2x8x8xf32>
    "tpu.trace_start"() <{level = 10 : i32, message = "bqk,bkd->bqd"}> : () -> ()
    %cst_122 = arith.constant dense<0.000000e+00> : vector<2x8x16xf32>
    %280 = tpu.matmul %279, %265, %cst_122 {dimension_numbers = #tpu.dot_dimension_numbers<[2], [1], [1], [2], [0, 0, 0, 1, 1, 2], [0], [0]>} : vector<2x8x8xf32>, vector<2x8x16xf32>, vector<2x8x16xf32> -> vector<2x8x16xf32>
    "tpu.trace_stop"() : () -> ()
    %281 = vector.shape_cast %280 : vector<2x8x16xf32> to vector<16x16xf32>
    %c2_123 = arith.constant 2 : index
    %c0_124 = arith.constant 0 : index
    %c0_125 = arith.constant 0 : index
    %282 = vector.load %arg7[%c2_123, %c0_124, %c0_125] : memref<12x16x32xf32, #tpu.memory_space<vmem>>, vector<1x16x32xf32>
    %283 = vector.shape_cast %282 : vector<1x16x32xf32> to vector<16x32xf32>
    %cst_126 = arith.constant dense<0.000000e+00> : vector<16x32xf32>
    %284 = tpu.matmul %281, %283, %cst_126 {dimension_numbers = #tpu.dot_dimension_numbers<[1], [0], [0], [1], [0, 0, 1, 1], [], []>} : vector<16x16xf32>, vector<16x32xf32>, vector<16x32xf32> -> vector<16x32xf32>
    %c9 = arith.constant 9 : index
    %c0_127 = arith.constant 0 : index
    %c0_128 = arith.constant 0 : index
    %285 = vector.load %arg5[%c9, %c0_127, %c0_128] : memref<36x32x16xf32, #tpu.memory_space<vmem>>, vector<1x32x16xf32>
    %286 = vector.shape_cast %285 : vector<1x32x16xf32> to vector<32x16xf32>
    %cst_129 = arith.constant dense<0.000000e+00> : vector<16x16xf32>
    %287 = tpu.matmul %238, %286, %cst_129 {dimension_numbers = #tpu.dot_dimension_numbers<[1], [0], [0], [1], [0, 0, 1, 1], [], []>} : vector<16x32xf32>, vector<32x16xf32>, vector<16x16xf32> -> vector<16x16xf32>
    %c9_130 = arith.constant 9 : index
    %c0_131 = arith.constant 0 : index
    %288 = vector.load %arg6[%c9_130, %c0_131] : memref<36x16xf32, #tpu.memory_space<vmem>>, vector<1x16xf32>
    %289 = vector.shape_cast %288 : vector<1x16xf32> to vector<16xf32>
    %290 = vector.shape_cast %289 : vector<16xf32> to vector<1x16xf32>
    %291 = vector.broadcast %290 : vector<1x16xf32> to vector<16x16xf32>
    %292 = arith.addf %287, %291 : vector<16x16xf32>
    %293 = vector.shape_cast %292 : vector<16x16xf32> to vector<2x8x16xf32>
    %c10 = arith.constant 10 : index
    %c0_132 = arith.constant 0 : index
    %c0_133 = arith.constant 0 : index
    %294 = vector.load %arg5[%c10, %c0_132, %c0_133] : memref<36x32x16xf32, #tpu.memory_space<vmem>>, vector<1x32x16xf32>
    %295 = vector.shape_cast %294 : vector<1x32x16xf32> to vector<32x16xf32>
    %cst_134 = arith.constant dense<0.000000e+00> : vector<16x16xf32>
    %296 = tpu.matmul %238, %295, %cst_134 {dimension_numbers = #tpu.dot_dimension_numbers<[1], [0], [0], [1], [0, 0, 1, 1], [], []>} : vector<16x32xf32>, vector<32x16xf32>, vector<16x16xf32> -> vector<16x16xf32>
    %c10_135 = arith.constant 10 : index
    %c0_136 = arith.constant 0 : index
    %297 = vector.load %arg6[%c10_135, %c0_136] : memref<36x16xf32, #tpu.memory_space<vmem>>, vector<1x16xf32>
    %298 = vector.shape_cast %297 : vector<1x16xf32> to vector<16xf32>
    %299 = vector.shape_cast %298 : vector<16xf32> to vector<1x16xf32>
    %300 = vector.broadcast %299 : vector<1x16xf32> to vector<16x16xf32>
    %301 = arith.addf %296, %300 : vector<16x16xf32>
    %302 = vector.shape_cast %301 : vector<16x16xf32> to vector<2x8x16xf32>
    %c11 = arith.constant 11 : index
    %c0_137 = arith.constant 0 : index
    %c0_138 = arith.constant 0 : index
    %303 = vector.load %arg5[%c11, %c0_137, %c0_138] : memref<36x32x16xf32, #tpu.memory_space<vmem>>, vector<1x32x16xf32>
    %304 = vector.shape_cast %303 : vector<1x32x16xf32> to vector<32x16xf32>
    %cst_139 = arith.constant dense<0.000000e+00> : vector<16x16xf32>
    %305 = tpu.matmul %238, %304, %cst_139 {dimension_numbers = #tpu.dot_dimension_numbers<[1], [0], [0], [1], [0, 0, 1, 1], [], []>} : vector<16x32xf32>, vector<32x16xf32>, vector<16x16xf32> -> vector<16x16xf32>
    %c11_140 = arith.constant 11 : index
    %c0_141 = arith.constant 0 : index
    %306 = vector.load %arg6[%c11_140, %c0_141] : memref<36x16xf32, #tpu.memory_space<vmem>>, vector<1x16xf32>
    %307 = vector.shape_cast %306 : vector<1x16xf32> to vector<16xf32>
    %308 = vector.shape_cast %307 : vector<16xf32> to vector<1x16xf32>
    %309 = vector.broadcast %308 : vector<1x16xf32> to vector<16x16xf32>
    %310 = arith.addf %305, %309 : vector<16x16xf32>
    %311 = vector.shape_cast %310 : vector<16x16xf32> to vector<2x8x16xf32>
    "tpu.trace_start"() <{level = 10 : i32, message = "bqd,bkd->bqk"}> : () -> ()
    %cst_142 = arith.constant dense<0.000000e+00> : vector<2x8x8xf32>
    %312 = tpu.matmul %293, %302, %cst_142 {dimension_numbers = #tpu.dot_dimension_numbers<[2], [2], [1], [1], [0, 0, 0, 1, 1, 1], [0], [0]>} : vector<2x8x16xf32>, vector<2x8x16xf32>, vector<2x8x8xf32> -> vector<2x8x8xf32>
    "tpu.trace_stop"() : () -> ()
    %cst_143 = arith.constant 2.500000e-01 : f32
    %313 = vector.broadcast %cst_143 : f32 to vector<2x8x8xf32>
    %314 = arith.mulf %312, %313 : vector<2x8x8xf32>
    %315 = arith.addf %314, %58 : vector<2x8x8xf32>
    %cst_144 = arith.constant dense<0xFF800000> : vector<2x8xf32>
    %316 = vector.multi_reduction <maximumf>, %315, %cst_144 [2] : vector<2x8x8xf32> to vector<2x8xf32>
    %317 = vector.shape_cast %316 : vector<2x8xf32> to vector<2x8x1xf32>
    %318 = vector.broadcast %317 : vector<2x8x1xf32> to vector<2x8x8xf32>
    %319 = arith.subf %315, %318 : vector<2x8x8xf32>
    %320 = math.exp %319 : vector<2x8x8xf32>
    %cst_145 = arith.constant dense<0.000000e+00> : vector<2x8xf32>
    %321 = vector.multi_reduction <add>, %320, %cst_145 [2] : vector<2x8x8xf32> to vector<2x8xf32>
    %322 = vector.shape_cast %321 : vector<2x8xf32> to vector<2x8x1xf32>
    %323 = tpu.reciprocal %322 {approx = true} : vector<2x8x1xf32> -> vector<2x8x1xf32>
    %324 = vector.broadcast %323 : vector<2x8x1xf32> to vector<2x8x8xf32>
    %325 = arith.mulf %320, %324 : vector<2x8x8xf32>
    "tpu.trace_start"() <{level = 10 : i32, message = "bqk,bkd->bqd"}> : () -> ()
    %cst_146 = arith.constant dense<0.000000e+00> : vector<2x8x16xf32>
    %326 = tpu.matmul %325, %311, %cst_146 {dimension_numbers = #tpu.dot_dimension_numbers<[2], [1], [1], [2], [0, 0, 0, 1, 1, 2], [0], [0]>} : vector<2x8x8xf32>, vector<2x8x16xf32>, vector<2x8x16xf32> -> vector<2x8x16xf32>
    "tpu.trace_stop"() : () -> ()
    %327 = vector.shape_cast %326 : vector<2x8x16xf32> to vector<16x16xf32>
    %c3_147 = arith.constant 3 : index
    %c0_148 = arith.constant 0 : index
    %c0_149 = arith.constant 0 : index
    %328 = vector.load %arg7[%c3_147, %c0_148, %c0_149] : memref<12x16x32xf32, #tpu.memory_space<vmem>>, vector<1x16x32xf32>
    %329 = vector.shape_cast %328 : vector<1x16x32xf32> to vector<16x32xf32>
    %cst_150 = arith.constant dense<0.000000e+00> : vector<16x32xf32>
    %330 = tpu.matmul %327, %329, %cst_150 {dimension_numbers = #tpu.dot_dimension_numbers<[1], [0], [0], [1], [0, 0, 1, 1], [], []>} : vector<16x16xf32>, vector<16x32xf32>, vector<16x32xf32> -> vector<16x32xf32>
    %331 = arith.addf %284, %330 : vector<16x32xf32>
    %c6_151 = arith.constant 6 : index
    %c0_152 = arith.constant 0 : index
    %332 = vector.load %arg11[%c6_151, %c0_152] : memref<36x32xf32, #tpu.memory_space<vmem>>, vector<1x32xf32>
    %333 = vector.shape_cast %332 : vector<1x32xf32> to vector<32xf32>
    %334 = vector.shape_cast %333 : vector<32xf32> to vector<1x32xf32>
    %335 = vector.broadcast %334 : vector<1x32xf32> to vector<16x32xf32>
    %336 = arith.addf %331, %335 : vector<16x32xf32>
    %337 = arith.addf %336, %238 : vector<16x32xf32>
    %c7_153 = arith.constant 7 : index
    %c0_154 = arith.constant 0 : index
    %338 = vector.load %arg11[%c7_153, %c0_154] : memref<36x32xf32, #tpu.memory_space<vmem>>, vector<1x32xf32>
    %339 = vector.shape_cast %338 : vector<1x32xf32> to vector<32xf32>
    %c8_155 = arith.constant 8 : index
    %c0_156 = arith.constant 0 : index
    %340 = vector.load %arg11[%c8_155, %c0_156] : memref<36x32xf32, #tpu.memory_space<vmem>>, vector<1x32xf32>
    %341 = vector.shape_cast %340 : vector<1x32xf32> to vector<32xf32>
    %cst_157 = arith.constant dense<0.000000e+00> : vector<16xf32>
    %342 = vector.multi_reduction <add>, %337, %cst_157 [1] : vector<16x32xf32> to vector<16xf32>
    %343 = vector.shape_cast %342 : vector<16xf32> to vector<16x1xf32>
    %cst_158 = arith.constant 3.200000e+01 : f32
    %344 = vector.broadcast %cst_158 : f32 to vector<16x1xf32>
    %345 = arith.divf %343, %344 : vector<16x1xf32>
    %346 = vector.broadcast %345 : vector<16x1xf32> to vector<16x32xf32>
    %347 = arith.subf %337, %346 : vector<16x32xf32>
    %348 = arith.mulf %347, %347 : vector<16x32xf32>
    %cst_159 = arith.constant dense<0.000000e+00> : vector<16xf32>
    %349 = vector.multi_reduction <add>, %348, %cst_159 [1] : vector<16x32xf32> to vector<16xf32>
    %350 = vector.shape_cast %349 : vector<16xf32> to vector<16x1xf32>
    %cst_160 = arith.constant 3.200000e+01 : f32
    %351 = vector.broadcast %cst_160 : f32 to vector<16x1xf32>
    %352 = arith.divf %350, %351 : vector<16x1xf32>
    %353 = vector.broadcast %345 : vector<16x1xf32> to vector<16x32xf32>
    %354 = arith.subf %337, %353 : vector<16x32xf32>
    %355 = vector.shape_cast %339 : vector<32xf32> to vector<1x32xf32>
    %356 = vector.broadcast %355 : vector<1x32xf32> to vector<16x32xf32>
    %357 = arith.mulf %356, %354 : vector<16x32xf32>
    %cst_161 = arith.constant 9.99999996E-13 : f32
    %358 = vector.broadcast %cst_161 : f32 to vector<16x1xf32>
    %359 = arith.addf %352, %358 : vector<16x1xf32>
    %360 = math.rsqrt %359 : vector<16x1xf32>
    %361 = vector.broadcast %360 : vector<16x1xf32> to vector<16x32xf32>
    %362 = arith.mulf %357, %361 : vector<16x32xf32>
    %363 = vector.shape_cast %341 : vector<32xf32> to vector<1x32xf32>
    %364 = vector.broadcast %363 : vector<1x32xf32> to vector<16x32xf32>
    %365 = arith.addf %362, %364 : vector<16x32xf32>
    %c1_162 = arith.constant 1 : index
    %c0_163 = arith.constant 0 : index
    %c0_164 = arith.constant 0 : index
    %366 = vector.load %arg8[%c1_162, %c0_163, %c0_164] : memref<6x32x128xf32, #tpu.memory_space<vmem>>, vector<1x32x128xf32>
    %367 = vector.shape_cast %366 : vector<1x32x128xf32> to vector<32x128xf32>
    %cst_165 = arith.constant dense<0.000000e+00> : vector<16x128xf32>
    %368 = tpu.matmul %365, %367, %cst_165 {dimension_numbers = #tpu.dot_dimension_numbers<[1], [0], [0], [1], [0, 0, 1, 1], [], []>} : vector<16x32xf32>, vector<32x128xf32>, vector<16x128xf32> -> vector<16x128xf32>
    %c1_166 = arith.constant 1 : index
    %c0_167 = arith.constant 0 : index
    %369 = vector.load %arg9[%c1_166, %c0_167] : memref<6x128xf32, #tpu.memory_space<vmem>>, vector<1x128xf32>
    %370 = vector.shape_cast %369 : vector<1x128xf32> to vector<128xf32>
    %371 = vector.shape_cast %370 : vector<128xf32> to vector<1x128xf32>
    %372 = vector.broadcast %371 : vector<1x128xf32> to vector<16x128xf32>
    %373 = arith.addf %368, %372 : vector<16x128xf32>
    %cst_168 = arith.constant 5.000000e-01 : f32
    %374 = vector.broadcast %cst_168 : f32 to vector<16x128xf32>
    %375 = arith.mulf %374, %373 : vector<16x128xf32>
    %cst_169 = arith.constant 1.41421354 : f32
    %376 = vector.broadcast %cst_169 : f32 to vector<16x128xf32>
    %377 = arith.divf %373, %376 : vector<16x128xf32>
    %378 = math.erf %377 : vector<16x128xf32>
    %cst_170 = arith.constant 1.000000e+00 : f32
    %379 = vector.broadcast %cst_170 : f32 to vector<16x128xf32>
    %380 = arith.addf %379, %378 : vector<16x128xf32>
    %381 = arith.mulf %375, %380 : vector<16x128xf32>
    %c1_171 = arith.constant 1 : index
    %c0_172 = arith.constant 0 : index
    %c0_173 = arith.constant 0 : index
    %382 = vector.load %arg10[%c1_171, %c0_172, %c0_173] : memref<6x128x32xf32, #tpu.memory_space<vmem>>, vector<1x128x32xf32>
    %383 = vector.shape_cast %382 : vector<1x128x32xf32> to vector<128x32xf32>
    %cst_174 = arith.constant dense<0.000000e+00> : vector<16x32xf32>
    %384 = tpu.matmul %381, %383, %cst_174 {dimension_numbers = #tpu.dot_dimension_numbers<[1], [0], [0], [1], [0, 0, 1, 1], [], []>} : vector<16x128xf32>, vector<128x32xf32>, vector<16x32xf32> -> vector<16x32xf32>
    %c9_175 = arith.constant 9 : index
    %c0_176 = arith.constant 0 : index
    %385 = vector.load %arg11[%c9_175, %c0_176] : memref<36x32xf32, #tpu.memory_space<vmem>>, vector<1x32xf32>
    %386 = vector.shape_cast %385 : vector<1x32xf32> to vector<32xf32>
    %387 = vector.shape_cast %386 : vector<32xf32> to vector<1x32xf32>
    %388 = vector.broadcast %387 : vector<1x32xf32> to vector<16x32xf32>
    %389 = arith.addf %384, %388 : vector<16x32xf32>
    %390 = arith.addf %389, %365 : vector<16x32xf32>
    %c10_177 = arith.constant 10 : index
    %c0_178 = arith.constant 0 : index
    %391 = vector.load %arg11[%c10_177, %c0_178] : memref<36x32xf32, #tpu.memory_space<vmem>>, vector<1x32xf32>
    %392 = vector.shape_cast %391 : vector<1x32xf32> to vector<32xf32>
    %c11_179 = arith.constant 11 : index
    %c0_180 = arith.constant 0 : index
    %393 = vector.load %arg11[%c11_179, %c0_180] : memref<36x32xf32, #tpu.memory_space<vmem>>, vector<1x32xf32>
    %394 = vector.shape_cast %393 : vector<1x32xf32> to vector<32xf32>
    %cst_181 = arith.constant dense<0.000000e+00> : vector<16xf32>
    %395 = vector.multi_reduction <add>, %390, %cst_181 [1] : vector<16x32xf32> to vector<16xf32>
    %396 = vector.shape_cast %395 : vector<16xf32> to vector<16x1xf32>
    %cst_182 = arith.constant 3.200000e+01 : f32
    %397 = vector.broadcast %cst_182 : f32 to vector<16x1xf32>
    %398 = arith.divf %396, %397 : vector<16x1xf32>
    %399 = vector.broadcast %398 : vector<16x1xf32> to vector<16x32xf32>
    %400 = arith.subf %390, %399 : vector<16x32xf32>
    %401 = arith.mulf %400, %400 : vector<16x32xf32>
    %cst_183 = arith.constant dense<0.000000e+00> : vector<16xf32>
    %402 = vector.multi_reduction <add>, %401, %cst_183 [1] : vector<16x32xf32> to vector<16xf32>
    %403 = vector.shape_cast %402 : vector<16xf32> to vector<16x1xf32>
    %cst_184 = arith.constant 3.200000e+01 : f32
    %404 = vector.broadcast %cst_184 : f32 to vector<16x1xf32>
    %405 = arith.divf %403, %404 : vector<16x1xf32>
    %406 = vector.broadcast %398 : vector<16x1xf32> to vector<16x32xf32>
    %407 = arith.subf %390, %406 : vector<16x32xf32>
    %408 = vector.shape_cast %392 : vector<32xf32> to vector<1x32xf32>
    %409 = vector.broadcast %408 : vector<1x32xf32> to vector<16x32xf32>
    %410 = arith.mulf %409, %407 : vector<16x32xf32>
    %cst_185 = arith.constant 9.99999996E-13 : f32
    %411 = vector.broadcast %cst_185 : f32 to vector<16x1xf32>
    %412 = arith.addf %405, %411 : vector<16x1xf32>
    %413 = math.rsqrt %412 : vector<16x1xf32>
    %414 = vector.broadcast %413 : vector<16x1xf32> to vector<16x32xf32>
    %415 = arith.mulf %410, %414 : vector<16x32xf32>
    %416 = vector.shape_cast %394 : vector<32xf32> to vector<1x32xf32>
    %417 = vector.broadcast %416 : vector<1x32xf32> to vector<16x32xf32>
    %418 = arith.addf %415, %417 : vector<16x32xf32>
    %c12 = arith.constant 12 : index
    %c0_186 = arith.constant 0 : index
    %c0_187 = arith.constant 0 : index
    %419 = vector.load %arg5[%c12, %c0_186, %c0_187] : memref<36x32x16xf32, #tpu.memory_space<vmem>>, vector<1x32x16xf32>
    %420 = vector.shape_cast %419 : vector<1x32x16xf32> to vector<32x16xf32>
    %cst_188 = arith.constant dense<0.000000e+00> : vector<16x16xf32>
    %421 = tpu.matmul %41, %420, %cst_188 {dimension_numbers = #tpu.dot_dimension_numbers<[1], [0], [0], [1], [0, 0, 1, 1], [], []>} : vector<16x32xf32>, vector<32x16xf32>, vector<16x16xf32> -> vector<16x16xf32>
    %c12_189 = arith.constant 12 : index
    %c0_190 = arith.constant 0 : index
    %422 = vector.load %arg6[%c12_189, %c0_190] : memref<36x16xf32, #tpu.memory_space<vmem>>, vector<1x16xf32>
    %423 = vector.shape_cast %422 : vector<1x16xf32> to vector<16xf32>
    %424 = vector.shape_cast %423 : vector<16xf32> to vector<1x16xf32>
    %425 = vector.broadcast %424 : vector<1x16xf32> to vector<16x16xf32>
    %426 = arith.addf %421, %425 : vector<16x16xf32>
    %427 = vector.shape_cast %426 : vector<16x16xf32> to vector<2x8x16xf32>
    %c13 = arith.constant 13 : index
    %c0_191 = arith.constant 0 : index
    %c0_192 = arith.constant 0 : index
    %428 = vector.load %arg5[%c13, %c0_191, %c0_192] : memref<36x32x16xf32, #tpu.memory_space<vmem>>, vector<1x32x16xf32>
    %429 = vector.shape_cast %428 : vector<1x32x16xf32> to vector<32x16xf32>
    %cst_193 = arith.constant dense<0.000000e+00> : vector<16x16xf32>
    %430 = tpu.matmul %41, %429, %cst_193 {dimension_numbers = #tpu.dot_dimension_numbers<[1], [0], [0], [1], [0, 0, 1, 1], [], []>} : vector<16x32xf32>, vector<32x16xf32>, vector<16x16xf32> -> vector<16x16xf32>
    %c13_194 = arith.constant 13 : index
    %c0_195 = arith.constant 0 : index
    %431 = vector.load %arg6[%c13_194, %c0_195] : memref<36x16xf32, #tpu.memory_space<vmem>>, vector<1x16xf32>
    %432 = vector.shape_cast %431 : vector<1x16xf32> to vector<16xf32>
    %433 = vector.shape_cast %432 : vector<16xf32> to vector<1x16xf32>
    %434 = vector.broadcast %433 : vector<1x16xf32> to vector<16x16xf32>
    %435 = arith.addf %430, %434 : vector<16x16xf32>
    %436 = vector.shape_cast %435 : vector<16x16xf32> to vector<2x8x16xf32>
    %c14 = arith.constant 14 : index
    %c0_196 = arith.constant 0 : index
    %c0_197 = arith.constant 0 : index
    %437 = vector.load %arg5[%c14, %c0_196, %c0_197] : memref<36x32x16xf32, #tpu.memory_space<vmem>>, vector<1x32x16xf32>
    %438 = vector.shape_cast %437 : vector<1x32x16xf32> to vector<32x16xf32>
    %cst_198 = arith.constant dense<0.000000e+00> : vector<16x16xf32>
    %439 = tpu.matmul %41, %438, %cst_198 {dimension_numbers = #tpu.dot_dimension_numbers<[1], [0], [0], [1], [0, 0, 1, 1], [], []>} : vector<16x32xf32>, vector<32x16xf32>, vector<16x16xf32> -> vector<16x16xf32>
    %c14_199 = arith.constant 14 : index
    %c0_200 = arith.constant 0 : index
    %440 = vector.load %arg6[%c14_199, %c0_200] : memref<36x16xf32, #tpu.memory_space<vmem>>, vector<1x16xf32>
    %441 = vector.shape_cast %440 : vector<1x16xf32> to vector<16xf32>
    %442 = vector.shape_cast %441 : vector<16xf32> to vector<1x16xf32>
    %443 = vector.broadcast %442 : vector<1x16xf32> to vector<16x16xf32>
    %444 = arith.addf %439, %443 : vector<16x16xf32>
    %445 = vector.shape_cast %444 : vector<16x16xf32> to vector<2x8x16xf32>
    "tpu.trace_start"() <{level = 10 : i32, message = "bqd,bkd->bqk"}> : () -> ()
    %cst_201 = arith.constant dense<0.000000e+00> : vector<2x8x8xf32>
    %446 = tpu.matmul %427, %436, %cst_201 {dimension_numbers = #tpu.dot_dimension_numbers<[2], [2], [1], [1], [0, 0, 0, 1, 1, 1], [0], [0]>} : vector<2x8x16xf32>, vector<2x8x16xf32>, vector<2x8x8xf32> -> vector<2x8x8xf32>
    "tpu.trace_stop"() : () -> ()
    %cst_202 = arith.constant 2.500000e-01 : f32
    %447 = vector.broadcast %cst_202 : f32 to vector<2x8x8xf32>
    %448 = arith.mulf %446, %447 : vector<2x8x8xf32>
    %449 = arith.addf %448, %58 : vector<2x8x8xf32>
    %cst_203 = arith.constant dense<0xFF800000> : vector<2x8xf32>
    %450 = vector.multi_reduction <maximumf>, %449, %cst_203 [2] : vector<2x8x8xf32> to vector<2x8xf32>
    %451 = vector.shape_cast %450 : vector<2x8xf32> to vector<2x8x1xf32>
    %452 = vector.broadcast %451 : vector<2x8x1xf32> to vector<2x8x8xf32>
    %453 = arith.subf %449, %452 : vector<2x8x8xf32>
    %454 = math.exp %453 : vector<2x8x8xf32>
    %cst_204 = arith.constant dense<0.000000e+00> : vector<2x8xf32>
    %455 = vector.multi_reduction <add>, %454, %cst_204 [2] : vector<2x8x8xf32> to vector<2x8xf32>
    %456 = vector.shape_cast %455 : vector<2x8xf32> to vector<2x8x1xf32>
    %457 = tpu.reciprocal %456 {approx = true} : vector<2x8x1xf32> -> vector<2x8x1xf32>
    %458 = vector.broadcast %457 : vector<2x8x1xf32> to vector<2x8x8xf32>
    %459 = arith.mulf %454, %458 : vector<2x8x8xf32>
    "tpu.trace_start"() <{level = 10 : i32, message = "bqk,bkd->bqd"}> : () -> ()
    %cst_205 = arith.constant dense<0.000000e+00> : vector<2x8x16xf32>
    %460 = tpu.matmul %459, %445, %cst_205 {dimension_numbers = #tpu.dot_dimension_numbers<[2], [1], [1], [2], [0, 0, 0, 1, 1, 2], [0], [0]>} : vector<2x8x8xf32>, vector<2x8x16xf32>, vector<2x8x16xf32> -> vector<2x8x16xf32>
    "tpu.trace_stop"() : () -> ()
    %461 = vector.shape_cast %460 : vector<2x8x16xf32> to vector<16x16xf32>
    %c4_206 = arith.constant 4 : index
    %c0_207 = arith.constant 0 : index
    %c0_208 = arith.constant 0 : index
    %462 = vector.load %arg7[%c4_206, %c0_207, %c0_208] : memref<12x16x32xf32, #tpu.memory_space<vmem>>, vector<1x16x32xf32>
    %463 = vector.shape_cast %462 : vector<1x16x32xf32> to vector<16x32xf32>
    %cst_209 = arith.constant dense<0.000000e+00> : vector<16x32xf32>
    %464 = tpu.matmul %461, %463, %cst_209 {dimension_numbers = #tpu.dot_dimension_numbers<[1], [0], [0], [1], [0, 0, 1, 1], [], []>} : vector<16x16xf32>, vector<16x32xf32>, vector<16x32xf32> -> vector<16x32xf32>
    %c15 = arith.constant 15 : index
    %c0_210 = arith.constant 0 : index
    %c0_211 = arith.constant 0 : index
    %465 = vector.load %arg5[%c15, %c0_210, %c0_211] : memref<36x32x16xf32, #tpu.memory_space<vmem>>, vector<1x32x16xf32>
    %466 = vector.shape_cast %465 : vector<1x32x16xf32> to vector<32x16xf32>
    %cst_212 = arith.constant dense<0.000000e+00> : vector<16x16xf32>
    %467 = tpu.matmul %41, %466, %cst_212 {dimension_numbers = #tpu.dot_dimension_numbers<[1], [0], [0], [1], [0, 0, 1, 1], [], []>} : vector<16x32xf32>, vector<32x16xf32>, vector<16x16xf32> -> vector<16x16xf32>
    %c15_213 = arith.constant 15 : index
    %c0_214 = arith.constant 0 : index
    %468 = vector.load %arg6[%c15_213, %c0_214] : memref<36x16xf32, #tpu.memory_space<vmem>>, vector<1x16xf32>
    %469 = vector.shape_cast %468 : vector<1x16xf32> to vector<16xf32>
    %470 = vector.shape_cast %469 : vector<16xf32> to vector<1x16xf32>
    %471 = vector.broadcast %470 : vector<1x16xf32> to vector<16x16xf32>
    %472 = arith.addf %467, %471 : vector<16x16xf32>
    %473 = vector.shape_cast %472 : vector<16x16xf32> to vector<2x8x16xf32>
    %c16 = arith.constant 16 : index
    %c0_215 = arith.constant 0 : index
    %c0_216 = arith.constant 0 : index
    %474 = vector.load %arg5[%c16, %c0_215, %c0_216] : memref<36x32x16xf32, #tpu.memory_space<vmem>>, vector<1x32x16xf32>
    %475 = vector.shape_cast %474 : vector<1x32x16xf32> to vector<32x16xf32>
    %cst_217 = arith.constant dense<0.000000e+00> : vector<16x16xf32>
    %476 = tpu.matmul %41, %475, %cst_217 {dimension_numbers = #tpu.dot_dimension_numbers<[1], [0], [0], [1], [0, 0, 1, 1], [], []>} : vector<16x32xf32>, vector<32x16xf32>, vector<16x16xf32> -> vector<16x16xf32>
    %c16_218 = arith.constant 16 : index
    %c0_219 = arith.constant 0 : index
    %477 = vector.load %arg6[%c16_218, %c0_219] : memref<36x16xf32, #tpu.memory_space<vmem>>, vector<1x16xf32>
    %478 = vector.shape_cast %477 : vector<1x16xf32> to vector<16xf32>
    %479 = vector.shape_cast %478 : vector<16xf32> to vector<1x16xf32>
    %480 = vector.broadcast %479 : vector<1x16xf32> to vector<16x16xf32>
    %481 = arith.addf %476, %480 : vector<16x16xf32>
    %482 = vector.shape_cast %481 : vector<16x16xf32> to vector<2x8x16xf32>
    %c17 = arith.constant 17 : index
    %c0_220 = arith.constant 0 : index
    %c0_221 = arith.constant 0 : index
    %483 = vector.load %arg5[%c17, %c0_220, %c0_221] : memref<36x32x16xf32, #tpu.memory_space<vmem>>, vector<1x32x16xf32>
    %484 = vector.shape_cast %483 : vector<1x32x16xf32> to vector<32x16xf32>
    %cst_222 = arith.constant dense<0.000000e+00> : vector<16x16xf32>
    %485 = tpu.matmul %41, %484, %cst_222 {dimension_numbers = #tpu.dot_dimension_numbers<[1], [0], [0], [1], [0, 0, 1, 1], [], []>} : vector<16x32xf32>, vector<32x16xf32>, vector<16x16xf32> -> vector<16x16xf32>
    %c17_223 = arith.constant 17 : index
    %c0_224 = arith.constant 0 : index
    %486 = vector.load %arg6[%c17_223, %c0_224] : memref<36x16xf32, #tpu.memory_space<vmem>>, vector<1x16xf32>
    %487 = vector.shape_cast %486 : vector<1x16xf32> to vector<16xf32>
    %488 = vector.shape_cast %487 : vector<16xf32> to vector<1x16xf32>
    %489 = vector.broadcast %488 : vector<1x16xf32> to vector<16x16xf32>
    %490 = arith.addf %485, %489 : vector<16x16xf32>
    %491 = vector.shape_cast %490 : vector<16x16xf32> to vector<2x8x16xf32>
    "tpu.trace_start"() <{level = 10 : i32, message = "bqd,bkd->bqk"}> : () -> ()
    %cst_225 = arith.constant dense<0.000000e+00> : vector<2x8x8xf32>
    %492 = tpu.matmul %473, %482, %cst_225 {dimension_numbers = #tpu.dot_dimension_numbers<[2], [2], [1], [1], [0, 0, 0, 1, 1, 1], [0], [0]>} : vector<2x8x16xf32>, vector<2x8x16xf32>, vector<2x8x8xf32> -> vector<2x8x8xf32>
    "tpu.trace_stop"() : () -> ()
    %cst_226 = arith.constant 2.500000e-01 : f32
    %493 = vector.broadcast %cst_226 : f32 to vector<2x8x8xf32>
    %494 = arith.mulf %492, %493 : vector<2x8x8xf32>
    %495 = arith.addf %494, %58 : vector<2x8x8xf32>
    %cst_227 = arith.constant dense<0xFF800000> : vector<2x8xf32>
    %496 = vector.multi_reduction <maximumf>, %495, %cst_227 [2] : vector<2x8x8xf32> to vector<2x8xf32>
    %497 = vector.shape_cast %496 : vector<2x8xf32> to vector<2x8x1xf32>
    %498 = vector.broadcast %497 : vector<2x8x1xf32> to vector<2x8x8xf32>
    %499 = arith.subf %495, %498 : vector<2x8x8xf32>
    %500 = math.exp %499 : vector<2x8x8xf32>
    %cst_228 = arith.constant dense<0.000000e+00> : vector<2x8xf32>
    %501 = vector.multi_reduction <add>, %500, %cst_228 [2] : vector<2x8x8xf32> to vector<2x8xf32>
    %502 = vector.shape_cast %501 : vector<2x8xf32> to vector<2x8x1xf32>
    %503 = tpu.reciprocal %502 {approx = true} : vector<2x8x1xf32> -> vector<2x8x1xf32>
    %504 = vector.broadcast %503 : vector<2x8x1xf32> to vector<2x8x8xf32>
    %505 = arith.mulf %500, %504 : vector<2x8x8xf32>
    "tpu.trace_start"() <{level = 10 : i32, message = "bqk,bkd->bqd"}> : () -> ()
    %cst_229 = arith.constant dense<0.000000e+00> : vector<2x8x16xf32>
    %506 = tpu.matmul %505, %491, %cst_229 {dimension_numbers = #tpu.dot_dimension_numbers<[2], [1], [1], [2], [0, 0, 0, 1, 1, 2], [0], [0]>} : vector<2x8x8xf32>, vector<2x8x16xf32>, vector<2x8x16xf32> -> vector<2x8x16xf32>
    "tpu.trace_stop"() : () -> ()
    %507 = vector.shape_cast %506 : vector<2x8x16xf32> to vector<16x16xf32>
    %c5_230 = arith.constant 5 : index
    %c0_231 = arith.constant 0 : index
    %c0_232 = arith.constant 0 : index
    %508 = vector.load %arg7[%c5_230, %c0_231, %c0_232] : memref<12x16x32xf32, #tpu.memory_space<vmem>>, vector<1x16x32xf32>
    %509 = vector.shape_cast %508 : vector<1x16x32xf32> to vector<16x32xf32>
    %cst_233 = arith.constant dense<0.000000e+00> : vector<16x32xf32>
    %510 = tpu.matmul %507, %509, %cst_233 {dimension_numbers = #tpu.dot_dimension_numbers<[1], [0], [0], [1], [0, 0, 1, 1], [], []>} : vector<16x16xf32>, vector<16x32xf32>, vector<16x32xf32> -> vector<16x32xf32>
    %511 = arith.addf %464, %510 : vector<16x32xf32>
    %c12_234 = arith.constant 12 : index
    %c0_235 = arith.constant 0 : index
    %512 = vector.load %arg11[%c12_234, %c0_235] : memref<36x32xf32, #tpu.memory_space<vmem>>, vector<1x32xf32>
    %513 = vector.shape_cast %512 : vector<1x32xf32> to vector<32xf32>
    %514 = vector.shape_cast %513 : vector<32xf32> to vector<1x32xf32>
    %515 = vector.broadcast %514 : vector<1x32xf32> to vector<16x32xf32>
    %516 = arith.addf %511, %515 : vector<16x32xf32>
    %517 = arith.addf %516, %41 : vector<16x32xf32>
    %c13_236 = arith.constant 13 : index
    %c0_237 = arith.constant 0 : index
    %518 = vector.load %arg11[%c13_236, %c0_237] : memref<36x32xf32, #tpu.memory_space<vmem>>, vector<1x32xf32>
    %519 = vector.shape_cast %518 : vector<1x32xf32> to vector<32xf32>
    %c14_238 = arith.constant 14 : index
    %c0_239 = arith.constant 0 : index
    %520 = vector.load %arg11[%c14_238, %c0_239] : memref<36x32xf32, #tpu.memory_space<vmem>>, vector<1x32xf32>
    %521 = vector.shape_cast %520 : vector<1x32xf32> to vector<32xf32>
    %cst_240 = arith.constant dense<0.000000e+00> : vector<16xf32>
    %522 = vector.multi_reduction <add>, %517, %cst_240 [1] : vector<16x32xf32> to vector<16xf32>
    %523 = vector.shape_cast %522 : vector<16xf32> to vector<16x1xf32>
    %cst_241 = arith.constant 3.200000e+01 : f32
    %524 = vector.broadcast %cst_241 : f32 to vector<16x1xf32>
    %525 = arith.divf %523, %524 : vector<16x1xf32>
    %526 = vector.broadcast %525 : vector<16x1xf32> to vector<16x32xf32>
    %527 = arith.subf %517, %526 : vector<16x32xf32>
    %528 = arith.mulf %527, %527 : vector<16x32xf32>
    %cst_242 = arith.constant dense<0.000000e+00> : vector<16xf32>
    %529 = vector.multi_reduction <add>, %528, %cst_242 [1] : vector<16x32xf32> to vector<16xf32>
    %530 = vector.shape_cast %529 : vector<16xf32> to vector<16x1xf32>
    %cst_243 = arith.constant 3.200000e+01 : f32
    %531 = vector.broadcast %cst_243 : f32 to vector<16x1xf32>
    %532 = arith.divf %530, %531 : vector<16x1xf32>
    %533 = vector.broadcast %525 : vector<16x1xf32> to vector<16x32xf32>
    %534 = arith.subf %517, %533 : vector<16x32xf32>
    %535 = vector.shape_cast %519 : vector<32xf32> to vector<1x32xf32>
    %536 = vector.broadcast %535 : vector<1x32xf32> to vector<16x32xf32>
    %537 = arith.mulf %536, %534 : vector<16x32xf32>
    %cst_244 = arith.constant 9.99999996E-13 : f32
    %538 = vector.broadcast %cst_244 : f32 to vector<16x1xf32>
    %539 = arith.addf %532, %538 : vector<16x1xf32>
    %540 = math.rsqrt %539 : vector<16x1xf32>
    %541 = vector.broadcast %540 : vector<16x1xf32> to vector<16x32xf32>
    %542 = arith.mulf %537, %541 : vector<16x32xf32>
    %543 = vector.shape_cast %521 : vector<32xf32> to vector<1x32xf32>
    %544 = vector.broadcast %543 : vector<1x32xf32> to vector<16x32xf32>
    %545 = arith.addf %542, %544 : vector<16x32xf32>
    %c2_245 = arith.constant 2 : index
    %c0_246 = arith.constant 0 : index
    %c0_247 = arith.constant 0 : index
    %546 = vector.load %arg8[%c2_245, %c0_246, %c0_247] : memref<6x32x128xf32, #tpu.memory_space<vmem>>, vector<1x32x128xf32>
    %547 = vector.shape_cast %546 : vector<1x32x128xf32> to vector<32x128xf32>
    %cst_248 = arith.constant dense<0.000000e+00> : vector<16x128xf32>
    %548 = tpu.matmul %545, %547, %cst_248 {dimension_numbers = #tpu.dot_dimension_numbers<[1], [0], [0], [1], [0, 0, 1, 1], [], []>} : vector<16x32xf32>, vector<32x128xf32>, vector<16x128xf32> -> vector<16x128xf32>
    %c2_249 = arith.constant 2 : index
    %c0_250 = arith.constant 0 : index
    %549 = vector.load %arg9[%c2_249, %c0_250] : memref<6x128xf32, #tpu.memory_space<vmem>>, vector<1x128xf32>
    %550 = vector.shape_cast %549 : vector<1x128xf32> to vector<128xf32>
    %551 = vector.shape_cast %550 : vector<128xf32> to vector<1x128xf32>
    %552 = vector.broadcast %551 : vector<1x128xf32> to vector<16x128xf32>
    %553 = arith.addf %548, %552 : vector<16x128xf32>
    %cst_251 = arith.constant 5.000000e-01 : f32
    %554 = vector.broadcast %cst_251 : f32 to vector<16x128xf32>
    %555 = arith.mulf %554, %553 : vector<16x128xf32>
    %cst_252 = arith.constant 1.41421354 : f32
    %556 = vector.broadcast %cst_252 : f32 to vector<16x128xf32>
    %557 = arith.divf %553, %556 : vector<16x128xf32>
    %558 = math.erf %557 : vector<16x128xf32>
    %cst_253 = arith.constant 1.000000e+00 : f32
    %559 = vector.broadcast %cst_253 : f32 to vector<16x128xf32>
    %560 = arith.addf %559, %558 : vector<16x128xf32>
    %561 = arith.mulf %555, %560 : vector<16x128xf32>
    %c2_254 = arith.constant 2 : index
    %c0_255 = arith.constant 0 : index
    %c0_256 = arith.constant 0 : index
    %562 = vector.load %arg10[%c2_254, %c0_255, %c0_256] : memref<6x128x32xf32, #tpu.memory_space<vmem>>, vector<1x128x32xf32>
    %563 = vector.shape_cast %562 : vector<1x128x32xf32> to vector<128x32xf32>
    %cst_257 = arith.constant dense<0.000000e+00> : vector<16x32xf32>
    %564 = tpu.matmul %561, %563, %cst_257 {dimension_numbers = #tpu.dot_dimension_numbers<[1], [0], [0], [1], [0, 0, 1, 1], [], []>} : vector<16x128xf32>, vector<128x32xf32>, vector<16x32xf32> -> vector<16x32xf32>
    %c15_258 = arith.constant 15 : index
    %c0_259 = arith.constant 0 : index
    %565 = vector.load %arg11[%c15_258, %c0_259] : memref<36x32xf32, #tpu.memory_space<vmem>>, vector<1x32xf32>
    %566 = vector.shape_cast %565 : vector<1x32xf32> to vector<32xf32>
    %567 = vector.shape_cast %566 : vector<32xf32> to vector<1x32xf32>
    %568 = vector.broadcast %567 : vector<1x32xf32> to vector<16x32xf32>
    %569 = arith.addf %564, %568 : vector<16x32xf32>
    %570 = arith.addf %569, %545 : vector<16x32xf32>
    %c16_260 = arith.constant 16 : index
    %c0_261 = arith.constant 0 : index
    %571 = vector.load %arg11[%c16_260, %c0_261] : memref<36x32xf32, #tpu.memory_space<vmem>>, vector<1x32xf32>
    %572 = vector.shape_cast %571 : vector<1x32xf32> to vector<32xf32>
    %c17_262 = arith.constant 17 : index
    %c0_263 = arith.constant 0 : index
    %573 = vector.load %arg11[%c17_262, %c0_263] : memref<36x32xf32, #tpu.memory_space<vmem>>, vector<1x32xf32>
    %574 = vector.shape_cast %573 : vector<1x32xf32> to vector<32xf32>
    %cst_264 = arith.constant dense<0.000000e+00> : vector<16xf32>
    %575 = vector.multi_reduction <add>, %570, %cst_264 [1] : vector<16x32xf32> to vector<16xf32>
    %576 = vector.shape_cast %575 : vector<16xf32> to vector<16x1xf32>
    %cst_265 = arith.constant 3.200000e+01 : f32
    %577 = vector.broadcast %cst_265 : f32 to vector<16x1xf32>
    %578 = arith.divf %576, %577 : vector<16x1xf32>
    %579 = vector.broadcast %578 : vector<16x1xf32> to vector<16x32xf32>
    %580 = arith.subf %570, %579 : vector<16x32xf32>
    %581 = arith.mulf %580, %580 : vector<16x32xf32>
    %cst_266 = arith.constant dense<0.000000e+00> : vector<16xf32>
    %582 = vector.multi_reduction <add>, %581, %cst_266 [1] : vector<16x32xf32> to vector<16xf32>
    %583 = vector.shape_cast %582 : vector<16xf32> to vector<16x1xf32>
    %cst_267 = arith.constant 3.200000e+01 : f32
    %584 = vector.broadcast %cst_267 : f32 to vector<16x1xf32>
    %585 = arith.divf %583, %584 : vector<16x1xf32>
    %586 = vector.broadcast %578 : vector<16x1xf32> to vector<16x32xf32>
    %587 = arith.subf %570, %586 : vector<16x32xf32>
    %588 = vector.shape_cast %572 : vector<32xf32> to vector<1x32xf32>
    %589 = vector.broadcast %588 : vector<1x32xf32> to vector<16x32xf32>
    %590 = arith.mulf %589, %587 : vector<16x32xf32>
    %cst_268 = arith.constant 9.99999996E-13 : f32
    %591 = vector.broadcast %cst_268 : f32 to vector<16x1xf32>
    %592 = arith.addf %585, %591 : vector<16x1xf32>
    %593 = math.rsqrt %592 : vector<16x1xf32>
    %594 = vector.broadcast %593 : vector<16x1xf32> to vector<16x32xf32>
    %595 = arith.mulf %590, %594 : vector<16x32xf32>
    %596 = vector.shape_cast %574 : vector<32xf32> to vector<1x32xf32>
    %597 = vector.broadcast %596 : vector<1x32xf32> to vector<16x32xf32>
    %598 = arith.addf %595, %597 : vector<16x32xf32>
    %c18 = arith.constant 18 : index
    %c0_269 = arith.constant 0 : index
    %c0_270 = arith.constant 0 : index
    %599 = vector.load %arg5[%c18, %c0_269, %c0_270] : memref<36x32x16xf32, #tpu.memory_space<vmem>>, vector<1x32x16xf32>
    %600 = vector.shape_cast %599 : vector<1x32x16xf32> to vector<32x16xf32>
    %cst_271 = arith.constant dense<0.000000e+00> : vector<16x16xf32>
    %601 = tpu.matmul %598, %600, %cst_271 {dimension_numbers = #tpu.dot_dimension_numbers<[1], [0], [0], [1], [0, 0, 1, 1], [], []>} : vector<16x32xf32>, vector<32x16xf32>, vector<16x16xf32> -> vector<16x16xf32>
    %c18_272 = arith.constant 18 : index
    %c0_273 = arith.constant 0 : index
    %602 = vector.load %arg6[%c18_272, %c0_273] : memref<36x16xf32, #tpu.memory_space<vmem>>, vector<1x16xf32>
    %603 = vector.shape_cast %602 : vector<1x16xf32> to vector<16xf32>
    %604 = vector.shape_cast %603 : vector<16xf32> to vector<1x16xf32>
    %605 = vector.broadcast %604 : vector<1x16xf32> to vector<16x16xf32>
    %606 = arith.addf %601, %605 : vector<16x16xf32>
    %607 = vector.shape_cast %606 : vector<16x16xf32> to vector<2x8x16xf32>
    %c19 = arith.constant 19 : index
    %c0_274 = arith.constant 0 : index
    %c0_275 = arith.constant 0 : index
    %608 = vector.load %arg5[%c19, %c0_274, %c0_275] : memref<36x32x16xf32, #tpu.memory_space<vmem>>, vector<1x32x16xf32>
    %609 = vector.shape_cast %608 : vector<1x32x16xf32> to vector<32x16xf32>
    %cst_276 = arith.constant dense<0.000000e+00> : vector<16x16xf32>
    %610 = tpu.matmul %598, %609, %cst_276 {dimension_numbers = #tpu.dot_dimension_numbers<[1], [0], [0], [1], [0, 0, 1, 1], [], []>} : vector<16x32xf32>, vector<32x16xf32>, vector<16x16xf32> -> vector<16x16xf32>
    %c19_277 = arith.constant 19 : index
    %c0_278 = arith.constant 0 : index
    %611 = vector.load %arg6[%c19_277, %c0_278] : memref<36x16xf32, #tpu.memory_space<vmem>>, vector<1x16xf32>
    %612 = vector.shape_cast %611 : vector<1x16xf32> to vector<16xf32>
    %613 = vector.shape_cast %612 : vector<16xf32> to vector<1x16xf32>
    %614 = vector.broadcast %613 : vector<1x16xf32> to vector<16x16xf32>
    %615 = arith.addf %610, %614 : vector<16x16xf32>
    %616 = vector.shape_cast %615 : vector<16x16xf32> to vector<2x8x16xf32>
    %c20 = arith.constant 20 : index
    %c0_279 = arith.constant 0 : index
    %c0_280 = arith.constant 0 : index
    %617 = vector.load %arg5[%c20, %c0_279, %c0_280] : memref<36x32x16xf32, #tpu.memory_space<vmem>>, vector<1x32x16xf32>
    %618 = vector.shape_cast %617 : vector<1x32x16xf32> to vector<32x16xf32>
    %cst_281 = arith.constant dense<0.000000e+00> : vector<16x16xf32>
    %619 = tpu.matmul %598, %618, %cst_281 {dimension_numbers = #tpu.dot_dimension_numbers<[1], [0], [0], [1], [0, 0, 1, 1], [], []>} : vector<16x32xf32>, vector<32x16xf32>, vector<16x16xf32> -> vector<16x16xf32>
    %c20_282 = arith.constant 20 : index
    %c0_283 = arith.constant 0 : index
    %620 = vector.load %arg6[%c20_282, %c0_283] : memref<36x16xf32, #tpu.memory_space<vmem>>, vector<1x16xf32>
    %621 = vector.shape_cast %620 : vector<1x16xf32> to vector<16xf32>
    %622 = vector.shape_cast %621 : vector<16xf32> to vector<1x16xf32>
    %623 = vector.broadcast %622 : vector<1x16xf32> to vector<16x16xf32>
    %624 = arith.addf %619, %623 : vector<16x16xf32>
    %625 = vector.shape_cast %624 : vector<16x16xf32> to vector<2x8x16xf32>
    "tpu.trace_start"() <{level = 10 : i32, message = "bqd,bkd->bqk"}> : () -> ()
    %cst_284 = arith.constant dense<0.000000e+00> : vector<2x8x8xf32>
    %626 = tpu.matmul %607, %616, %cst_284 {dimension_numbers = #tpu.dot_dimension_numbers<[2], [2], [1], [1], [0, 0, 0, 1, 1, 1], [0], [0]>} : vector<2x8x16xf32>, vector<2x8x16xf32>, vector<2x8x8xf32> -> vector<2x8x8xf32>
    "tpu.trace_stop"() : () -> ()
    %cst_285 = arith.constant 2.500000e-01 : f32
    %627 = vector.broadcast %cst_285 : f32 to vector<2x8x8xf32>
    %628 = arith.mulf %626, %627 : vector<2x8x8xf32>
    %629 = arith.addf %628, %58 : vector<2x8x8xf32>
    %cst_286 = arith.constant dense<0xFF800000> : vector<2x8xf32>
    %630 = vector.multi_reduction <maximumf>, %629, %cst_286 [2] : vector<2x8x8xf32> to vector<2x8xf32>
    %631 = vector.shape_cast %630 : vector<2x8xf32> to vector<2x8x1xf32>
    %632 = vector.broadcast %631 : vector<2x8x1xf32> to vector<2x8x8xf32>
    %633 = arith.subf %629, %632 : vector<2x8x8xf32>
    %634 = math.exp %633 : vector<2x8x8xf32>
    %cst_287 = arith.constant dense<0.000000e+00> : vector<2x8xf32>
    %635 = vector.multi_reduction <add>, %634, %cst_287 [2] : vector<2x8x8xf32> to vector<2x8xf32>
    %636 = vector.shape_cast %635 : vector<2x8xf32> to vector<2x8x1xf32>
    %637 = tpu.reciprocal %636 {approx = true} : vector<2x8x1xf32> -> vector<2x8x1xf32>
    %638 = vector.broadcast %637 : vector<2x8x1xf32> to vector<2x8x8xf32>
    %639 = arith.mulf %634, %638 : vector<2x8x8xf32>
    "tpu.trace_start"() <{level = 10 : i32, message = "bqk,bkd->bqd"}> : () -> ()
    %cst_288 = arith.constant dense<0.000000e+00> : vector<2x8x16xf32>
    %640 = tpu.matmul %639, %625, %cst_288 {dimension_numbers = #tpu.dot_dimension_numbers<[2], [1], [1], [2], [0, 0, 0, 1, 1, 2], [0], [0]>} : vector<2x8x8xf32>, vector<2x8x16xf32>, vector<2x8x16xf32> -> vector<2x8x16xf32>
    "tpu.trace_stop"() : () -> ()
    %641 = vector.shape_cast %640 : vector<2x8x16xf32> to vector<16x16xf32>
    %c6_289 = arith.constant 6 : index
    %c0_290 = arith.constant 0 : index
    %c0_291 = arith.constant 0 : index
    %642 = vector.load %arg7[%c6_289, %c0_290, %c0_291] : memref<12x16x32xf32, #tpu.memory_space<vmem>>, vector<1x16x32xf32>
    %643 = vector.shape_cast %642 : vector<1x16x32xf32> to vector<16x32xf32>
    %cst_292 = arith.constant dense<0.000000e+00> : vector<16x32xf32>
    %644 = tpu.matmul %641, %643, %cst_292 {dimension_numbers = #tpu.dot_dimension_numbers<[1], [0], [0], [1], [0, 0, 1, 1], [], []>} : vector<16x16xf32>, vector<16x32xf32>, vector<16x32xf32> -> vector<16x32xf32>
    %c21 = arith.constant 21 : index
    %c0_293 = arith.constant 0 : index
    %c0_294 = arith.constant 0 : index
    %645 = vector.load %arg5[%c21, %c0_293, %c0_294] : memref<36x32x16xf32, #tpu.memory_space<vmem>>, vector<1x32x16xf32>
    %646 = vector.shape_cast %645 : vector<1x32x16xf32> to vector<32x16xf32>
    %cst_295 = arith.constant dense<0.000000e+00> : vector<16x16xf32>
    %647 = tpu.matmul %598, %646, %cst_295 {dimension_numbers = #tpu.dot_dimension_numbers<[1], [0], [0], [1], [0, 0, 1, 1], [], []>} : vector<16x32xf32>, vector<32x16xf32>, vector<16x16xf32> -> vector<16x16xf32>
    %c21_296 = arith.constant 21 : index
    %c0_297 = arith.constant 0 : index
    %648 = vector.load %arg6[%c21_296, %c0_297] : memref<36x16xf32, #tpu.memory_space<vmem>>, vector<1x16xf32>
    %649 = vector.shape_cast %648 : vector<1x16xf32> to vector<16xf32>
    %650 = vector.shape_cast %649 : vector<16xf32> to vector<1x16xf32>
    %651 = vector.broadcast %650 : vector<1x16xf32> to vector<16x16xf32>
    %652 = arith.addf %647, %651 : vector<16x16xf32>
    %653 = vector.shape_cast %652 : vector<16x16xf32> to vector<2x8x16xf32>
    %c22 = arith.constant 22 : index
    %c0_298 = arith.constant 0 : index
    %c0_299 = arith.constant 0 : index
    %654 = vector.load %arg5[%c22, %c0_298, %c0_299] : memref<36x32x16xf32, #tpu.memory_space<vmem>>, vector<1x32x16xf32>
    %655 = vector.shape_cast %654 : vector<1x32x16xf32> to vector<32x16xf32>
    %cst_300 = arith.constant dense<0.000000e+00> : vector<16x16xf32>
    %656 = tpu.matmul %598, %655, %cst_300 {dimension_numbers = #tpu.dot_dimension_numbers<[1], [0], [0], [1], [0, 0, 1, 1], [], []>} : vector<16x32xf32>, vector<32x16xf32>, vector<16x16xf32> -> vector<16x16xf32>
    %c22_301 = arith.constant 22 : index
    %c0_302 = arith.constant 0 : index
    %657 = vector.load %arg6[%c22_301, %c0_302] : memref<36x16xf32, #tpu.memory_space<vmem>>, vector<1x16xf32>
    %658 = vector.shape_cast %657 : vector<1x16xf32> to vector<16xf32>
    %659 = vector.shape_cast %658 : vector<16xf32> to vector<1x16xf32>
    %660 = vector.broadcast %659 : vector<1x16xf32> to vector<16x16xf32>
    %661 = arith.addf %656, %660 : vector<16x16xf32>
    %662 = vector.shape_cast %661 : vector<16x16xf32> to vector<2x8x16xf32>
    %c23 = arith.constant 23 : index
    %c0_303 = arith.constant 0 : index
    %c0_304 = arith.constant 0 : index
    %663 = vector.load %arg5[%c23, %c0_303, %c0_304] : memref<36x32x16xf32, #tpu.memory_space<vmem>>, vector<1x32x16xf32>
    %664 = vector.shape_cast %663 : vector<1x32x16xf32> to vector<32x16xf32>
    %cst_305 = arith.constant dense<0.000000e+00> : vector<16x16xf32>
    %665 = tpu.matmul %598, %664, %cst_305 {dimension_numbers = #tpu.dot_dimension_numbers<[1], [0], [0], [1], [0, 0, 1, 1], [], []>} : vector<16x32xf32>, vector<32x16xf32>, vector<16x16xf32> -> vector<16x16xf32>
    %c23_306 = arith.constant 23 : index
    %c0_307 = arith.constant 0 : index
    %666 = vector.load %arg6[%c23_306, %c0_307] : memref<36x16xf32, #tpu.memory_space<vmem>>, vector<1x16xf32>
    %667 = vector.shape_cast %666 : vector<1x16xf32> to vector<16xf32>
    %668 = vector.shape_cast %667 : vector<16xf32> to vector<1x16xf32>
    %669 = vector.broadcast %668 : vector<1x16xf32> to vector<16x16xf32>
    %670 = arith.addf %665, %669 : vector<16x16xf32>
    %671 = vector.shape_cast %670 : vector<16x16xf32> to vector<2x8x16xf32>
    "tpu.trace_start"() <{level = 10 : i32, message = "bqd,bkd->bqk"}> : () -> ()
    %cst_308 = arith.constant dense<0.000000e+00> : vector<2x8x8xf32>
    %672 = tpu.matmul %653, %662, %cst_308 {dimension_numbers = #tpu.dot_dimension_numbers<[2], [2], [1], [1], [0, 0, 0, 1, 1, 1], [0], [0]>} : vector<2x8x16xf32>, vector<2x8x16xf32>, vector<2x8x8xf32> -> vector<2x8x8xf32>
    "tpu.trace_stop"() : () -> ()
    %cst_309 = arith.constant 2.500000e-01 : f32
    %673 = vector.broadcast %cst_309 : f32 to vector<2x8x8xf32>
    %674 = arith.mulf %672, %673 : vector<2x8x8xf32>
    %675 = arith.addf %674, %58 : vector<2x8x8xf32>
    %cst_310 = arith.constant dense<0xFF800000> : vector<2x8xf32>
    %676 = vector.multi_reduction <maximumf>, %675, %cst_310 [2] : vector<2x8x8xf32> to vector<2x8xf32>
    %677 = vector.shape_cast %676 : vector<2x8xf32> to vector<2x8x1xf32>
    %678 = vector.broadcast %677 : vector<2x8x1xf32> to vector<2x8x8xf32>
    %679 = arith.subf %675, %678 : vector<2x8x8xf32>
    %680 = math.exp %679 : vector<2x8x8xf32>
    %cst_311 = arith.constant dense<0.000000e+00> : vector<2x8xf32>
    %681 = vector.multi_reduction <add>, %680, %cst_311 [2] : vector<2x8x8xf32> to vector<2x8xf32>
    %682 = vector.shape_cast %681 : vector<2x8xf32> to vector<2x8x1xf32>
    %683 = tpu.reciprocal %682 {approx = true} : vector<2x8x1xf32> -> vector<2x8x1xf32>
    %684 = vector.broadcast %683 : vector<2x8x1xf32> to vector<2x8x8xf32>
    %685 = arith.mulf %680, %684 : vector<2x8x8xf32>
    "tpu.trace_start"() <{level = 10 : i32, message = "bqk,bkd->bqd"}> : () -> ()
    %cst_312 = arith.constant dense<0.000000e+00> : vector<2x8x16xf32>
    %686 = tpu.matmul %685, %671, %cst_312 {dimension_numbers = #tpu.dot_dimension_numbers<[2], [1], [1], [2], [0, 0, 0, 1, 1, 2], [0], [0]>} : vector<2x8x8xf32>, vector<2x8x16xf32>, vector<2x8x16xf32> -> vector<2x8x16xf32>
    "tpu.trace_stop"() : () -> ()
    %687 = vector.shape_cast %686 : vector<2x8x16xf32> to vector<16x16xf32>
    %c7_313 = arith.constant 7 : index
    %c0_314 = arith.constant 0 : index
    %c0_315 = arith.constant 0 : index
    %688 = vector.load %arg7[%c7_313, %c0_314, %c0_315] : memref<12x16x32xf32, #tpu.memory_space<vmem>>, vector<1x16x32xf32>
    %689 = vector.shape_cast %688 : vector<1x16x32xf32> to vector<16x32xf32>
    %cst_316 = arith.constant dense<0.000000e+00> : vector<16x32xf32>
    %690 = tpu.matmul %687, %689, %cst_316 {dimension_numbers = #tpu.dot_dimension_numbers<[1], [0], [0], [1], [0, 0, 1, 1], [], []>} : vector<16x16xf32>, vector<16x32xf32>, vector<16x32xf32> -> vector<16x32xf32>
    %691 = arith.addf %644, %690 : vector<16x32xf32>
    %c18_317 = arith.constant 18 : index
    %c0_318 = arith.constant 0 : index
    %692 = vector.load %arg11[%c18_317, %c0_318] : memref<36x32xf32, #tpu.memory_space<vmem>>, vector<1x32xf32>
    %693 = vector.shape_cast %692 : vector<1x32xf32> to vector<32xf32>
    %694 = vector.shape_cast %693 : vector<32xf32> to vector<1x32xf32>
    %695 = vector.broadcast %694 : vector<1x32xf32> to vector<16x32xf32>
    %696 = arith.addf %691, %695 : vector<16x32xf32>
    %697 = arith.addf %696, %598 : vector<16x32xf32>
    %c19_319 = arith.constant 19 : index
    %c0_320 = arith.constant 0 : index
    %698 = vector.load %arg11[%c19_319, %c0_320] : memref<36x32xf32, #tpu.memory_space<vmem>>, vector<1x32xf32>
    %699 = vector.shape_cast %698 : vector<1x32xf32> to vector<32xf32>
    %c20_321 = arith.constant 20 : index
    %c0_322 = arith.constant 0 : index
    %700 = vector.load %arg11[%c20_321, %c0_322] : memref<36x32xf32, #tpu.memory_space<vmem>>, vector<1x32xf32>
    %701 = vector.shape_cast %700 : vector<1x32xf32> to vector<32xf32>
    %cst_323 = arith.constant dense<0.000000e+00> : vector<16xf32>
    %702 = vector.multi_reduction <add>, %697, %cst_323 [1] : vector<16x32xf32> to vector<16xf32>
    %703 = vector.shape_cast %702 : vector<16xf32> to vector<16x1xf32>
    %cst_324 = arith.constant 3.200000e+01 : f32
    %704 = vector.broadcast %cst_324 : f32 to vector<16x1xf32>
    %705 = arith.divf %703, %704 : vector<16x1xf32>
    %706 = vector.broadcast %705 : vector<16x1xf32> to vector<16x32xf32>
    %707 = arith.subf %697, %706 : vector<16x32xf32>
    %708 = arith.mulf %707, %707 : vector<16x32xf32>
    %cst_325 = arith.constant dense<0.000000e+00> : vector<16xf32>
    %709 = vector.multi_reduction <add>, %708, %cst_325 [1] : vector<16x32xf32> to vector<16xf32>
    %710 = vector.shape_cast %709 : vector<16xf32> to vector<16x1xf32>
    %cst_326 = arith.constant 3.200000e+01 : f32
    %711 = vector.broadcast %cst_326 : f32 to vector<16x1xf32>
    %712 = arith.divf %710, %711 : vector<16x1xf32>
    %713 = vector.broadcast %705 : vector<16x1xf32> to vector<16x32xf32>
    %714 = arith.subf %697, %713 : vector<16x32xf32>
    %715 = vector.shape_cast %699 : vector<32xf32> to vector<1x32xf32>
    %716 = vector.broadcast %715 : vector<1x32xf32> to vector<16x32xf32>
    %717 = arith.mulf %716, %714 : vector<16x32xf32>
    %cst_327 = arith.constant 9.99999996E-13 : f32
    %718 = vector.broadcast %cst_327 : f32 to vector<16x1xf32>
    %719 = arith.addf %712, %718 : vector<16x1xf32>
    %720 = math.rsqrt %719 : vector<16x1xf32>
    %721 = vector.broadcast %720 : vector<16x1xf32> to vector<16x32xf32>
    %722 = arith.mulf %717, %721 : vector<16x32xf32>
    %723 = vector.shape_cast %701 : vector<32xf32> to vector<1x32xf32>
    %724 = vector.broadcast %723 : vector<1x32xf32> to vector<16x32xf32>
    %725 = arith.addf %722, %724 : vector<16x32xf32>
    %c3_328 = arith.constant 3 : index
    %c0_329 = arith.constant 0 : index
    %c0_330 = arith.constant 0 : index
    %726 = vector.load %arg8[%c3_328, %c0_329, %c0_330] : memref<6x32x128xf32, #tpu.memory_space<vmem>>, vector<1x32x128xf32>
    %727 = vector.shape_cast %726 : vector<1x32x128xf32> to vector<32x128xf32>
    %cst_331 = arith.constant dense<0.000000e+00> : vector<16x128xf32>
    %728 = tpu.matmul %725, %727, %cst_331 {dimension_numbers = #tpu.dot_dimension_numbers<[1], [0], [0], [1], [0, 0, 1, 1], [], []>} : vector<16x32xf32>, vector<32x128xf32>, vector<16x128xf32> -> vector<16x128xf32>
    %c3_332 = arith.constant 3 : index
    %c0_333 = arith.constant 0 : index
    %729 = vector.load %arg9[%c3_332, %c0_333] : memref<6x128xf32, #tpu.memory_space<vmem>>, vector<1x128xf32>
    %730 = vector.shape_cast %729 : vector<1x128xf32> to vector<128xf32>
    %731 = vector.shape_cast %730 : vector<128xf32> to vector<1x128xf32>
    %732 = vector.broadcast %731 : vector<1x128xf32> to vector<16x128xf32>
    %733 = arith.addf %728, %732 : vector<16x128xf32>
    %cst_334 = arith.constant 5.000000e-01 : f32
    %734 = vector.broadcast %cst_334 : f32 to vector<16x128xf32>
    %735 = arith.mulf %734, %733 : vector<16x128xf32>
    %cst_335 = arith.constant 1.41421354 : f32
    %736 = vector.broadcast %cst_335 : f32 to vector<16x128xf32>
    %737 = arith.divf %733, %736 : vector<16x128xf32>
    %738 = math.erf %737 : vector<16x128xf32>
    %cst_336 = arith.constant 1.000000e+00 : f32
    %739 = vector.broadcast %cst_336 : f32 to vector<16x128xf32>
    %740 = arith.addf %739, %738 : vector<16x128xf32>
    %741 = arith.mulf %735, %740 : vector<16x128xf32>
    %c3_337 = arith.constant 3 : index
    %c0_338 = arith.constant 0 : index
    %c0_339 = arith.constant 0 : index
    %742 = vector.load %arg10[%c3_337, %c0_338, %c0_339] : memref<6x128x32xf32, #tpu.memory_space<vmem>>, vector<1x128x32xf32>
    %743 = vector.shape_cast %742 : vector<1x128x32xf32> to vector<128x32xf32>
    %cst_340 = arith.constant dense<0.000000e+00> : vector<16x32xf32>
    %744 = tpu.matmul %741, %743, %cst_340 {dimension_numbers = #tpu.dot_dimension_numbers<[1], [0], [0], [1], [0, 0, 1, 1], [], []>} : vector<16x128xf32>, vector<128x32xf32>, vector<16x32xf32> -> vector<16x32xf32>
    %c21_341 = arith.constant 21 : index
    %c0_342 = arith.constant 0 : index
    %745 = vector.load %arg11[%c21_341, %c0_342] : memref<36x32xf32, #tpu.memory_space<vmem>>, vector<1x32xf32>
    %746 = vector.shape_cast %745 : vector<1x32xf32> to vector<32xf32>
    %747 = vector.shape_cast %746 : vector<32xf32> to vector<1x32xf32>
    %748 = vector.broadcast %747 : vector<1x32xf32> to vector<16x32xf32>
    %749 = arith.addf %744, %748 : vector<16x32xf32>
    %750 = arith.addf %749, %725 : vector<16x32xf32>
    %c22_343 = arith.constant 22 : index
    %c0_344 = arith.constant 0 : index
    %751 = vector.load %arg11[%c22_343, %c0_344] : memref<36x32xf32, #tpu.memory_space<vmem>>, vector<1x32xf32>
    %752 = vector.shape_cast %751 : vector<1x32xf32> to vector<32xf32>
    %c23_345 = arith.constant 23 : index
    %c0_346 = arith.constant 0 : index
    %753 = vector.load %arg11[%c23_345, %c0_346] : memref<36x32xf32, #tpu.memory_space<vmem>>, vector<1x32xf32>
    %754 = vector.shape_cast %753 : vector<1x32xf32> to vector<32xf32>
    %cst_347 = arith.constant dense<0.000000e+00> : vector<16xf32>
    %755 = vector.multi_reduction <add>, %750, %cst_347 [1] : vector<16x32xf32> to vector<16xf32>
    %756 = vector.shape_cast %755 : vector<16xf32> to vector<16x1xf32>
    %cst_348 = arith.constant 3.200000e+01 : f32
    %757 = vector.broadcast %cst_348 : f32 to vector<16x1xf32>
    %758 = arith.divf %756, %757 : vector<16x1xf32>
    %759 = vector.broadcast %758 : vector<16x1xf32> to vector<16x32xf32>
    %760 = arith.subf %750, %759 : vector<16x32xf32>
    %761 = arith.mulf %760, %760 : vector<16x32xf32>
    %cst_349 = arith.constant dense<0.000000e+00> : vector<16xf32>
    %762 = vector.multi_reduction <add>, %761, %cst_349 [1] : vector<16x32xf32> to vector<16xf32>
    %763 = vector.shape_cast %762 : vector<16xf32> to vector<16x1xf32>
    %cst_350 = arith.constant 3.200000e+01 : f32
    %764 = vector.broadcast %cst_350 : f32 to vector<16x1xf32>
    %765 = arith.divf %763, %764 : vector<16x1xf32>
    %766 = vector.broadcast %758 : vector<16x1xf32> to vector<16x32xf32>
    %767 = arith.subf %750, %766 : vector<16x32xf32>
    %768 = vector.shape_cast %752 : vector<32xf32> to vector<1x32xf32>
    %769 = vector.broadcast %768 : vector<1x32xf32> to vector<16x32xf32>
    %770 = arith.mulf %769, %767 : vector<16x32xf32>
    %cst_351 = arith.constant 9.99999996E-13 : f32
    %771 = vector.broadcast %cst_351 : f32 to vector<16x1xf32>
    %772 = arith.addf %765, %771 : vector<16x1xf32>
    %773 = math.rsqrt %772 : vector<16x1xf32>
    %774 = vector.broadcast %773 : vector<16x1xf32> to vector<16x32xf32>
    %775 = arith.mulf %770, %774 : vector<16x32xf32>
    %776 = vector.shape_cast %754 : vector<32xf32> to vector<1x32xf32>
    %777 = vector.broadcast %776 : vector<1x32xf32> to vector<16x32xf32>
    %778 = arith.addf %775, %777 : vector<16x32xf32>
    %cst_352 = arith.constant 5.000000e-01 : f32
    %779 = vector.broadcast %cst_352 : f32 to vector<16x32xf32>
    %780 = arith.mulf %779, %778 : vector<16x32xf32>
    %781 = math.exp %780 : vector<16x32xf32>
    %782 = arith.addf %418, %781 : vector<16x32xf32>
    %c24 = arith.constant 24 : index
    %c0_353 = arith.constant 0 : index
    %c0_354 = arith.constant 0 : index
    %783 = vector.load %arg5[%c24, %c0_353, %c0_354] : memref<36x32x16xf32, #tpu.memory_space<vmem>>, vector<1x32x16xf32>
    %784 = vector.shape_cast %783 : vector<1x32x16xf32> to vector<32x16xf32>
    %cst_355 = arith.constant dense<0.000000e+00> : vector<16x16xf32>
    %785 = tpu.matmul %782, %784, %cst_355 {dimension_numbers = #tpu.dot_dimension_numbers<[1], [0], [0], [1], [0, 0, 1, 1], [], []>} : vector<16x32xf32>, vector<32x16xf32>, vector<16x16xf32> -> vector<16x16xf32>
    %c24_356 = arith.constant 24 : index
    %c0_357 = arith.constant 0 : index
    %786 = vector.load %arg6[%c24_356, %c0_357] : memref<36x16xf32, #tpu.memory_space<vmem>>, vector<1x16xf32>
    %787 = vector.shape_cast %786 : vector<1x16xf32> to vector<16xf32>
    %788 = vector.shape_cast %787 : vector<16xf32> to vector<1x16xf32>
    %789 = vector.broadcast %788 : vector<1x16xf32> to vector<16x16xf32>
    %790 = arith.addf %785, %789 : vector<16x16xf32>
    %791 = vector.shape_cast %790 : vector<16x16xf32> to vector<2x8x16xf32>
    %c25 = arith.constant 25 : index
    %c0_358 = arith.constant 0 : index
    %c0_359 = arith.constant 0 : index
    %792 = vector.load %arg5[%c25, %c0_358, %c0_359] : memref<36x32x16xf32, #tpu.memory_space<vmem>>, vector<1x32x16xf32>
    %793 = vector.shape_cast %792 : vector<1x32x16xf32> to vector<32x16xf32>
    %cst_360 = arith.constant dense<0.000000e+00> : vector<16x16xf32>
    %794 = tpu.matmul %782, %793, %cst_360 {dimension_numbers = #tpu.dot_dimension_numbers<[1], [0], [0], [1], [0, 0, 1, 1], [], []>} : vector<16x32xf32>, vector<32x16xf32>, vector<16x16xf32> -> vector<16x16xf32>
    %c25_361 = arith.constant 25 : index
    %c0_362 = arith.constant 0 : index
    %795 = vector.load %arg6[%c25_361, %c0_362] : memref<36x16xf32, #tpu.memory_space<vmem>>, vector<1x16xf32>
    %796 = vector.shape_cast %795 : vector<1x16xf32> to vector<16xf32>
    %797 = vector.shape_cast %796 : vector<16xf32> to vector<1x16xf32>
    %798 = vector.broadcast %797 : vector<1x16xf32> to vector<16x16xf32>
    %799 = arith.addf %794, %798 : vector<16x16xf32>
    %800 = vector.shape_cast %799 : vector<16x16xf32> to vector<2x8x16xf32>
    %c26 = arith.constant 26 : index
    %c0_363 = arith.constant 0 : index
    %c0_364 = arith.constant 0 : index
    %801 = vector.load %arg5[%c26, %c0_363, %c0_364] : memref<36x32x16xf32, #tpu.memory_space<vmem>>, vector<1x32x16xf32>
    %802 = vector.shape_cast %801 : vector<1x32x16xf32> to vector<32x16xf32>
    %cst_365 = arith.constant dense<0.000000e+00> : vector<16x16xf32>
    %803 = tpu.matmul %782, %802, %cst_365 {dimension_numbers = #tpu.dot_dimension_numbers<[1], [0], [0], [1], [0, 0, 1, 1], [], []>} : vector<16x32xf32>, vector<32x16xf32>, vector<16x16xf32> -> vector<16x16xf32>
    %c26_366 = arith.constant 26 : index
    %c0_367 = arith.constant 0 : index
    %804 = vector.load %arg6[%c26_366, %c0_367] : memref<36x16xf32, #tpu.memory_space<vmem>>, vector<1x16xf32>
    %805 = vector.shape_cast %804 : vector<1x16xf32> to vector<16xf32>
    %806 = vector.shape_cast %805 : vector<16xf32> to vector<1x16xf32>
    %807 = vector.broadcast %806 : vector<1x16xf32> to vector<16x16xf32>
    %808 = arith.addf %803, %807 : vector<16x16xf32>
    %809 = vector.shape_cast %808 : vector<16x16xf32> to vector<2x8x16xf32>
    "tpu.trace_start"() <{level = 10 : i32, message = "bqd,bkd->bqk"}> : () -> ()
    %cst_368 = arith.constant dense<0.000000e+00> : vector<2x8x8xf32>
    %810 = tpu.matmul %791, %800, %cst_368 {dimension_numbers = #tpu.dot_dimension_numbers<[2], [2], [1], [1], [0, 0, 0, 1, 1, 1], [0], [0]>} : vector<2x8x16xf32>, vector<2x8x16xf32>, vector<2x8x8xf32> -> vector<2x8x8xf32>
    "tpu.trace_stop"() : () -> ()
    %cst_369 = arith.constant 2.500000e-01 : f32
    %811 = vector.broadcast %cst_369 : f32 to vector<2x8x8xf32>
    %812 = arith.mulf %810, %811 : vector<2x8x8xf32>
    %813 = arith.addf %812, %58 : vector<2x8x8xf32>
    %cst_370 = arith.constant dense<0xFF800000> : vector<2x8xf32>
    %814 = vector.multi_reduction <maximumf>, %813, %cst_370 [2] : vector<2x8x8xf32> to vector<2x8xf32>
    %815 = vector.shape_cast %814 : vector<2x8xf32> to vector<2x8x1xf32>
    %816 = vector.broadcast %815 : vector<2x8x1xf32> to vector<2x8x8xf32>
    %817 = arith.subf %813, %816 : vector<2x8x8xf32>
    %818 = math.exp %817 : vector<2x8x8xf32>
    %cst_371 = arith.constant dense<0.000000e+00> : vector<2x8xf32>
    %819 = vector.multi_reduction <add>, %818, %cst_371 [2] : vector<2x8x8xf32> to vector<2x8xf32>
    %820 = vector.shape_cast %819 : vector<2x8xf32> to vector<2x8x1xf32>
    %821 = tpu.reciprocal %820 {approx = true} : vector<2x8x1xf32> -> vector<2x8x1xf32>
    %822 = vector.broadcast %821 : vector<2x8x1xf32> to vector<2x8x8xf32>
    %823 = arith.mulf %818, %822 : vector<2x8x8xf32>
    "tpu.trace_start"() <{level = 10 : i32, message = "bqk,bkd->bqd"}> : () -> ()
    %cst_372 = arith.constant dense<0.000000e+00> : vector<2x8x16xf32>
    %824 = tpu.matmul %823, %809, %cst_372 {dimension_numbers = #tpu.dot_dimension_numbers<[2], [1], [1], [2], [0, 0, 0, 1, 1, 2], [0], [0]>} : vector<2x8x8xf32>, vector<2x8x16xf32>, vector<2x8x16xf32> -> vector<2x8x16xf32>
    "tpu.trace_stop"() : () -> ()
    %825 = vector.shape_cast %824 : vector<2x8x16xf32> to vector<16x16xf32>
    %c8_373 = arith.constant 8 : index
    %c0_374 = arith.constant 0 : index
    %c0_375 = arith.constant 0 : index
    %826 = vector.load %arg7[%c8_373, %c0_374, %c0_375] : memref<12x16x32xf32, #tpu.memory_space<vmem>>, vector<1x16x32xf32>
    %827 = vector.shape_cast %826 : vector<1x16x32xf32> to vector<16x32xf32>
    %cst_376 = arith.constant dense<0.000000e+00> : vector<16x32xf32>
    %828 = tpu.matmul %825, %827, %cst_376 {dimension_numbers = #tpu.dot_dimension_numbers<[1], [0], [0], [1], [0, 0, 1, 1], [], []>} : vector<16x16xf32>, vector<16x32xf32>, vector<16x32xf32> -> vector<16x32xf32>
    %c27 = arith.constant 27 : index
    %c0_377 = arith.constant 0 : index
    %c0_378 = arith.constant 0 : index
    %829 = vector.load %arg5[%c27, %c0_377, %c0_378] : memref<36x32x16xf32, #tpu.memory_space<vmem>>, vector<1x32x16xf32>
    %830 = vector.shape_cast %829 : vector<1x32x16xf32> to vector<32x16xf32>
    %cst_379 = arith.constant dense<0.000000e+00> : vector<16x16xf32>
    %831 = tpu.matmul %782, %830, %cst_379 {dimension_numbers = #tpu.dot_dimension_numbers<[1], [0], [0], [1], [0, 0, 1, 1], [], []>} : vector<16x32xf32>, vector<32x16xf32>, vector<16x16xf32> -> vector<16x16xf32>
    %c27_380 = arith.constant 27 : index
    %c0_381 = arith.constant 0 : index
    %832 = vector.load %arg6[%c27_380, %c0_381] : memref<36x16xf32, #tpu.memory_space<vmem>>, vector<1x16xf32>
    %833 = vector.shape_cast %832 : vector<1x16xf32> to vector<16xf32>
    %834 = vector.shape_cast %833 : vector<16xf32> to vector<1x16xf32>
    %835 = vector.broadcast %834 : vector<1x16xf32> to vector<16x16xf32>
    %836 = arith.addf %831, %835 : vector<16x16xf32>
    %837 = vector.shape_cast %836 : vector<16x16xf32> to vector<2x8x16xf32>
    %c28 = arith.constant 28 : index
    %c0_382 = arith.constant 0 : index
    %c0_383 = arith.constant 0 : index
    %838 = vector.load %arg5[%c28, %c0_382, %c0_383] : memref<36x32x16xf32, #tpu.memory_space<vmem>>, vector<1x32x16xf32>
    %839 = vector.shape_cast %838 : vector<1x32x16xf32> to vector<32x16xf32>
    %cst_384 = arith.constant dense<0.000000e+00> : vector<16x16xf32>
    %840 = tpu.matmul %782, %839, %cst_384 {dimension_numbers = #tpu.dot_dimension_numbers<[1], [0], [0], [1], [0, 0, 1, 1], [], []>} : vector<16x32xf32>, vector<32x16xf32>, vector<16x16xf32> -> vector<16x16xf32>
    %c28_385 = arith.constant 28 : index
    %c0_386 = arith.constant 0 : index
    %841 = vector.load %arg6[%c28_385, %c0_386] : memref<36x16xf32, #tpu.memory_space<vmem>>, vector<1x16xf32>
    %842 = vector.shape_cast %841 : vector<1x16xf32> to vector<16xf32>
    %843 = vector.shape_cast %842 : vector<16xf32> to vector<1x16xf32>
    %844 = vector.broadcast %843 : vector<1x16xf32> to vector<16x16xf32>
    %845 = arith.addf %840, %844 : vector<16x16xf32>
    %846 = vector.shape_cast %845 : vector<16x16xf32> to vector<2x8x16xf32>
    %c29 = arith.constant 29 : index
    %c0_387 = arith.constant 0 : index
    %c0_388 = arith.constant 0 : index
    %847 = vector.load %arg5[%c29, %c0_387, %c0_388] : memref<36x32x16xf32, #tpu.memory_space<vmem>>, vector<1x32x16xf32>
    %848 = vector.shape_cast %847 : vector<1x32x16xf32> to vector<32x16xf32>
    %cst_389 = arith.constant dense<0.000000e+00> : vector<16x16xf32>
    %849 = tpu.matmul %782, %848, %cst_389 {dimension_numbers = #tpu.dot_dimension_numbers<[1], [0], [0], [1], [0, 0, 1, 1], [], []>} : vector<16x32xf32>, vector<32x16xf32>, vector<16x16xf32> -> vector<16x16xf32>
    %c29_390 = arith.constant 29 : index
    %c0_391 = arith.constant 0 : index
    %850 = vector.load %arg6[%c29_390, %c0_391] : memref<36x16xf32, #tpu.memory_space<vmem>>, vector<1x16xf32>
    %851 = vector.shape_cast %850 : vector<1x16xf32> to vector<16xf32>
    %852 = vector.shape_cast %851 : vector<16xf32> to vector<1x16xf32>
    %853 = vector.broadcast %852 : vector<1x16xf32> to vector<16x16xf32>
    %854 = arith.addf %849, %853 : vector<16x16xf32>
    %855 = vector.shape_cast %854 : vector<16x16xf32> to vector<2x8x16xf32>
    "tpu.trace_start"() <{level = 10 : i32, message = "bqd,bkd->bqk"}> : () -> ()
    %cst_392 = arith.constant dense<0.000000e+00> : vector<2x8x8xf32>
    %856 = tpu.matmul %837, %846, %cst_392 {dimension_numbers = #tpu.dot_dimension_numbers<[2], [2], [1], [1], [0, 0, 0, 1, 1, 1], [0], [0]>} : vector<2x8x16xf32>, vector<2x8x16xf32>, vector<2x8x8xf32> -> vector<2x8x8xf32>
    "tpu.trace_stop"() : () -> ()
    %cst_393 = arith.constant 2.500000e-01 : f32
    %857 = vector.broadcast %cst_393 : f32 to vector<2x8x8xf32>
    %858 = arith.mulf %856, %857 : vector<2x8x8xf32>
    %859 = arith.addf %858, %58 : vector<2x8x8xf32>
    %cst_394 = arith.constant dense<0xFF800000> : vector<2x8xf32>
    %860 = vector.multi_reduction <maximumf>, %859, %cst_394 [2] : vector<2x8x8xf32> to vector<2x8xf32>
    %861 = vector.shape_cast %860 : vector<2x8xf32> to vector<2x8x1xf32>
    %862 = vector.broadcast %861 : vector<2x8x1xf32> to vector<2x8x8xf32>
    %863 = arith.subf %859, %862 : vector<2x8x8xf32>
    %864 = math.exp %863 : vector<2x8x8xf32>
    %cst_395 = arith.constant dense<0.000000e+00> : vector<2x8xf32>
    %865 = vector.multi_reduction <add>, %864, %cst_395 [2] : vector<2x8x8xf32> to vector<2x8xf32>
    %866 = vector.shape_cast %865 : vector<2x8xf32> to vector<2x8x1xf32>
    %867 = tpu.reciprocal %866 {approx = true} : vector<2x8x1xf32> -> vector<2x8x1xf32>
    %868 = vector.broadcast %867 : vector<2x8x1xf32> to vector<2x8x8xf32>
    %869 = arith.mulf %864, %868 : vector<2x8x8xf32>
    "tpu.trace_start"() <{level = 10 : i32, message = "bqk,bkd->bqd"}> : () -> ()
    %cst_396 = arith.constant dense<0.000000e+00> : vector<2x8x16xf32>
    %870 = tpu.matmul %869, %855, %cst_396 {dimension_numbers = #tpu.dot_dimension_numbers<[2], [1], [1], [2], [0, 0, 0, 1, 1, 2], [0], [0]>} : vector<2x8x8xf32>, vector<2x8x16xf32>, vector<2x8x16xf32> -> vector<2x8x16xf32>
    "tpu.trace_stop"() : () -> ()
    %871 = vector.shape_cast %870 : vector<2x8x16xf32> to vector<16x16xf32>
    %c9_397 = arith.constant 9 : index
    %c0_398 = arith.constant 0 : index
    %c0_399 = arith.constant 0 : index
    %872 = vector.load %arg7[%c9_397, %c0_398, %c0_399] : memref<12x16x32xf32, #tpu.memory_space<vmem>>, vector<1x16x32xf32>
    %873 = vector.shape_cast %872 : vector<1x16x32xf32> to vector<16x32xf32>
    %cst_400 = arith.constant dense<0.000000e+00> : vector<16x32xf32>
    %874 = tpu.matmul %871, %873, %cst_400 {dimension_numbers = #tpu.dot_dimension_numbers<[1], [0], [0], [1], [0, 0, 1, 1], [], []>} : vector<16x16xf32>, vector<16x32xf32>, vector<16x32xf32> -> vector<16x32xf32>
    %875 = arith.addf %828, %874 : vector<16x32xf32>
    %c24_401 = arith.constant 24 : index
    %c0_402 = arith.constant 0 : index
    %876 = vector.load %arg11[%c24_401, %c0_402] : memref<36x32xf32, #tpu.memory_space<vmem>>, vector<1x32xf32>
    %877 = vector.shape_cast %876 : vector<1x32xf32> to vector<32xf32>
    %878 = vector.shape_cast %877 : vector<32xf32> to vector<1x32xf32>
    %879 = vector.broadcast %878 : vector<1x32xf32> to vector<16x32xf32>
    %880 = arith.addf %875, %879 : vector<16x32xf32>
    %881 = arith.addf %880, %782 : vector<16x32xf32>
    %c25_403 = arith.constant 25 : index
    %c0_404 = arith.constant 0 : index
    %882 = vector.load %arg11[%c25_403, %c0_404] : memref<36x32xf32, #tpu.memory_space<vmem>>, vector<1x32xf32>
    %883 = vector.shape_cast %882 : vector<1x32xf32> to vector<32xf32>
    %c26_405 = arith.constant 26 : index
    %c0_406 = arith.constant 0 : index
    %884 = vector.load %arg11[%c26_405, %c0_406] : memref<36x32xf32, #tpu.memory_space<vmem>>, vector<1x32xf32>
    %885 = vector.shape_cast %884 : vector<1x32xf32> to vector<32xf32>
    %cst_407 = arith.constant dense<0.000000e+00> : vector<16xf32>
    %886 = vector.multi_reduction <add>, %881, %cst_407 [1] : vector<16x32xf32> to vector<16xf32>
    %887 = vector.shape_cast %886 : vector<16xf32> to vector<16x1xf32>
    %cst_408 = arith.constant 3.200000e+01 : f32
    %888 = vector.broadcast %cst_408 : f32 to vector<16x1xf32>
    %889 = arith.divf %887, %888 : vector<16x1xf32>
    %890 = vector.broadcast %889 : vector<16x1xf32> to vector<16x32xf32>
    %891 = arith.subf %881, %890 : vector<16x32xf32>
    %892 = arith.mulf %891, %891 : vector<16x32xf32>
    %cst_409 = arith.constant dense<0.000000e+00> : vector<16xf32>
    %893 = vector.multi_reduction <add>, %892, %cst_409 [1] : vector<16x32xf32> to vector<16xf32>
    %894 = vector.shape_cast %893 : vector<16xf32> to vector<16x1xf32>
    %cst_410 = arith.constant 3.200000e+01 : f32
    %895 = vector.broadcast %cst_410 : f32 to vector<16x1xf32>
    %896 = arith.divf %894, %895 : vector<16x1xf32>
    %897 = vector.broadcast %889 : vector<16x1xf32> to vector<16x32xf32>
    %898 = arith.subf %881, %897 : vector<16x32xf32>
    %899 = vector.shape_cast %883 : vector<32xf32> to vector<1x32xf32>
    %900 = vector.broadcast %899 : vector<1x32xf32> to vector<16x32xf32>
    %901 = arith.mulf %900, %898 : vector<16x32xf32>
    %cst_411 = arith.constant 9.99999996E-13 : f32
    %902 = vector.broadcast %cst_411 : f32 to vector<16x1xf32>
    %903 = arith.addf %896, %902 : vector<16x1xf32>
    %904 = math.rsqrt %903 : vector<16x1xf32>
    %905 = vector.broadcast %904 : vector<16x1xf32> to vector<16x32xf32>
    %906 = arith.mulf %901, %905 : vector<16x32xf32>
    %907 = vector.shape_cast %885 : vector<32xf32> to vector<1x32xf32>
    %908 = vector.broadcast %907 : vector<1x32xf32> to vector<16x32xf32>
    %909 = arith.addf %906, %908 : vector<16x32xf32>
    %c4_412 = arith.constant 4 : index
    %c0_413 = arith.constant 0 : index
    %c0_414 = arith.constant 0 : index
    %910 = vector.load %arg8[%c4_412, %c0_413, %c0_414] : memref<6x32x128xf32, #tpu.memory_space<vmem>>, vector<1x32x128xf32>
    %911 = vector.shape_cast %910 : vector<1x32x128xf32> to vector<32x128xf32>
    %cst_415 = arith.constant dense<0.000000e+00> : vector<16x128xf32>
    %912 = tpu.matmul %909, %911, %cst_415 {dimension_numbers = #tpu.dot_dimension_numbers<[1], [0], [0], [1], [0, 0, 1, 1], [], []>} : vector<16x32xf32>, vector<32x128xf32>, vector<16x128xf32> -> vector<16x128xf32>
    %c4_416 = arith.constant 4 : index
    %c0_417 = arith.constant 0 : index
    %913 = vector.load %arg9[%c4_416, %c0_417] : memref<6x128xf32, #tpu.memory_space<vmem>>, vector<1x128xf32>
    %914 = vector.shape_cast %913 : vector<1x128xf32> to vector<128xf32>
    %915 = vector.shape_cast %914 : vector<128xf32> to vector<1x128xf32>
    %916 = vector.broadcast %915 : vector<1x128xf32> to vector<16x128xf32>
    %917 = arith.addf %912, %916 : vector<16x128xf32>
    %cst_418 = arith.constant 5.000000e-01 : f32
    %918 = vector.broadcast %cst_418 : f32 to vector<16x128xf32>
    %919 = arith.mulf %918, %917 : vector<16x128xf32>
    %cst_419 = arith.constant 1.41421354 : f32
    %920 = vector.broadcast %cst_419 : f32 to vector<16x128xf32>
    %921 = arith.divf %917, %920 : vector<16x128xf32>
    %922 = math.erf %921 : vector<16x128xf32>
    %cst_420 = arith.constant 1.000000e+00 : f32
    %923 = vector.broadcast %cst_420 : f32 to vector<16x128xf32>
    %924 = arith.addf %923, %922 : vector<16x128xf32>
    %925 = arith.mulf %919, %924 : vector<16x128xf32>
    %c4_421 = arith.constant 4 : index
    %c0_422 = arith.constant 0 : index
    %c0_423 = arith.constant 0 : index
    %926 = vector.load %arg10[%c4_421, %c0_422, %c0_423] : memref<6x128x32xf32, #tpu.memory_space<vmem>>, vector<1x128x32xf32>
    %927 = vector.shape_cast %926 : vector<1x128x32xf32> to vector<128x32xf32>
    %cst_424 = arith.constant dense<0.000000e+00> : vector<16x32xf32>
    %928 = tpu.matmul %925, %927, %cst_424 {dimension_numbers = #tpu.dot_dimension_numbers<[1], [0], [0], [1], [0, 0, 1, 1], [], []>} : vector<16x128xf32>, vector<128x32xf32>, vector<16x32xf32> -> vector<16x32xf32>
    %c27_425 = arith.constant 27 : index
    %c0_426 = arith.constant 0 : index
    %929 = vector.load %arg11[%c27_425, %c0_426] : memref<36x32xf32, #tpu.memory_space<vmem>>, vector<1x32xf32>
    %930 = vector.shape_cast %929 : vector<1x32xf32> to vector<32xf32>
    %931 = vector.shape_cast %930 : vector<32xf32> to vector<1x32xf32>
    %932 = vector.broadcast %931 : vector<1x32xf32> to vector<16x32xf32>
    %933 = arith.addf %928, %932 : vector<16x32xf32>
    %934 = arith.addf %933, %909 : vector<16x32xf32>
    %c28_427 = arith.constant 28 : index
    %c0_428 = arith.constant 0 : index
    %935 = vector.load %arg11[%c28_427, %c0_428] : memref<36x32xf32, #tpu.memory_space<vmem>>, vector<1x32xf32>
    %936 = vector.shape_cast %935 : vector<1x32xf32> to vector<32xf32>
    %c29_429 = arith.constant 29 : index
    %c0_430 = arith.constant 0 : index
    %937 = vector.load %arg11[%c29_429, %c0_430] : memref<36x32xf32, #tpu.memory_space<vmem>>, vector<1x32xf32>
    %938 = vector.shape_cast %937 : vector<1x32xf32> to vector<32xf32>
    %cst_431 = arith.constant dense<0.000000e+00> : vector<16xf32>
    %939 = vector.multi_reduction <add>, %934, %cst_431 [1] : vector<16x32xf32> to vector<16xf32>
    %940 = vector.shape_cast %939 : vector<16xf32> to vector<16x1xf32>
    %cst_432 = arith.constant 3.200000e+01 : f32
    %941 = vector.broadcast %cst_432 : f32 to vector<16x1xf32>
    %942 = arith.divf %940, %941 : vector<16x1xf32>
    %943 = vector.broadcast %942 : vector<16x1xf32> to vector<16x32xf32>
    %944 = arith.subf %934, %943 : vector<16x32xf32>
    %945 = arith.mulf %944, %944 : vector<16x32xf32>
    %cst_433 = arith.constant dense<0.000000e+00> : vector<16xf32>
    %946 = vector.multi_reduction <add>, %945, %cst_433 [1] : vector<16x32xf32> to vector<16xf32>
    %947 = vector.shape_cast %946 : vector<16xf32> to vector<16x1xf32>
    %cst_434 = arith.constant 3.200000e+01 : f32
    %948 = vector.broadcast %cst_434 : f32 to vector<16x1xf32>
    %949 = arith.divf %947, %948 : vector<16x1xf32>
    %950 = vector.broadcast %942 : vector<16x1xf32> to vector<16x32xf32>
    %951 = arith.subf %934, %950 : vector<16x32xf32>
    %952 = vector.shape_cast %936 : vector<32xf32> to vector<1x32xf32>
    %953 = vector.broadcast %952 : vector<1x32xf32> to vector<16x32xf32>
    %954 = arith.mulf %953, %951 : vector<16x32xf32>
    %cst_435 = arith.constant 9.99999996E-13 : f32
    %955 = vector.broadcast %cst_435 : f32 to vector<16x1xf32>
    %956 = arith.addf %949, %955 : vector<16x1xf32>
    %957 = math.rsqrt %956 : vector<16x1xf32>
    %958 = vector.broadcast %957 : vector<16x1xf32> to vector<16x32xf32>
    %959 = arith.mulf %954, %958 : vector<16x32xf32>
    %960 = vector.shape_cast %938 : vector<32xf32> to vector<1x32xf32>
    %961 = vector.broadcast %960 : vector<1x32xf32> to vector<16x32xf32>
    %962 = arith.addf %959, %961 : vector<16x32xf32>
    %c30 = arith.constant 30 : index
    %c0_436 = arith.constant 0 : index
    %c0_437 = arith.constant 0 : index
    %963 = vector.load %arg5[%c30, %c0_436, %c0_437] : memref<36x32x16xf32, #tpu.memory_space<vmem>>, vector<1x32x16xf32>
    %964 = vector.shape_cast %963 : vector<1x32x16xf32> to vector<32x16xf32>
    %cst_438 = arith.constant dense<0.000000e+00> : vector<16x16xf32>
    %965 = tpu.matmul %962, %964, %cst_438 {dimension_numbers = #tpu.dot_dimension_numbers<[1], [0], [0], [1], [0, 0, 1, 1], [], []>} : vector<16x32xf32>, vector<32x16xf32>, vector<16x16xf32> -> vector<16x16xf32>
    %c30_439 = arith.constant 30 : index
    %c0_440 = arith.constant 0 : index
    %966 = vector.load %arg6[%c30_439, %c0_440] : memref<36x16xf32, #tpu.memory_space<vmem>>, vector<1x16xf32>
    %967 = vector.shape_cast %966 : vector<1x16xf32> to vector<16xf32>
    %968 = vector.shape_cast %967 : vector<16xf32> to vector<1x16xf32>
    %969 = vector.broadcast %968 : vector<1x16xf32> to vector<16x16xf32>
    %970 = arith.addf %965, %969 : vector<16x16xf32>
    %971 = vector.shape_cast %970 : vector<16x16xf32> to vector<2x8x16xf32>
    %c31 = arith.constant 31 : index
    %c0_441 = arith.constant 0 : index
    %c0_442 = arith.constant 0 : index
    %972 = vector.load %arg5[%c31, %c0_441, %c0_442] : memref<36x32x16xf32, #tpu.memory_space<vmem>>, vector<1x32x16xf32>
    %973 = vector.shape_cast %972 : vector<1x32x16xf32> to vector<32x16xf32>
    %cst_443 = arith.constant dense<0.000000e+00> : vector<16x16xf32>
    %974 = tpu.matmul %962, %973, %cst_443 {dimension_numbers = #tpu.dot_dimension_numbers<[1], [0], [0], [1], [0, 0, 1, 1], [], []>} : vector<16x32xf32>, vector<32x16xf32>, vector<16x16xf32> -> vector<16x16xf32>
    %c31_444 = arith.constant 31 : index
    %c0_445 = arith.constant 0 : index
    %975 = vector.load %arg6[%c31_444, %c0_445] : memref<36x16xf32, #tpu.memory_space<vmem>>, vector<1x16xf32>
    %976 = vector.shape_cast %975 : vector<1x16xf32> to vector<16xf32>
    %977 = vector.shape_cast %976 : vector<16xf32> to vector<1x16xf32>
    %978 = vector.broadcast %977 : vector<1x16xf32> to vector<16x16xf32>
    %979 = arith.addf %974, %978 : vector<16x16xf32>
    %980 = vector.shape_cast %979 : vector<16x16xf32> to vector<2x8x16xf32>
    %c32 = arith.constant 32 : index
    %c0_446 = arith.constant 0 : index
    %c0_447 = arith.constant 0 : index
    %981 = vector.load %arg5[%c32, %c0_446, %c0_447] : memref<36x32x16xf32, #tpu.memory_space<vmem>>, vector<1x32x16xf32>
    %982 = vector.shape_cast %981 : vector<1x32x16xf32> to vector<32x16xf32>
    %cst_448 = arith.constant dense<0.000000e+00> : vector<16x16xf32>
    %983 = tpu.matmul %962, %982, %cst_448 {dimension_numbers = #tpu.dot_dimension_numbers<[1], [0], [0], [1], [0, 0, 1, 1], [], []>} : vector<16x32xf32>, vector<32x16xf32>, vector<16x16xf32> -> vector<16x16xf32>
    %c32_449 = arith.constant 32 : index
    %c0_450 = arith.constant 0 : index
    %984 = vector.load %arg6[%c32_449, %c0_450] : memref<36x16xf32, #tpu.memory_space<vmem>>, vector<1x16xf32>
    %985 = vector.shape_cast %984 : vector<1x16xf32> to vector<16xf32>
    %986 = vector.shape_cast %985 : vector<16xf32> to vector<1x16xf32>
    %987 = vector.broadcast %986 : vector<1x16xf32> to vector<16x16xf32>
    %988 = arith.addf %983, %987 : vector<16x16xf32>
    %989 = vector.shape_cast %988 : vector<16x16xf32> to vector<2x8x16xf32>
    "tpu.trace_start"() <{level = 10 : i32, message = "bqd,bkd->bqk"}> : () -> ()
    %cst_451 = arith.constant dense<0.000000e+00> : vector<2x8x8xf32>
    %990 = tpu.matmul %971, %980, %cst_451 {dimension_numbers = #tpu.dot_dimension_numbers<[2], [2], [1], [1], [0, 0, 0, 1, 1, 1], [0], [0]>} : vector<2x8x16xf32>, vector<2x8x16xf32>, vector<2x8x8xf32> -> vector<2x8x8xf32>
    "tpu.trace_stop"() : () -> ()
    %cst_452 = arith.constant 2.500000e-01 : f32
    %991 = vector.broadcast %cst_452 : f32 to vector<2x8x8xf32>
    %992 = arith.mulf %990, %991 : vector<2x8x8xf32>
    %993 = arith.addf %992, %58 : vector<2x8x8xf32>
    %cst_453 = arith.constant dense<0xFF800000> : vector<2x8xf32>
    %994 = vector.multi_reduction <maximumf>, %993, %cst_453 [2] : vector<2x8x8xf32> to vector<2x8xf32>
    %995 = vector.shape_cast %994 : vector<2x8xf32> to vector<2x8x1xf32>
    %996 = vector.broadcast %995 : vector<2x8x1xf32> to vector<2x8x8xf32>
    %997 = arith.subf %993, %996 : vector<2x8x8xf32>
    %998 = math.exp %997 : vector<2x8x8xf32>
    %cst_454 = arith.constant dense<0.000000e+00> : vector<2x8xf32>
    %999 = vector.multi_reduction <add>, %998, %cst_454 [2] : vector<2x8x8xf32> to vector<2x8xf32>
    %1000 = vector.shape_cast %999 : vector<2x8xf32> to vector<2x8x1xf32>
    %1001 = tpu.reciprocal %1000 {approx = true} : vector<2x8x1xf32> -> vector<2x8x1xf32>
    %1002 = vector.broadcast %1001 : vector<2x8x1xf32> to vector<2x8x8xf32>
    %1003 = arith.mulf %998, %1002 : vector<2x8x8xf32>
    "tpu.trace_start"() <{level = 10 : i32, message = "bqk,bkd->bqd"}> : () -> ()
    %cst_455 = arith.constant dense<0.000000e+00> : vector<2x8x16xf32>
    %1004 = tpu.matmul %1003, %989, %cst_455 {dimension_numbers = #tpu.dot_dimension_numbers<[2], [1], [1], [2], [0, 0, 0, 1, 1, 2], [0], [0]>} : vector<2x8x8xf32>, vector<2x8x16xf32>, vector<2x8x16xf32> -> vector<2x8x16xf32>
    "tpu.trace_stop"() : () -> ()
    %1005 = vector.shape_cast %1004 : vector<2x8x16xf32> to vector<16x16xf32>
    %c10_456 = arith.constant 10 : index
    %c0_457 = arith.constant 0 : index
    %c0_458 = arith.constant 0 : index
    %1006 = vector.load %arg7[%c10_456, %c0_457, %c0_458] : memref<12x16x32xf32, #tpu.memory_space<vmem>>, vector<1x16x32xf32>
    %1007 = vector.shape_cast %1006 : vector<1x16x32xf32> to vector<16x32xf32>
    %cst_459 = arith.constant dense<0.000000e+00> : vector<16x32xf32>
    %1008 = tpu.matmul %1005, %1007, %cst_459 {dimension_numbers = #tpu.dot_dimension_numbers<[1], [0], [0], [1], [0, 0, 1, 1], [], []>} : vector<16x16xf32>, vector<16x32xf32>, vector<16x32xf32> -> vector<16x32xf32>
    %c33 = arith.constant 33 : index
    %c0_460 = arith.constant 0 : index
    %c0_461 = arith.constant 0 : index
    %1009 = vector.load %arg5[%c33, %c0_460, %c0_461] : memref<36x32x16xf32, #tpu.memory_space<vmem>>, vector<1x32x16xf32>
    %1010 = vector.shape_cast %1009 : vector<1x32x16xf32> to vector<32x16xf32>
    %cst_462 = arith.constant dense<0.000000e+00> : vector<16x16xf32>
    %1011 = tpu.matmul %962, %1010, %cst_462 {dimension_numbers = #tpu.dot_dimension_numbers<[1], [0], [0], [1], [0, 0, 1, 1], [], []>} : vector<16x32xf32>, vector<32x16xf32>, vector<16x16xf32> -> vector<16x16xf32>
    %c33_463 = arith.constant 33 : index
    %c0_464 = arith.constant 0 : index
    %1012 = vector.load %arg6[%c33_463, %c0_464] : memref<36x16xf32, #tpu.memory_space<vmem>>, vector<1x16xf32>
    %1013 = vector.shape_cast %1012 : vector<1x16xf32> to vector<16xf32>
    %1014 = vector.shape_cast %1013 : vector<16xf32> to vector<1x16xf32>
    %1015 = vector.broadcast %1014 : vector<1x16xf32> to vector<16x16xf32>
    %1016 = arith.addf %1011, %1015 : vector<16x16xf32>
    %1017 = vector.shape_cast %1016 : vector<16x16xf32> to vector<2x8x16xf32>
    %c34 = arith.constant 34 : index
    %c0_465 = arith.constant 0 : index
    %c0_466 = arith.constant 0 : index
    %1018 = vector.load %arg5[%c34, %c0_465, %c0_466] : memref<36x32x16xf32, #tpu.memory_space<vmem>>, vector<1x32x16xf32>
    %1019 = vector.shape_cast %1018 : vector<1x32x16xf32> to vector<32x16xf32>
    %cst_467 = arith.constant dense<0.000000e+00> : vector<16x16xf32>
    %1020 = tpu.matmul %962, %1019, %cst_467 {dimension_numbers = #tpu.dot_dimension_numbers<[1], [0], [0], [1], [0, 0, 1, 1], [], []>} : vector<16x32xf32>, vector<32x16xf32>, vector<16x16xf32> -> vector<16x16xf32>
    %c34_468 = arith.constant 34 : index
    %c0_469 = arith.constant 0 : index
    %1021 = vector.load %arg6[%c34_468, %c0_469] : memref<36x16xf32, #tpu.memory_space<vmem>>, vector<1x16xf32>
    %1022 = vector.shape_cast %1021 : vector<1x16xf32> to vector<16xf32>
    %1023 = vector.shape_cast %1022 : vector<16xf32> to vector<1x16xf32>
    %1024 = vector.broadcast %1023 : vector<1x16xf32> to vector<16x16xf32>
    %1025 = arith.addf %1020, %1024 : vector<16x16xf32>
    %1026 = vector.shape_cast %1025 : vector<16x16xf32> to vector<2x8x16xf32>
    %c35 = arith.constant 35 : index
    %c0_470 = arith.constant 0 : index
    %c0_471 = arith.constant 0 : index
    %1027 = vector.load %arg5[%c35, %c0_470, %c0_471] : memref<36x32x16xf32, #tpu.memory_space<vmem>>, vector<1x32x16xf32>
    %1028 = vector.shape_cast %1027 : vector<1x32x16xf32> to vector<32x16xf32>
    %cst_472 = arith.constant dense<0.000000e+00> : vector<16x16xf32>
    %1029 = tpu.matmul %962, %1028, %cst_472 {dimension_numbers = #tpu.dot_dimension_numbers<[1], [0], [0], [1], [0, 0, 1, 1], [], []>} : vector<16x32xf32>, vector<32x16xf32>, vector<16x16xf32> -> vector<16x16xf32>
    %c35_473 = arith.constant 35 : index
    %c0_474 = arith.constant 0 : index
    %1030 = vector.load %arg6[%c35_473, %c0_474] : memref<36x16xf32, #tpu.memory_space<vmem>>, vector<1x16xf32>
    %1031 = vector.shape_cast %1030 : vector<1x16xf32> to vector<16xf32>
    %1032 = vector.shape_cast %1031 : vector<16xf32> to vector<1x16xf32>
    %1033 = vector.broadcast %1032 : vector<1x16xf32> to vector<16x16xf32>
    %1034 = arith.addf %1029, %1033 : vector<16x16xf32>
    %1035 = vector.shape_cast %1034 : vector<16x16xf32> to vector<2x8x16xf32>
    "tpu.trace_start"() <{level = 10 : i32, message = "bqd,bkd->bqk"}> : () -> ()
    %cst_475 = arith.constant dense<0.000000e+00> : vector<2x8x8xf32>
    %1036 = tpu.matmul %1017, %1026, %cst_475 {dimension_numbers = #tpu.dot_dimension_numbers<[2], [2], [1], [1], [0, 0, 0, 1, 1, 1], [0], [0]>} : vector<2x8x16xf32>, vector<2x8x16xf32>, vector<2x8x8xf32> -> vector<2x8x8xf32>
    "tpu.trace_stop"() : () -> ()
    %cst_476 = arith.constant 2.500000e-01 : f32
    %1037 = vector.broadcast %cst_476 : f32 to vector<2x8x8xf32>
    %1038 = arith.mulf %1036, %1037 : vector<2x8x8xf32>
    %1039 = arith.addf %1038, %58 : vector<2x8x8xf32>
    %cst_477 = arith.constant dense<0xFF800000> : vector<2x8xf32>
    %1040 = vector.multi_reduction <maximumf>, %1039, %cst_477 [2] : vector<2x8x8xf32> to vector<2x8xf32>
    %1041 = vector.shape_cast %1040 : vector<2x8xf32> to vector<2x8x1xf32>
    %1042 = vector.broadcast %1041 : vector<2x8x1xf32> to vector<2x8x8xf32>
    %1043 = arith.subf %1039, %1042 : vector<2x8x8xf32>
    %1044 = math.exp %1043 : vector<2x8x8xf32>
    %cst_478 = arith.constant dense<0.000000e+00> : vector<2x8xf32>
    %1045 = vector.multi_reduction <add>, %1044, %cst_478 [2] : vector<2x8x8xf32> to vector<2x8xf32>
    %1046 = vector.shape_cast %1045 : vector<2x8xf32> to vector<2x8x1xf32>
    %1047 = tpu.reciprocal %1046 {approx = true} : vector<2x8x1xf32> -> vector<2x8x1xf32>
    %1048 = vector.broadcast %1047 : vector<2x8x1xf32> to vector<2x8x8xf32>
    %1049 = arith.mulf %1044, %1048 : vector<2x8x8xf32>
    "tpu.trace_start"() <{level = 10 : i32, message = "bqk,bkd->bqd"}> : () -> ()
    %cst_479 = arith.constant dense<0.000000e+00> : vector<2x8x16xf32>
    %1050 = tpu.matmul %1049, %1035, %cst_479 {dimension_numbers = #tpu.dot_dimension_numbers<[2], [1], [1], [2], [0, 0, 0, 1, 1, 2], [0], [0]>} : vector<2x8x8xf32>, vector<2x8x16xf32>, vector<2x8x16xf32> -> vector<2x8x16xf32>
    "tpu.trace_stop"() : () -> ()
    %1051 = vector.shape_cast %1050 : vector<2x8x16xf32> to vector<16x16xf32>
    %c11_480 = arith.constant 11 : index
    %c0_481 = arith.constant 0 : index
    %c0_482 = arith.constant 0 : index
    %1052 = vector.load %arg7[%c11_480, %c0_481, %c0_482] : memref<12x16x32xf32, #tpu.memory_space<vmem>>, vector<1x16x32xf32>
    %1053 = vector.shape_cast %1052 : vector<1x16x32xf32> to vector<16x32xf32>
    %cst_483 = arith.constant dense<0.000000e+00> : vector<16x32xf32>
    %1054 = tpu.matmul %1051, %1053, %cst_483 {dimension_numbers = #tpu.dot_dimension_numbers<[1], [0], [0], [1], [0, 0, 1, 1], [], []>} : vector<16x16xf32>, vector<16x32xf32>, vector<16x32xf32> -> vector<16x32xf32>
    %1055 = arith.addf %1008, %1054 : vector<16x32xf32>
    %c30_484 = arith.constant 30 : index
    %c0_485 = arith.constant 0 : index
    %1056 = vector.load %arg11[%c30_484, %c0_485] : memref<36x32xf32, #tpu.memory_space<vmem>>, vector<1x32xf32>
    %1057 = vector.shape_cast %1056 : vector<1x32xf32> to vector<32xf32>
    %1058 = vector.shape_cast %1057 : vector<32xf32> to vector<1x32xf32>
    %1059 = vector.broadcast %1058 : vector<1x32xf32> to vector<16x32xf32>
    %1060 = arith.addf %1055, %1059 : vector<16x32xf32>
    %1061 = arith.addf %1060, %962 : vector<16x32xf32>
    %c31_486 = arith.constant 31 : index
    %c0_487 = arith.constant 0 : index
    %1062 = vector.load %arg11[%c31_486, %c0_487] : memref<36x32xf32, #tpu.memory_space<vmem>>, vector<1x32xf32>
    %1063 = vector.shape_cast %1062 : vector<1x32xf32> to vector<32xf32>
    %c32_488 = arith.constant 32 : index
    %c0_489 = arith.constant 0 : index
    %1064 = vector.load %arg11[%c32_488, %c0_489] : memref<36x32xf32, #tpu.memory_space<vmem>>, vector<1x32xf32>
    %1065 = vector.shape_cast %1064 : vector<1x32xf32> to vector<32xf32>
    %cst_490 = arith.constant dense<0.000000e+00> : vector<16xf32>
    %1066 = vector.multi_reduction <add>, %1061, %cst_490 [1] : vector<16x32xf32> to vector<16xf32>
    %1067 = vector.shape_cast %1066 : vector<16xf32> to vector<16x1xf32>
    %cst_491 = arith.constant 3.200000e+01 : f32
    %1068 = vector.broadcast %cst_491 : f32 to vector<16x1xf32>
    %1069 = arith.divf %1067, %1068 : vector<16x1xf32>
    %1070 = vector.broadcast %1069 : vector<16x1xf32> to vector<16x32xf32>
    %1071 = arith.subf %1061, %1070 : vector<16x32xf32>
    %1072 = arith.mulf %1071, %1071 : vector<16x32xf32>
    %cst_492 = arith.constant dense<0.000000e+00> : vector<16xf32>
    %1073 = vector.multi_reduction <add>, %1072, %cst_492 [1] : vector<16x32xf32> to vector<16xf32>
    %1074 = vector.shape_cast %1073 : vector<16xf32> to vector<16x1xf32>
    %cst_493 = arith.constant 3.200000e+01 : f32
    %1075 = vector.broadcast %cst_493 : f32 to vector<16x1xf32>
    %1076 = arith.divf %1074, %1075 : vector<16x1xf32>
    %1077 = vector.broadcast %1069 : vector<16x1xf32> to vector<16x32xf32>
    %1078 = arith.subf %1061, %1077 : vector<16x32xf32>
    %1079 = vector.shape_cast %1063 : vector<32xf32> to vector<1x32xf32>
    %1080 = vector.broadcast %1079 : vector<1x32xf32> to vector<16x32xf32>
    %1081 = arith.mulf %1080, %1078 : vector<16x32xf32>
    %cst_494 = arith.constant 9.99999996E-13 : f32
    %1082 = vector.broadcast %cst_494 : f32 to vector<16x1xf32>
    %1083 = arith.addf %1076, %1082 : vector<16x1xf32>
    %1084 = math.rsqrt %1083 : vector<16x1xf32>
    %1085 = vector.broadcast %1084 : vector<16x1xf32> to vector<16x32xf32>
    %1086 = arith.mulf %1081, %1085 : vector<16x32xf32>
    %1087 = vector.shape_cast %1065 : vector<32xf32> to vector<1x32xf32>
    %1088 = vector.broadcast %1087 : vector<1x32xf32> to vector<16x32xf32>
    %1089 = arith.addf %1086, %1088 : vector<16x32xf32>
    %c5_495 = arith.constant 5 : index
    %c0_496 = arith.constant 0 : index
    %c0_497 = arith.constant 0 : index
    %1090 = vector.load %arg8[%c5_495, %c0_496, %c0_497] : memref<6x32x128xf32, #tpu.memory_space<vmem>>, vector<1x32x128xf32>
    %1091 = vector.shape_cast %1090 : vector<1x32x128xf32> to vector<32x128xf32>
    %cst_498 = arith.constant dense<0.000000e+00> : vector<16x128xf32>
    %1092 = tpu.matmul %1089, %1091, %cst_498 {dimension_numbers = #tpu.dot_dimension_numbers<[1], [0], [0], [1], [0, 0, 1, 1], [], []>} : vector<16x32xf32>, vector<32x128xf32>, vector<16x128xf32> -> vector<16x128xf32>
    %c5_499 = arith.constant 5 : index
    %c0_500 = arith.constant 0 : index
    %1093 = vector.load %arg9[%c5_499, %c0_500] : memref<6x128xf32, #tpu.memory_space<vmem>>, vector<1x128xf32>
    %1094 = vector.shape_cast %1093 : vector<1x128xf32> to vector<128xf32>
    %1095 = vector.shape_cast %1094 : vector<128xf32> to vector<1x128xf32>
    %1096 = vector.broadcast %1095 : vector<1x128xf32> to vector<16x128xf32>
    %1097 = arith.addf %1092, %1096 : vector<16x128xf32>
    %cst_501 = arith.constant 5.000000e-01 : f32
    %1098 = vector.broadcast %cst_501 : f32 to vector<16x128xf32>
    %1099 = arith.mulf %1098, %1097 : vector<16x128xf32>
    %cst_502 = arith.constant 1.41421354 : f32
    %1100 = vector.broadcast %cst_502 : f32 to vector<16x128xf32>
    %1101 = arith.divf %1097, %1100 : vector<16x128xf32>
    %1102 = math.erf %1101 : vector<16x128xf32>
    %cst_503 = arith.constant 1.000000e+00 : f32
    %1103 = vector.broadcast %cst_503 : f32 to vector<16x128xf32>
    %1104 = arith.addf %1103, %1102 : vector<16x128xf32>
    %1105 = arith.mulf %1099, %1104 : vector<16x128xf32>
    %c5_504 = arith.constant 5 : index
    %c0_505 = arith.constant 0 : index
    %c0_506 = arith.constant 0 : index
    %1106 = vector.load %arg10[%c5_504, %c0_505, %c0_506] : memref<6x128x32xf32, #tpu.memory_space<vmem>>, vector<1x128x32xf32>
    %1107 = vector.shape_cast %1106 : vector<1x128x32xf32> to vector<128x32xf32>
    %cst_507 = arith.constant dense<0.000000e+00> : vector<16x32xf32>
    %1108 = tpu.matmul %1105, %1107, %cst_507 {dimension_numbers = #tpu.dot_dimension_numbers<[1], [0], [0], [1], [0, 0, 1, 1], [], []>} : vector<16x128xf32>, vector<128x32xf32>, vector<16x32xf32> -> vector<16x32xf32>
    %c33_508 = arith.constant 33 : index
    %c0_509 = arith.constant 0 : index
    %1109 = vector.load %arg11[%c33_508, %c0_509] : memref<36x32xf32, #tpu.memory_space<vmem>>, vector<1x32xf32>
    %1110 = vector.shape_cast %1109 : vector<1x32xf32> to vector<32xf32>
    %1111 = vector.shape_cast %1110 : vector<32xf32> to vector<1x32xf32>
    %1112 = vector.broadcast %1111 : vector<1x32xf32> to vector<16x32xf32>
    %1113 = arith.addf %1108, %1112 : vector<16x32xf32>
    %1114 = arith.addf %1113, %1089 : vector<16x32xf32>
    %c34_510 = arith.constant 34 : index
    %c0_511 = arith.constant 0 : index
    %1115 = vector.load %arg11[%c34_510, %c0_511] : memref<36x32xf32, #tpu.memory_space<vmem>>, vector<1x32xf32>
    %1116 = vector.shape_cast %1115 : vector<1x32xf32> to vector<32xf32>
    %c35_512 = arith.constant 35 : index
    %c0_513 = arith.constant 0 : index
    %1117 = vector.load %arg11[%c35_512, %c0_513] : memref<36x32xf32, #tpu.memory_space<vmem>>, vector<1x32xf32>
    %1118 = vector.shape_cast %1117 : vector<1x32xf32> to vector<32xf32>
    %cst_514 = arith.constant dense<0.000000e+00> : vector<16xf32>
    %1119 = vector.multi_reduction <add>, %1114, %cst_514 [1] : vector<16x32xf32> to vector<16xf32>
    %1120 = vector.shape_cast %1119 : vector<16xf32> to vector<16x1xf32>
    %cst_515 = arith.constant 3.200000e+01 : f32
    %1121 = vector.broadcast %cst_515 : f32 to vector<16x1xf32>
    %1122 = arith.divf %1120, %1121 : vector<16x1xf32>
    %1123 = vector.broadcast %1122 : vector<16x1xf32> to vector<16x32xf32>
    %1124 = arith.subf %1114, %1123 : vector<16x32xf32>
    %1125 = arith.mulf %1124, %1124 : vector<16x32xf32>
    %cst_516 = arith.constant dense<0.000000e+00> : vector<16xf32>
    %1126 = vector.multi_reduction <add>, %1125, %cst_516 [1] : vector<16x32xf32> to vector<16xf32>
    %1127 = vector.shape_cast %1126 : vector<16xf32> to vector<16x1xf32>
    %cst_517 = arith.constant 3.200000e+01 : f32
    %1128 = vector.broadcast %cst_517 : f32 to vector<16x1xf32>
    %1129 = arith.divf %1127, %1128 : vector<16x1xf32>
    %1130 = vector.broadcast %1122 : vector<16x1xf32> to vector<16x32xf32>
    %1131 = arith.subf %1114, %1130 : vector<16x32xf32>
    %1132 = vector.shape_cast %1116 : vector<32xf32> to vector<1x32xf32>
    %1133 = vector.broadcast %1132 : vector<1x32xf32> to vector<16x32xf32>
    %1134 = arith.mulf %1133, %1131 : vector<16x32xf32>
    %cst_518 = arith.constant 9.99999996E-13 : f32
    %1135 = vector.broadcast %cst_518 : f32 to vector<16x1xf32>
    %1136 = arith.addf %1129, %1135 : vector<16x1xf32>
    %1137 = math.rsqrt %1136 : vector<16x1xf32>
    %1138 = vector.broadcast %1137 : vector<16x1xf32> to vector<16x32xf32>
    %1139 = arith.mulf %1134, %1138 : vector<16x32xf32>
    %1140 = vector.shape_cast %1118 : vector<32xf32> to vector<1x32xf32>
    %1141 = vector.broadcast %1140 : vector<1x32xf32> to vector<16x32xf32>
    %1142 = arith.addf %1139, %1141 : vector<16x32xf32>
    %1143 = vector.shape_cast %418 : vector<16x32xf32> to vector<2x8x32xf32>
    %c0_519 = arith.constant 0 : index
    %c0_520 = arith.constant 0 : index
    %c0_521 = arith.constant 0 : index
    %c0_522 = arith.constant 0 : index
    %1144 = vector.load %arg12[%c0_519, %c0_520, %c0_521, %c0_522] : memref<4x2x8x32xf32, #tpu.memory_space<vmem>>, vector<1x2x8x32xf32>
    %1145 = vector.shape_cast %1144 : vector<1x2x8x32xf32> to vector<2x8x32xf32>
    %1146 = vector.shape_cast %1143 : vector<2x8x32xf32> to vector<1x2x8x32xf32>
    tpu.vector_store %arg12[%c0_519, %c0_520, %c0_521, %c0_522], %1146 {strides = array<i32>} : memref<4x2x8x32xf32, #tpu.memory_space<vmem>>, vector<1x2x8x32xf32>,
    %1147 = vector.shape_cast %778 : vector<16x32xf32> to vector<2x8x32xf32>
    %c1_523 = arith.constant 1 : index
    %c0_524 = arith.constant 0 : index
    %c0_525 = arith.constant 0 : index
    %c0_526 = arith.constant 0 : index
    %1148 = vector.load %arg12[%c1_523, %c0_524, %c0_525, %c0_526] : memref<4x2x8x32xf32, #tpu.memory_space<vmem>>, vector<1x2x8x32xf32>
    %1149 = vector.shape_cast %1148 : vector<1x2x8x32xf32> to vector<2x8x32xf32>
    %1150 = vector.shape_cast %1147 : vector<2x8x32xf32> to vector<1x2x8x32xf32>
    tpu.vector_store %arg12[%c1_523, %c0_524, %c0_525, %c0_526], %1150 {strides = array<i32>} : memref<4x2x8x32xf32, #tpu.memory_space<vmem>>, vector<1x2x8x32xf32>,
    %1151 = vector.shape_cast %782 : vector<16x32xf32> to vector<2x8x32xf32>
    %c2_527 = arith.constant 2 : index
    %c0_528 = arith.constant 0 : index
    %c0_529 = arith.constant 0 : index
    %c0_530 = arith.constant 0 : index
    %1152 = vector.load %arg12[%c2_527, %c0_528, %c0_529, %c0_530] : memref<4x2x8x32xf32, #tpu.memory_space<vmem>>, vector<1x2x8x32xf32>
    %1153 = vector.shape_cast %1152 : vector<1x2x8x32xf32> to vector<2x8x32xf32>
    %1154 = vector.shape_cast %1151 : vector<2x8x32xf32> to vector<1x2x8x32xf32>
    tpu.vector_store %arg12[%c2_527, %c0_528, %c0_529, %c0_530], %1154 {strides = array<i32>} : memref<4x2x8x32xf32, #tpu.memory_space<vmem>>, vector<1x2x8x32xf32>,
    %1155 = vector.shape_cast %1142 : vector<16x32xf32> to vector<2x8x32xf32>
    %c3_531 = arith.constant 3 : index
    %c0_532 = arith.constant 0 : index
    %c0_533 = arith.constant 0 : index
    %c0_534 = arith.constant 0 : index
    %1156 = vector.load %arg12[%c3_531, %c0_532, %c0_533, %c0_534] : memref<4x2x8x32xf32, #tpu.memory_space<vmem>>, vector<1x2x8x32xf32>
    %1157 = vector.shape_cast %1156 : vector<1x2x8x32xf32> to vector<2x8x32xf32>
    %1158 = vector.shape_cast %1155 : vector<2x8x32xf32> to vector<1x2x8x32xf32>
    tpu.vector_store %arg12[%c3_531, %c0_532, %c0_533, %c0_534], %1158 {strides = array<i32>} : memref<4x2x8x32xf32, #tpu.memory_space<vmem>>, vector<1x2x8x32xf32>,
    return
  }
}

</mosaic_0001>

<bundles_post_ra>
// kernel: tpu_custom_call.1
= control target key start
LH: loop header
LB: loop body
LE: loop exit
PB: predicated region body
PF: predicated region fallthrough
CT: control target
= control target key end

     0   :  { %v12226_v1 = vmov 0   ;;  %vm68_vm0 = vcmask 1043456   ;;  %s14096_s0 = inlined_call_operand.vmem [shape: s32[16,1], index: 0, kind: input, shape index: {}]   ;;  %s14097_s1 = inlined_call_operand.vmem [shape: s32[2,1,8], index: 1, kind: input, shape index: {}]   ;;  %s14098_s2 = inlined_call_operand.vmem [shape: f32[20,32], index: 2, kind: input, shape index: {}]   ;;  %s14099_s3 = inlined_call_operand.vmem [shape: f32[8,32], index: 3, kind: input, shape index: {}]   ;;  %s14100_s4 = inlined_call_operand.vmem [shape: f32[2,32], index: 4, kind: input, shape index: {}]   ;;  %s14101_s5 = inlined_call_operand.vmem [shape: f32[36,32,16], index: 5, kind: input, shape index: {}]   ;;  %s14102_s6 = inlined_call_operand.vmem [shape: f32[36,16], index: 6, kind: input, shape index: {}]   ;;  %s14103_s7 = inlined_call_operand.vmem [shape: f32[12,16,32], index: 7, kind: input, shape index: {}]   ;;  %s14104_s8 = inlined_call_operand.vmem [shape: f32[6,32,128], index: 8, kind: input, shape index: {}]   ;;  %s14105_s9 = inlined_call_operand.vmem [shape: f32[6,128], index: 9, kind: input, shape index: {}]   ;;  %s14106_s10 = inlined_call_operand.vmem [shape: f32[6,128,32], index: 10, kind: input, shape index: {}]   ;;  %s14107_s11 = inlined_call_operand.vmem [shape: f32[36,32], index: 11, kind: input, shape index: {}]   ;;  %s14108_s12 = inlined_call_operand.hbm [shape: f32[4,2,8,32], index: 12, kind: output, shape index: {}]  }
   0x1   :  { %v42_v0 = vld [vmem:[%s14096_s0] sm:$0xff]  ;;  %12027 = vset.pattern.permute.xlu0 %v12226_v1  ;;  %v60_v2 = vld [vmem:[%s14098_s2 + $0x10] sm:$0xf]  ;;  %v59_v3 = vld [vmem:[%s14098_s2 + $0x8] sm:$0xff] }
   0x2   :  { %47 = vperm.xlu0 %12027, %v42_v0   ;;  %11016 = vmatprep.subr.msk.mxu0 %vm68_vm0, %v60_v2  ;;  %v43_v4 = vld [vmem:[%s14096_s0 + $0x8] sm:$0xff]  ;;  %v58_v5 = vld [vmem:[%s14098_s2] sm:$0xff] }
   0x3   :  { %11017 = vmatpush3.msk.msra.mxu0 %vm68_vm0, %v60_v2 }
   0x4   :  { %17 = vsyncpa [#allocation3], 0  ;;  %11018 = vmatprep.subr.mxu0 %v59_v3  ;;  %v44_v6 = vlaneseq  ;;  %vm61_vm1 = vcmask 162816   ;;  %v12227_v9 = vmov 0.0   ;;  %v147_v14 = vld [vmem:[%s14099_s3] sm:$0xff]  ;;  %vm152_vm4 = vcmask 261120  }
   0x5   :  { %11019 = vmatpush3.msra.mxu0 %v59_v3  ;;  %v226_v30 = vld [vmem:[%s14101_s5 + $0x18] sm:$0xff]  ;;  %v225_v32 = vld [vmem:[%s14101_s5 + $0x10] sm:$0xff]  ;;  %v224_v34 = vld [vmem:[%s14101_s5 + $0x8] sm:$0xff]  ;;  %vm12228_vm5 = vmmov 0   ;;  %vm483_vm6 = vcmask 130048   ;;  %vm640_vm10 = vcmask 64512  }
   0x6   :  { %50 = vperm.xlu0 %12027, %v43_v4   ;;  %11020 = vmatprep.subr.mxu0 %v58_v5  ;;  %v12313_v7 = vand.u32 127, %v44_v6  ;;  %v10000_v31 = vld [vmem:[%s14101_s5 + $0x58] sm:$0xff]  ;;  %v9999_v33 = vld [vmem:[%s14101_s5 + $0x50] sm:$0xff]  ;;  %v9998_v35 = vld [vmem:[%s14101_s5 + $0x48] sm:$0xff] }
   0x7   :  { %11021 = vmatpush3.msra.mxu0 %v58_v5  ;;  %11047 = vmatprep.subr.mxu1 %v10000_v31  ;;  %v223_v36 = vld [vmem:[%s14101_s5] sm:$0xff]  ;;  %v9993_v38 = vld [vmem:[%s14101_s5 + $0x38] sm:$0xff]  ;;  %v9992_v55 = vld [vmem:[%s14101_s5 + $0x30] sm:$0xff] }
   0x8   :  { %11025 = vmatprep.subr.mxu0 %v226_v30  ;;  %11048 = vmatpush3.msra.mxu1 %v10000_v31  ;;  %v9997_v37 = vld [vmem:[%s14101_s5 + $0x40] sm:$0xff]  ;;  %v9991_v56 = vld [vmem:[%s14101_s5 + $0x28] sm:$0xff] }
   0x9   :  { %11049 = vmatprep.subr.mxu1 %v9999_v33  ;;  %v9982_v45 = vld [vmem:[%s14100_s4] ss:$0 sm:$0xff]  ;;  %v9983_v48 = vld [vmem:[%s14100_s4 + $0x1] ss:$0 sm:$0xff]  ;;  %v10001_v58 = vld [vmem:[%s14102_s6 + $0x2] ss:$0 sm:$0xff] }
   0xa   :  { %11050 = vmatpush3.msra.mxu1 %v9999_v33  ;;  %v9990_v57 = vld [vmem:[%s14101_s5 + $0x20] sm:$0xff] }
   0xb   :  { %11051 = vmatprep.subr.mxu1 %v9998_v35  ;;  %v9994_v0 = vld [vmem:[%s14102_s6 + $0x1] ss:$0 sm:$0xff]  ;;  %v9987_v3 = vld [vmem:[%s14102_s6] ss:$0 sm:$0xff] }
   0xc   :  { %11052 = vmatpush3.msra.mxu1 %v9998_v35 }
   0xd   :  { %11053 = vmatprep.subr.mxu1 %v9997_v37 }
   0xe   :  { %11054 = vmatpush3.msra.mxu1 %v9997_v37 }
   0xf   :  { %11073 = vmatprep.subr.mxu1 %v12227_v9 }
  0x7d   :  { %v48_v8 = vpop.permute.xlu0 %47 }
  0x7e   :  { %vm52_vm2 = vcmp.eq.s32.totalorder %v48_v8, %v12313_v7 }
  0x7f   :  { %v9977_v10 = vsel %vm52_vm2, 1.0, %v12227_v9 }
  0x80   :  { %11022 = vmatprep.mubr.msk.f32.mxu0 %vm61_vm1, %v9977_v10 }
  0x81   :  { %v51_v11 = vpop.permute.xlu0 %50 }
  0x82   :  { %vm53_vm3 = vcmp.eq.s32.totalorder %v51_v11, %v12313_v7 }
  0x83   :  { %v9978_v12 = vsel %vm53_vm3, 1.0, %v12227_v9 }
  0x84   :  { %11023 = vmatmul.mubr.msk.f32.vlgmr.msra.gmra.mxu0 %vm61_vm1, %v9978_v12  ;;  %v198_v12 = vld [vmem:[%s14097_s1 + $0x1] sm:$0x1] }
  0x85   :  { %11026 = vmatpush3.msra.mxu0 %v226_v30  ;;  %vm200_vm7 = vcmp.gt.s32.totalorder %v198_v12, 0 }
  0x86   :  { %11027 = vmatprep.subr.mxu0 %v225_v32 }
  0x87   :  { %11028 = vmatpush3.msra.mxu0 %v225_v32 }
  0x88   :  { %11029 = vmatprep.subr.mxu0 %v224_v34 }
  0x89   :  { %11030 = vmatpush3.msra.mxu0 %v224_v34 }
  0x8a   :  { %11031 = vmatprep.subr.mxu0 %v223_v36 }
  0x8b   :  { %11032 = vmatpush3.msra.mxu0 %v223_v36 }
  0x8c   :  { %11036 = vmatprep.subr.mxu0 %v9993_v38 }
 0x144   :  { %v11024_v13 = vpop.f32.mrf.mxu0 }
 0x145   :  { %v149_v17 = vadd.f32 %v11024_v13, %v147_v14  ;;  %v197_v13 = vld [vmem:[%s14097_s1] sm:$0x1]  ;;  %s12229_s1 = smov [#allocation2]  }
 0x146   :  { %v138_v15 = vpop.f32.mrf.mxu0  ;;  %vm199_vm8 = vcmp.gt.s32.totalorder %v197_v13, 0  ;;  %v10014_v13 = vld [vmem:[%s14102_s6 + $0x3] ss:$0 sm:$0xff]  ;;  %s9966_s28 = sshll.u32 %s12229_s1, 4  ;;  %s9967_s28 = int_to_ptr.vmem [resolvable:$true] %s9966_s28 }
 0x147   :  { %v148_v16 = vadd.f32 %v147_v14, %v138_v15  ;;  %v156_v19 = vsel %vm152_vm4, %v149_v17, 0.0  ;;  %v193_v14 = vshrl.u32 %v44_v6, 7  ;;  %v9986_v15 = vsel %vm200_vm7, 1.0, %v12227_v9  ;;  %s12204_s29 = scalar_lea.vmem %s9967_s28, 1024  ;;  %p12209_p1 = scmp.lt.s32.totalorder %s9967_s28, %s9967_s28 }
 0x148   :  { %p12205_p0 = scmp.ne.s32.totalorder %s9967_s28, %s12204_s29  ;;  %p12210_p2 = scmp.lt.s32.totalorder %s12204_s29, %s12204_s29 }
 0x149   :  { %v153_v18 = vsel %vm152_vm4, %v148_v16, 0.0  ;;  %vm194_vm9 = vcmp.le.s32.totalorder %v12313_v7, %v193_v14 }
 0x14a   :  { %154 = vadd.xlane.f32.xlu1 %v153_v18  ;;  %p12211_p3 = por %p12210_p2, %p12209_p1 }
 0x14c   :  { %p12212_p4 = pnand %p12211_p3, %p12205_p0 }
 0x14e   :  { %157 = vadd.xlane.f32.xlu1 %v156_v19 }
 0x1d3   :  { %v155_v20 = vpop.xlane.xlu1 %154 }
 0x1d4   :  { %v160_v21 = vmul.f32 0.03125, %v155_v20  ;;  %v9984_v20 = vsel %vm194_vm9, 1.0, %v12227_v9 }
 0x1d6   :  { %v162_v22 = vsub.f32 %v148_v16, %v160_v21  ;;  %v209_v16 = vsub.s32 0, %v193_v14 }
 0x1d7   :  { %v158_v23 = vpop.xlane.xlu1 %157 }
 0x1d8   :  { %v161_v24 = vmul.f32 0.03125, %v158_v23  ;;  %v164_v25 = vmul.f32 %v162_v22, %v162_v22  ;;  %v178_v46 = vmul.f32 %v9982_v45, %v162_v22  ;;  %v214_v18 = vrot.slane %v9986_v15, %v209_v16 }
 0x1da   :  { %v163_v26 = vsub.f32 %v149_v17, %v161_v24  ;;  %v166_v27 = vsel %vm152_vm4, %v164_v25, 0.0  ;;  %v9985_v17 = vsel %vm199_vm8, 1.0, %v12227_v9  ;;  %v218_v21 = vmul.f32 %v9984_v20, %v214_v18 }
 0x1db   :  { %167 = vadd.xlane.f32.xlu0 %v166_v27  ;;  %v210_v19 = vrot.slane %v9985_v17, %v209_v16  ;;  %v10028_v17 = vld [vmem:[%s14102_s6 + $0x5] ss:$0 sm:$0xff] }
 0x1dc   :  { %v165_v28 = vmul.f32 %v163_v26, %v163_v26  ;;  %v179_v50 = vmul.f32 %v9982_v45, %v163_v26  ;;  %v220_v23 = vsub.f32 1.0, %v218_v21  ;;  %v10020_v45 = vld [vmem:[%s14101_s5 + $0x98] sm:$0xff] }
 0x1dd   :  { %v217_v22 = vmul.f32 %v9984_v20, %v210_v19 }
 0x1de   :  { %v169_v29 = vsel %vm152_vm4, %v165_v28, 0.0  ;;  %v12420_v6 = vmul.f32 -10000.0, %v220_v23 }
 0x1df   :  { %170 = vadd.xlane.f32.xlu1 %v169_v29  ;;  %v219_v25 = vsub.f32 1.0, %v217_v22 }
 0x1e1   :  { %v12422_v28 = vmul.f32 -10000.0, %v219_v25 }
 0x264   :  { %v168_v39 = vpop.xlane.xlu0 %167 }
 0x265   :  { %v172_v40 = vmul.f32 0.03125, %v168_v39 }
 0x267   :  { %v180_v41 = vadd.f32 1e-12, %v172_v40 }
 0x268   :  { %v171_v42 = vpop.xlane.xlu1 %170 }
 0x269   :  { %12028 = vrsqrt.f32 %v180_v41  ;;  %v173_v43 = vmul.f32 0.03125, %v171_v42 }
 0x26b   :  { %v181_v44 = vadd.f32 1e-12, %v173_v43 }
 0x26d   :  { %12030 = vrsqrt.f32 %v181_v44 }
 0x276   :  { %v12029_v47 = vpop.eup %12028 }
 0x277   :  { %v184_v49 = vmul.f32 %v12029_v47, %v178_v46  ;;  %v10013_v46 = vld [vmem:[%s14101_s5 + $0x78] sm:$0xff] }
 0x279   :  { %v12360_v51 = vadd.f32 %v9983_v48, %v184_v49 }
 0x27a   :  { %v12031_v52 = vpop.eup %12030 }
 0x27b   :  { %v185_v53 = vmul.f32 %v12031_v52, %v179_v50  ;;  %11033 = vmatprep.mubr.msk.f32.mxu0 %vm152_vm4, %v12360_v51  ;;  %11055 = vmatprep.mubr.msk.f32.mxu1 %vm152_vm4, %v12360_v51  ;;  %v10019_v52 = vld [vmem:[%s14101_s5 + $0x90] sm:$0xff] }
 0x27d   :  { %v12366_v54 = vadd.f32 %v9983_v48, %v185_v53 }
 0x27f   :  { %11034 = vmatmul.mubr.msk.f32.vlgmr.msra.gmra.mxu0 %vm152_vm4, %v12366_v54  ;;  %11056 = vmatmul.mubr.msk.f32.vlgmr.msra.gmra.mxu1 %vm152_vm4, %v12366_v54 }
 0x280   :  { %11037 = vmatpush3.msra.mxu0 %v9993_v38  ;;  %11044 = vmatprep.mubr.msk.f32.mxu0 %vm152_vm4, %v12360_v51 }
 0x281   :  { %11038 = vmatprep.subr.mxu0 %v9992_v55  ;;  %11075 = vmatprep.mubr.msk.f32.mxu1 %vm12228_vm5, %v12227_v9 }
 0x282   :  { %11039 = vmatpush3.msra.mxu0 %v9992_v55  ;;  %v10018_v55 = vld [vmem:[%s14101_s5 + $0x88] sm:$0xff] }
 0x283   :  { %11040 = vmatprep.subr.mxu0 %v9991_v56 }
 0x284   :  { %11041 = vmatpush3.msra.mxu0 %v9991_v56 }
 0x285   :  { %11042 = vmatprep.subr.mxu0 %v9990_v57 }
 0x286   :  { %11043 = vmatpush3.msra.mxu0 %v9990_v57  ;;  %v10012_v57 = vld [vmem:[%s14101_s5 + $0x70] sm:$0xff] }
 0x287   :  { %11045 = vmatmul.mubr.msk.f32.vlgmr.msra.gmra.mxu0 %vm152_vm4, %v12366_v54  ;;  %11058 = vmatprep.subr.mxu0 %v12227_v9 }
 0x288   :  { %11060 = vmatprep.mubr.msk.f32.mxu0 %vm12228_vm5, %v12227_v9 }
 0x33f   :  { %v11057_v59 = vpop.f32.mrf.mxu1  ;;  %v11035_v61 = vpop.f32.mrf.mxu0 }
 0x340   :  { %v480_v60 = vadd.f32 %v11057_v59, %v10001_v58  ;;  %v310_v10 = vadd.f32 %v11035_v61, %v9987_v3  ;;  %v10011_v59 = vld [vmem:[%s14101_s5 + $0x68] sm:$0xff]  ;;  %v10027_v61 = vld [vmem:[%s14101_s5 + $0xb8] sm:$0xff] }
 0x341   :  { %v304_v62 = vpop.f32.mrf.mxu0  ;;  %v474_v8 = vpop.f32.mrf.mxu1 }
 0x342   :  { %11074 = vmatpush3.msra.mxu1 %v480_v60  ;;  %v305_v4 = vadd.f32 %v9987_v3, %v304_v62  ;;  %v475_v11 = vadd.f32 %v10001_v58, %v474_v8  ;;  %v10017_v58 = vld [vmem:[%s14101_s5 + $0x80] sm:$0xff]  ;;  %v10026_v62 = vld [vmem:[%s14101_s5 + $0xb0] sm:$0xff] }
 0x343   :  { %11089 = vmatprep.subr.mxu1 %v10020_v45  ;;  %v10010_v60 = vld [vmem:[%s14101_s5 + $0x60] sm:$0xff] }
 0x344   :  { %v10021_v8 = vld [vmem:[%s14102_s6 + $0x4] ss:$0 sm:$0xff] }
 0x347   :  { %v11046_v63 = vpop.f32.mrf.mxu0 }
 0x348   :  { %v395_v5 = vadd.f32 %v11046_v63, %v9994_v0  ;;  %v10025_v63 = vld [vmem:[%s14101_s5 + $0xa8] sm:$0xff] }
 0x349   :  { %v389_v1 = vpop.f32.mrf.mxu0 }
 0x34a   :  { %v390_v2 = vadd.f32 %v9994_v0, %v389_v1  ;;  %v10024_v0 = vld [vmem:[%s14101_s5 + $0xa0] sm:$0xff] }
 0x34c   :  { %11059 = vmatpush3.xpose.msk.msra.mxu0 %vm483_vm6, %v390_v2 }
 0x34d   :  { %11063 = vmatprep.subr.mxu0 %v12227_v9 }
 0x34f   :  { %11061 = vmatmul.mubr.msk.f32.vlgmr.msra.gmra.mxu0 %vm483_vm6, %v305_v4 }
 0x350   :  { %11064 = vmatpush3.xpose.msk.msra.mxu0 %vm483_vm6, %v395_v5  ;;  %11065 = vmatprep.mubr.msk.f32.mxu0 %vm12228_vm5, %v12227_v9 }
 0x351   :  { %11068 = vmatprep.subr.mxu0 %v12227_v9 }
 0x353   :  { %11066 = vmatmul.mubr.msk.f32.vlgmr.msra.gmra.mxu0 %vm483_vm6, %v310_v10 }
 0x354   :  { %11069 = vmatpush3.msra.mxu0 %v475_v11  ;;  %11070 = vmatprep.mubr.msk.f32.mxu0 %vm12228_vm5, %v12227_v9 }
 0x355   :  { %11078 = vmatprep.subr.mxu0 %v10013_v46 }
 0x40f   :  { %v556_v24 = vpop.f32.mrf.mxu0 }
 0x410   :  { %v636_v29 = vmul.f32 0.25, %v556_v24 }
 0x411   :  { %v11062_v26 = vpop.f32.mrf.mxu0 }
 0x412   :  { %v638_v33 = vadd.f32 %v636_v29, %v12422_v28 }
 0x413   :  { %v632_v27 = vpop.f32.mrf.mxu0 }
 0x414   :  { %v637_v30 = vmul.f32 0.25, %v632_v27  ;;  %v641_v34 = vsel %vm640_vm10, %v638_v33, -inf }
 0x415   :  { %v11067_v31 = vpop.f32.mrf.mxu0 }
 0x416   :  { %v639_v7 = vadd.f32 %v637_v30, %v12420_v6 }
 0x418   :  { %v644_v32 = vsel %vm640_vm10, %v639_v7, -inf }
 0x419   :  { %645 = vmax.xlane.f32.xlu1 %v644_v32 }
 0x41d   :  { %642 = vmax.xlane.f32.xlu1 %v641_v34 }
 0x4a2   :  { %v646_v35 = vpop.xlane.xlu1 %645 }
 0x4a3   :  { %v648_v36 = vsub.f32 %v639_v7, %v646_v35 }
 0x4a5   :  { %v651_v37 = vmul.f32 1.442695, %v648_v36 }
 0x4a6   :  { %v643_v38 = vpop.xlane.xlu1 %642 }
 0x4a7   :  { %12032 = vpow2.f32 %v651_v37  ;;  %v647_v39 = vsub.f32 %v638_v33, %v643_v38 }
 0x4a9   :  { %v649_v40 = vmul.f32 1.442695, %v647_v39 }
 0x4ab   :  { %12034 = vpow2.f32 %v649_v40 }
 0x4b4   :  { %v12033_v41 = vpop.eup %12032 }
 0x4b5   :  { %v656_v42 = vsel %vm640_vm10, %v12033_v41, 0.0 }
 0x4b6   :  { %657 = vadd.xlane.f32.xlu1 %v656_v42 }
 0x4b8   :  { %v12035_v43 = vpop.eup %12034 }
 0x4b9   :  { %v653_v44 = vsel %vm640_vm10, %v12035_v43, 0.0 }
 0x4ba   :  { %654 = vadd.xlane.f32.xlu1 %v653_v44 }
 0x53f   :  { %v658_v47 = vpop.xlane.xlu1 %657 }
 0x540   :  { %12036 = vrcp.f32 %v658_v47 }
 0x543   :  { %v655_v48 = vpop.xlane.xlu1 %654 }
 0x544   :  { %12038 = vrcp.f32 %v655_v48 }
 0x54d   :  { %v12037_v49 = vpop.eup %12036 }
 0x54e   :  { %v662_v50 = vmul.f32 %v12037_v49, %v12033_v41 }
 0x550   :  { %11076 = vmatmul.mubr.msk.f32.vlgmr.msra.gmra.mxu1 %vm640_vm10, %v662_v50  ;;  %v809_v50 = vld [vmem:[%s14103_s7] sm:$0xff] }
 0x551   :  { %v12039_v53 = vpop.eup %12038  ;;  %11090 = vmatpush3.msra.mxu1 %v10020_v45  ;;  %11097 = vmatprep.mubr.msk.f32.mxu1 %vm152_vm4, %v12360_v51 }
 0x552   :  { %11091 = vmatprep.subr.mxu1 %v10019_v52  ;;  %v661_v56 = vmul.f32 %v12039_v53, %v12035_v43  ;;  %v810_v43 = vld [vmem:[%s14103_s7 + $0x8] sm:$0xff]  ;;  %v10037_v53 = vld [vmem:[%s14103_s7 + $0x10] sm:$0xff] }
 0x553   :  { %11092 = vmatpush3.msra.mxu1 %v10019_v52  ;;  %v10038_v52 = vld [vmem:[%s14103_s7 + $0x18] sm:$0xff] }
 0x554   :  { %11093 = vmatprep.subr.mxu1 %v10018_v55  ;;  %11071 = vmatmul.mubr.msk.f32.vlgmr.msra.gmra.mxu0 %vm640_vm10, %v661_v56 }
 0x555   :  { %11079 = vmatpush3.msra.mxu0 %v10013_v46  ;;  %11094 = vmatpush3.msra.mxu1 %v10018_v55 }
 0x556   :  { %11080 = vmatprep.subr.mxu0 %v10012_v57  ;;  %11086 = vmatprep.mubr.msk.f32.mxu0 %vm152_vm4, %v12360_v51 }
 0x557   :  { %11095 = vmatprep.subr.mxu1 %v10017_v58  ;;  %11081 = vmatpush3.msra.mxu0 %v10012_v57 }
 0x558   :  { %11096 = vmatpush3.msra.mxu1 %v10017_v58  ;;  %11082 = vmatprep.subr.mxu0 %v10011_v59 }
 0x559   :  { %11098 = vmatmul.mubr.msk.f32.vlgmr.msra.gmra.mxu1 %vm152_vm4, %v12366_v54  ;;  %11083 = vmatpush3.msra.mxu0 %v10011_v59 }
 0x55a   :  { %11084 = vmatprep.subr.mxu0 %v10010_v60  ;;  %11111 = vmatprep.subr.mxu1 %v12227_v9 }
 0x55b   :  { %11085 = vmatpush3.msra.mxu0 %v10010_v60  ;;  %11113 = vmatprep.mubr.msk.f32.mxu1 %vm12228_vm5, %v12227_v9 }
 0x55c   :  { %11087 = vmatmul.mubr.msk.f32.vlgmr.msra.gmra.mxu0 %vm152_vm4, %v12366_v54  ;;  %11100 = vmatprep.subr.mxu0 %v10027_v61 }
 0x55d   :  { %11101 = vmatpush3.msra.mxu0 %v10027_v61  ;;  %11108 = vmatprep.mubr.msk.f32.mxu0 %vm152_vm4, %v12360_v51  ;;  %v10043_v61 = vld [vmem:[%s14107_s11] ss:$0 sm:$0xff] }
 0x55e   :  { %11102 = vmatprep.subr.mxu0 %v10026_v62 }
 0x55f   :  { %11103 = vmatpush3.msra.mxu0 %v10026_v62 }
 0x560   :  { %11104 = vmatprep.subr.mxu0 %v10025_v63 }
 0x561   :  { %11105 = vmatpush3.msra.mxu0 %v10025_v63 }
 0x562   :  { %11106 = vmatprep.subr.mxu0 %v10024_v0 }
 0x563   :  { %11107 = vmatpush3.msra.mxu0 %v10024_v0 }
 0x564   :  { %11109 = vmatmul.mubr.msk.f32.vlgmr.msra.gmra.mxu0 %vm152_vm4, %v12366_v54  ;;  %11121 = vmatprep.subr.mxu0 %v12227_v9 }
 0x565   :  { %11123 = vmatprep.mubr.msk.f32.mxu0 %vm12228_vm5, %v12227_v9 }
 0x610   :  { %v12486_v1 = vpop.f32.mrf.mxu1 }
 0x612   :  { %v11077_v2 = vpop.f32.mrf.mxu1 }
 0x614   :  { %v12488_v3 = vpop.f32.mrf.mxu0 }
 0x616   :  { %v11072_v4 = vpop.f32.mrf.mxu0 }
 0x619   :  { %v11099_v5 = vpop.f32.mrf.mxu1 }
 0x61a   :  { %v978_v16 = vadd.f32 %v11099_v5, %v10021_v8 }
 0x61b   :  { %v972_v10 = vpop.f32.mrf.mxu1 }
 0x61c   :  { %v973_v11 = vadd.f32 %v10021_v8, %v972_v10  ;;  %v11088_v12 = vpop.f32.mrf.mxu0 }
 0x61d   :  { %v893_v18 = vadd.f32 %v11088_v12, %v10014_v13 }
 0x61e   :  { %11112 = vmatpush3.xpose.msk.msra.mxu1 %vm483_vm6, %v973_v11  ;;  %v887_v14 = vpop.f32.mrf.mxu0 }
 0x61f   :  { %v888_v15 = vadd.f32 %v10014_v13, %v887_v14  ;;  %11116 = vmatprep.subr.mxu1 %v12227_v9 }
 0x621   :  { %11114 = vmatmul.mubr.msk.f32.vlgmr.msra.gmra.mxu1 %vm483_vm6, %v888_v15 }
 0x622   :  { %11117 = vmatpush3.xpose.msk.msra.mxu1 %vm483_vm6, %v978_v16  ;;  %11118 = vmatprep.mubr.msk.f32.mxu1 %vm12228_vm5, %v12227_v9 }
 0x623   :  { %11126 = vmatprep.subr.mxu1 %v12227_v9 }
 0x624   :  { %v11110_v19 = vpop.f32.mrf.mxu0 }
 0x625   :  { %v1063_v20 = vadd.f32 %v11110_v19, %v10028_v17  ;;  %11119 = vmatmul.mubr.msk.f32.vlgmr.msra.gmra.mxu1 %vm483_vm6, %v893_v18 }
 0x626   :  { %v1057_v21 = vpop.f32.mrf.mxu0  ;;  %11128 = vmatprep.mubr.msk.f32.mxu1 %vm12228_vm5, %v12227_v9 }
 0x627   :  { %v1058_v22 = vadd.f32 %v10028_v17, %v1057_v21  ;;  %11127 = vmatpush3.msra.mxu1 %v1063_v20  ;;  %v1607_v21 = vld [vmem:[%s14104_s8 + $0x18] sm:$0xff] }
 0x628   :  { %11138 = vmatprep.subr.mxu1 %v810_v43 }
 0x629   :  { %11122 = vmatpush3.msra.mxu0 %v1058_v22  ;;  %v1606_v22 = vld [vmem:[%s14104_s8 + $0x10] sm:$0xff] }
 0x62a   :  { %11131 = vmatprep.subr.mxu0 %v10038_v52 }
 0x6e1   :  { %v1138_v23 = vpop.f32.mrf.mxu1 }
 0x6e2   :  { %v1218_v24 = vmul.f32 0.25, %v1138_v23  ;;  %v1605_v23 = vld [vmem:[%s14104_s8 + $0x8] sm:$0xff] }
 0x6e3   :  { %v11115_v25 = vpop.f32.mrf.mxu1 }
 0x6e4   :  { %v1220_v26 = vadd.f32 %v1218_v24, %v12422_v28  ;;  %v1604_v24 = vld [vmem:[%s14104_s8] sm:$0xff]  ;;  %v1720_v25 = vld [vmem:[%s14106_s10 + $0x78] sm:$0xff] }
 0x6e5   :  { %v1214_v27 = vpop.f32.mrf.mxu1 }
 0x6e6   :  { %v1219_v29 = vmul.f32 0.25, %v1214_v27  ;;  %v1222_v30 = vsel %vm640_vm10, %v1220_v26, -inf  ;;  %v1718_v27 = vld [vmem:[%s14106_s10 + $0x68] sm:$0xff] }
 0x6e7   :  { %1223 = vmax.xlane.f32.xlu1 %v1222_v30  ;;  %v11120_v31 = vpop.f32.mrf.mxu1 }
 0x6e8   :  { %v1221_v7 = vadd.f32 %v1219_v29, %v12420_v6 }
 0x6ea   :  { %v1225_v32 = vsel %vm640_vm10, %v1221_v7, -inf }
 0x6eb   :  { %1226 = vmax.xlane.f32.xlu1 %v1225_v32 }
 0x770   :  { %v1224_v33 = vpop.xlane.xlu1 %1223 }
 0x771   :  { %v1228_v34 = vsub.f32 %v1220_v26, %v1224_v33  ;;  %v1719_v26 = vld [vmem:[%s14106_s10 + $0x70] sm:$0xff] }
 0x773   :  { %v1230_v35 = vmul.f32 1.442695, %v1228_v34  ;;  %v10044_v34 = vld [vmem:[%s14107_s11 + $0x1] ss:$0 sm:$0xff] }
 0x774   :  { %v1227_v36 = vpop.xlane.xlu1 %1226 }
 0x775   :  { %12040 = vpow2.f32 %v1230_v35  ;;  %v1229_v37 = vsub.f32 %v1221_v7, %v1227_v36 }
 0x777   :  { %v1232_v38 = vmul.f32 1.442695, %v1229_v37 }
 0x779   :  { %12042 = vpow2.f32 %v1232_v38 }
 0x782   :  { %v12041_v39 = vpop.eup %12040 }
 0x783   :  { %v1234_v40 = vsel %vm640_vm10, %v12041_v39, 0.0 }
 0x784   :  { %1235 = vadd.xlane.f32.xlu1 %v1234_v40  ;;  %v10045_v40 = vld [vmem:[%s14107_s11 + $0x2] ss:$0 sm:$0xff] }
 0x786   :  { %v12043_v41 = vpop.eup %12042 }
 0x787   :  { %v1237_v42 = vsel %vm640_vm10, %v12043_v41, 0.0 }
 0x788   :  { %1238 = vadd.xlane.f32.xlu0 %v1237_v42 }
 0x80d   :  { %v1236_v44 = vpop.xlane.xlu1 %1235 }
 0x80e   :  { %12044 = vrcp.f32 %v1236_v44  ;;  %v1717_v44 = vld [vmem:[%s14106_s10 + $0x60] sm:$0xff] }
 0x811   :  { %v1239_v45 = vpop.xlane.xlu0 %1238 }
 0x812   :  { %12046 = vrcp.f32 %v1239_v45  ;;  %v1716_v45 = vld [vmem:[%s14106_s10 + $0x58] sm:$0xff] }
 0x81b   :  { %v12045_v46 = vpop.eup %12044 }
 0x81c   :  { %v1242_v47 = vmul.f32 %v12045_v46, %v12041_v39  ;;  %v1715_v46 = vld [vmem:[%s14106_s10 + $0x50] sm:$0xff] }
 0x81e   :  { %11124 = vmatmul.mubr.msk.f32.vlgmr.msra.gmra.mxu0 %vm640_vm10, %v1242_v47  ;;  %v1714_v47 = vld [vmem:[%s14106_s10 + $0x48] sm:$0xff] }
 0x81f   :  { %v12047_v48 = vpop.eup %12046  ;;  %11132 = vmatpush3.msra.mxu0 %v10038_v52  ;;  %v1710_v52 = vld [vmem:[%s14106_s10 + $0x28] sm:$0xff] }
 0x820   :  { %v1243_v49 = vmul.f32 %v12047_v48, %v12043_v41  ;;  %11133 = vmatprep.subr.mxu0 %v10037_v53  ;;  %v1713_v48 = vld [vmem:[%s14106_s10 + $0x40] sm:$0xff] }
 0x821   :  { %11134 = vmatpush3.msra.mxu0 %v10037_v53  ;;  %v1709_v53 = vld [vmem:[%s14106_s10 + $0x20] sm:$0xff] }
 0x822   :  { %11129 = vmatmul.mubr.msk.f32.vlgmr.msra.gmra.mxu1 %vm640_vm10, %v1243_v49  ;;  %11145 = vmatprep.subr.mxu0 %v1607_v21  ;;  %v1712_v49 = vld [vmem:[%s14106_s10 + $0x38] sm:$0xff] }
 0x823   :  { %11139 = vmatpush3.msra.mxu1 %v810_v43  ;;  %11142 = vmatprep.mubr.msk.f32.mxu1 %vm483_vm6, %v12488_v3 }
 0x824   :  { %11140 = vmatprep.subr.mxu1 %v809_v50 }
 0x825   :  { %11141 = vmatpush3.msra.mxu1 %v809_v50  ;;  %v1711_v50 = vld [vmem:[%s14106_s10 + $0x30] sm:$0xff] }
 0x826   :  { %11143 = vmatmul.mubr.msk.f32.vlgmr.msra.gmra.mxu1 %vm483_vm6, %v12486_v1  ;;  %11156 = vmatprep.subr.mxu1 %v1720_v25 }
 0x827   :  { %11157 = vmatpush3.msra.mxu1 %v1720_v25 }
 0x828   :  { %11158 = vmatprep.subr.mxu1 %v1719_v26 }
 0x829   :  { %11159 = vmatpush3.msra.mxu1 %v1719_v26 }
 0x82a   :  { %11160 = vmatprep.subr.mxu1 %v1718_v27 }
 0x82b   :  { %11161 = vmatpush3.msra.mxu1 %v1718_v27 }
 0x82c   :  { %11162 = vmatprep.subr.mxu1 %v1717_v44 }
 0x82d   :  { %11163 = vmatpush3.msra.mxu1 %v1717_v44 }
 0x82e   :  { %11164 = vmatprep.subr.mxu1 %v1716_v45 }
 0x82f   :  { %11165 = vmatpush3.msra.mxu1 %v1716_v45 }
 0x830   :  { %11166 = vmatprep.subr.mxu1 %v1715_v46 }
 0x831   :  { %11167 = vmatpush3.msra.mxu1 %v1715_v46 }
 0x832   :  { %11168 = vmatprep.subr.mxu1 %v1714_v47 }
 0x833   :  { %11169 = vmatpush3.msra.mxu1 %v1714_v47 }
 0x834   :  { %11170 = vmatprep.subr.mxu1 %v1713_v48 }
 0x835   :  { %11171 = vmatpush3.msra.mxu1 %v1713_v48 }
 0x836   :  { %11172 = vmatprep.subr.mxu1 %v1712_v49 }
 0x837   :  { %11173 = vmatpush3.msra.mxu1 %v1712_v49  ;;  %v10051_v49 = vld [vmem:[%s14107_s11 + $0x5] ss:$0 sm:$0xff] }
 0x838   :  { %11174 = vmatprep.subr.mxu1 %v1711_v50 }
 0x839   :  { %11175 = vmatpush3.msra.mxu1 %v1711_v50 }
 0x83a   :  { %11176 = vmatprep.subr.mxu1 %v1710_v52 }
 0x83b   :  { %11177 = vmatpush3.msra.mxu1 %v1710_v52 }
 0x83c   :  { %11178 = vmatprep.subr.mxu1 %v1709_v53 }
 0x83d   :  { %11179 = vmatpush3.msra.mxu1 %v1709_v53 }
 0x8de   :  { %v1313_v55 = vpop.f32.mrf.mxu0 }
 0x8df   :  { %11135 = vmatprep.mubr.msk.f32.mxu0 %vm483_vm6, %v1313_v55  ;;  %v1708_v55 = vld [vmem:[%s14106_s10 + $0x18] sm:$0xff] }
 0x8e0   :  { %v11125_v56 = vpop.f32.mrf.mxu0  ;;  %11180 = vmatprep.subr.mxu1 %v1708_v55 }
 0x8e1   :  { %11181 = vmatpush3.msra.mxu1 %v1708_v55  ;;  %v1707_v56 = vld [vmem:[%s14106_s10 + $0x10] sm:$0xff] }
 0x8e2   :  { %v1386_v57 = vpop.f32.mrf.mxu1  ;;  %11182 = vmatprep.subr.mxu1 %v1707_v56  ;;  %v10061_v55 = vld [vmem:[%s14101_s5 + $0xf0] sm:$0xff] }
 0x8e3   :  { %11136 = vmatmul.mubr.msk.f32.vlgmr.msra.gmra.mxu0 %vm483_vm6, %v1386_v57  ;;  %v1706_v57 = vld [vmem:[%s14106_s10 + $0x8] sm:$0xff]  ;;  %11183 = vmatpush3.msra.mxu1 %v1707_v56 }
 0x8e4   :  { %v11130_v58 = vpop.f32.mrf.mxu1  ;;  %11146 = vmatpush3.msra.mxu0 %v1607_v21  ;;  %11184 = vmatprep.subr.mxu1 %v1706_v57  ;;  %v10060_v56 = vld [vmem:[%s14101_s5 + $0xe8] sm:$0xff] }
 0x8e5   :  { %11147 = vmatprep.subr.mxu0 %v1606_v22  ;;  %v1705_v58 = vld [vmem:[%s14106_s10] sm:$0xff]  ;;  %11185 = vmatpush3.msra.mxu1 %v1706_v57 }
 0x8e6   :  { %v11144_v59 = vpop.f32.mrf.mxu1  ;;  %11148 = vmatpush3.msra.mxu0 %v1606_v22  ;;  %11186 = vmatprep.subr.mxu1 %v1705_v58  ;;  %v10059_v57 = vld [vmem:[%s14101_s5 + $0xe0] sm:$0xff] }
 0x8e7   :  { %11149 = vmatprep.subr.mxu0 %v1605_v23  ;;  %11187 = vmatpush3.msra.mxu1 %v1705_v58  ;;  %v10069_v58 = vld [vmem:[%s14101_s5 + $0x118] sm:$0xff] }
 0x8e8   :  { %v1546_v63 = vpop.f32.mrf.mxu1  ;;  %11150 = vmatpush3.msra.mxu0 %v1605_v23  ;;  %11229 = vmatprep.subr.mxu1 %v12227_v9 }
 0x8e9   :  { %11151 = vmatprep.subr.mxu0 %v1604_v24 }
 0x8ea   :  { %11152 = vmatpush3.msra.mxu0 %v1604_v24 }
 0x9a3   :  { %v11137_v60 = vpop.f32.mrf.mxu0 }
 0x9a4   :  { %v1552_v62 = vadd.f32 %v11144_v59, %v11137_v60  ;;  %v10046_v59 = vld [vmem:[%s14105_s9] ss:$0 sm:$0xff] }
 0x9a5   :  { %v1465_v0 = vpop.f32.mrf.mxu0 }
 0x9a6   :  { %v1561_v1 = vadd.f32 %v10043_v61, %v1552_v62  ;;  %v1547_v2 = vadd.f32 %v1546_v63, %v1465_v0 }
 0x9a8   :  { %v1560_v3 = vadd.f32 %v10043_v61, %v1547_v2  ;;  %v1563_v4 = vadd.f32 %v1561_v1, %v12366_v54 }
 0x9aa   :  { %v1569_v5 = vsel %vm152_vm4, %v1563_v4, 0.0  ;;  %v1562_v8 = vadd.f32 %v1560_v3, %v12360_v51 }
 0x9ab   :  { %1570 = vadd.xlane.f32.xlu0 %v1569_v5 }
 0x9ac   :  { %v1566_v10 = vsel %vm152_vm4, %v1562_v8, 0.0 }
 0x9ad   :  { %1567 = vadd.xlane.f32.xlu1 %v1566_v10 }
 0xa34   :  { %v1571_v11 = vpop.xlane.xlu0 %1570 }
 0xa35   :  { %v1573_v12 = vmul.f32 0.03125, %v1571_v11 }
 0xa36   :  { %v1568_v13 = vpop.xlane.xlu1 %1567 }
 0xa37   :  { %v1575_v14 = vsub.f32 %v1563_v4, %v1573_v12  ;;  %v1572_v15 = vmul.f32 0.03125, %v1568_v13  ;;  %v10049_v13 = vld [vmem:[%s14107_s11 + $0x3] ss:$0 sm:$0xff] }
 0xa39   :  { %v1574_v16 = vsub.f32 %v1562_v8, %v1572_v15  ;;  %v1577_v17 = vmul.f32 %v1575_v14, %v1575_v14  ;;  %v1591_v36 = vmul.f32 %v10044_v34, %v1575_v14 }
 0xa3b   :  { %v1581_v18 = vsel %vm152_vm4, %v1577_v17, 0.0  ;;  %v1576_v19 = vmul.f32 %v1574_v16, %v1574_v16  ;;  %v1590_v37 = vmul.f32 %v10044_v34, %v1574_v16  ;;  %v10053_v34 = vld [vmem:[%s14101_s5 + $0xc8] sm:$0xff] }
 0xa3c   :  { %1582 = vadd.xlane.f32.xlu0 %v1581_v18 }
 0xa3d   :  { %v1578_v20 = vsel %vm152_vm4, %v1576_v19, 0.0 }
 0xa3e   :  { %1579 = vadd.xlane.f32.xlu1 %v1578_v20 }
 0xac5   :  { %v1583_v29 = vpop.xlane.xlu0 %1582 }
 0xac6   :  { %v1585_v30 = vmul.f32 0.03125, %v1583_v29 }
 0xac7   :  { %v1580_v31 = vpop.xlane.xlu1 %1579 }
 0xac8   :  { %v1593_v7 = vadd.f32 1e-12, %v1585_v30  ;;  %v1584_v32 = vmul.f32 0.03125, %v1580_v31 }
 0xaca   :  { %12048 = vrsqrt.f32 %v1593_v7  ;;  %v1592_v33 = vadd.f32 1e-12, %v1584_v32  ;;  %v10055_v32 = vld [vmem:[%s14101_s5 + $0xd8] sm:$0xff] }
 0xacb   :  { %11191 = vmatprep.subr.mxu0 %v10055_v32 }
 0xacc   :  { %12050 = vrsqrt.f32 %v1592_v33  ;;  %v10054_v33 = vld [vmem:[%s14101_s5 + $0xd0] sm:$0xff] }
 0xad7   :  { %v12049_v35 = vpop.eup %12048 }
 0xad8   :  { %v1597_v39 = vmul.f32 %v12049_v35, %v1591_v36  ;;  %v10052_v35 = vld [vmem:[%s14101_s5 + $0xc0] sm:$0xff]  ;;  %v10062_v36 = vld [vmem:[%s14101_s5 + $0xf8] sm:$0xff] }
 0xad9   :  { %v12051_v38 = vpop.eup %12050 }
 0xada   :  { %v1596_v41 = vmul.f32 %v12051_v38, %v1590_v37  ;;  %v12573_v43 = vadd.f32 %v10045_v40, %v1597_v39 }
 0xadc   :  { %v12571_v42 = vadd.f32 %v10045_v40, %v1596_v41 }
 0xade   :  { %11153 = vmatprep.mubr.msk.f32.mxu0 %vm152_vm4, %v12571_v42 }
 0xadf   :  { %11154 = vmatmul.mubr.msk.f32.vlgmr.msra.gmra.mxu0 %vm152_vm4, %v12573_v43 }
 0xae0   :  { %11192 = vmatpush3.msra.mxu0 %v10055_v32 }
 0xae1   :  { %11193 = vmatprep.subr.mxu0 %v10054_v33 }
 0xae2   :  { %11194 = vmatpush3.msra.mxu0 %v10054_v33 }
 0xae3   :  { %11195 = vmatprep.subr.mxu0 %v10053_v34 }
 0xae4   :  { %11196 = vmatpush3.msra.mxu0 %v10053_v34 }
 0xae5   :  { %11197 = vmatprep.subr.mxu0 %v10052_v35 }
 0xae6   :  { %11198 = vmatpush3.msra.mxu0 %v10052_v35 }
 0xae7   :  { %11202 = vmatprep.subr.mxu0 %v10062_v36 }
 0xb9f   :  { %v11155_v60 = vpop.f32.mrf.mxu0 }
 0xba0   :  { %v1691_v61 = vadd.f32 %v11155_v60, %v10046_v59  ;;  %v10067_v60 = vld [vmem:[%s14101_s5 + $0x108] sm:$0xff] }
 0xba1   :  { %v1685_v62 = vpop.f32.mrf.mxu0 }
 0xba2   :  { %v1698_v63 = vmul.f32 0.70710677, %v1691_v61  ;;  %v1686_v0 = vadd.f32 %v10046_v59, %v1685_v62  ;;  %v1695_v10 = vmul.f32 0.5, %v1691_v61  ;;  %v10068_v59 = vld [vmem:[%s14101_s5 + $0x110] sm:$0xff]  ;;  %v10066_v61 = vld [vmem:[%s14101_s5 + $0x100] sm:$0xff] }
 0xba4   :  { %12052 = verf.f32 %v1698_v63  ;;  %v1697_v1 = vmul.f32 0.70710677, %v1686_v0  ;;  %v1694_v5 = vmul.f32 0.5, %v1686_v0  ;;  %v10063_v0 = vld [vmem:[%s14102_s6 + $0x7] ss:$0 sm:$0xff] }
 0xba6   :  { %12054 = verf.f32 %v1697_v1 }
 0xbb1   :  { %v12053_v2 = vpop.eup %12052 }
 0xbb2   :  { %v1702_v4 = vadd.f32 1.0, %v12053_v2  ;;  %v10056_v2 = vld [vmem:[%s14102_s6 + $0x6] ss:$0 sm:$0xff] }
 0xbb3   :  { %v12055_v3 = vpop.eup %12054 }
 0xbb4   :  { %v1701_v8 = vadd.f32 1.0, %v12055_v3  ;;  %v1704_v12 = vmul.f32 %v1702_v4, %v1695_v10 }
 0xbb6   :  { %v1703_v11 = vmul.f32 %v1701_v8, %v1694_v5 }
 0xbb8   :  { %11188 = vmatprep.mubr.f32.mxu1 %v1703_v11  ;;  %v10070_v11 = vld [vmem:[%s14102_s6 + $0x8] ss:$0 sm:$0xff] }
 0xbb9   :  { %11189 = vmatmul.mubr.f32.vlgmr.msra.gmra.mxu1 %v1704_v12 }
 0xbba   :  { %11231 = vmatprep.mubr.msk.f32.mxu1 %vm12228_vm5, %v12227_v9 }
 0xc79   :  { %v11190_v14 = vpop.f32.mrf.mxu1 }
 0xc7a   :  { %v1798_v15 = vadd.f32 %v11190_v14, %v10049_v13 }
 0xc7b   :  { %v1792_v16 = vpop.f32.mrf.mxu1 }
 0xc7c   :  { %v1793_v17 = vadd.f32 %v10049_v13, %v1792_v16  ;;  %v1802_v18 = vadd.f32 %v1798_v15, %v12573_v43  ;;  %v10050_v43 = vld [vmem:[%s14107_s11 + $0x4] ss:$0 sm:$0xff] }
 0xc7e   :  { %v1808_v19 = vsel %vm152_vm4, %v1802_v18, 0.0  ;;  %v1801_v20 = vadd.f32 %v1793_v17, %v12571_v42 }
 0xc7f   :  { %1809 = vadd.xlane.f32.xlu0 %v1808_v19 }
 0xc80   :  { %v1805_v21 = vsel %vm152_vm4, %v1801_v20, 0.0 }
 0xc81   :  { %1806 = vadd.xlane.f32.xlu1 %v1805_v21 }
 0xd08   :  { %v1810_v22 = vpop.xlane.xlu0 %1809 }
 0xd09   :  { %v1812_v23 = vmul.f32 0.03125, %v1810_v22 }
 0xd0a   :  { %v1807_v24 = vpop.xlane.xlu1 %1806 }
 0xd0b   :  { %v1814_v25 = vsub.f32 %v1802_v18, %v1812_v23  ;;  %v1811_v26 = vmul.f32 0.03125, %v1807_v24 }
 0xd0d   :  { %v1813_v27 = vsub.f32 %v1801_v20, %v1811_v26  ;;  %v1816_v29 = vmul.f32 %v1814_v25, %v1814_v25  ;;  %v1830_v45 = vmul.f32 %v10050_v43, %v1814_v25 }
 0xd0f   :  { %v1820_v30 = vsel %vm152_vm4, %v1816_v29, 0.0  ;;  %v1815_v31 = vmul.f32 %v1813_v27, %v1813_v27  ;;  %v1829_v46 = vmul.f32 %v10050_v43, %v1813_v27  ;;  %v10090_v43 = vld [vmem:[%s14101_s5 + $0x150] sm:$0xff] }
 0xd10   :  { %1821 = vadd.xlane.f32.xlu0 %v1820_v30 }
 0xd11   :  { %v1817_v7 = vsel %vm152_vm4, %v1815_v31, 0.0 }
 0xd12   :  { %1818 = vadd.xlane.f32.xlu1 %v1817_v7 }
 0xd99   :  { %v1822_v37 = vpop.xlane.xlu0 %1821 }
 0xd9a   :  { %v1824_v38 = vmul.f32 0.03125, %v1822_v37  ;;  %v10084_v37 = vld [vmem:[%s14101_s5 + $0x138] sm:$0xff] }
 0xd9b   :  { %v1819_v39 = vpop.xlane.xlu1 %1818 }
 0xd9c   :  { %v1832_v40 = vadd.f32 1e-12, %v1824_v38  ;;  %v1823_v41 = vmul.f32 0.03125, %v1819_v39 }
 0xd9e   :  { %12056 = vrsqrt.f32 %v1832_v40  ;;  %v1831_v42 = vadd.f32 1e-12, %v1823_v41 }
 0xda0   :  { %12058 = vrsqrt.f32 %v1831_v42 }
 0xdab   :  { %v12057_v44 = vpop.eup %12056 }
 0xdac   :  { %v1836_v48 = vmul.f32 %v12057_v44, %v1830_v45  ;;  %v10083_v45 = vld [vmem:[%s14101_s5 + $0x130] sm:$0xff] }
 0xdad   :  { %v12059_v47 = vpop.eup %12058 }
 0xdae   :  { %v1835_v50 = vmul.f32 %v12059_v47, %v1829_v46  ;;  %v12656_v53 = vadd.f32 %v10051_v49, %v1836_v48  ;;  %v10089_v46 = vld [vmem:[%s14101_s5 + $0x148] sm:$0xff]  ;;  %v10088_v48 = vld [vmem:[%s14101_s5 + $0x140] sm:$0xff] }
 0xdaf   :  { %v10082_v47 = vld [vmem:[%s14101_s5 + $0x128] sm:$0xff] }
 0xdb0   :  { %v12654_v52 = vadd.f32 %v10051_v49, %v1835_v50  ;;  %v10081_v49 = vld [vmem:[%s14101_s5 + $0x120] sm:$0xff]  ;;  %v10098_v50 = vld [vmem:[%s14101_s5 + $0x178] sm:$0xff] }
 0xdb2   :  { %11199 = vmatprep.mubr.msk.f32.mxu0 %vm152_vm4, %v12654_v52 }
 0xdb3   :  { %11200 = vmatmul.mubr.msk.f32.vlgmr.msra.gmra.mxu0 %vm152_vm4, %v12656_v53 }
 0xdb4   :  { %11203 = vmatpush3.msra.mxu0 %v10062_v36  ;;  %11210 = vmatprep.mubr.msk.f32.mxu0 %vm152_vm4, %v12654_v52  ;;  %v10091_v36 = vld [vmem:[%s14101_s5 + $0x158] sm:$0xff] }
 0xdb5   :  { %11204 = vmatprep.subr.mxu0 %v10061_v55 }
 0xdb6   :  { %11205 = vmatpush3.msra.mxu0 %v10061_v55  ;;  %v10097_v55 = vld [vmem:[%s14101_s5 + $0x170] sm:$0xff] }
 0xdb7   :  { %11206 = vmatprep.subr.mxu0 %v10060_v56 }
 0xdb8   :  { %11207 = vmatpush3.msra.mxu0 %v10060_v56  ;;  %v10096_v56 = vld [vmem:[%s14101_s5 + $0x168] sm:$0xff] }
 0xdb9   :  { %11208 = vmatprep.subr.mxu0 %v10059_v57 }
 0xdba   :  { %11209 = vmatpush3.msra.mxu0 %v10059_v57  ;;  %v10095_v57 = vld [vmem:[%s14101_s5 + $0x160] sm:$0xff] }
 0xdbb   :  { %11211 = vmatmul.mubr.msk.f32.vlgmr.msra.gmra.mxu0 %vm152_vm4, %v12656_v53  ;;  %11213 = vmatprep.subr.mxu0 %v10069_v58 }
 0xdbc   :  { %11214 = vmatpush3.msra.mxu0 %v10069_v58  ;;  %11221 = vmatprep.mubr.msk.f32.mxu0 %vm152_vm4, %v12654_v52 }
 0xdbd   :  { %11215 = vmatprep.subr.mxu0 %v10068_v59 }
 0xdbe   :  { %11216 = vmatpush3.msra.mxu0 %v10068_v59 }
 0xdbf   :  { %11217 = vmatprep.subr.mxu0 %v10067_v60 }
 0xdc0   :  { %11218 = vmatpush3.msra.mxu0 %v10067_v60 }
 0xdc1   :  { %11219 = vmatprep.subr.mxu0 %v10066_v61 }
 0xdc2   :  { %11220 = vmatpush3.msra.mxu0 %v10066_v61 }
 0xdc3   :  { %11222 = vmatmul.mubr.msk.f32.vlgmr.msra.gmra.mxu0 %vm152_vm4, %v12656_v53  ;;  %11224 = vmatprep.subr.mxu0 %v12227_v9 }
 0xdc4   :  { %11226 = vmatprep.mubr.msk.f32.mxu0 %vm12228_vm5, %v12227_v9 }
 0xe73   :  { %v11201_v62 = vpop.f32.mrf.mxu0 }
 0xe74   :  { %v1931_v8 = vadd.f32 %v11201_v62, %v10056_v2 }
 0xe75   :  { %v1925_v63 = vpop.f32.mrf.mxu0 }
 0xe76   :  { %v1926_v10 = vadd.f32 %v10056_v2, %v1925_v63  ;;  %v10085_v2 = vld [vmem:[%s14102_s6 + $0x9] ss:$0 sm:$0xff] }
 0xe7b   :  { %v11212_v1 = vpop.f32.mrf.mxu0 }
 0xe7c   :  { %v2016_v3 = vadd.f32 %v11212_v1, %v10063_v0 }
 0xe7d   :  { %v2010_v4 = vpop.f32.mrf.mxu0 }
 0xe7e   :  { %v2011_v5 = vadd.f32 %v10063_v0, %v2010_v4  ;;  %11230 = vmatpush3.xpose.msk.msra.mxu1 %vm483_vm6, %v2016_v3  ;;  %v10092_v0 = vld [vmem:[%s14102_s6 + $0xa] ss:$0 sm:$0xff] }
 0xe7f   :  { %11239 = vmatprep.subr.mxu1 %v12227_v9 }
 0xe80   :  { %11225 = vmatpush3.xpose.msk.msra.mxu0 %vm483_vm6, %v2011_v5 }
 0xe81   :  { %11232 = vmatmul.mubr.msk.f32.vlgmr.msra.gmra.mxu1 %vm483_vm6, %v1931_v8  ;;  %11234 = vmatprep.subr.mxu0 %v12227_v9 }
 0xe82   :  { %11241 = vmatprep.mubr.msk.f32.mxu1 %vm12228_vm5, %v12227_v9 }
 0xe83   :  { %v11223_v12 = vpop.f32.mrf.mxu0  ;;  %11227 = vmatmul.mubr.msk.f32.vlgmr.msra.gmra.mxu0 %vm483_vm6, %v1926_v10  ;;  %v10099_v10 = vld [vmem:[%s14102_s6 + $0xb] ss:$0 sm:$0xff] }
 0xe84   :  { %v2101_v13 = vadd.f32 %v11223_v12, %v10070_v11  ;;  %11236 = vmatprep.mubr.msk.f32.mxu0 %vm12228_vm5, %v12227_v9 }
 0xe85   :  { %v2095_v14 = vpop.f32.mrf.mxu0 }
 0xe86   :  { %v2096_v15 = vadd.f32 %v10070_v11, %v2095_v14  ;;  %11240 = vmatpush3.msra.mxu1 %v2101_v13 }
 0xe87   :  { %11255 = vmatprep.subr.mxu1 %v10091_v36 }
 0xe88   :  { %11235 = vmatpush3.msra.mxu0 %v2096_v15 }
 0xe89   :  { %11244 = vmatprep.subr.mxu0 %v10084_v37 }
 0xf41   :  { %v2252_v16 = vpop.f32.mrf.mxu1 }
 0xf42   :  { %v2257_v17 = vmul.f32 0.25, %v2252_v16 }
 0xf43   :  { %v2176_v18 = vpop.f32.mrf.mxu0  ;;  %v11233_v19 = vpop.f32.mrf.mxu1 }
 0xf44   :  { %v2256_v20 = vmul.f32 0.25, %v2176_v18  ;;  %v2259_v21 = vadd.f32 %v2257_v17, %v12420_v6 }
 0xf45   :  { %v11228_v22 = vpop.f32.mrf.mxu0 }
 0xf46   :  { %v2263_v23 = vsel %vm640_vm10, %v2259_v21, -inf  ;;  %v2258_v24 = vadd.f32 %v2256_v20, %v12422_v28 }
 0xf47   :  { %2264 = vmax.xlane.f32.xlu1 %v2263_v23 }
 0xf48   :  { %v2260_v25 = vsel %vm640_vm10, %v2258_v24, -inf }
 0xf49   :  { %2261 = vmax.xlane.f32.xlu0 %v2260_v25 }
 0xfd0   :  { %v2265_v26 = vpop.xlane.xlu1 %2264 }
 0xfd1   :  { %v2267_v27 = vsub.f32 %v2259_v21, %v2265_v26 }
 0xfd2   :  { %v2262_v29 = vpop.xlane.xlu0 %2261 }
 0xfd3   :  { %v2270_v30 = vmul.f32 1.442695, %v2267_v27  ;;  %v2266_v31 = vsub.f32 %v2258_v24, %v2262_v29 }
 0xfd5   :  { %12060 = vpow2.f32 %v2270_v30  ;;  %v2268_v7 = vmul.f32 1.442695, %v2266_v31 }
 0xfd7   :  { %12062 = vpow2.f32 %v2268_v7 }
 0xfe2   :  { %v12061_v32 = vpop.eup %12060 }
 0xfe3   :  { %v2275_v33 = vsel %vm640_vm10, %v12061_v32, 0.0 }
 0xfe4   :  { %v12063_v34 = vpop.eup %12062  ;;  %2276 = vadd.xlane.f32.xlu1 %v2275_v33 }
 0xfe5   :  { %v2272_v35 = vsel %vm640_vm10, %v12063_v34, 0.0 }
 0xfe6   :  { %2273 = vadd.xlane.f32.xlu0 %v2272_v35 }
0x106d   :  { %v2277_v38 = vpop.xlane.xlu1 %2276 }
0x106e   :  { %12064 = vrcp.f32 %v2277_v38 }
0x106f   :  { %v2274_v39 = vpop.xlane.xlu0 %2273 }
0x1070   :  { %12066 = vrcp.f32 %v2274_v39 }
0x107b   :  { %v12065_v40 = vpop.eup %12064 }
0x107c   :  { %v2281_v41 = vmul.f32 %v12065_v40, %v12061_v32 }
0x107d   :  { %v12067_v42 = vpop.eup %12066 }
0x107e   :  { %11242 = vmatmul.mubr.msk.f32.vlgmr.msra.gmra.mxu1 %vm640_vm10, %v2281_v41  ;;  %v2280_v44 = vmul.f32 %v12067_v42, %v12063_v34 }
0x107f   :  { %11256 = vmatpush3.msra.mxu1 %v10091_v36  ;;  %11263 = vmatprep.mubr.msk.f32.mxu1 %vm152_vm4, %v12654_v52  ;;  %v10080_v36 = vld [vmem:[%s14103_s7 + $0x28] sm:$0xff] }
0x1080   :  { %11257 = vmatprep.subr.mxu1 %v10090_v43  ;;  %11237 = vmatmul.mubr.msk.f32.vlgmr.msra.gmra.mxu0 %vm640_vm10, %v2280_v44  ;;  %v10109_v44 = vld [vmem:[%s14103_s7 + $0x38] sm:$0xff] }
0x1081   :  { %11245 = vmatpush3.msra.mxu0 %v10084_v37  ;;  %11258 = vmatpush3.msra.mxu1 %v10090_v43  ;;  %v10079_v43 = vld [vmem:[%s14103_s7 + $0x20] sm:$0xff] }
0x1082   :  { %11246 = vmatprep.subr.mxu0 %v10083_v45  ;;  %11252 = vmatprep.mubr.msk.f32.mxu0 %vm152_vm4, %v12654_v52 }
0x1083   :  { %11259 = vmatprep.subr.mxu1 %v10089_v46  ;;  %11247 = vmatpush3.msra.mxu0 %v10083_v45  ;;  %v10108_v45 = vld [vmem:[%s14103_s7 + $0x30] sm:$0xff] }
0x1084   :  { %11260 = vmatpush3.msra.mxu1 %v10089_v46  ;;  %11248 = vmatprep.subr.mxu0 %v10082_v47 }
0x1085   :  { %11261 = vmatprep.subr.mxu1 %v10088_v48  ;;  %11249 = vmatpush3.msra.mxu0 %v10082_v47 }
0x1086   :  { %11262 = vmatpush3.msra.mxu1 %v10088_v48  ;;  %11250 = vmatprep.subr.mxu0 %v10081_v49 }
0x1087   :  { %11264 = vmatmul.mubr.msk.f32.vlgmr.msra.gmra.mxu1 %vm152_vm4, %v12656_v53  ;;  %11251 = vmatpush3.msra.mxu0 %v10081_v49 }
0x1088   :  { %11253 = vmatmul.mubr.msk.f32.vlgmr.msra.gmra.mxu0 %vm152_vm4, %v12656_v53  ;;  %11266 = vmatprep.subr.mxu0 %v10098_v50 }
0x1089   :  { %11267 = vmatpush3.msra.mxu0 %v10098_v50  ;;  %11274 = vmatprep.mubr.msk.f32.mxu0 %vm152_vm4, %v12654_v52 }
0x108a   :  { %11268 = vmatprep.subr.mxu0 %v10097_v55  ;;  %11277 = vmatprep.subr.mxu1 %v12227_v9 }
0x108b   :  { %11269 = vmatpush3.msra.mxu0 %v10097_v55  ;;  %11279 = vmatprep.mubr.msk.f32.mxu1 %vm12228_vm5, %v12227_v9 }
0x108c   :  { %11270 = vmatprep.subr.mxu0 %v10096_v56 }
0x108d   :  { %11271 = vmatpush3.msra.mxu0 %v10096_v56  ;;  %v10114_v56 = vld [vmem:[%s14107_s11 + $0x6] ss:$0 sm:$0xff] }
0x108e   :  { %11272 = vmatprep.subr.mxu0 %v10095_v57 }
0x108f   :  { %11273 = vmatpush3.msra.mxu0 %v10095_v57 }
0x1090   :  { %11275 = vmatmul.mubr.msk.f32.vlgmr.msra.gmra.mxu0 %vm152_vm4, %v12656_v53  ;;  %11287 = vmatprep.subr.mxu0 %v12227_v9 }
0x1091   :  { %11289 = vmatprep.mubr.msk.f32.mxu0 %vm12228_vm5, %v12227_v9 }
0x113e   :  { %v12775_v58 = vpop.f32.mrf.mxu1 }
0x1140   :  { %v12777_v59 = vpop.f32.mrf.mxu0  ;;  %v11243_v60 = vpop.f32.mrf.mxu1 }
0x1142   :  { %v11238_v61 = vpop.f32.mrf.mxu0 }
0x1147   :  { %v11265_v62 = vpop.f32.mrf.mxu1 }
0x1148   :  { %v11254_v63 = vpop.f32.mrf.mxu0  ;;  %v2598_v8 = vadd.f32 %v11265_v62, %v10092_v0 }
0x1149   :  { %v2592_v1 = vpop.f32.mrf.mxu1  ;;  %v2513_v12 = vadd.f32 %v11254_v63, %v10085_v2 }
0x114a   :  { %v2593_v3 = vadd.f32 %v10092_v0, %v2592_v1  ;;  %v2507_v4 = vpop.f32.mrf.mxu0 }
0x114b   :  { %v2508_v5 = vadd.f32 %v10085_v2, %v2507_v4 }
0x114c   :  { %11278 = vmatpush3.xpose.msk.msra.mxu1 %vm483_vm6, %v2593_v3 }
0x114d   :  { %11282 = vmatprep.subr.mxu1 %v12227_v9 }
0x114f   :  { %11280 = vmatmul.mubr.msk.f32.vlgmr.msra.gmra.mxu1 %vm483_vm6, %v2508_v5 }
0x1150   :  { %11283 = vmatpush3.xpose.msk.msra.mxu1 %vm483_vm6, %v2598_v8  ;;  %v11276_v11 = vpop.f32.mrf.mxu0  ;;  %11284 = vmatprep.mubr.msk.f32.mxu1 %vm12228_vm5, %v12227_v9 }
0x1151   :  { %v2683_v13 = vadd.f32 %v11276_v11, %v10099_v10  ;;  %11292 = vmatprep.subr.mxu1 %v12227_v9 }
0x1152   :  { %v2677_v14 = vpop.f32.mrf.mxu0 }
0x1153   :  { %v2678_v15 = vadd.f32 %v10099_v10, %v2677_v14  ;;  %11285 = vmatmul.mubr.msk.f32.vlgmr.msra.gmra.mxu1 %vm483_vm6, %v2513_v12 }
0x1154   :  { %11293 = vmatpush3.msra.mxu1 %v2683_v13  ;;  %11294 = vmatprep.mubr.msk.f32.mxu1 %vm12228_vm5, %v12227_v9 }
0x1155   :  { %11288 = vmatpush3.msra.mxu0 %v2678_v15  ;;  %11304 = vmatprep.subr.mxu1 %v10080_v36  ;;  %v10119_v15 = vld [vmem:[%s14104_s8 + $0x30] sm:$0xff] }
0x1156   :  { %11297 = vmatprep.subr.mxu0 %v10109_v44 }
0x120f   :  { %v2758_v16 = vpop.f32.mrf.mxu1 }
0x1210   :  { %v2838_v17 = vmul.f32 0.25, %v2758_v16  ;;  %v10118_v16 = vld [vmem:[%s14104_s8 + $0x28] sm:$0xff] }
0x1211   :  { %v11281_v18 = vpop.f32.mrf.mxu1 }
0x1212   :  { %v2840_v19 = vadd.f32 %v2838_v17, %v12422_v28  ;;  %v10117_v17 = vld [vmem:[%s14104_s8 + $0x20] sm:$0xff]  ;;  %v10146_v18 = vld [vmem:[%s14101_s5 + $0x198] sm:$0xff] }
0x1213   :  { %v2834_v20 = vpop.f32.mrf.mxu1 }
0x1214   :  { %v2839_v21 = vmul.f32 0.25, %v2834_v20  ;;  %v2842_v22 = vsel %vm640_vm10, %v2840_v19, -inf  ;;  %v10138_v20 = vld [vmem:[%s14106_s10 + $0xf0] sm:$0xff] }
0x1215   :  { %2843 = vmax.xlane.f32.xlu1 %v2842_v22  ;;  %v11286_v23 = vpop.f32.mrf.mxu1  ;;  %v10136_v22 = vld [vmem:[%s14106_s10 + $0xe0] sm:$0xff] }
0x1216   :  { %v2841_v24 = vadd.f32 %v2839_v21, %v12420_v6  ;;  %v10137_v21 = vld [vmem:[%s14106_s10 + $0xe8] sm:$0xff] }
0x1218   :  { %v2845_v25 = vsel %vm640_vm10, %v2841_v24, -inf }
0x1219   :  { %2846 = vmax.xlane.f32.xlu0 %v2845_v25 }
0x129e   :  { %v2844_v26 = vpop.xlane.xlu1 %2843 }
0x129f   :  { %v2848_v27 = vsub.f32 %v2840_v19, %v2844_v26  ;;  %v10139_v19 = vld [vmem:[%s14106_s10 + $0xf8] sm:$0xff] }
0x12a1   :  { %v2850_v29 = vmul.f32 1.442695, %v2848_v27 }
0x12a2   :  { %v2847_v30 = vpop.xlane.xlu0 %2846 }
0x12a3   :  { %12068 = vpow2.f32 %v2850_v29  ;;  %v2849_v31 = vsub.f32 %v2841_v24, %v2847_v30  ;;  %v10115_v30 = vld [vmem:[%s14107_s11 + $0x7] ss:$0 sm:$0xff] }
0x12a5   :  { %v2852_v7 = vmul.f32 1.442695, %v2849_v31 }
0x12a7   :  { %12070 = vpow2.f32 %v2852_v7 }
0x12b0   :  { %v12069_v32 = vpop.eup %12068 }
0x12b1   :  { %v2854_v33 = vsel %vm640_vm10, %v12069_v32, 0.0 }
0x12b2   :  { %2855 = vadd.xlane.f32.xlu1 %v2854_v33 }
0x12b4   :  { %v12071_v34 = vpop.eup %12070 }
0x12b5   :  { %v2857_v35 = vsel %vm640_vm10, %v12071_v34, 0.0 }
0x12b6   :  { %2858 = vadd.xlane.f32.xlu0 %v2857_v35  ;;  %v10116_v35 = vld [vmem:[%s14107_s11 + $0x8] ss:$0 sm:$0xff] }
0x133b   :  { %v2856_v37 = vpop.xlane.xlu1 %2855 }
0x133c   :  { %12072 = vrcp.f32 %v2856_v37 }
0x133f   :  { %v2859_v38 = vpop.xlane.xlu0 %2858 }
0x1340   :  { %12074 = vrcp.f32 %v2859_v38 }
0x1349   :  { %v12073_v39 = vpop.eup %12072 }
0x134a   :  { %v2862_v40 = vmul.f32 %v12073_v39, %v12069_v32  ;;  %v10145_v39 = vld [vmem:[%s14101_s5 + $0x190] sm:$0xff] }
0x134c   :  { %11290 = vmatmul.mubr.msk.f32.vlgmr.msra.gmra.mxu0 %vm640_vm10, %v2862_v40  ;;  %v10144_v40 = vld [vmem:[%s14101_s5 + $0x188] sm:$0xff] }
0x134d   :  { %v12075_v41 = vpop.eup %12074  ;;  %11298 = vmatpush3.msra.mxu0 %v10109_v44  ;;  %v10151_v44 = vld [vmem:[%s14101_s5 + $0x1a8] sm:$0xff] }
0x134e   :  { %v2863_v42 = vmul.f32 %v12075_v41, %v12071_v34  ;;  %11299 = vmatprep.subr.mxu0 %v10108_v45  ;;  %v10143_v41 = vld [vmem:[%s14101_s5 + $0x180] sm:$0xff] }
0x134f   :  { %11300 = vmatpush3.msra.mxu0 %v10108_v45  ;;  %v10150_v45 = vld [vmem:[%s14101_s5 + $0x1a0] sm:$0xff] }
0x1350   :  { %11295 = vmatmul.mubr.msk.f32.vlgmr.msra.gmra.mxu1 %vm640_vm10, %v2863_v42  ;;  %v10153_v42 = vld [vmem:[%s14101_s5 + $0x1b8] sm:$0xff] }
0x1351   :  { %11305 = vmatpush3.msra.mxu1 %v10080_v36  ;;  %11308 = vmatprep.mubr.msk.f32.mxu1 %vm483_vm6, %v12777_v59 }
0x1352   :  { %11306 = vmatprep.subr.mxu1 %v10079_v43 }
0x1353   :  { %11307 = vmatpush3.msra.mxu1 %v10079_v43  ;;  %v10152_v43 = vld [vmem:[%s14101_s5 + $0x1b0] sm:$0xff] }
0x1354   :  { %11309 = vmatmul.mubr.msk.f32.vlgmr.msra.gmra.mxu1 %vm483_vm6, %v12775_v58  ;;  %11322 = vmatprep.subr.mxu1 %v10139_v19 }
0x1355   :  { %11323 = vmatpush3.msra.mxu1 %v10139_v19 }
0x1356   :  { %11324 = vmatprep.subr.mxu1 %v10138_v20 }
0x1357   :  { %11325 = vmatpush3.msra.mxu1 %v10138_v20  ;;  %v10147_v20 = vld [vmem:[%s14102_s6 + $0xc] ss:$0 sm:$0xff] }
0x1358   :  { %11326 = vmatprep.subr.mxu1 %v10137_v21 }
0x1359   :  { %11327 = vmatpush3.msra.mxu1 %v10137_v21 }
0x135a   :  { %11328 = vmatprep.subr.mxu1 %v10136_v22 }
0x135b   :  { %11329 = vmatpush3.msra.mxu1 %v10136_v22 }
0x140c   :  { %v2933_v46 = vpop.f32.mrf.mxu0 }
0x140d   :  { %11301 = vmatprep.mubr.msk.f32.mxu0 %vm483_vm6, %v2933_v46  ;;  %v10160_v46 = vld [vmem:[%s14101_s5 + $0x1d8] sm:$0xff] }
0x140e   :  { %v11291_v47 = vpop.f32.mrf.mxu0 }
0x140f   :  { %v10159_v47 = vld [vmem:[%s14101_s5 + $0x1d0] sm:$0xff] }
0x1410   :  { %v3006_v48 = vpop.f32.mrf.mxu1 }
0x1411   :  { %11302 = vmatmul.mubr.msk.f32.vlgmr.msra.gmra.mxu0 %vm483_vm6, %v3006_v48  ;;  %v10158_v48 = vld [vmem:[%s14101_s5 + $0x1c8] sm:$0xff] }
0x1412   :  { %v11296_v49 = vpop.f32.mrf.mxu1 }
0x1413   :  { %v10157_v49 = vld [vmem:[%s14101_s5 + $0x1c0] sm:$0xff] }
0x1414   :  { %v11310_v50 = vpop.f32.mrf.mxu1 }
0x1416   :  { %v3166_v58 = vpop.f32.mrf.mxu1 }
0x14d1   :  { %v11303_v55 = vpop.f32.mrf.mxu0 }
0x14d2   :  { %v3172_v57 = vadd.f32 %v11310_v50, %v11303_v55  ;;  %v10135_v50 = vld [vmem:[%s14106_s10 + $0xd8] sm:$0xff]  ;;  %v10134_v55 = vld [vmem:[%s14106_s10 + $0xd0] sm:$0xff] }
0x14d3   :  { %v3085_v59 = vpop.f32.mrf.mxu0  ;;  %11330 = vmatprep.subr.mxu1 %v10135_v50 }
0x14d4   :  { %v3181_v60 = vadd.f32 %v10114_v56, %v3172_v57  ;;  %v3167_v61 = vadd.f32 %v3166_v58, %v3085_v59  ;;  %11331 = vmatpush3.msra.mxu1 %v10135_v50  ;;  %v10132_v57 = vld [vmem:[%s14106_s10 + $0xc0] sm:$0xff]  ;;  %v10131_v58 = vld [vmem:[%s14106_s10 + $0xb8] sm:$0xff]  ;;  %v10130_v59 = vld [vmem:[%s14106_s10 + $0xb0] sm:$0xff] }
0x14d5   :  { %11332 = vmatprep.subr.mxu1 %v10134_v55 }
0x14d6   :  { %v3180_v62 = vadd.f32 %v10114_v56, %v3167_v61  ;;  %v3183_v63 = vadd.f32 %v3181_v60, %v12656_v53  ;;  %11333 = vmatpush3.msra.mxu1 %v10134_v55  ;;  %v10133_v56 = vld [vmem:[%s14106_s10 + $0xc8] sm:$0xff]  ;;  %v10128_v61 = vld [vmem:[%s14106_s10 + $0xa0] sm:$0xff] }
0x14d7   :  { %11334 = vmatprep.subr.mxu1 %v10133_v56  ;;  %v10129_v60 = vld [vmem:[%s14106_s10 + $0xa8] sm:$0xff] }
0x14d8   :  { %v3189_v0 = vsel %vm152_vm4, %v3183_v63, 0.0  ;;  %v3182_v1 = vadd.f32 %v3180_v62, %v12654_v52  ;;  %v10120_v52 = vld [vmem:[%s14104_s8 + $0x38] sm:$0xff]  ;;  %11335 = vmatpush3.msra.mxu1 %v10133_v56 }
0x14d9   :  { %3190 = vadd.xlane.f32.xlu0 %v3189_v0  ;;  %11311 = vmatprep.subr.mxu0 %v10120_v52  ;;  %v10127_v62 = vld [vmem:[%s14106_s10 + $0x98] sm:$0xff]  ;;  %v10125_v0 = vld [vmem:[%s14106_s10 + $0x88] sm:$0xff] }
0x14da   :  { %v3186_v2 = vsel %vm152_vm4, %v3182_v1, 0.0  ;;  %11312 = vmatpush3.msra.mxu0 %v10120_v52  ;;  %11336 = vmatprep.subr.mxu1 %v10132_v57  ;;  %v10154_v52 = vld [vmem:[%s14102_s6 + $0xd] ss:$0 sm:$0xff] }
0x14db   :  { %3187 = vadd.xlane.f32.xlu1 %v3186_v2  ;;  %11313 = vmatprep.subr.mxu0 %v10119_v15  ;;  %v10121_v2 = vld [vmem:[%s14105_s9 + $0x1] ss:$0 sm:$0xff] }
0x14dc   :  { %11314 = vmatpush3.msra.mxu0 %v10119_v15  ;;  %11337 = vmatpush3.msra.mxu1 %v10132_v57 }
0x14dd   :  { %11315 = vmatprep.subr.mxu0 %v10118_v16  ;;  %11338 = vmatprep.subr.mxu1 %v10131_v58 }
0x14de   :  { %11316 = vmatpush3.msra.mxu0 %v10118_v16  ;;  %11339 = vmatpush3.msra.mxu1 %v10131_v58 }
0x14df   :  { %11317 = vmatprep.subr.mxu0 %v10117_v17  ;;  %11340 = vmatprep.subr.mxu1 %v10130_v59 }
0x14e0   :  { %11318 = vmatpush3.msra.mxu0 %v10117_v17  ;;  %11341 = vmatpush3.msra.mxu1 %v10130_v59 }
0x14e1   :  { %11357 = vmatprep.subr.mxu0 %v10146_v18  ;;  %11342 = vmatprep.subr.mxu1 %v10129_v60 }
0x14e2   :  { %11343 = vmatpush3.msra.mxu1 %v10129_v60 }
0x14e3   :  { %11344 = vmatprep.subr.mxu1 %v10128_v61 }
0x14e4   :  { %11345 = vmatpush3.msra.mxu1 %v10128_v61  ;;  %v10175_v61 = vld [vmem:[%s14101_s5 + $0x1f8] sm:$0xff] }
0x14e5   :  { %11346 = vmatprep.subr.mxu1 %v10127_v62 }
0x14e6   :  { %11347 = vmatpush3.msra.mxu1 %v10127_v62  ;;  %v10182_v62 = vld [vmem:[%s14101_s5 + $0x218] sm:$0xff] }
0x1562   :  { %v3191_v3 = vpop.xlane.xlu0 %3190 }
0x1563   :  { %v3193_v4 = vmul.f32 0.03125, %v3191_v3 }
0x1564   :  { %v3188_v5 = vpop.xlane.xlu1 %3187 }
0x1565   :  { %v3195_v8 = vsub.f32 %v3183_v63, %v3193_v4  ;;  %v3192_v10 = vmul.f32 0.03125, %v3188_v5  ;;  %v10126_v63 = vld [vmem:[%s14106_s10 + $0x90] sm:$0xff] }
0x1566   :  { %11348 = vmatprep.subr.mxu1 %v10126_v63 }
0x1567   :  { %v3194_v11 = vsub.f32 %v3182_v1, %v3192_v10  ;;  %v3197_v12 = vmul.f32 %v3195_v8, %v3195_v8  ;;  %v3211_v7 = vmul.f32 %v10115_v30, %v3195_v8  ;;  %11349 = vmatpush3.msra.mxu1 %v10126_v63  ;;  %v10124_v1 = vld [vmem:[%s14106_s10 + $0x80] sm:$0xff] }
0x1568   :  { %11350 = vmatprep.subr.mxu1 %v10125_v0 }
0x1569   :  { %v3201_v13 = vsel %vm152_vm4, %v3197_v12, 0.0  ;;  %v3196_v14 = vmul.f32 %v3194_v11, %v3194_v11  ;;  %v3210_v32 = vmul.f32 %v10115_v30, %v3194_v11  ;;  %11351 = vmatpush3.msra.mxu1 %v10125_v0 }
0x156a   :  { %3202 = vadd.xlane.f32.xlu0 %v3201_v13  ;;  %11352 = vmatprep.subr.mxu1 %v10124_v1 }
0x156b   :  { %v3198_v53 = vsel %vm152_vm4, %v3196_v14, 0.0  ;;  %11353 = vmatpush3.msra.mxu1 %v10124_v1 }
0x156c   :  { %3199 = vadd.xlane.f32.xlu1 %v3198_v53  ;;  %11395 = vmatprep.subr.mxu1 %v12227_v9 }
0x15f3   :  { %v3203_v23 = vpop.xlane.xlu0 %3202 }
0x15f4   :  { %v3205_v24 = vmul.f32 0.03125, %v3203_v23 }
0x15f5   :  { %v3200_v25 = vpop.xlane.xlu1 %3199 }
0x15f6   :  { %v3213_v26 = vadd.f32 1e-12, %v3205_v24  ;;  %v3204_v27 = vmul.f32 0.03125, %v3200_v25 }
0x15f8   :  { %12076 = vrsqrt.f32 %v3213_v26  ;;  %v3212_v29 = vadd.f32 1e-12, %v3204_v27 }
0x15fa   :  { %12078 = vrsqrt.f32 %v3212_v29  ;;  %v10161_v29 = vld [vmem:[%s14102_s6 + $0xe] ss:$0 sm:$0xff] }
0x1605   :  { %v12077_v31 = vpop.eup %12076 }
0x1606   :  { %v3217_v34 = vmul.f32 %v12077_v31, %v3211_v7 }
0x1607   :  { %v12079_v33 = vpop.eup %12078 }
0x1608   :  { %v3216_v36 = vmul.f32 %v12079_v33, %v3210_v32  ;;  %v12868_v38 = vadd.f32 %v10116_v35, %v3217_v34 }
0x160a   :  { %v12866_v37 = vadd.f32 %v10116_v35, %v3216_v36 }
0x160c   :  { %11319 = vmatprep.mubr.msk.f32.mxu0 %vm152_vm4, %v12866_v37 }
0x160d   :  { %11320 = vmatmul.mubr.msk.f32.vlgmr.msra.gmra.mxu0 %vm152_vm4, %v12868_v38 }
0x160e   :  { %11358 = vmatpush3.msra.mxu0 %v10146_v18  ;;  %11365 = vmatprep.mubr.msk.f32.mxu0 %vm152_vm4, %v12360_v51 }
0x160f   :  { %11359 = vmatprep.subr.mxu0 %v10145_v39 }
0x1610   :  { %11360 = vmatpush3.msra.mxu0 %v10145_v39 }
0x1611   :  { %11361 = vmatprep.subr.mxu0 %v10144_v40 }
0x1612   :  { %11362 = vmatpush3.msra.mxu0 %v10144_v40 }
0x1613   :  { %11363 = vmatprep.subr.mxu0 %v10143_v41 }
0x1614   :  { %11364 = vmatpush3.msra.mxu0 %v10143_v41 }
0x1615   :  { %11366 = vmatmul.mubr.msk.f32.vlgmr.msra.gmra.mxu0 %vm152_vm4, %v12366_v54  ;;  %11368 = vmatprep.subr.mxu0 %v10153_v42 }
0x1616   :  { %11369 = vmatpush3.msra.mxu0 %v10153_v42  ;;  %11376 = vmatprep.mubr.msk.f32.mxu0 %vm152_vm4, %v12360_v51 }
0x1617   :  { %11370 = vmatprep.subr.mxu0 %v10152_v43 }
0x1618   :  { %11371 = vmatpush3.msra.mxu0 %v10152_v43 }
0x1619   :  { %11372 = vmatprep.subr.mxu0 %v10151_v44 }
0x161a   :  { %11373 = vmatpush3.msra.mxu0 %v10151_v44 }
0x161b   :  { %11374 = vmatprep.subr.mxu0 %v10150_v45 }
0x161c   :  { %11375 = vmatpush3.msra.mxu0 %v10150_v45 }
0x161d   :  { %11377 = vmatmul.mubr.msk.f32.vlgmr.msra.gmra.mxu0 %vm152_vm4, %v12366_v54  ;;  %11379 = vmatprep.subr.mxu0 %v10160_v46 }
0x161e   :  { %11380 = vmatpush3.msra.mxu0 %v10160_v46  ;;  %11387 = vmatprep.mubr.msk.f32.mxu0 %vm152_vm4, %v12360_v51 }
0x161f   :  { %11381 = vmatprep.subr.mxu0 %v10159_v47 }
0x1620   :  { %11382 = vmatpush3.msra.mxu0 %v10159_v47 }
0x1621   :  { %11383 = vmatprep.subr.mxu0 %v10158_v48 }
0x1622   :  { %11384 = vmatpush3.msra.mxu0 %v10158_v48 }
0x1623   :  { %11385 = vmatprep.subr.mxu0 %v10157_v49 }
0x1624   :  { %11386 = vmatpush3.msra.mxu0 %v10157_v49 }
0x1625   :  { %11388 = vmatmul.mubr.msk.f32.vlgmr.msra.gmra.mxu0 %vm152_vm4, %v12366_v54  ;;  %11390 = vmatprep.subr.mxu0 %v12227_v9 }
0x1626   :  { %11392 = vmatprep.mubr.msk.f32.mxu0 %vm12228_vm5, %v12227_v9 }
0x16cd   :  { %v11321_v3 = vpop.f32.mrf.mxu0 }
0x16ce   :  { %v3312_v4 = vadd.f32 %v11321_v3, %v10121_v2  ;;  %v10174_v3 = vld [vmem:[%s14101_s5 + $0x1f0] sm:$0xff] }
0x16cf   :  { %v3306_v5 = vpop.f32.mrf.mxu0 }
0x16d0   :  { %v3318_v8 = vmul.f32 0.70710677, %v3312_v4  ;;  %v3307_v10 = vadd.f32 %v10121_v2, %v3306_v5  ;;  %v3316_v22 = vmul.f32 0.5, %v3312_v4  ;;  %v10173_v4 = vld [vmem:[%s14101_s5 + $0x1e8] sm:$0xff] }
0x16d2   :  { %12080 = verf.f32 %v3318_v8  ;;  %v3317_v11 = vmul.f32 0.70710677, %v3307_v10  ;;  %v3315_v19 = vmul.f32 0.5, %v3307_v10  ;;  %v10172_v8 = vld [vmem:[%s14101_s5 + $0x1e0] sm:$0xff] }
0x16d4   :  { %12082 = verf.f32 %v3317_v11  ;;  %v10189_v11 = vld [vmem:[%s14101_s5 + $0x238] sm:$0xff] }
0x16d5   :  { %v11367_v12 = vpop.f32.mrf.mxu0 }
0x16d6   :  { %v3546_v7 = vadd.f32 %v11367_v12, %v10147_v20  ;;  %v10181_v12 = vld [vmem:[%s14101_s5 + $0x210] sm:$0xff] }
0x16d7   :  { %v3540_v13 = vpop.f32.mrf.mxu0 }
0x16d8   :  { %v3541_v23 = vadd.f32 %v10147_v20, %v3540_v13  ;;  %v10188_v13 = vld [vmem:[%s14101_s5 + $0x230] sm:$0xff] }
0x16dd   :  { %v11378_v14 = vpop.f32.mrf.mxu0 }
0x16de   :  { %v3631_v27 = vadd.f32 %v11378_v14, %v10154_v52  ;;  %v10180_v14 = vld [vmem:[%s14101_s5 + $0x208] sm:$0xff] }
0x16df   :  { %v12081_v53 = vpop.eup %12080  ;;  %v3625_v15 = vpop.f32.mrf.mxu0 }
0x16e0   :  { %v3626_v16 = vadd.f32 %v10154_v52, %v3625_v15  ;;  %v3322_v18 = vadd.f32 1.0, %v12081_v53  ;;  %v10187_v53 = vld [vmem:[%s14101_s5 + $0x228] sm:$0xff]  ;;  %v10179_v52 = vld [vmem:[%s14101_s5 + $0x200] sm:$0xff] }
0x16e1   :  { %v12083_v17 = vpop.eup %12082  ;;  %v10186_v15 = vld [vmem:[%s14101_s5 + $0x220] sm:$0xff] }
0x16e2   :  { %11391 = vmatpush3.xpose.msk.msra.mxu0 %vm483_vm6, %v3626_v16  ;;  %v3321_v21 = vadd.f32 1.0, %v12083_v17  ;;  %v3324_v25 = vmul.f32 %v3322_v18, %v3316_v22 }
0x16e3   :  { %11400 = vmatprep.subr.mxu0 %v12227_v9 }
0x16e4   :  { %v3323_v24 = vmul.f32 %v3321_v21, %v3315_v19 }
0x16e5   :  { %v11389_v26 = vpop.f32.mrf.mxu0  ;;  %11393 = vmatmul.mubr.msk.f32.vlgmr.msra.gmra.mxu0 %vm483_vm6, %v3541_v23 }
0x16e6   :  { %11354 = vmatprep.mubr.f32.mxu1 %v3323_v24  ;;  %11402 = vmatprep.mubr.msk.f32.mxu0 %vm12228_vm5, %v12227_v9  ;;  %v3716_v32 = vadd.f32 %v11389_v26, %v10161_v29  ;;  %v10183_v24 = vld [vmem:[%s14102_s6 + $0x10] ss:$0 sm:$0xff]  ;;  %v10190_v26 = vld [vmem:[%s14102_s6 + $0x11] ss:$0 sm:$0xff] }
0x16e7   :  { %v3710_v30 = vpop.f32.mrf.mxu0  ;;  %11355 = vmatmul.mubr.f32.vlgmr.msra.gmra.mxu1 %v3324_v25 }
0x16e8   :  { %v3711_v31 = vadd.f32 %v10161_v29, %v3710_v30  ;;  %11396 = vmatpush3.xpose.msk.msra.mxu1 %vm483_vm6, %v3631_v27  ;;  %11397 = vmatprep.mubr.msk.f32.mxu1 %vm12228_vm5, %v12227_v9 }
0x16e9   :  { %11405 = vmatprep.subr.mxu1 %v12227_v9 }
0x16ea   :  { %11401 = vmatpush3.msra.mxu0 %v3711_v31  ;;  %v10176_v31 = vld [vmem:[%s14102_s6 + $0xf] ss:$0 sm:$0xff] }
0x16eb   :  { %11398 = vmatmul.mubr.msk.f32.vlgmr.msra.gmra.mxu1 %vm483_vm6, %v3546_v7  ;;  %11410 = vmatprep.subr.mxu0 %v10175_v61 }
0x16ec   :  { %11406 = vmatpush3.msra.mxu1 %v3716_v32  ;;  %11407 = vmatprep.mubr.msk.f32.mxu1 %vm12228_vm5, %v12227_v9 }
0x16ed   :  { %11421 = vmatprep.subr.mxu1 %v10182_v62 }
0x17a5   :  { %v3791_v33 = vpop.f32.mrf.mxu0 }
0x17a6   :  { %v3871_v34 = vmul.f32 0.25, %v3791_v33 }
0x17a7   :  { %v11394_v35 = vpop.f32.mrf.mxu0  ;;  %v12983_v36 = vpop.f32.mrf.mxu1 }
0x17a8   :  { %v3873_v39 = vadd.f32 %v3871_v34, %v12422_v28 }
0x17a9   :  { %v12986_v40 = vpop.f32.mrf.mxu1 }
0x17aa   :  { %v3875_v41 = vsel %vm640_vm10, %v3873_v39, -inf }
0x17ab   :  { %3876 = vmax.xlane.f32.xlu0 %v3875_v41  ;;  %v3867_v42 = vpop.f32.mrf.mxu1 }
0x17ac   :  { %v3872_v43 = vmul.f32 0.25, %v3867_v42 }
0x17ad   :  { %v11399_v44 = vpop.f32.mrf.mxu1 }
0x17ae   :  { %v3874_v45 = vadd.f32 %v3872_v43, %v12420_v6 }
0x17b0   :  { %v3878_v46 = vsel %vm640_vm10, %v3874_v45, -inf }
0x17b1   :  { %3879 = vmax.xlane.f32.xlu1 %v3878_v46 }
0x1834   :  { %v3877_v47 = vpop.xlane.xlu0 %3876 }
0x1835   :  { %v3881_v48 = vsub.f32 %v3873_v39, %v3877_v47 }
0x1837   :  { %v3883_v49 = vmul.f32 1.442695, %v3881_v48 }
0x1839   :  { %12084 = vpow2.f32 %v3883_v49 }
0x183a   :  { %v3880_v50 = vpop.xlane.xlu1 %3879 }
0x183b   :  { %v3882_v55 = vsub.f32 %v3874_v45, %v3880_v50 }
0x183d   :  { %v3885_v56 = vmul.f32 1.442695, %v3882_v55 }
0x183f   :  { %12086 = vpow2.f32 %v3885_v56 }
0x1846   :  { %v12085_v57 = vpop.eup %12084 }
0x1847   :  { %v3887_v58 = vsel %vm640_vm10, %v12085_v57, 0.0 }
0x1848   :  { %3888 = vadd.xlane.f32.xlu0 %v3887_v58 }
0x184c   :  { %v12087_v59 = vpop.eup %12086 }
0x184d   :  { %v3890_v60 = vsel %vm640_vm10, %v12087_v59, 0.0 }
0x184e   :  { %3891 = vadd.xlane.f32.xlu1 %v3890_v60 }
0x18d1   :  { %v3889_v63 = vpop.xlane.xlu0 %3888 }
0x18d2   :  { %12088 = vrcp.f32 %v3889_v63  ;;  %v10171_v63 = vld [vmem:[%s14103_s7 + $0x48] sm:$0xff] }
0x18d7   :  { %v3892_v0 = vpop.xlane.xlu1 %3891 }
0x18d8   :  { %12090 = vrcp.f32 %v3892_v0 }
0x18df   :  { %v12089_v1 = vpop.eup %12088 }
0x18e0   :  { %v3895_v2 = vmul.f32 %v12089_v1, %v12085_v57 }
0x18e2   :  { %11403 = vmatmul.mubr.msk.f32.vlgmr.msra.gmra.mxu0 %vm640_vm10, %v3895_v2 }
0x18e3   :  { %11411 = vmatpush3.msra.mxu0 %v10175_v61  ;;  %11418 = vmatprep.mubr.msk.f32.mxu0 %vm152_vm4, %v12360_v51 }
0x18e4   :  { %11412 = vmatprep.subr.mxu0 %v10174_v3 }
0x18e5   :  { %v12091_v5 = vpop.eup %12090  ;;  %11413 = vmatpush3.msra.mxu0 %v10174_v3 }
0x18e6   :  { %11414 = vmatprep.subr.mxu0 %v10173_v4  ;;  %v3896_v10 = vmul.f32 %v12091_v5, %v12087_v59 }
0x18e7   :  { %11415 = vmatpush3.msra.mxu0 %v10173_v4 }
0x18e8   :  { %11416 = vmatprep.subr.mxu0 %v10172_v8  ;;  %11408 = vmatmul.mubr.msk.f32.vlgmr.msra.gmra.mxu1 %vm640_vm10, %v3896_v10  ;;  %v10200_v10 = vld [vmem:[%s14103_s7 + $0x58] sm:$0xff] }
0x18e9   :  { %11417 = vmatpush3.msra.mxu0 %v10172_v8  ;;  %11422 = vmatpush3.msra.mxu1 %v10182_v62  ;;  %v10170_v8 = vld [vmem:[%s14103_s7 + $0x40] sm:$0xff] }
0x18ea   :  { %11419 = vmatmul.mubr.msk.f32.vlgmr.msra.gmra.mxu0 %vm152_vm4, %v12366_v54  ;;  %11432 = vmatprep.subr.mxu0 %v10189_v11 }
0x18eb   :  { %11423 = vmatprep.subr.mxu1 %v10181_v12  ;;  %11429 = vmatprep.mubr.msk.f32.mxu1 %vm152_vm4, %v12360_v51 }
0x18ec   :  { %11433 = vmatpush3.msra.mxu0 %v10189_v11  ;;  %11440 = vmatprep.mubr.msk.f32.mxu0 %vm152_vm4, %v12360_v51  ;;  %v10199_v11 = vld [vmem:[%s14103_s7 + $0x50] sm:$0xff] }
0x18ed   :  { %11424 = vmatpush3.msra.mxu1 %v10181_v12  ;;  %11434 = vmatprep.subr.mxu0 %v10188_v13 }
0x18ee   :  { %11425 = vmatprep.subr.mxu1 %v10180_v14  ;;  %11435 = vmatpush3.msra.mxu0 %v10188_v13 }
0x18ef   :  { %11426 = vmatpush3.msra.mxu1 %v10180_v14  ;;  %11436 = vmatprep.subr.mxu0 %v10187_v53 }
0x18f0   :  { %11427 = vmatprep.subr.mxu1 %v10179_v52  ;;  %11437 = vmatpush3.msra.mxu0 %v10187_v53 }
0x18f1   :  { %11428 = vmatpush3.msra.mxu1 %v10179_v52  ;;  %11438 = vmatprep.subr.mxu0 %v10186_v15 }
0x18f2   :  { %11430 = vmatmul.mubr.msk.f32.vlgmr.msra.gmra.mxu1 %vm152_vm4, %v12366_v54  ;;  %11439 = vmatpush3.msra.mxu0 %v10186_v15 }
0x18f3   :  { %11441 = vmatmul.mubr.msk.f32.vlgmr.msra.gmra.mxu0 %vm152_vm4, %v12366_v54  ;;  %11443 = vmatprep.subr.mxu1 %v12227_v9 }
0x18f4   :  { %11453 = vmatprep.subr.mxu0 %v12227_v9  ;;  %11445 = vmatprep.mubr.msk.f32.mxu1 %vm12228_vm5, %v12227_v9 }
0x18f5   :  { %11455 = vmatprep.mubr.msk.f32.mxu0 %vm12228_vm5, %v12227_v9 }
0x19a2   :  { %v13049_v16 = vpop.f32.mrf.mxu0 }
0x19a4   :  { %v11404_v17 = vpop.f32.mrf.mxu0 }
0x19a8   :  { %v13051_v18 = vpop.f32.mrf.mxu1 }
0x19aa   :  { %v11409_v19 = vpop.f32.mrf.mxu1  ;;  %v11420_v20 = vpop.f32.mrf.mxu0 }
0x19ab   :  { %v4128_v33 = vadd.f32 %v11420_v20, %v10176_v31 }
0x19ac   :  { %v4122_v21 = vpop.f32.mrf.mxu0 }
0x19ad   :  { %v4123_v7 = vadd.f32 %v10176_v31, %v4122_v21 }
0x19b2   :  { %v11431_v22 = vpop.f32.mrf.mxu1 }
0x19b3   :  { %v11442_v23 = vpop.f32.mrf.mxu0  ;;  %v4213_v32 = vadd.f32 %v11431_v22, %v10183_v24 }
0x19b4   :  { %v4207_v25 = vpop.f32.mrf.mxu1  ;;  %v4298_v34 = vadd.f32 %v11442_v23, %v10190_v26 }
0x19b5   :  { %v4208_v27 = vadd.f32 %v10183_v24, %v4207_v25  ;;  %v4292_v29 = vpop.f32.mrf.mxu0 }
0x19b6   :  { %v4293_v30 = vadd.f32 %v10190_v26, %v4292_v29 }
0x19b7   :  { %11444 = vmatpush3.xpose.msk.msra.mxu1 %vm483_vm6, %v4208_v27 }
0x19b8   :  { %11454 = vmatpush3.msra.mxu0 %v4293_v30  ;;  %11448 = vmatprep.subr.mxu1 %v12227_v9 }
0x19b9   :  { %11463 = vmatprep.subr.mxu0 %v10200_v10 }
0x19ba   :  { %11446 = vmatmul.mubr.msk.f32.vlgmr.msra.gmra.mxu1 %vm483_vm6, %v4123_v7 }
0x19bb   :  { %11449 = vmatpush3.xpose.msk.msra.mxu1 %vm483_vm6, %v4213_v32  ;;  %11450 = vmatprep.mubr.msk.f32.mxu1 %vm12228_vm5, %v12227_v9 }
0x19bc   :  { %11458 = vmatprep.subr.mxu1 %v12227_v9 }
0x19be   :  { %11451 = vmatmul.mubr.msk.f32.vlgmr.msra.gmra.mxu1 %vm483_vm6, %v4128_v33 }
0x19bf   :  { %11459 = vmatpush3.msra.mxu1 %v4298_v34  ;;  %11460 = vmatprep.mubr.msk.f32.mxu1 %vm12228_vm5, %v12227_v9 }
0x19c0   :  { %11470 = vmatprep.subr.mxu1 %v10171_v63 }
0x1a7a   :  { %v4373_v35 = vpop.f32.mrf.mxu1 }
0x1a7b   :  { %v4453_v39 = vmul.f32 0.25, %v4373_v35 }
0x1a7c   :  { %v11447_v41 = vpop.f32.mrf.mxu1 }
0x1a7d   :  { %v4455_v42 = vadd.f32 %v4453_v39, %v12422_v28  ;;  %v10210_v39 = vld [vmem:[%s14104_s8 + $0x50] sm:$0xff]  ;;  %v10209_v41 = vld [vmem:[%s14104_s8 + $0x48] sm:$0xff] }
0x1a7e   :  { %v4449_v43 = vpop.f32.mrf.mxu1 }
0x1a7f   :  { %v4454_v44 = vmul.f32 0.25, %v4449_v43  ;;  %v4457_v45 = vsel %vm640_vm10, %v4455_v42, -inf  ;;  %v10230_v43 = vld [vmem:[%s14106_s10 + $0x178] sm:$0xff] }
0x1a80   :  { %4458 = vmax.xlane.f32.xlu1 %v4457_v45  ;;  %v11452_v46 = vpop.f32.mrf.mxu1  ;;  %v10228_v45 = vld [vmem:[%s14106_s10 + $0x168] sm:$0xff] }
0x1a81   :  { %v4456_v47 = vadd.f32 %v4454_v44, %v12420_v6  ;;  %v10229_v44 = vld [vmem:[%s14106_s10 + $0x170] sm:$0xff] }
0x1a83   :  { %v4460_v48 = vsel %vm640_vm10, %v4456_v47, -inf }
0x1a84   :  { %4461 = vmax.xlane.f32.xlu0 %v4460_v48 }
0x1b09   :  { %v4459_v49 = vpop.xlane.xlu1 %4458 }
0x1b0a   :  { %v4463_v50 = vsub.f32 %v4455_v42, %v4459_v49  ;;  %v10208_v42 = vld [vmem:[%s14104_s8 + $0x40] sm:$0xff] }
0x1b0c   :  { %v4465_v55 = vmul.f32 1.442695, %v4463_v50 }
0x1b0d   :  { %v4462_v56 = vpop.xlane.xlu0 %4461 }
0x1b0e   :  { %12092 = vpow2.f32 %v4465_v55  ;;  %v4464_v57 = vsub.f32 %v4456_v47, %v4462_v56  ;;  %v10206_v56 = vld [vmem:[%s14107_s11 + $0xd] ss:$0 sm:$0xff] }
0x1b10   :  { %v4467_v58 = vmul.f32 1.442695, %v4464_v57 }
0x1b12   :  { %12094 = vpow2.f32 %v4467_v58 }
0x1b1b   :  { %v12093_v59 = vpop.eup %12092 }
0x1b1c   :  { %v4469_v60 = vsel %vm640_vm10, %v12093_v59, 0.0 }
0x1b1d   :  { %4470 = vadd.xlane.f32.xlu1 %v4469_v60 }
0x1b1f   :  { %v12095_v61 = vpop.eup %12094 }
0x1b20   :  { %v4472_v62 = vsel %vm640_vm10, %v12095_v61, 0.0 }
0x1b21   :  { %4473 = vadd.xlane.f32.xlu0 %v4472_v62  ;;  %v10207_v62 = vld [vmem:[%s14107_s11 + $0xe] ss:$0 sm:$0xff] }
0x1ba6   :  { %v4471_v0 = vpop.xlane.xlu1 %4470 }
0x1ba7   :  { %12096 = vrcp.f32 %v4471_v0 }
0x1baa   :  { %v4474_v1 = vpop.xlane.xlu0 %4473 }
0x1bab   :  { %12098 = vrcp.f32 %v4474_v1 }
0x1bb4   :  { %v12097_v2 = vpop.eup %12096 }
0x1bb5   :  { %v4477_v3 = vmul.f32 %v12097_v2, %v12093_v59  ;;  %v10227_v2 = vld [vmem:[%s14106_s10 + $0x160] sm:$0xff] }
0x1bb7   :  { %11456 = vmatmul.mubr.msk.f32.vlgmr.msra.gmra.mxu0 %vm640_vm10, %v4477_v3  ;;  %v10226_v3 = vld [vmem:[%s14106_s10 + $0x158] sm:$0xff] }
0x1bb8   :  { %v12099_v4 = vpop.eup %12098  ;;  %11464 = vmatpush3.msra.mxu0 %v10200_v10  ;;  %v10222_v10 = vld [vmem:[%s14106_s10 + $0x138] sm:$0xff] }
0x1bb9   :  { %v4478_v5 = vmul.f32 %v12099_v4, %v12095_v61  ;;  %11465 = vmatprep.subr.mxu0 %v10199_v11  ;;  %v10225_v4 = vld [vmem:[%s14106_s10 + $0x150] sm:$0xff] }
0x1bba   :  { %11466 = vmatpush3.msra.mxu0 %v10199_v11  ;;  %v10221_v11 = vld [vmem:[%s14106_s10 + $0x130] sm:$0xff] }
0x1bbb   :  { %11461 = vmatmul.mubr.msk.f32.vlgmr.msra.gmra.mxu1 %vm640_vm10, %v4478_v5  ;;  %v10224_v5 = vld [vmem:[%s14106_s10 + $0x148] sm:$0xff] }
0x1bbc   :  { %11471 = vmatpush3.msra.mxu1 %v10171_v63  ;;  %11474 = vmatprep.mubr.msk.f32.mxu1 %vm483_vm6, %v13049_v16  ;;  %v10205_v16 = vld [vmem:[%s14107_s11 + $0xc] ss:$0 sm:$0xff] }
0x1bbd   :  { %11472 = vmatprep.subr.mxu1 %v10170_v8 }
0x1bbe   :  { %11473 = vmatpush3.msra.mxu1 %v10170_v8  ;;  %v10223_v8 = vld [vmem:[%s14106_s10 + $0x140] sm:$0xff] }
0x1bbf   :  { %11475 = vmatmul.mubr.msk.f32.vlgmr.msra.gmra.mxu1 %vm483_vm6, %v13051_v18  ;;  %11488 = vmatprep.subr.mxu1 %v10230_v43 }
0x1bc0   :  { %11489 = vmatpush3.msra.mxu1 %v10230_v43 }
0x1bc1   :  { %11490 = vmatprep.subr.mxu1 %v10229_v44 }
0x1bc2   :  { %11491 = vmatpush3.msra.mxu1 %v10229_v44 }
0x1bc3   :  { %11492 = vmatprep.subr.mxu1 %v10228_v45 }
0x1bc4   :  { %11493 = vmatpush3.msra.mxu1 %v10228_v45 }
0x1bc5   :  { %11494 = vmatprep.subr.mxu1 %v10227_v2 }
0x1bc6   :  { %11495 = vmatpush3.msra.mxu1 %v10227_v2 }
0x1bc7   :  { %11496 = vmatprep.subr.mxu1 %v10226_v3 }
0x1bc8   :  { %11497 = vmatpush3.msra.mxu1 %v10226_v3  ;;  %v10232_v3 = vld [vmem:[%s14107_s11 + $0x10] ss:$0 sm:$0xff] }
0x1bc9   :  { %11498 = vmatprep.subr.mxu1 %v10225_v4 }
0x1bca   :  { %11499 = vmatpush3.msra.mxu1 %v10225_v4 }
0x1bcb   :  { %11500 = vmatprep.subr.mxu1 %v10224_v5 }
0x1bcc   :  { %11501 = vmatpush3.msra.mxu1 %v10224_v5 }
0x1bcd   :  { %11502 = vmatprep.subr.mxu1 %v10223_v8 }
0x1bce   :  { %11503 = vmatpush3.msra.mxu1 %v10223_v8 }
0x1bcf   :  { %11504 = vmatprep.subr.mxu1 %v10222_v10 }
0x1bd0   :  { %11505 = vmatpush3.msra.mxu1 %v10222_v10 }
0x1bd1   :  { %11506 = vmatprep.subr.mxu1 %v10221_v11 }
0x1bd2   :  { %11507 = vmatpush3.msra.mxu1 %v10221_v11 }
0x1c77   :  { %v4548_v12 = vpop.f32.mrf.mxu0 }
0x1c78   :  { %11467 = vmatprep.mubr.msk.f32.mxu0 %vm483_vm6, %v4548_v12  ;;  %v10220_v12 = vld [vmem:[%s14106_s10 + $0x128] sm:$0xff] }
0x1c79   :  { %v11457_v13 = vpop.f32.mrf.mxu0  ;;  %11508 = vmatprep.subr.mxu1 %v10220_v12 }
0x1c7a   :  { %11509 = vmatpush3.msra.mxu1 %v10220_v12  ;;  %v10219_v13 = vld [vmem:[%s14106_s10 + $0x120] sm:$0xff]  ;;  %v10233_v12 = vld [vmem:[%s14107_s11 + $0x11] ss:$0 sm:$0xff] }
0x1c7b   :  { %v4621_v14 = vpop.f32.mrf.mxu1  ;;  %11510 = vmatprep.subr.mxu1 %v10219_v13 }
0x1c7c   :  { %11468 = vmatmul.mubr.msk.f32.vlgmr.msra.gmra.mxu0 %vm483_vm6, %v4621_v14  ;;  %11511 = vmatpush3.msra.mxu1 %v10219_v13  ;;  %v10218_v14 = vld [vmem:[%s14106_s10 + $0x118] sm:$0xff] }
0x1c7d   :  { %v11462_v53 = vpop.f32.mrf.mxu1  ;;  %11512 = vmatprep.subr.mxu1 %v10218_v14 }
0x1c7e   :  { %11513 = vmatpush3.msra.mxu1 %v10218_v14  ;;  %v10217_v53 = vld [vmem:[%s14106_s10 + $0x110] sm:$0xff] }
0x1c7f   :  { %v11476_v52 = vpop.f32.mrf.mxu1  ;;  %11514 = vmatprep.subr.mxu1 %v10217_v53 }
0x1c80   :  { %11515 = vmatpush3.msra.mxu1 %v10217_v53 }
0x1c81   :  { %v4781_v18 = vpop.f32.mrf.mxu1 }
0x1d3c   :  { %v11469_v15 = vpop.f32.mrf.mxu0 }
0x1d3d   :  { %v4787_v17 = vadd.f32 %v11476_v52, %v11469_v15  ;;  %v10216_v52 = vld [vmem:[%s14106_s10 + $0x108] sm:$0xff]  ;;  %v10215_v15 = vld [vmem:[%s14106_s10 + $0x100] sm:$0xff] }
0x1d3e   :  { %v4700_v19 = vpop.f32.mrf.mxu0  ;;  %11516 = vmatprep.subr.mxu1 %v10216_v52 }
0x1d3f   :  { %v4796_v20 = vadd.f32 %v10205_v16, %v4787_v17  ;;  %v4782_v21 = vadd.f32 %v4781_v18, %v4700_v19  ;;  %11517 = vmatpush3.msra.mxu1 %v10216_v52  ;;  %v10243_v52 = vld [vmem:[%s14101_s5 + $0x270] sm:$0xff] }
0x1d40   :  { %11518 = vmatprep.subr.mxu1 %v10215_v15 }
0x1d41   :  { %v4795_v22 = vadd.f32 %v10205_v16, %v4782_v21  ;;  %v4798_v23 = vadd.f32 %v4796_v20, %v12366_v54  ;;  %11519 = vmatpush3.msra.mxu1 %v10215_v15  ;;  %v10212_v16 = vld [vmem:[%s14105_s9 + $0x2] ss:$0 sm:$0xff]  ;;  %v10242_v15 = vld [vmem:[%s14101_s5 + $0x268] sm:$0xff] }
0x1d42   :  { %11561 = vmatprep.subr.mxu1 %v12227_v9 }
0x1d43   :  { %v4804_v24 = vsel %vm152_vm4, %v4798_v23, 0.0  ;;  %v4797_v25 = vadd.f32 %v4795_v22, %v12360_v51  ;;  %v10211_v51 = vld [vmem:[%s14104_s8 + $0x58] sm:$0xff] }
0x1d44   :  { %4805 = vadd.xlane.f32.xlu0 %v4804_v24  ;;  %11477 = vmatprep.subr.mxu0 %v10211_v51 }
0x1d45   :  { %v4801_v26 = vsel %vm152_vm4, %v4797_v25, 0.0  ;;  %11478 = vmatpush3.msra.mxu0 %v10211_v51 }
0x1d46   :  { %4802 = vadd.xlane.f32.xlu1 %v4801_v26  ;;  %11479 = vmatprep.subr.mxu0 %v10210_v39 }
0x1d47   :  { %11480 = vmatpush3.msra.mxu0 %v10210_v39 }
0x1d48   :  { %11481 = vmatprep.subr.mxu0 %v10209_v41 }
0x1d49   :  { %11482 = vmatpush3.msra.mxu0 %v10209_v41 }
0x1d4a   :  { %11483 = vmatprep.subr.mxu0 %v10208_v42 }
0x1d4b   :  { %11484 = vmatpush3.msra.mxu0 %v10208_v42 }
0x1dcd   :  { %v4806_v27 = vpop.xlane.xlu0 %4805 }
0x1dce   :  { %v4808_v29 = vmul.f32 0.03125, %v4806_v27 }
0x1dcf   :  { %v4803_v30 = vpop.xlane.xlu1 %4802 }
0x1dd0   :  { %v4810_v31 = vsub.f32 %v4798_v23, %v4808_v29  ;;  %v4807_v7 = vmul.f32 0.03125, %v4803_v30 }
0x1dd2   :  { %v4809_v32 = vsub.f32 %v4797_v25, %v4807_v7  ;;  %v4812_v33 = vmul.f32 %v4810_v31, %v4810_v31  ;;  %v4826_v58 = vmul.f32 %v10206_v56, %v4810_v31  ;;  %v10231_v7 = vld [vmem:[%s14107_s11 + $0xf] ss:$0 sm:$0xff] }
0x1dd4   :  { %v4816_v34 = vsel %vm152_vm4, %v4812_v33, 0.0  ;;  %v4811_v35 = vmul.f32 %v4809_v32, %v4809_v32  ;;  %v4825_v59 = vmul.f32 %v10206_v56, %v4809_v32  ;;  %v10237_v56 = vld [vmem:[%s14101_s5 + $0x258] sm:$0xff] }
0x1dd5   :  { %4817 = vadd.xlane.f32.xlu0 %v4816_v34  ;;  %11523 = vmatprep.subr.mxu0 %v10237_v56 }
0x1dd6   :  { %v4813_v54 = vsel %vm152_vm4, %v4811_v35, 0.0 }
0x1dd7   :  { %4814 = vadd.xlane.f32.xlu1 %v4813_v54 }
0x1e5e   :  { %v4818_v46 = vpop.xlane.xlu0 %4817 }
0x1e5f   :  { %v4820_v47 = vmul.f32 0.03125, %v4818_v46 }
0x1e60   :  { %v4815_v48 = vpop.xlane.xlu1 %4814 }
0x1e61   :  { %v4828_v49 = vadd.f32 1e-12, %v4820_v47  ;;  %v4819_v50 = vmul.f32 0.03125, %v4815_v48 }
0x1e63   :  { %12100 = vrsqrt.f32 %v4828_v49  ;;  %v4827_v55 = vadd.f32 1e-12, %v4819_v50 }
0x1e65   :  { %12102 = vrsqrt.f32 %v4827_v55 }
0x1e70   :  { %v12101_v57 = vpop.eup %12100 }
0x1e71   :  { %v4832_v61 = vmul.f32 %v12101_v57, %v4826_v58  ;;  %v10236_v57 = vld [vmem:[%s14101_s5 + $0x250] sm:$0xff]  ;;  %v10235_v58 = vld [vmem:[%s14101_s5 + $0x248] sm:$0xff] }
0x1e72   :  { %v12103_v60 = vpop.eup %12102 }
0x1e73   :  { %v4831_v63 = vmul.f32 %v12103_v60, %v4825_v59  ;;  %v13136_v1 = vadd.f32 %v10207_v62, %v4832_v61  ;;  %v10234_v59 = vld [vmem:[%s14101_s5 + $0x240] sm:$0xff]  ;;  %v10244_v60 = vld [vmem:[%s14101_s5 + $0x278] sm:$0xff] }
0x1e75   :  { %v13134_v0 = vadd.f32 %v10207_v62, %v4831_v63 }
0x1e77   :  { %11485 = vmatprep.mubr.msk.f32.mxu0 %vm152_vm4, %v13134_v0 }
0x1e78   :  { %11486 = vmatmul.mubr.msk.f32.vlgmr.msra.gmra.mxu0 %vm152_vm4, %v13136_v1 }
0x1e79   :  { %11524 = vmatpush3.msra.mxu0 %v10237_v56 }
0x1e7a   :  { %11525 = vmatprep.subr.mxu0 %v10236_v57 }
0x1e7b   :  { %11526 = vmatpush3.msra.mxu0 %v10236_v57 }
0x1e7c   :  { %11527 = vmatprep.subr.mxu0 %v10235_v58 }
0x1e7d   :  { %11528 = vmatpush3.msra.mxu0 %v10235_v58 }
0x1e7e   :  { %11529 = vmatprep.subr.mxu0 %v10234_v59 }
0x1e7f   :  { %11530 = vmatpush3.msra.mxu0 %v10234_v59 }
0x1e80   :  { %11534 = vmatprep.subr.mxu0 %v10244_v60 }
0x1f38   :  { %v11487_v17 = vpop.f32.mrf.mxu0 }
0x1f39   :  { %v4927_v18 = vadd.f32 %v11487_v17, %v10212_v16  ;;  %v10251_v17 = vld [vmem:[%s14101_s5 + $0x298] sm:$0xff] }
0x1f3a   :  { %v4921_v19 = vpop.f32.mrf.mxu0 }
0x1f3b   :  { %v4933_v20 = vmul.f32 0.70710677, %v4927_v18  ;;  %v4922_v21 = vadd.f32 %v10212_v16, %v4921_v19  ;;  %v4931_v29 = vmul.f32 0.5, %v4927_v18  ;;  %v10241_v16 = vld [vmem:[%s14101_s5 + $0x260] sm:$0xff]  ;;  %v10250_v18 = vld [vmem:[%s14101_s5 + $0x290] sm:$0xff]  ;;  %v10249_v19 = vld [vmem:[%s14101_s5 + $0x288] sm:$0xff] }
0x1f3d   :  { %12104 = verf.f32 %v4933_v20  ;;  %v4932_v22 = vmul.f32 0.70710677, %v4922_v21  ;;  %v4930_v26 = vmul.f32 0.5, %v4922_v21  ;;  %v10248_v20 = vld [vmem:[%s14101_s5 + $0x280] sm:$0xff] }
0x1f3f   :  { %12106 = verf.f32 %v4932_v22 }
0x1f4a   :  { %v12105_v23 = vpop.eup %12104 }
0x1f4b   :  { %v4937_v25 = vadd.f32 1.0, %v12105_v23  ;;  %v10245_v23 = vld [vmem:[%s14102_s6 + $0x13] ss:$0 sm:$0xff] }
0x1f4c   :  { %v12107_v24 = vpop.eup %12106 }
0x1f4d   :  { %v4936_v27 = vadd.f32 1.0, %v12107_v24  ;;  %v4939_v31 = vmul.f32 %v4937_v25, %v4931_v29  ;;  %v10238_v25 = vld [vmem:[%s14102_s6 + $0x12] ss:$0 sm:$0xff] }
0x1f4f   :  { %v4938_v30 = vmul.f32 %v4936_v27, %v4930_v26 }
0x1f51   :  { %11520 = vmatprep.mubr.f32.mxu1 %v4938_v30 }
0x1f52   :  { %11521 = vmatmul.mubr.f32.vlgmr.msra.gmra.mxu1 %v4939_v31 }
0x1f53   :  { %11563 = vmatprep.mubr.msk.f32.mxu1 %vm12228_vm5, %v12227_v9 }
0x2012   :  { %v11522_v32 = vpop.f32.mrf.mxu1 }
0x2013   :  { %v5034_v33 = vadd.f32 %v11522_v32, %v10231_v7 }
0x2014   :  { %v5028_v34 = vpop.f32.mrf.mxu1 }
0x2015   :  { %v5029_v35 = vadd.f32 %v10231_v7, %v5028_v34  ;;  %v5038_v54 = vadd.f32 %v5034_v33, %v13136_v1  ;;  %v10252_v7 = vld [vmem:[%s14102_s6 + $0x14] ss:$0 sm:$0xff] }
0x2017   :  { %v5044_v51 = vsel %vm152_vm4, %v5038_v54, 0.0  ;;  %v5037_v39 = vadd.f32 %v5029_v35, %v13134_v0 }
0x2018   :  { %5045 = vadd.xlane.f32.xlu0 %v5044_v51 }
0x2019   :  { %v5041_v41 = vsel %vm152_vm4, %v5037_v39, 0.0 }
0x201a   :  { %5042 = vadd.xlane.f32.xlu1 %v5041_v41 }
0x20a1   :  { %v5046_v42 = vpop.xlane.xlu0 %5045 }
0x20a2   :  { %v5048_v43 = vmul.f32 0.03125, %v5046_v42 }
0x20a3   :  { %v5043_v44 = vpop.xlane.xlu1 %5042 }
0x20a4   :  { %v5050_v45 = vsub.f32 %v5038_v54, %v5048_v43  ;;  %v5047_v46 = vmul.f32 0.03125, %v5043_v44 }
0x20a6   :  { %v5049_v47 = vsub.f32 %v5037_v39, %v5047_v46  ;;  %v5052_v48 = vmul.f32 %v5050_v45, %v5050_v45  ;;  %v5066_v5 = vmul.f32 %v10232_v3, %v5050_v45 }
0x20a8   :  { %v5056_v49 = vsel %vm152_vm4, %v5052_v48, 0.0  ;;  %v5051_v50 = vmul.f32 %v5049_v47, %v5049_v47  ;;  %v5065_v8 = vmul.f32 %v10232_v3, %v5049_v47 }
0x20a9   :  { %5057 = vadd.xlane.f32.xlu0 %v5056_v49 }
0x20aa   :  { %v5053_v55 = vsel %vm152_vm4, %v5051_v50, 0.0 }
0x20ab   :  { %5054 = vadd.xlane.f32.xlu1 %v5053_v55 }
0x2132   :  { %v5058_v61 = vpop.xlane.xlu0 %5057 }
0x2133   :  { %v5060_v62 = vmul.f32 0.03125, %v5058_v61 }
0x2134   :  { %v5055_v63 = vpop.xlane.xlu1 %5054 }
0x2135   :  { %v5068_v0 = vadd.f32 1e-12, %v5060_v62  ;;  %v5059_v1 = vmul.f32 0.03125, %v5055_v63  ;;  %v10273_v62 = vld [vmem:[%s14101_s5 + $0x2d8] sm:$0xff] }
0x2136   :  { %v10266_v63 = vld [vmem:[%s14101_s5 + $0x2b8] sm:$0xff] }
0x2137   :  { %12108 = vrsqrt.f32 %v5068_v0  ;;  %v5067_v2 = vadd.f32 1e-12, %v5059_v1 }
0x2139   :  { %12110 = vrsqrt.f32 %v5067_v2 }
0x2144   :  { %v12109_v4 = vpop.eup %12108 }
0x2145   :  { %v5072_v11 = vmul.f32 %v12109_v4, %v5066_v5  ;;  %v10272_v5 = vld [vmem:[%s14101_s5 + $0x2d0] sm:$0xff] }
0x2146   :  { %v12111_v10 = vpop.eup %12110 }
0x2147   :  { %v5071_v13 = vmul.f32 %v12111_v10, %v5065_v8  ;;  %v13219_v53 = vadd.f32 %v10233_v12, %v5072_v11  ;;  %v10265_v10 = vld [vmem:[%s14101_s5 + $0x2b0] sm:$0xff]  ;;  %v10271_v11 = vld [vmem:[%s14101_s5 + $0x2c8] sm:$0xff] }
0x2149   :  { %v13217_v14 = vadd.f32 %v10233_v12, %v5071_v13  ;;  %v10264_v12 = vld [vmem:[%s14101_s5 + $0x2a8] sm:$0xff]  ;;  %v10270_v13 = vld [vmem:[%s14101_s5 + $0x2c0] sm:$0xff] }
0x214b   :  { %11531 = vmatprep.mubr.msk.f32.mxu0 %vm152_vm4, %v13217_v14 }
0x214c   :  { %11532 = vmatmul.mubr.msk.f32.vlgmr.msra.gmra.mxu0 %vm152_vm4, %v13219_v53 }
0x214d   :  { %11535 = vmatpush3.msra.mxu0 %v10244_v60  ;;  %11542 = vmatprep.mubr.msk.f32.mxu0 %vm152_vm4, %v13217_v14 }
0x214e   :  { %11536 = vmatprep.subr.mxu0 %v10243_v52 }
0x214f   :  { %11537 = vmatpush3.msra.mxu0 %v10243_v52  ;;  %v10263_v52 = vld [vmem:[%s14101_s5 + $0x2a0] sm:$0xff] }
0x2150   :  { %11538 = vmatprep.subr.mxu0 %v10242_v15 }
0x2151   :  { %11539 = vmatpush3.msra.mxu0 %v10242_v15  ;;  %v10280_v15 = vld [vmem:[%s14101_s5 + $0x2f8] sm:$0xff] }
0x2152   :  { %11540 = vmatprep.subr.mxu0 %v10241_v16 }
0x2153   :  { %11541 = vmatpush3.msra.mxu0 %v10241_v16  ;;  %v10279_v16 = vld [vmem:[%s14101_s5 + $0x2f0] sm:$0xff] }
0x2154   :  { %11543 = vmatmul.mubr.msk.f32.vlgmr.msra.gmra.mxu0 %vm152_vm4, %v13219_v53  ;;  %11545 = vmatprep.subr.mxu0 %v10251_v17 }
0x2155   :  { %11546 = vmatpush3.msra.mxu0 %v10251_v17  ;;  %11553 = vmatprep.mubr.msk.f32.mxu0 %vm152_vm4, %v13217_v14  ;;  %v10278_v17 = vld [vmem:[%s14101_s5 + $0x2e8] sm:$0xff] }
0x2156   :  { %11547 = vmatprep.subr.mxu0 %v10250_v18 }
0x2157   :  { %11548 = vmatpush3.msra.mxu0 %v10250_v18  ;;  %v10277_v18 = vld [vmem:[%s14101_s5 + $0x2e0] sm:$0xff] }
0x2158   :  { %11549 = vmatprep.subr.mxu0 %v10249_v19 }
0x2159   :  { %11550 = vmatpush3.msra.mxu0 %v10249_v19 }
0x215a   :  { %11551 = vmatprep.subr.mxu0 %v10248_v20 }
0x215b   :  { %11552 = vmatpush3.msra.mxu0 %v10248_v20 }
0x215c   :  { %11554 = vmatmul.mubr.msk.f32.vlgmr.msra.gmra.mxu0 %vm152_vm4, %v13219_v53  ;;  %11556 = vmatprep.subr.mxu0 %v12227_v9 }
0x215d   :  { %11558 = vmatprep.mubr.msk.f32.mxu0 %vm12228_vm5, %v12227_v9 }
0x220c   :  { %v11533_v21 = vpop.f32.mrf.mxu0 }
0x220d   :  { %v5167_v30 = vadd.f32 %v11533_v21, %v10238_v25 }
0x220e   :  { %v5161_v22 = vpop.f32.mrf.mxu0 }
0x220f   :  { %v5162_v31 = vadd.f32 %v10238_v25, %v5161_v22  ;;  %v10274_v25 = vld [vmem:[%s14102_s6 + $0x16] ss:$0 sm:$0xff] }
0x2214   :  { %v11544_v24 = vpop.f32.mrf.mxu0 }
0x2215   :  { %v5252_v26 = vadd.f32 %v11544_v24, %v10245_v23 }
0x2216   :  { %v5246_v27 = vpop.f32.mrf.mxu0 }
0x2217   :  { %v5247_v29 = vadd.f32 %v10245_v23, %v5246_v27  ;;  %11562 = vmatpush3.xpose.msk.msra.mxu1 %vm483_vm6, %v5252_v26  ;;  %v10267_v27 = vld [vmem:[%s14102_s6 + $0x15] ss:$0 sm:$0xff] }
0x2218   :  { %11571 = vmatprep.subr.mxu1 %v12227_v9 }
0x2219   :  { %11557 = vmatpush3.xpose.msk.msra.mxu0 %vm483_vm6, %v5247_v29 }
0x221a   :  { %11564 = vmatmul.mubr.msk.f32.vlgmr.msra.gmra.mxu1 %vm483_vm6, %v5167_v30  ;;  %11566 = vmatprep.subr.mxu0 %v12227_v9 }
0x221b   :  { %11573 = vmatprep.mubr.msk.f32.mxu1 %vm12228_vm5, %v12227_v9 }
0x221c   :  { %v11555_v32 = vpop.f32.mrf.mxu0  ;;  %11559 = vmatmul.mubr.msk.f32.vlgmr.msra.gmra.mxu0 %vm483_vm6, %v5162_v31 }
0x221d   :  { %v5337_v33 = vadd.f32 %v11555_v32, %v10252_v7  ;;  %11568 = vmatprep.mubr.msk.f32.mxu0 %vm12228_vm5, %v12227_v9  ;;  %v10281_v32 = vld [vmem:[%s14102_s6 + $0x17] ss:$0 sm:$0xff] }
0x221e   :  { %v5331_v34 = vpop.f32.mrf.mxu0 }
0x221f   :  { %v5332_v35 = vadd.f32 %v10252_v7, %v5331_v34  ;;  %11572 = vmatpush3.msra.mxu1 %v5337_v33 }
0x2220   :  { %11587 = vmatprep.subr.mxu1 %v10273_v62 }
0x2221   :  { %11567 = vmatpush3.msra.mxu0 %v5332_v35 }
0x2222   :  { %11576 = vmatprep.subr.mxu0 %v10266_v63 }
0x22da   :  { %v5488_v54 = vpop.f32.mrf.mxu1 }
0x22db   :  { %v5493_v51 = vmul.f32 0.25, %v5488_v54 }
0x22dc   :  { %v5412_v39 = vpop.f32.mrf.mxu0  ;;  %v11565_v41 = vpop.f32.mrf.mxu1 }
0x22dd   :  { %v5492_v42 = vmul.f32 0.25, %v5412_v39  ;;  %v5495_v43 = vadd.f32 %v5493_v51, %v12420_v6 }
0x22de   :  { %v11560_v44 = vpop.f32.mrf.mxu0 }
0x22df   :  { %v5499_v45 = vsel %vm640_vm10, %v5495_v43, -inf  ;;  %v5494_v46 = vadd.f32 %v5492_v42, %v12422_v28 }
0x22e0   :  { %5500 = vmax.xlane.f32.xlu1 %v5499_v45 }
0x22e1   :  { %v5496_v47 = vsel %vm640_vm10, %v5494_v46, -inf }
0x22e2   :  { %5497 = vmax.xlane.f32.xlu0 %v5496_v47 }
0x2369   :  { %v5501_v48 = vpop.xlane.xlu1 %5500 }
0x236a   :  { %v5503_v49 = vsub.f32 %v5495_v43, %v5501_v48 }
0x236b   :  { %v5498_v50 = vpop.xlane.xlu0 %5497 }
0x236c   :  { %v5506_v55 = vmul.f32 1.442695, %v5503_v49  ;;  %v5502_v56 = vsub.f32 %v5494_v46, %v5498_v50 }
0x236e   :  { %12112 = vpow2.f32 %v5506_v55  ;;  %v5504_v57 = vmul.f32 1.442695, %v5502_v56 }
0x2370   :  { %12114 = vpow2.f32 %v5504_v57 }
0x237b   :  { %v12113_v58 = vpop.eup %12112 }
0x237c   :  { %v5511_v59 = vsel %vm640_vm10, %v12113_v58, 0.0 }
0x237d   :  { %v12115_v60 = vpop.eup %12114  ;;  %5512 = vadd.xlane.f32.xlu1 %v5511_v59 }
0x237e   :  { %v5508_v61 = vsel %vm640_vm10, %v12115_v60, 0.0 }
0x237f   :  { %5509 = vadd.xlane.f32.xlu0 %v5508_v61 }
0x2406   :  { %v5513_v0 = vpop.xlane.xlu1 %5512 }
0x2407   :  { %12116 = vrcp.f32 %v5513_v0  ;;  %v10262_v0 = vld [vmem:[%s14103_s7 + $0x68] sm:$0xff] }
0x2408   :  { %v5510_v1 = vpop.xlane.xlu0 %5509 }
0x2409   :  { %12118 = vrcp.f32 %v5510_v1 }
0x2414   :  { %v12117_v2 = vpop.eup %12116 }
0x2415   :  { %v5517_v3 = vmul.f32 %v12117_v2, %v12113_v58 }
0x2416   :  { %v12119_v4 = vpop.eup %12118 }
0x2417   :  { %11574 = vmatmul.mubr.msk.f32.vlgmr.msra.gmra.mxu1 %vm640_vm10, %v5517_v3  ;;  %v5516_v8 = vmul.f32 %v12119_v4, %v12115_v60 }
0x2418   :  { %11588 = vmatpush3.msra.mxu1 %v10273_v62  ;;  %11595 = vmatprep.mubr.msk.f32.mxu1 %vm152_vm4, %v13217_v14 }
0x2419   :  { %11589 = vmatprep.subr.mxu1 %v10272_v5  ;;  %11569 = vmatmul.mubr.msk.f32.vlgmr.msra.gmra.mxu0 %vm640_vm10, %v5516_v8 }
0x241a   :  { %11577 = vmatpush3.msra.mxu0 %v10266_v63  ;;  %11590 = vmatpush3.msra.mxu1 %v10272_v5 }
0x241b   :  { %11578 = vmatprep.subr.mxu0 %v10265_v10  ;;  %11584 = vmatprep.mubr.msk.f32.mxu0 %vm152_vm4, %v13217_v14 }
0x241c   :  { %11591 = vmatprep.subr.mxu1 %v10271_v11  ;;  %11579 = vmatpush3.msra.mxu0 %v10265_v10  ;;  %v10261_v10 = vld [vmem:[%s14103_s7 + $0x60] sm:$0xff] }
0x241d   :  { %11592 = vmatpush3.msra.mxu1 %v10271_v11  ;;  %11580 = vmatprep.subr.mxu0 %v10264_v12  ;;  %v10291_v11 = vld [vmem:[%s14103_s7 + $0x78] sm:$0xff] }
0x241e   :  { %11593 = vmatprep.subr.mxu1 %v10270_v13  ;;  %11581 = vmatpush3.msra.mxu0 %v10264_v12  ;;  %v10290_v12 = vld [vmem:[%s14103_s7 + $0x70] sm:$0xff] }
0x241f   :  { %11594 = vmatpush3.msra.mxu1 %v10270_v13  ;;  %11582 = vmatprep.subr.mxu0 %v10263_v52 }
0x2420   :  { %11596 = vmatmul.mubr.msk.f32.vlgmr.msra.gmra.mxu1 %vm152_vm4, %v13219_v53  ;;  %11583 = vmatpush3.msra.mxu0 %v10263_v52 }
0x2421   :  { %11585 = vmatmul.mubr.msk.f32.vlgmr.msra.gmra.mxu0 %vm152_vm4, %v13219_v53  ;;  %11598 = vmatprep.subr.mxu0 %v10280_v15 }
0x2422   :  { %11599 = vmatpush3.msra.mxu0 %v10280_v15  ;;  %11606 = vmatprep.mubr.msk.f32.mxu0 %vm152_vm4, %v13217_v14 }
0x2423   :  { %11600 = vmatprep.subr.mxu0 %v10279_v16  ;;  %11609 = vmatprep.subr.mxu1 %v12227_v9 }
0x2424   :  { %11601 = vmatpush3.msra.mxu0 %v10279_v16  ;;  %11611 = vmatprep.mubr.msk.f32.mxu1 %vm12228_vm5, %v12227_v9 }
0x2425   :  { %11602 = vmatprep.subr.mxu0 %v10278_v17 }
0x2426   :  { %11603 = vmatpush3.msra.mxu0 %v10278_v17 }
0x2427   :  { %11604 = vmatprep.subr.mxu0 %v10277_v18 }
0x2428   :  { %11605 = vmatpush3.msra.mxu0 %v10277_v18 }
0x2429   :  { %11607 = vmatmul.mubr.msk.f32.vlgmr.msra.gmra.mxu0 %vm152_vm4, %v13219_v53  ;;  %11619 = vmatprep.subr.mxu0 %v12227_v9 }
0x242a   :  { %11621 = vmatprep.mubr.msk.f32.mxu0 %vm12228_vm5, %v12227_v9 }
0x24d7   :  { %v13338_v19 = vpop.f32.mrf.mxu1 }
0x24d9   :  { %v13340_v20 = vpop.f32.mrf.mxu0  ;;  %v11575_v21 = vpop.f32.mrf.mxu1 }
0x24db   :  { %v11570_v22 = vpop.f32.mrf.mxu0 }
0x24e0   :  { %v11597_v23 = vpop.f32.mrf.mxu1 }
0x24e1   :  { %v11586_v24 = vpop.f32.mrf.mxu0  ;;  %v5834_v7 = vadd.f32 %v11597_v23, %v10274_v25 }
0x24e2   :  { %v5828_v26 = vpop.f32.mrf.mxu1  ;;  %v5749_v34 = vadd.f32 %v11586_v24, %v10267_v27 }
0x24e3   :  { %v5829_v29 = vadd.f32 %v10274_v25, %v5828_v26  ;;  %v5743_v30 = vpop.f32.mrf.mxu0 }
0x24e4   :  { %v5744_v31 = vadd.f32 %v10267_v27, %v5743_v30 }
0x24e5   :  { %11610 = vmatpush3.xpose.msk.msra.mxu1 %vm483_vm6, %v5829_v29 }
0x24e6   :  { %11614 = vmatprep.subr.mxu1 %v12227_v9 }
0x24e8   :  { %11612 = vmatmul.mubr.msk.f32.vlgmr.msra.gmra.mxu1 %vm483_vm6, %v5744_v31 }
0x24e9   :  { %11615 = vmatpush3.xpose.msk.msra.mxu1 %vm483_vm6, %v5834_v7  ;;  %v11608_v33 = vpop.f32.mrf.mxu0  ;;  %11616 = vmatprep.mubr.msk.f32.mxu1 %vm12228_vm5, %v12227_v9 }
0x24ea   :  { %v5919_v35 = vadd.f32 %v11608_v33, %v10281_v32  ;;  %11624 = vmatprep.subr.mxu1 %v12227_v9 }
0x24eb   :  { %v5913_v54 = vpop.f32.mrf.mxu0 }
0x24ec   :  { %v5914_v51 = vadd.f32 %v10281_v32, %v5913_v54  ;;  %11617 = vmatmul.mubr.msk.f32.vlgmr.msra.gmra.mxu1 %vm483_vm6, %v5749_v34 }
0x24ed   :  { %11625 = vmatpush3.msra.mxu1 %v5919_v35  ;;  %11626 = vmatprep.mubr.msk.f32.mxu1 %vm12228_vm5, %v12227_v9 }
0x24ee   :  { %11620 = vmatpush3.msra.mxu0 %v5914_v51  ;;  %11636 = vmatprep.subr.mxu1 %v10262_v0 }
0x24ef   :  { %11629 = vmatprep.subr.mxu0 %v10291_v11 }
0x25a8   :  { %v5994_v39 = vpop.f32.mrf.mxu1 }
0x25a9   :  { %v6074_v41 = vmul.f32 0.25, %v5994_v39 }
0x25aa   :  { %v11613_v42 = vpop.f32.mrf.mxu1 }
0x25ab   :  { %v6076_v43 = vadd.f32 %v6074_v41, %v12422_v28  ;;  %v10301_v41 = vld [vmem:[%s14104_s8 + $0x70] sm:$0xff]  ;;  %v10300_v42 = vld [vmem:[%s14104_s8 + $0x68] sm:$0xff] }
0x25ac   :  { %v6070_v44 = vpop.f32.mrf.mxu1 }
0x25ad   :  { %v6075_v45 = vmul.f32 0.25, %v6070_v44  ;;  %v6078_v46 = vsel %vm640_vm10, %v6076_v43, -inf  ;;  %v10321_v44 = vld [vmem:[%s14106_s10 + $0x1f8] sm:$0xff] }
0x25ae   :  { %6079 = vmax.xlane.f32.xlu1 %v6078_v46  ;;  %v11618_v47 = vpop.f32.mrf.mxu1  ;;  %v10319_v46 = vld [vmem:[%s14106_s10 + $0x1e8] sm:$0xff] }
0x25af   :  { %v6077_v48 = vadd.f32 %v6075_v45, %v12420_v6  ;;  %v10320_v45 = vld [vmem:[%s14106_s10 + $0x1f0] sm:$0xff] }
0x25b1   :  { %v6081_v49 = vsel %vm640_vm10, %v6077_v48, -inf }
0x25b2   :  { %6082 = vmax.xlane.f32.xlu0 %v6081_v49 }
0x2637   :  { %v6080_v50 = vpop.xlane.xlu1 %6079 }
0x2638   :  { %v6084_v55 = vsub.f32 %v6076_v43, %v6080_v50  ;;  %v10299_v43 = vld [vmem:[%s14104_s8 + $0x60] sm:$0xff] }
0x263a   :  { %v6086_v56 = vmul.f32 1.442695, %v6084_v55 }
0x263b   :  { %v6083_v57 = vpop.xlane.xlu0 %6082 }
0x263c   :  { %12120 = vpow2.f32 %v6086_v56  ;;  %v6085_v58 = vsub.f32 %v6077_v48, %v6083_v57  ;;  %v10297_v57 = vld [vmem:[%s14107_s11 + $0x13] ss:$0 sm:$0xff] }
0x263e   :  { %v6088_v59 = vmul.f32 1.442695, %v6085_v58 }
0x2640   :  { %12122 = vpow2.f32 %v6088_v59 }
0x2649   :  { %v12121_v60 = vpop.eup %12120 }
0x264a   :  { %v6090_v61 = vsel %vm640_vm10, %v12121_v60, 0.0 }
0x264b   :  { %6091 = vadd.xlane.f32.xlu1 %v6090_v61 }
0x264d   :  { %v12123_v62 = vpop.eup %12122 }
0x264e   :  { %v6093_v63 = vsel %vm640_vm10, %v12123_v62, 0.0 }
0x264f   :  { %6094 = vadd.xlane.f32.xlu0 %v6093_v63  ;;  %v10298_v63 = vld [vmem:[%s14107_s11 + $0x14] ss:$0 sm:$0xff] }
0x26d4   :  { %v6092_v1 = vpop.xlane.xlu1 %6091 }
0x26d5   :  { %12124 = vrcp.f32 %v6092_v1 }
0x26d8   :  { %v6095_v2 = vpop.xlane.xlu0 %6094 }
0x26d9   :  { %12126 = vrcp.f32 %v6095_v2 }
0x26e2   :  { %v12125_v3 = vpop.eup %12124 }
0x26e3   :  { %v6098_v4 = vmul.f32 %v12125_v3, %v12121_v60  ;;  %v10318_v3 = vld [vmem:[%s14106_s10 + $0x1e0] sm:$0xff] }
0x26e5   :  { %11622 = vmatmul.mubr.msk.f32.vlgmr.msra.gmra.mxu0 %vm640_vm10, %v6098_v4  ;;  %v10317_v4 = vld [vmem:[%s14106_s10 + $0x1d8] sm:$0xff] }
0x26e6   :  { %v12127_v5 = vpop.eup %12126  ;;  %11630 = vmatpush3.msra.mxu0 %v10291_v11  ;;  %v10313_v11 = vld [vmem:[%s14106_s10 + $0x1b8] sm:$0xff] }
0x26e7   :  { %v6099_v8 = vmul.f32 %v12127_v5, %v12123_v62  ;;  %11631 = vmatprep.subr.mxu0 %v10290_v12  ;;  %v10316_v5 = vld [vmem:[%s14106_s10 + $0x1d0] sm:$0xff] }
0x26e8   :  { %11632 = vmatpush3.msra.mxu0 %v10290_v12  ;;  %v10312_v12 = vld [vmem:[%s14106_s10 + $0x1b0] sm:$0xff] }
0x26e9   :  { %11627 = vmatmul.mubr.msk.f32.vlgmr.msra.gmra.mxu1 %vm640_vm10, %v6099_v8  ;;  %v10315_v8 = vld [vmem:[%s14106_s10 + $0x1c8] sm:$0xff] }
0x26ea   :  { %11637 = vmatpush3.msra.mxu1 %v10262_v0  ;;  %11640 = vmatprep.mubr.msk.f32.mxu1 %vm483_vm6, %v13340_v20 }
0x26eb   :  { %11638 = vmatprep.subr.mxu1 %v10261_v10 }
0x26ec   :  { %11639 = vmatpush3.msra.mxu1 %v10261_v10  ;;  %v10314_v10 = vld [vmem:[%s14106_s10 + $0x1c0] sm:$0xff] }
0x26ed   :  { %11641 = vmatmul.mubr.msk.f32.vlgmr.msra.gmra.mxu1 %vm483_vm6, %v13338_v19  ;;  %v10296_v19 = vld [vmem:[%s14107_s11 + $0x12] ss:$0 sm:$0xff]  ;;  %11654 = vmatprep.subr.mxu1 %v10321_v44 }
0x26ee   :  { %11655 = vmatpush3.msra.mxu1 %v10321_v44 }
0x26ef   :  { %11656 = vmatprep.subr.mxu1 %v10320_v45 }
0x26f0   :  { %11657 = vmatpush3.msra.mxu1 %v10320_v45 }
0x26f1   :  { %11658 = vmatprep.subr.mxu1 %v10319_v46 }
0x26f2   :  { %11659 = vmatpush3.msra.mxu1 %v10319_v46 }
0x26f3   :  { %11660 = vmatprep.subr.mxu1 %v10318_v3 }
0x26f4   :  { %11661 = vmatpush3.msra.mxu1 %v10318_v3 }
0x26f5   :  { %11662 = vmatprep.subr.mxu1 %v10317_v4 }
0x26f6   :  { %11663 = vmatpush3.msra.mxu1 %v10317_v4 }
0x26f7   :  { %11664 = vmatprep.subr.mxu1 %v10316_v5 }
0x26f8   :  { %11665 = vmatpush3.msra.mxu1 %v10316_v5 }
0x26f9   :  { %11666 = vmatprep.subr.mxu1 %v10315_v8 }
0x26fa   :  { %11667 = vmatpush3.msra.mxu1 %v10315_v8  ;;  %v10328_v8 = vld [vmem:[%s14101_s5 + $0x318] sm:$0xff] }
0x26fb   :  { %11668 = vmatprep.subr.mxu1 %v10314_v10 }
0x26fc   :  { %11669 = vmatpush3.msra.mxu1 %v10314_v10  ;;  %v10327_v10 = vld [vmem:[%s14101_s5 + $0x310] sm:$0xff] }
0x26fd   :  { %11670 = vmatprep.subr.mxu1 %v10313_v11 }
0x26fe   :  { %11671 = vmatpush3.msra.mxu1 %v10313_v11  ;;  %v10326_v11 = vld [vmem:[%s14101_s5 + $0x308] sm:$0xff] }
0x26ff   :  { %11672 = vmatprep.subr.mxu1 %v10312_v12 }
0x2700   :  { %11673 = vmatpush3.msra.mxu1 %v10312_v12  ;;  %v10325_v12 = vld [vmem:[%s14101_s5 + $0x300] sm:$0xff] }
0x27a5   :  { %v6169_v13 = vpop.f32.mrf.mxu0 }
0x27a6   :  { %11633 = vmatprep.mubr.msk.f32.mxu0 %vm483_vm6, %v6169_v13  ;;  %v10311_v13 = vld [vmem:[%s14106_s10 + $0x1a8] sm:$0xff] }
0x27a7   :  { %v11623_v52 = vpop.f32.mrf.mxu0  ;;  %11674 = vmatprep.subr.mxu1 %v10311_v13 }
0x27a8   :  { %11675 = vmatpush3.msra.mxu1 %v10311_v13  ;;  %v10310_v52 = vld [vmem:[%s14106_s10 + $0x1a0] sm:$0xff]  ;;  %v10335_v13 = vld [vmem:[%s14101_s5 + $0x338] sm:$0xff] }
0x27a9   :  { %v6242_v15 = vpop.f32.mrf.mxu1  ;;  %11676 = vmatprep.subr.mxu1 %v10310_v52 }
0x27aa   :  { %11634 = vmatmul.mubr.msk.f32.vlgmr.msra.gmra.mxu0 %vm483_vm6, %v6242_v15  ;;  %11677 = vmatpush3.msra.mxu1 %v10310_v52  ;;  %v10309_v15 = vld [vmem:[%s14106_s10 + $0x198] sm:$0xff] }
0x27ab   :  { %v11628_v16 = vpop.f32.mrf.mxu1  ;;  %11678 = vmatprep.subr.mxu1 %v10309_v15 }
0x27ac   :  { %11679 = vmatpush3.msra.mxu1 %v10309_v15  ;;  %v10308_v16 = vld [vmem:[%s14106_s10 + $0x190] sm:$0xff] }
0x27ad   :  { %v11642_v17 = vpop.f32.mrf.mxu1  ;;  %11680 = vmatprep.subr.mxu1 %v10308_v16 }
0x27ae   :  { %11681 = vmatpush3.msra.mxu1 %v10308_v16 }
0x27af   :  { %v6402_v21 = vpop.f32.mrf.mxu1 }
0x286a   :  { %v11635_v18 = vpop.f32.mrf.mxu0 }
0x286b   :  { %v6408_v20 = vadd.f32 %v11642_v17, %v11635_v18  ;;  %v10307_v17 = vld [vmem:[%s14106_s10 + $0x188] sm:$0xff]  ;;  %v10306_v18 = vld [vmem:[%s14106_s10 + $0x180] sm:$0xff] }
0x286c   :  { %v6321_v22 = vpop.f32.mrf.mxu0  ;;  %11682 = vmatprep.subr.mxu1 %v10307_v17 }
0x286d   :  { %v6417_v23 = vadd.f32 %v10296_v19, %v6408_v20  ;;  %v6403_v24 = vadd.f32 %v6402_v21, %v6321_v22  ;;  %11683 = vmatpush3.msra.mxu1 %v10307_v17 }
0x286e   :  { %11684 = vmatprep.subr.mxu1 %v10306_v18 }
0x286f   :  { %v6416_v25 = vadd.f32 %v10296_v19, %v6403_v24  ;;  %v6419_v26 = vadd.f32 %v6417_v23, %v13219_v53  ;;  %11685 = vmatpush3.msra.mxu1 %v10306_v18  ;;  %v10303_v19 = vld [vmem:[%s14105_s9 + $0x3] ss:$0 sm:$0xff] }
0x2870   :  { %11727 = vmatprep.subr.mxu1 %v12227_v9 }
0x2871   :  { %v6425_v27 = vsel %vm152_vm4, %v6419_v26, 0.0  ;;  %v6418_v29 = vadd.f32 %v6416_v25, %v13217_v14  ;;  %v10302_v14 = vld [vmem:[%s14104_s8 + $0x78] sm:$0xff] }
0x2872   :  { %6426 = vadd.xlane.f32.xlu0 %v6425_v27  ;;  %11643 = vmatprep.subr.mxu0 %v10302_v14 }
0x2873   :  { %v6422_v30 = vsel %vm152_vm4, %v6418_v29, 0.0  ;;  %11644 = vmatpush3.msra.mxu0 %v10302_v14 }
0x2874   :  { %6423 = vadd.xlane.f32.xlu1 %v6422_v30  ;;  %11645 = vmatprep.subr.mxu0 %v10301_v41 }
0x2875   :  { %11646 = vmatpush3.msra.mxu0 %v10301_v41 }
0x2876   :  { %11647 = vmatprep.subr.mxu0 %v10300_v42 }
0x2877   :  { %11648 = vmatpush3.msra.mxu0 %v10300_v42 }
0x2878   :  { %11649 = vmatprep.subr.mxu0 %v10299_v43 }
0x2879   :  { %11650 = vmatpush3.msra.mxu0 %v10299_v43 }
0x287a   :  { %11689 = vmatprep.subr.mxu0 %v10328_v8 }
0x28fb   :  { %v6427_v31 = vpop.xlane.xlu0 %6426 }
0x28fc   :  { %v6429_v7 = vmul.f32 0.03125, %v6427_v31 }
0x28fd   :  { %v6424_v32 = vpop.xlane.xlu1 %6423 }
0x28fe   :  { %v6431_v33 = vsub.f32 %v6419_v26, %v6429_v7  ;;  %v6428_v34 = vmul.f32 0.03125, %v6424_v32 }
0x2900   :  { %v6430_v35 = vsub.f32 %v6418_v29, %v6428_v34  ;;  %v6433_v54 = vmul.f32 %v6431_v33, %v6431_v33  ;;  %v6447_v59 = vmul.f32 %v10297_v57, %v6431_v33  ;;  %v10140_v34 = vld [vmem:[%s14107_s11 + $0x9] ss:$0 sm:$0xff] }
0x2901   :  { %v3414_v14 = vadd.f32 %v10140_v34, %v12986_v40 }
0x2902   :  { %v6437_v51 = vsel %vm152_vm4, %v6433_v54, 0.0  ;;  %v6432_v39 = vmul.f32 %v6430_v35, %v6430_v35  ;;  %v6446_v60 = vmul.f32 %v10297_v57, %v6430_v35  ;;  %v10322_v35 = vld [vmem:[%s14107_s11 + $0x15] ss:$0 sm:$0xff] }
0x2903   :  { %6438 = vadd.xlane.f32.xlu0 %v6437_v51  ;;  %v3419_v51 = vadd.f32 %v12983_v36, %v10140_v34 }
0x2904   :  { %v6434_v53 = vsel %vm152_vm4, %v6432_v39, 0.0 }
0x2905   :  { %6435 = vadd.xlane.f32.xlu1 %v6434_v53  ;;  %v3423_v45 = vadd.f32 %v3419_v51, %v12868_v38 }
0x2907   :  { %v3429_v36 = vsel %vm152_vm4, %v3423_v45, 0.0 }
0x298c   :  { %v6439_v47 = vpop.xlane.xlu0 %6438 }
0x298d   :  { %v6441_v48 = vmul.f32 0.03125, %v6439_v47  ;;  %v3422_v47 = vadd.f32 %v3414_v14, %v12866_v37 }
0x298e   :  { %v6436_v49 = vpop.xlane.xlu1 %6435 }
0x298f   :  { %v6449_v50 = vadd.f32 1e-12, %v6441_v48  ;;  %v6440_v55 = vmul.f32 0.03125, %v6436_v49  ;;  %v3426_v40 = vsel %vm152_vm4, %v3422_v47, 0.0 }
0x2991   :  { %12128 = vrsqrt.f32 %v6449_v50  ;;  %v6448_v56 = vadd.f32 1e-12, %v6440_v55 }
0x2993   :  { %12130 = vrsqrt.f32 %v6448_v56 }
0x299e   :  { %v12129_v58 = vpop.eup %12128 }
0x299f   :  { %v6453_v62 = vmul.f32 %v12129_v58, %v6447_v59 }
0x29a0   :  { %v12131_v61 = vpop.eup %12130 }
0x29a1   :  { %v6452_v0 = vmul.f32 %v12131_v61, %v6446_v60  ;;  %v13425_v2 = vadd.f32 %v10298_v63, %v6453_v62 }
0x29a3   :  { %v13423_v1 = vadd.f32 %v10298_v63, %v6452_v0 }
0x29a5   :  { %11651 = vmatprep.mubr.msk.f32.mxu0 %vm152_vm4, %v13423_v1 }
0x29a6   :  { %11652 = vmatmul.mubr.msk.f32.vlgmr.msra.gmra.mxu0 %vm152_vm4, %v13425_v2 }
0x29a7   :  { %11690 = vmatpush3.msra.mxu0 %v10328_v8 }
0x29a8   :  { %11691 = vmatprep.subr.mxu0 %v10327_v10 }
0x29a9   :  { %11692 = vmatpush3.msra.mxu0 %v10327_v10  ;;  %v10343_v10 = vld [vmem:[%s14102_s6 + $0x1a] ss:$0 sm:$0xff] }
0x29aa   :  { %11693 = vmatprep.subr.mxu0 %v10326_v11 }
0x29ab   :  { %11694 = vmatpush3.msra.mxu0 %v10326_v11 }
0x29ac   :  { %11695 = vmatprep.subr.mxu0 %v10325_v12 }
0x29ad   :  { %11696 = vmatpush3.msra.mxu0 %v10325_v12 }
0x29ae   :  { %11700 = vmatprep.subr.mxu0 %v10335_v13 }
0x2a66   :  { %v11653_v20 = vpop.f32.mrf.mxu0 }
0x2a67   :  { %v6548_v21 = vadd.f32 %v11653_v20, %v10303_v19 }
0x2a68   :  { %v6542_v22 = vpop.f32.mrf.mxu0 }
0x2a69   :  { %v6554_v23 = vmul.f32 0.70710677, %v6548_v21  ;;  %v6543_v24 = vadd.f32 %v10303_v19, %v6542_v22  ;;  %v6552_v7 = vmul.f32 0.5, %v6548_v21 }
0x2a6b   :  { %12132 = verf.f32 %v6554_v23  ;;  %v6553_v25 = vmul.f32 0.70710677, %v6543_v24  ;;  %v6551_v30 = vmul.f32 0.5, %v6543_v24 }
0x2a6d   :  { %12134 = verf.f32 %v6553_v25 }
0x2a78   :  { %v12133_v26 = vpop.eup %12132 }
0x2a79   :  { %v6558_v29 = vadd.f32 1.0, %v12133_v26  ;;  %v10323_v26 = vld [vmem:[%s14107_s11 + $0x16] ss:$0 sm:$0xff] }
0x2a7a   :  { %v12135_v27 = vpop.eup %12134 }
0x2a7b   :  { %v6557_v31 = vadd.f32 1.0, %v12135_v27  ;;  %v6560_v33 = vmul.f32 %v6558_v29, %v6552_v7 }
0x2a7d   :  { %v6559_v32 = vmul.f32 %v6557_v31, %v6551_v30  ;;  %v10141_v30 = vld [vmem:[%s14107_s11 + $0xa] ss:$0 sm:$0xff]  ;;  %v10324_v31 = vld [vmem:[%s14107_s11 + $0x17] ss:$0 sm:$0xff] }
0x2a7f   :  { %11686 = vmatprep.mubr.f32.mxu1 %v6559_v32 }
0x2a80   :  { %11687 = vmatmul.mubr.f32.vlgmr.msra.gmra.mxu1 %v6560_v33 }
0x2a81   :  { %11729 = vmatprep.mubr.msk.f32.mxu1 %vm12228_vm5, %v12227_v9 }
0x2b40   :  { %v11688_v54 = vpop.f32.mrf.mxu1 }
0x2b41   :  { %v6655_v39 = vadd.f32 %v11688_v54, %v10322_v35 }
0x2b42   :  { %v6649_v53 = vpop.f32.mrf.mxu1 }
0x2b43   :  { %v6650_v41 = vadd.f32 %v10322_v35, %v6649_v53  ;;  %v6659_v42 = vadd.f32 %v6655_v39, %v13425_v2  ;;  %v10142_v39 = vld [vmem:[%s14107_s11 + $0xb] ss:$0 sm:$0xff] }
0x2b45   :  { %v6665_v43 = vsel %vm152_vm4, %v6659_v42, 0.0  ;;  %v6658_v44 = vadd.f32 %v6650_v41, %v13423_v1 }
0x2b46   :  { %6666 = vadd.xlane.f32.xlu0 %v6665_v43 }
0x2b47   :  { %v6662_v46 = vsel %vm152_vm4, %v6658_v44, 0.0 }
0x2b48   :  { %6663 = vadd.xlane.f32.xlu1 %v6662_v46 }
0x2b4a   :  { %3430 = vadd.xlane.f32.xlu0 %v3429_v36 }
0x2b4c   :  { %3427 = vadd.xlane.f32.xlu1 %v3426_v40 }
0x2bcf   :  { %v6667_v48 = vpop.xlane.xlu0 %6666 }
0x2bd0   :  { %v6669_v49 = vmul.f32 0.03125, %v6667_v48 }
0x2bd1   :  { %v6664_v50 = vpop.xlane.xlu1 %6663 }
0x2bd2   :  { %v6671_v55 = vsub.f32 %v6659_v42, %v6669_v49  ;;  %v6668_v56 = vmul.f32 0.03125, %v6664_v50 }
0x2bd3   :  { %v3431_v57 = vpop.xlane.xlu0 %3430 }
0x2bd4   :  { %v6670_v58 = vsub.f32 %v6658_v44, %v6668_v56  ;;  %v3433_v38 = vmul.f32 0.03125, %v3431_v57  ;;  %v6673_v59 = vmul.f32 %v6671_v55, %v6671_v55  ;;  %v6687_v27 = vmul.f32 %v10323_v26, %v6671_v55  ;;  %v10334_v56 = vld [vmem:[%s14101_s5 + $0x330] sm:$0xff]  ;;  %v10333_v57 = vld [vmem:[%s14101_s5 + $0x328] sm:$0xff] }
0x2bd5   :  { %v3428_v60 = vpop.xlane.xlu1 %3427 }
0x2bd6   :  { %v3435_v61 = vsub.f32 %v3423_v45, %v3433_v38  ;;  %v3432_v62 = vmul.f32 0.03125, %v3428_v60  ;;  %v6677_v37 = vsel %vm152_vm4, %v6673_v59, 0.0  ;;  %v6672_v63 = vmul.f32 %v6670_v58, %v6670_v58  ;;  %v10342_v38 = vld [vmem:[%s14101_s5 + $0x358] sm:$0xff]  ;;  %v10341_v59 = vld [vmem:[%s14101_s5 + $0x350] sm:$0xff]  ;;  %v10340_v60 = vld [vmem:[%s14101_s5 + $0x348] sm:$0xff] }
0x2bd7   :  { %6678 = vadd.xlane.f32.xlu0 %v6677_v37  ;;  %v6686_v32 = vmul.f32 %v10323_v26, %v6670_v58  ;;  %v10332_v58 = vld [vmem:[%s14101_s5 + $0x320] sm:$0xff] }
0x2bd8   :  { %v3434_v0 = vsub.f32 %v3422_v47, %v3432_v62  ;;  %v3437_v1 = vmul.f32 %v3435_v61, %v3435_v61  ;;  %v6674_v2 = vsel %vm152_vm4, %v6672_v63, 0.0  ;;  %v3451_v34 = vmul.f32 %v10141_v30, %v3435_v61  ;;  %v10339_v61 = vld [vmem:[%s14101_s5 + $0x340] sm:$0xff]  ;;  %v10336_v63 = vld [vmem:[%s14102_s6 + $0x19] ss:$0 sm:$0xff] }
0x2bd9   :  { %6675 = vadd.xlane.f32.xlu1 %v6674_v2 }
0x2bda   :  { %v3441_v3 = vsel %vm152_vm4, %v3437_v1, 0.0  ;;  %v3436_v4 = vmul.f32 %v3434_v0, %v3434_v0  ;;  %v3450_v41 = vmul.f32 %v10141_v30, %v3434_v0  ;;  %v10329_v1 = vld [vmem:[%s14102_s6 + $0x18] ss:$0 sm:$0xff] }
0x2bdb   :  { %3442 = vadd.xlane.f32.xlu0 %v3441_v3 }
0x2bdc   :  { %v3438_v5 = vsel %vm152_vm4, %v3436_v4, 0.0 }
0x2bdd   :  { %3439 = vadd.xlane.f32.xlu1 %v3438_v5 }
0x2c60   :  { %v6679_v52 = vpop.xlane.xlu0 %6678 }
0x2c61   :  { %v6681_v15 = vmul.f32 0.03125, %v6679_v52 }
0x2c62   :  { %v6676_v17 = vpop.xlane.xlu1 %6675 }
0x2c63   :  { %v6689_v16 = vadd.f32 1e-12, %v6681_v15  ;;  %v6680_v18 = vmul.f32 0.03125, %v6676_v17 }
0x2c64   :  { %v3443_v19 = vpop.xlane.xlu0 %3442 }
0x2c65   :  { %12136 = vrsqrt.f32 %v6689_v16  ;;  %v3445_v20 = vmul.f32 0.03125, %v3443_v19  ;;  %v6688_v21 = vadd.f32 1e-12, %v6680_v18 }
0x2c66   :  { %v3440_v23 = vpop.xlane.xlu1 %3439 }
0x2c67   :  { %v3453_v22 = vadd.f32 1e-12, %v3445_v20  ;;  %12138 = vrsqrt.f32 %v6688_v21  ;;  %v3444_v24 = vmul.f32 0.03125, %v3440_v23 }
0x2c69   :  { %12140 = vrsqrt.f32 %v3453_v22  ;;  %v3452_v25 = vadd.f32 1e-12, %v3444_v24 }
0x2c6b   :  { %12142 = vrsqrt.f32 %v3452_v25 }
0x2c72   :  { %v12137_v29 = vpop.eup %12136 }
0x2c73   :  { %v6693_v7 = vmul.f32 %v12137_v29, %v6687_v27 }
0x2c74   :  { %v12139_v33 = vpop.eup %12138 }
0x2c75   :  { %v6699_v35 = vadd.f32 %v10324_v31, %v6693_v7  ;;  %v6692_v51 = vmul.f32 %v12139_v33, %v6686_v32 }
0x2c76   :  { %v12141_v54 = vpop.eup %12140 }
0x2c77   :  { %v6701_v53 = vmul.f32 0.5, %v6699_v35  ;;  %9954 = vst.msk [vmem:[#allocation2 + $0x18] sm:$0xff] %vm152_vm4, %v6699_v35  ;;  %v3457_v14 = vmul.f32 %v12141_v54, %v3451_v34  ;;  %v6698_v42 = vadd.f32 %v10324_v31, %v6692_v51  ;;  %v10364_v35 = vld [vmem:[%s14101_s5 + $0x398] sm:$0xff] }
0x2c78   :  { %v12143_v43 = vpop.eup %12142  ;;  %v10357_v54 = vld [vmem:[%s14101_s5 + $0x378] sm:$0xff] }
0x2c79   :  { %v6704_v44 = vmul.f32 1.442695, %v6701_v53  ;;  %v3463_v45 = vadd.f32 %v10142_v39, %v3457_v14  ;;  %v6700_v46 = vmul.f32 0.5, %v6698_v42  ;;  %9953 = vst.msk [vmem:[#allocation2 + $0x10] sm:$0xff] %vm152_vm4, %v6698_v42  ;;  %v3456_v47 = vmul.f32 %v12143_v43, %v3450_v41  ;;  %v10363_v42 = vld [vmem:[%s14101_s5 + $0x390] sm:$0xff] }
0x2c7b   :  { %12144 = vpow2.f32 %v6704_v44  ;;  %9951 = vst.msk [vmem:[#allocation2 + $0x8] sm:$0xff] %vm152_vm4, %v3463_v45  ;;  %v6702_v36 = vmul.f32 1.442695, %v6700_v46  ;;  %v3462_v40 = vadd.f32 %v10142_v39, %v3456_v47  ;;  %v10356_v44 = vld [vmem:[%s14101_s5 + $0x370] sm:$0xff]  ;;  %v10355_v46 = vld [vmem:[%s14101_s5 + $0x368] sm:$0xff]  ;;  %v10361_v47 = vld [vmem:[%s14101_s5 + $0x380] sm:$0xff] }
0x2c7d   :  { %12146 = vpow2.f32 %v6702_v36  ;;  %9950 = vst.msk [vmem:[#allocation2] sm:$0xff] %vm152_vm4, %v3462_v40  ;;  %v10354_v36 = vld [vmem:[%s14101_s5 + $0x360] sm:$0xff] }
0x2c88   :  { %v12145_v48 = vpop.eup %12144 }
0x2c89   :  { %v13527_v49 = vadd.f32 %v12145_v48, %v3463_v45  ;;  %v10362_v45 = vld [vmem:[%s14101_s5 + $0x388] sm:$0xff]  ;;  %v10370_v48 = vld [vmem:[%s14101_s5 + $0x3b0] sm:$0xff] }
0x2c8a   :  { %v12147_v50 = vpop.eup %12146 }
0x2c8b   :  { %9957 = vst.msk [vmem:[#allocation2 + $0x28] sm:$0xff] %vm152_vm4, %v13527_v49  ;;  %v13531_v55 = vadd.f32 %v12147_v50, %v3462_v40  ;;  %v10371_v40 = vld [vmem:[%s14101_s5 + $0x3b8] sm:$0xff]  ;;  %v10369_v50 = vld [vmem:[%s14101_s5 + $0x3a8] sm:$0xff] }
0x2c8d   :  { %9956 = vst.msk [vmem:[#allocation2 + $0x20] sm:$0xff] %vm152_vm4, %v13531_v55  ;;  %11697 = vmatprep.mubr.msk.f32.mxu0 %vm152_vm4, %v13531_v55 }
0x2c8e   :  { %11698 = vmatmul.mubr.msk.f32.vlgmr.msra.gmra.mxu0 %vm152_vm4, %v13527_v49 }
0x2c8f   :  { %11701 = vmatpush3.msra.mxu0 %v10335_v13  ;;  %11708 = vmatprep.mubr.msk.f32.mxu0 %vm152_vm4, %v13531_v55 }
0x2c90   :  { %11702 = vmatprep.subr.mxu0 %v10334_v56 }
0x2c91   :  { %11703 = vmatpush3.msra.mxu0 %v10334_v56  ;;  %v10368_v56 = vld [vmem:[%s14101_s5 + $0x3a0] sm:$0xff] }
0x2c92   :  { %11704 = vmatprep.subr.mxu0 %v10333_v57 }
0x2c93   :  { %11705 = vmatpush3.msra.mxu0 %v10333_v57 }
0x2c94   :  { %11706 = vmatprep.subr.mxu0 %v10332_v58 }
0x2c95   :  { %11707 = vmatpush3.msra.mxu0 %v10332_v58 }
0x2c96   :  { %11709 = vmatmul.mubr.msk.f32.vlgmr.msra.gmra.mxu0 %vm152_vm4, %v13527_v49  ;;  %11711 = vmatprep.subr.mxu0 %v10342_v38 }
0x2c97   :  { %11712 = vmatpush3.msra.mxu0 %v10342_v38  ;;  %11719 = vmatprep.mubr.msk.f32.mxu0 %vm152_vm4, %v13531_v55 }
0x2c98   :  { %11713 = vmatprep.subr.mxu0 %v10341_v59 }
0x2c99   :  { %11714 = vmatpush3.msra.mxu0 %v10341_v59 }
0x2c9a   :  { %11715 = vmatprep.subr.mxu0 %v10340_v60 }
0x2c9b   :  { %11716 = vmatpush3.msra.mxu0 %v10340_v60 }
0x2c9c   :  { %11717 = vmatprep.subr.mxu0 %v10339_v61 }
0x2c9d   :  { %11718 = vmatpush3.msra.mxu0 %v10339_v61 }
0x2c9e   :  { %11720 = vmatmul.mubr.msk.f32.vlgmr.msra.gmra.mxu0 %vm152_vm4, %v13527_v49  ;;  %11722 = vmatprep.subr.mxu0 %v12227_v9 }
0x2c9f   :  { %11724 = vmatprep.mubr.msk.f32.mxu0 %vm12228_vm5, %v12227_v9 }
0x2d4e   :  { %v11699_v62 = vpop.f32.mrf.mxu0 }
0x2d4f   :  { %v6796_v5 = vadd.f32 %v11699_v62, %v10329_v1  ;;  %v10365_v62 = vld [vmem:[%s14102_s6 + $0x1c] ss:$0 sm:$0xff] }
0x2d50   :  { %v6790_v37 = vpop.f32.mrf.mxu0 }
0x2d51   :  { %v6791_v8 = vadd.f32 %v10329_v1, %v6790_v37 }
0x2d56   :  { %v11710_v0 = vpop.f32.mrf.mxu0 }
0x2d57   :  { %v6881_v2 = vadd.f32 %v11710_v0, %v10336_v63 }
0x2d58   :  { %v6875_v3 = vpop.f32.mrf.mxu0 }
0x2d59   :  { %v6876_v4 = vadd.f32 %v10336_v63, %v6875_v3  ;;  %11728 = vmatpush3.xpose.msk.msra.mxu1 %vm483_vm6, %v6881_v2  ;;  %v10358_v63 = vld [vmem:[%s14102_s6 + $0x1b] ss:$0 sm:$0xff] }
0x2d5a   :  { %11737 = vmatprep.subr.mxu1 %v12227_v9 }
0x2d5b   :  { %11723 = vmatpush3.xpose.msk.msra.mxu0 %vm483_vm6, %v6876_v4  ;;  %v10372_v4 = vld [vmem:[%s14102_s6 + $0x1d] ss:$0 sm:$0xff] }
0x2d5c   :  { %11730 = vmatmul.mubr.msk.f32.vlgmr.msra.gmra.mxu1 %vm483_vm6, %v6796_v5  ;;  %11732 = vmatprep.subr.mxu0 %v12227_v9 }
0x2d5d   :  { %11739 = vmatprep.mubr.msk.f32.mxu1 %vm12228_vm5, %v12227_v9 }
0x2d5e   :  { %v11721_v11 = vpop.f32.mrf.mxu0  ;;  %11725 = vmatmul.mubr.msk.f32.vlgmr.msra.gmra.mxu0 %vm483_vm6, %v6791_v8 }
0x2d5f   :  { %v6966_v12 = vadd.f32 %v11721_v11, %v10343_v10  ;;  %11734 = vmatprep.mubr.msk.f32.mxu0 %vm12228_vm5, %v12227_v9 }
0x2d60   :  { %v6960_v13 = vpop.f32.mrf.mxu0 }
0x2d61   :  { %v6961_v52 = vadd.f32 %v10343_v10, %v6960_v13  ;;  %11738 = vmatpush3.msra.mxu1 %v6966_v12 }
0x2d62   :  { %11753 = vmatprep.subr.mxu1 %v10364_v35 }
0x2d63   :  { %11733 = vmatpush3.msra.mxu0 %v6961_v52 }
0x2d64   :  { %11742 = vmatprep.subr.mxu0 %v10357_v54 }
0x2e1c   :  { %v7117_v15 = vpop.f32.mrf.mxu1 }
0x2e1d   :  { %v7122_v16 = vmul.f32 0.25, %v7117_v15 }
0x2e1e   :  { %v7041_v17 = vpop.f32.mrf.mxu0  ;;  %v11731_v18 = vpop.f32.mrf.mxu1 }
0x2e1f   :  { %v7121_v19 = vmul.f32 0.25, %v7041_v17  ;;  %v7124_v20 = vadd.f32 %v7122_v16, %v12420_v6 }
0x2e20   :  { %v11726_v21 = vpop.f32.mrf.mxu0 }
0x2e21   :  { %v7128_v22 = vsel %vm640_vm10, %v7124_v20, -inf  ;;  %v7123_v23 = vadd.f32 %v7121_v19, %v12422_v28 }
0x2e22   :  { %7129 = vmax.xlane.f32.xlu1 %v7128_v22 }
0x2e23   :  { %v7125_v24 = vsel %vm640_vm10, %v7123_v23, -inf }
0x2e24   :  { %7126 = vmax.xlane.f32.xlu0 %v7125_v24 }
0x2eab   :  { %v7130_v25 = vpop.xlane.xlu1 %7129 }
0x2eac   :  { %v7132_v26 = vsub.f32 %v7124_v20, %v7130_v25 }
0x2ead   :  { %v7127_v27 = vpop.xlane.xlu0 %7126 }
0x2eae   :  { %v7135_v29 = vmul.f32 1.442695, %v7132_v26  ;;  %v7131_v30 = vsub.f32 %v7123_v23, %v7127_v27 }
0x2eb0   :  { %12148 = vpow2.f32 %v7135_v29  ;;  %v7133_v31 = vmul.f32 1.442695, %v7131_v30 }
0x2eb2   :  { %12150 = vpow2.f32 %v7133_v31 }
0x2ebd   :  { %v12149_v7 = vpop.eup %12148 }
0x2ebe   :  { %v7140_v32 = vsel %vm640_vm10, %v12149_v7, 0.0 }
0x2ebf   :  { %v12151_v33 = vpop.eup %12150  ;;  %7141 = vadd.xlane.f32.xlu1 %v7140_v32 }
0x2ec0   :  { %v7137_v34 = vsel %vm640_vm10, %v12151_v33, 0.0 }
0x2ec1   :  { %7138 = vadd.xlane.f32.xlu0 %v7137_v34 }
0x2f48   :  { %v7142_v51 = vpop.xlane.xlu1 %7141 }
0x2f49   :  { %12152 = vrcp.f32 %v7142_v51 }
0x2f4a   :  { %v7139_v39 = vpop.xlane.xlu0 %7138 }
0x2f4b   :  { %12154 = vrcp.f32 %v7139_v39 }
0x2f56   :  { %v12153_v53 = vpop.eup %12152 }
0x2f57   :  { %v7146_v14 = vmul.f32 %v12153_v53, %v12149_v7 }
0x2f58   :  { %v12155_v41 = vpop.eup %12154 }
0x2f59   :  { %11740 = vmatmul.mubr.msk.f32.vlgmr.msra.gmra.mxu1 %vm640_vm10, %v7146_v14  ;;  %v7145_v43 = vmul.f32 %v12155_v41, %v12151_v33  ;;  %v10353_v33 = vld [vmem:[%s14103_s7 + $0x88] sm:$0xff]  ;;  %v10352_v14 = vld [vmem:[%s14103_s7 + $0x80] sm:$0xff]  ;;  %v10382_v41 = vld [vmem:[%s14103_s7 + $0x98] sm:$0xff] }
0x2f5a   :  { %11754 = vmatpush3.msra.mxu1 %v10364_v35  ;;  %11761 = vmatprep.mubr.msk.f32.mxu1 %vm152_vm4, %v13531_v55 }
0x2f5b   :  { %11755 = vmatprep.subr.mxu1 %v10363_v42  ;;  %11735 = vmatmul.mubr.msk.f32.vlgmr.msra.gmra.mxu0 %vm640_vm10, %v7145_v43 }
0x2f5c   :  { %11743 = vmatpush3.msra.mxu0 %v10357_v54  ;;  %11756 = vmatpush3.msra.mxu1 %v10363_v42  ;;  %v10381_v42 = vld [vmem:[%s14103_s7 + $0x90] sm:$0xff] }
0x2f5d   :  { %11744 = vmatprep.subr.mxu0 %v10356_v44  ;;  %11750 = vmatprep.mubr.msk.f32.mxu0 %vm152_vm4, %v13531_v55 }
0x2f5e   :  { %11757 = vmatprep.subr.mxu1 %v10362_v45  ;;  %11745 = vmatpush3.msra.mxu0 %v10356_v44 }
0x2f5f   :  { %11758 = vmatpush3.msra.mxu1 %v10362_v45  ;;  %11746 = vmatprep.subr.mxu0 %v10355_v46 }
0x2f60   :  { %11759 = vmatprep.subr.mxu1 %v10361_v47  ;;  %11747 = vmatpush3.msra.mxu0 %v10355_v46 }
0x2f61   :  { %11760 = vmatpush3.msra.mxu1 %v10361_v47  ;;  %11748 = vmatprep.subr.mxu0 %v10354_v36 }
0x2f62   :  { %11762 = vmatmul.mubr.msk.f32.vlgmr.msra.gmra.mxu1 %vm152_vm4, %v13527_v49  ;;  %11749 = vmatpush3.msra.mxu0 %v10354_v36 }
0x2f63   :  { %11751 = vmatmul.mubr.msk.f32.vlgmr.msra.gmra.mxu0 %vm152_vm4, %v13527_v49  ;;  %11764 = vmatprep.subr.mxu0 %v10371_v40 }
0x2f64   :  { %11765 = vmatpush3.msra.mxu0 %v10371_v40  ;;  %11772 = vmatprep.mubr.msk.f32.mxu0 %vm152_vm4, %v13531_v55  ;;  %v10387_v40 = vld [vmem:[%s14107_s11 + $0x18] ss:$0 sm:$0xff] }
0x2f65   :  { %11766 = vmatprep.subr.mxu0 %v10370_v48  ;;  %11775 = vmatprep.subr.mxu1 %v12227_v9 }
0x2f66   :  { %11767 = vmatpush3.msra.mxu0 %v10370_v48  ;;  %11777 = vmatprep.mubr.msk.f32.mxu1 %vm12228_vm5, %v12227_v9 }
0x2f67   :  { %11768 = vmatprep.subr.mxu0 %v10369_v50 }
0x2f68   :  { %11769 = vmatpush3.msra.mxu0 %v10369_v50 }
0x2f69   :  { %11770 = vmatprep.subr.mxu0 %v10368_v56 }
0x2f6a   :  { %11771 = vmatpush3.msra.mxu0 %v10368_v56 }
0x2f6b   :  { %11773 = vmatmul.mubr.msk.f32.vlgmr.msra.gmra.mxu0 %vm152_vm4, %v13527_v49  ;;  %11785 = vmatprep.subr.mxu0 %v12227_v9 }
0x2f6c   :  { %11787 = vmatprep.mubr.msk.f32.mxu0 %vm12228_vm5, %v12227_v9 }
0x3019   :  { %v13652_v57 = vpop.f32.mrf.mxu1 }
0x301b   :  { %v13654_v58 = vpop.f32.mrf.mxu0  ;;  %v11741_v38 = vpop.f32.mrf.mxu1 }
0x301d   :  { %v11736_v59 = vpop.f32.mrf.mxu0 }
0x3022   :  { %v11763_v60 = vpop.f32.mrf.mxu1 }
0x3023   :  { %v11752_v61 = vpop.f32.mrf.mxu0  ;;  %v7463_v3 = vadd.f32 %v11763_v60, %v10365_v62 }
0x3024   :  { %v7457_v37 = vpop.f32.mrf.mxu1  ;;  %v7378_v8 = vadd.f32 %v11752_v61, %v10358_v63 }
0x3025   :  { %v7458_v0 = vadd.f32 %v10365_v62, %v7457_v37  ;;  %v7372_v1 = vpop.f32.mrf.mxu0 }
0x3026   :  { %v7373_v2 = vadd.f32 %v10358_v63, %v7372_v1 }
0x3027   :  { %11776 = vmatpush3.xpose.msk.msra.mxu1 %vm483_vm6, %v7458_v0 }
0x3028   :  { %11780 = vmatprep.subr.mxu1 %v12227_v9 }
0x302a   :  { %11778 = vmatmul.mubr.msk.f32.vlgmr.msra.gmra.mxu1 %vm483_vm6, %v7373_v2 }
0x302b   :  { %11781 = vmatpush3.xpose.msk.msra.mxu1 %vm483_vm6, %v7463_v3  ;;  %v11774_v5 = vpop.f32.mrf.mxu0  ;;  %11782 = vmatprep.mubr.msk.f32.mxu1 %vm12228_vm5, %v12227_v9 }
0x302c   :  { %v7548_v10 = vadd.f32 %v11774_v5, %v10372_v4  ;;  %11790 = vmatprep.subr.mxu1 %v12227_v9 }
0x302d   :  { %v7542_v11 = vpop.f32.mrf.mxu0 }
0x302e   :  { %v7543_v12 = vadd.f32 %v10372_v4, %v7542_v11  ;;  %11783 = vmatmul.mubr.msk.f32.vlgmr.msra.gmra.mxu1 %vm483_vm6, %v7378_v8  ;;  %v10391_v11 = vld [vmem:[%s14104_s8 + $0x88] sm:$0xff] }
0x302f   :  { %11791 = vmatpush3.msra.mxu1 %v7548_v10  ;;  %11792 = vmatprep.mubr.msk.f32.mxu1 %vm12228_vm5, %v12227_v9  ;;  %v10392_v10 = vld [vmem:[%s14104_s8 + $0x90] sm:$0xff] }
0x3030   :  { %11786 = vmatpush3.msra.mxu0 %v7543_v12  ;;  %11802 = vmatprep.subr.mxu1 %v10353_v33  ;;  %v10390_v12 = vld [vmem:[%s14104_s8 + $0x80] sm:$0xff] }
0x3031   :  { %11795 = vmatprep.subr.mxu0 %v10382_v41 }
0x30ea   :  { %v7623_v13 = vpop.f32.mrf.mxu1 }
0x30eb   :  { %v7703_v52 = vmul.f32 0.25, %v7623_v13  ;;  %v10412_v13 = vld [vmem:[%s14106_s10 + $0x278] sm:$0xff] }
0x30ec   :  { %v11779_v15 = vpop.f32.mrf.mxu1 }
0x30ed   :  { %v7705_v16 = vadd.f32 %v7703_v52, %v12422_v28  ;;  %v10411_v52 = vld [vmem:[%s14106_s10 + $0x270] sm:$0xff]  ;;  %v10410_v15 = vld [vmem:[%s14106_s10 + $0x268] sm:$0xff] }
0x30ee   :  { %v7699_v17 = vpop.f32.mrf.mxu1 }
0x30ef   :  { %v7704_v18 = vmul.f32 0.25, %v7699_v17  ;;  %v7707_v19 = vsel %vm640_vm10, %v7705_v16, -inf }
0x30f0   :  { %7708 = vmax.xlane.f32.xlu1 %v7707_v19  ;;  %v11784_v20 = vpop.f32.mrf.mxu1 }
0x30f1   :  { %v7706_v21 = vadd.f32 %v7704_v18, %v12420_v6 }
0x30f3   :  { %v7710_v22 = vsel %vm640_vm10, %v7706_v21, -inf }
0x30f4   :  { %7711 = vmax.xlane.f32.xlu0 %v7710_v22  ;;  %v10388_v22 = vld [vmem:[%s14107_s11 + $0x19] ss:$0 sm:$0xff] }
0x3179   :  { %v7709_v23 = vpop.xlane.xlu1 %7708 }
0x317a   :  { %v7713_v24 = vsub.f32 %v7705_v16, %v7709_v23 }
0x317c   :  { %v7715_v25 = vmul.f32 1.442695, %v7713_v24 }
0x317d   :  { %v7712_v26 = vpop.xlane.xlu0 %7711 }
0x317e   :  { %12156 = vpow2.f32 %v7715_v25  ;;  %v7714_v27 = vsub.f32 %v7706_v21, %v7712_v26 }
0x3180   :  { %v7717_v29 = vmul.f32 1.442695, %v7714_v27 }
0x3182   :  { %12158 = vpow2.f32 %v7717_v29  ;;  %v10389_v29 = vld [vmem:[%s14107_s11 + $0x1a] ss:$0 sm:$0xff] }
0x318b   :  { %v12157_v30 = vpop.eup %12156 }
0x318c   :  { %v7719_v31 = vsel %vm640_vm10, %v12157_v30, 0.0 }
0x318d   :  { %7720 = vadd.xlane.f32.xlu1 %v7719_v31 }
0x318f   :  { %v12159_v7 = vpop.eup %12158 }
0x3190   :  { %v7722_v32 = vsel %vm640_vm10, %v12159_v7, 0.0 }
0x3191   :  { %7723 = vadd.xlane.f32.xlu0 %v7722_v32  ;;  %v10409_v32 = vld [vmem:[%s14106_s10 + $0x260] sm:$0xff] }
0x3216   :  { %v7721_v34 = vpop.xlane.xlu1 %7720 }
0x3217   :  { %12160 = vrcp.f32 %v7721_v34  ;;  %v10407_v34 = vld [vmem:[%s14106_s10 + $0x250] sm:$0xff] }
0x321a   :  { %v7724_v35 = vpop.xlane.xlu0 %7723 }
0x321b   :  { %12162 = vrcp.f32 %v7724_v35  ;;  %v10406_v35 = vld [vmem:[%s14106_s10 + $0x248] sm:$0xff] }
0x3224   :  { %v12161_v54 = vpop.eup %12160 }
0x3225   :  { %v7727_v51 = vmul.f32 %v12161_v54, %v12157_v30  ;;  %v10405_v54 = vld [vmem:[%s14106_s10 + $0x240] sm:$0xff] }
0x3227   :  { %11788 = vmatmul.mubr.msk.f32.vlgmr.msra.gmra.mxu0 %vm640_vm10, %v7727_v51  ;;  %v10404_v51 = vld [vmem:[%s14106_s10 + $0x238] sm:$0xff] }
0x3228   :  { %v12163_v39 = vpop.eup %12162  ;;  %11796 = vmatpush3.msra.mxu0 %v10382_v41  ;;  %v10400_v41 = vld [vmem:[%s14106_s10 + $0x218] sm:$0xff] }
0x3229   :  { %v7728_v53 = vmul.f32 %v12163_v39, %v12159_v7  ;;  %11797 = vmatprep.subr.mxu0 %v10381_v42  ;;  %v10403_v39 = vld [vmem:[%s14106_s10 + $0x230] sm:$0xff] }
0x322a   :  { %11798 = vmatpush3.msra.mxu0 %v10381_v42  ;;  %v10399_v42 = vld [vmem:[%s14106_s10 + $0x210] sm:$0xff] }
0x322b   :  { %11793 = vmatmul.mubr.msk.f32.vlgmr.msra.gmra.mxu1 %vm640_vm10, %v7728_v53  ;;  %v10402_v53 = vld [vmem:[%s14106_s10 + $0x228] sm:$0xff] }
0x322c   :  { %11803 = vmatpush3.msra.mxu1 %v10353_v33  ;;  %11806 = vmatprep.mubr.msk.f32.mxu1 %vm483_vm6, %v13654_v58  ;;  %v10408_v33 = vld [vmem:[%s14106_s10 + $0x258] sm:$0xff] }
0x322d   :  { %11804 = vmatprep.subr.mxu1 %v10352_v14 }
0x322e   :  { %11805 = vmatpush3.msra.mxu1 %v10352_v14  ;;  %v10401_v14 = vld [vmem:[%s14106_s10 + $0x220] sm:$0xff] }
0x322f   :  { %11807 = vmatmul.mubr.msk.f32.vlgmr.msra.gmra.mxu1 %vm483_vm6, %v13652_v57  ;;  %11820 = vmatprep.subr.mxu1 %v10412_v13 }
0x3230   :  { %11821 = vmatpush3.msra.mxu1 %v10412_v13 }
0x3231   :  { %11822 = vmatprep.subr.mxu1 %v10411_v52 }
0x3232   :  { %11823 = vmatpush3.msra.mxu1 %v10411_v52 }
0x3233   :  { %11824 = vmatprep.subr.mxu1 %v10410_v15 }
0x3234   :  { %11825 = vmatpush3.msra.mxu1 %v10410_v15 }
0x3235   :  { %11826 = vmatprep.subr.mxu1 %v10409_v32 }
0x3236   :  { %11827 = vmatpush3.msra.mxu1 %v10409_v32 }
0x3237   :  { %11828 = vmatprep.subr.mxu1 %v10408_v33 }
0x3238   :  { %11829 = vmatpush3.msra.mxu1 %v10408_v33 }
0x3239   :  { %11830 = vmatprep.subr.mxu1 %v10407_v34 }
0x323a   :  { %11831 = vmatpush3.msra.mxu1 %v10407_v34 }
0x323b   :  { %11832 = vmatprep.subr.mxu1 %v10406_v35 }
0x323c   :  { %11833 = vmatpush3.msra.mxu1 %v10406_v35  ;;  %v10415_v35 = vld [vmem:[%s14107_s11 + $0x1d] ss:$0 sm:$0xff] }
0x323d   :  { %11834 = vmatprep.subr.mxu1 %v10405_v54 }
0x323e   :  { %11835 = vmatpush3.msra.mxu1 %v10405_v54 }
0x323f   :  { %11836 = vmatprep.subr.mxu1 %v10404_v51 }
0x3240   :  { %11837 = vmatpush3.msra.mxu1 %v10404_v51 }
0x3241   :  { %11838 = vmatprep.subr.mxu1 %v10403_v39 }
0x3242   :  { %11839 = vmatpush3.msra.mxu1 %v10403_v39 }
0x3243   :  { %11840 = vmatprep.subr.mxu1 %v10402_v53 }
0x3244   :  { %11841 = vmatpush3.msra.mxu1 %v10402_v53  ;;  %v10425_v53 = vld [vmem:[%s14101_s5 + $0x3f0] sm:$0xff] }
0x3245   :  { %11842 = vmatprep.subr.mxu1 %v10401_v14 }
0x3246   :  { %11843 = vmatpush3.msra.mxu1 %v10401_v14  ;;  %v10424_v14 = vld [vmem:[%s14101_s5 + $0x3e8] sm:$0xff] }
0x3247   :  { %11844 = vmatprep.subr.mxu1 %v10400_v41 }
0x3248   :  { %11845 = vmatpush3.msra.mxu1 %v10400_v41  ;;  %v10423_v41 = vld [vmem:[%s14101_s5 + $0x3e0] sm:$0xff] }
0x3249   :  { %11846 = vmatprep.subr.mxu1 %v10399_v42 }
0x324a   :  { %11847 = vmatpush3.msra.mxu1 %v10399_v42  ;;  %v10433_v42 = vld [vmem:[%s14101_s5 + $0x418] sm:$0xff] }
0x32e7   :  { %v7798_v43 = vpop.f32.mrf.mxu0 }
0x32e8   :  { %11799 = vmatprep.mubr.msk.f32.mxu0 %vm483_vm6, %v7798_v43  ;;  %v10398_v43 = vld [vmem:[%s14106_s10 + $0x208] sm:$0xff] }
0x32e9   :  { %v11789_v44 = vpop.f32.mrf.mxu0  ;;  %11848 = vmatprep.subr.mxu1 %v10398_v43 }
0x32ea   :  { %v10397_v44 = vld [vmem:[%s14106_s10 + $0x200] sm:$0xff]  ;;  %11849 = vmatpush3.msra.mxu1 %v10398_v43  ;;  %v10432_v43 = vld [vmem:[%s14101_s5 + $0x410] sm:$0xff] }
0x32eb   :  { %v7871_v45 = vpop.f32.mrf.mxu1  ;;  %11850 = vmatprep.subr.mxu1 %v10397_v44 }
0x32ec   :  { %11800 = vmatmul.mubr.msk.f32.vlgmr.msra.gmra.mxu0 %vm483_vm6, %v7871_v45  ;;  %11851 = vmatpush3.msra.mxu1 %v10397_v44  ;;  %v10394_v45 = vld [vmem:[%s14105_s9 + $0x4] ss:$0 sm:$0xff]  ;;  %v10431_v44 = vld [vmem:[%s14101_s5 + $0x408] sm:$0xff] }
0x32ed   :  { %v11794_v46 = vpop.f32.mrf.mxu1  ;;  %11893 = vmatprep.subr.mxu1 %v12227_v9 }
0x32ef   :  { %v11808_v47 = vpop.f32.mrf.mxu1 }
0x32f1   :  { %v8031_v50 = vpop.f32.mrf.mxu1 }
0x33ac   :  { %v11801_v36 = vpop.f32.mrf.mxu0 }
0x33ad   :  { %v8037_v48 = vadd.f32 %v11808_v47, %v11801_v36 }
0x33ae   :  { %v7950_v56 = vpop.f32.mrf.mxu0 }
0x33af   :  { %v8046_v57 = vadd.f32 %v10387_v40, %v8037_v48  ;;  %v8032_v58 = vadd.f32 %v8031_v50, %v7950_v56 }
0x33b1   :  { %v8045_v38 = vadd.f32 %v10387_v40, %v8032_v58  ;;  %v8048_v59 = vadd.f32 %v8046_v57, %v13527_v49 }
0x33b3   :  { %v8054_v60 = vsel %vm152_vm4, %v8048_v59, 0.0  ;;  %v8047_v61 = vadd.f32 %v8045_v38, %v13531_v55  ;;  %v10393_v55 = vld [vmem:[%s14104_s8 + $0x98] sm:$0xff] }
0x33b4   :  { %8055 = vadd.xlane.f32.xlu0 %v8054_v60  ;;  %11809 = vmatprep.subr.mxu0 %v10393_v55 }
0x33b5   :  { %v8051_v62 = vsel %vm152_vm4, %v8047_v61, 0.0  ;;  %11810 = vmatpush3.msra.mxu0 %v10393_v55 }
0x33b6   :  { %8052 = vadd.xlane.f32.xlu1 %v8051_v62  ;;  %11811 = vmatprep.subr.mxu0 %v10392_v10 }
0x33b7   :  { %11812 = vmatpush3.msra.mxu0 %v10392_v10 }
0x33b8   :  { %11813 = vmatprep.subr.mxu0 %v10391_v11 }
0x33b9   :  { %11814 = vmatpush3.msra.mxu0 %v10391_v11 }
0x33ba   :  { %11815 = vmatprep.subr.mxu0 %v10390_v12 }
0x33bb   :  { %11816 = vmatpush3.msra.mxu0 %v10390_v12 }
0x343d   :  { %v8056_v37 = vpop.xlane.xlu0 %8055 }
0x343e   :  { %v8058_v63 = vmul.f32 0.03125, %v8056_v37  ;;  %v10413_v37 = vld [vmem:[%s14107_s11 + $0x1b] ss:$0 sm:$0xff] }
0x343f   :  { %v8053_v0 = vpop.xlane.xlu1 %8052 }
0x3440   :  { %v8060_v1 = vsub.f32 %v8048_v59, %v8058_v63  ;;  %v8057_v2 = vmul.f32 0.03125, %v8053_v0 }
0x3442   :  { %v8059_v3 = vsub.f32 %v8047_v61, %v8057_v2  ;;  %v8062_v4 = vmul.f32 %v8060_v1, %v8060_v1  ;;  %v8076_v24 = vmul.f32 %v10388_v22, %v8060_v1 }
0x3444   :  { %v8066_v5 = vsel %vm152_vm4, %v8062_v4, 0.0  ;;  %v8061_v8 = vmul.f32 %v8059_v3, %v8059_v3  ;;  %v8075_v25 = vmul.f32 %v10388_v22, %v8059_v3  ;;  %v10426_v22 = vld [vmem:[%s14101_s5 + $0x3f8] sm:$0xff] }
0x3445   :  { %8067 = vadd.xlane.f32.xlu0 %v8066_v5 }
0x3446   :  { %v8063_v49 = vsel %vm152_vm4, %v8061_v8, 0.0 }
0x3447   :  { %8064 = vadd.xlane.f32.xlu1 %v8063_v49 }
0x34ce   :  { %v8068_v16 = vpop.xlane.xlu0 %8067 }
0x34cf   :  { %v8070_v17 = vmul.f32 0.03125, %v8068_v16 }
0x34d0   :  { %v8065_v18 = vpop.xlane.xlu1 %8064 }
0x34d1   :  { %v8078_v19 = vadd.f32 1e-12, %v8070_v17  ;;  %v8069_v20 = vmul.f32 0.03125, %v8065_v18  ;;  %v10419_v18 = vld [vmem:[%s14101_s5 + $0x3d8] sm:$0xff] }
0x34d2   :  { %11855 = vmatprep.subr.mxu0 %v10419_v18 }
0x34d3   :  { %12164 = vrsqrt.f32 %v8078_v19  ;;  %v8077_v21 = vadd.f32 1e-12, %v8069_v20  ;;  %v10418_v19 = vld [vmem:[%s14101_s5 + $0x3d0] sm:$0xff]  ;;  %v10417_v20 = vld [vmem:[%s14101_s5 + $0x3c8] sm:$0xff] }
0x34d5   :  { %12166 = vrsqrt.f32 %v8077_v21  ;;  %v10416_v21 = vld [vmem:[%s14101_s5 + $0x3c0] sm:$0xff] }
0x34e0   :  { %v12165_v23 = vpop.eup %12164 }
0x34e1   :  { %v8082_v27 = vmul.f32 %v12165_v23, %v8076_v24 }
0x34e2   :  { %v12167_v26 = vpop.eup %12166 }
0x34e3   :  { %v8081_v30 = vmul.f32 %v12167_v26, %v8075_v25  ;;  %v13739_v7 = vadd.f32 %v10389_v29, %v8082_v27 }
0x34e5   :  { %v13737_v31 = vadd.f32 %v10389_v29, %v8081_v30  ;;  %v10414_v30 = vld [vmem:[%s14107_s11 + $0x1c] ss:$0 sm:$0xff] }
0x34e7   :  { %11817 = vmatprep.mubr.msk.f32.mxu0 %vm152_vm4, %v13737_v31 }
0x34e8   :  { %11818 = vmatmul.mubr.msk.f32.vlgmr.msra.gmra.mxu0 %vm152_vm4, %v13739_v7 }
0x34e9   :  { %11856 = vmatpush3.msra.mxu0 %v10419_v18 }
0x34ea   :  { %11857 = vmatprep.subr.mxu0 %v10418_v19 }
0x34eb   :  { %11858 = vmatpush3.msra.mxu0 %v10418_v19 }
0x34ec   :  { %11859 = vmatprep.subr.mxu0 %v10417_v20 }
0x34ed   :  { %11860 = vmatpush3.msra.mxu0 %v10417_v20  ;;  %v10455_v20 = vld [vmem:[%s14101_s5 + $0x458] sm:$0xff] }
0x34ee   :  { %11861 = vmatprep.subr.mxu0 %v10416_v21 }
0x34ef   :  { %11862 = vmatpush3.msra.mxu0 %v10416_v21  ;;  %v10448_v21 = vld [vmem:[%s14101_s5 + $0x438] sm:$0xff] }
0x34f0   :  { %11866 = vmatprep.subr.mxu0 %v10426_v22 }
0x35a8   :  { %v11819_v46 = vpop.f32.mrf.mxu0 }
0x35a9   :  { %v8177_v47 = vadd.f32 %v11819_v46, %v10394_v45 }
0x35aa   :  { %v8171_v36 = vpop.f32.mrf.mxu0 }
0x35ab   :  { %v8183_v40 = vmul.f32 0.70710677, %v8177_v47  ;;  %v8172_v48 = vadd.f32 %v10394_v45, %v8171_v36  ;;  %v8181_v60 = vmul.f32 0.5, %v8177_v47  ;;  %v10430_v45 = vld [vmem:[%s14101_s5 + $0x400] sm:$0xff]  ;;  %v10427_v36 = vld [vmem:[%s14102_s6 + $0x1f] ss:$0 sm:$0xff] }
0x35ad   :  { %12168 = verf.f32 %v8183_v40  ;;  %v8182_v50 = vmul.f32 0.70710677, %v8172_v48  ;;  %v8180_v38 = vmul.f32 0.5, %v8172_v48  ;;  %v10420_v48 = vld [vmem:[%s14102_s6 + $0x1e] ss:$0 sm:$0xff] }
0x35af   :  { %12170 = verf.f32 %v8182_v50 }
0x35ba   :  { %v12169_v56 = vpop.eup %12168 }
0x35bb   :  { %v8187_v58 = vadd.f32 1.0, %v12169_v56 }
0x35bc   :  { %v12171_v57 = vpop.eup %12170 }
0x35bd   :  { %v8186_v59 = vadd.f32 1.0, %v12171_v57  ;;  %v8189_v62 = vmul.f32 %v8187_v58, %v8181_v60 }
0x35bf   :  { %v8188_v61 = vmul.f32 %v8186_v59, %v8180_v38  ;;  %v10434_v59 = vld [vmem:[%s14102_s6 + $0x20] ss:$0 sm:$0xff] }
0x35c1   :  { %11852 = vmatprep.mubr.f32.mxu1 %v8188_v61 }
0x35c2   :  { %11853 = vmatmul.mubr.f32.vlgmr.msra.gmra.mxu1 %v8189_v62 }
0x35c3   :  { %11895 = vmatprep.mubr.msk.f32.mxu1 %vm12228_vm5, %v12227_v9 }
0x3682   :  { %v11854_v63 = vpop.f32.mrf.mxu1 }
0x3683   :  { %v8284_v0 = vadd.f32 %v11854_v63, %v10413_v37 }
0x3684   :  { %v8278_v1 = vpop.f32.mrf.mxu1 }
0x3685   :  { %v8279_v2 = vadd.f32 %v10413_v37, %v8278_v1  ;;  %v8288_v3 = vadd.f32 %v8284_v0, %v13739_v7 }
0x3687   :  { %v8294_v4 = vsel %vm152_vm4, %v8288_v3, 0.0  ;;  %v8287_v5 = vadd.f32 %v8279_v2, %v13737_v31 }
0x3688   :  { %8295 = vadd.xlane.f32.xlu0 %v8294_v4 }
0x3689   :  { %v8291_v8 = vsel %vm152_vm4, %v8287_v5, 0.0 }
0x368a   :  { %8292 = vadd.xlane.f32.xlu1 %v8291_v8 }
0x3711   :  { %v8296_v49 = vpop.xlane.xlu0 %8295 }
0x3712   :  { %v8298_v55 = vmul.f32 0.03125, %v8296_v49 }
0x3713   :  { %v8293_v10 = vpop.xlane.xlu1 %8292 }
0x3714   :  { %v8300_v11 = vsub.f32 %v8288_v3, %v8298_v55  ;;  %v8297_v12 = vmul.f32 0.03125, %v8293_v10 }
0x3716   :  { %v8299_v13 = vsub.f32 %v8287_v5, %v8297_v12  ;;  %v8302_v52 = vmul.f32 %v8300_v11, %v8300_v11  ;;  %v8316_v7 = vmul.f32 %v10414_v30, %v8300_v11 }
0x3718   :  { %v8306_v15 = vsel %vm152_vm4, %v8302_v52, 0.0  ;;  %v8301_v16 = vmul.f32 %v8299_v13, %v8299_v13  ;;  %v8315_v32 = vmul.f32 %v10414_v30, %v8299_v13  ;;  %v10447_v30 = vld [vmem:[%s14101_s5 + $0x430] sm:$0xff] }
0x3719   :  { %8307 = vadd.xlane.f32.xlu0 %v8306_v15 }
0x371a   :  { %v8303_v17 = vsel %vm152_vm4, %v8301_v16, 0.0 }
0x371b   :  { %8304 = vadd.xlane.f32.xlu1 %v8303_v17 }
0x37a2   :  { %v8308_v23 = vpop.xlane.xlu0 %8307 }
0x37a3   :  { %v8310_v24 = vmul.f32 0.03125, %v8308_v23 }
0x37a4   :  { %v8305_v25 = vpop.xlane.xlu1 %8304 }
0x37a5   :  { %v8318_v26 = vadd.f32 1e-12, %v8310_v24  ;;  %v8309_v27 = vmul.f32 0.03125, %v8305_v25 }
0x37a7   :  { %12172 = vrsqrt.f32 %v8318_v26  ;;  %v8317_v29 = vadd.f32 1e-12, %v8309_v27  ;;  %v10454_v27 = vld [vmem:[%s14101_s5 + $0x450] sm:$0xff] }
0x37a9   :  { %12174 = vrsqrt.f32 %v8317_v29 }
0x37b4   :  { %v12173_v31 = vpop.eup %12172 }
0x37b5   :  { %v8322_v34 = vmul.f32 %v12173_v31, %v8316_v7  ;;  %v10453_v31 = vld [vmem:[%s14101_s5 + $0x448] sm:$0xff] }
0x37b6   :  { %v12175_v33 = vpop.eup %12174  ;;  %v10446_v7 = vld [vmem:[%s14101_s5 + $0x428] sm:$0xff] }
0x37b7   :  { %v8321_v54 = vmul.f32 %v12175_v33, %v8315_v32  ;;  %v13822_v39 = vadd.f32 %v10415_v35, %v8322_v34  ;;  %v10452_v32 = vld [vmem:[%s14101_s5 + $0x440] sm:$0xff]  ;;  %v10462_v34 = vld [vmem:[%s14101_s5 + $0x478] sm:$0xff] }
0x37b8   :  { %v10445_v33 = vld [vmem:[%s14101_s5 + $0x420] sm:$0xff] }
0x37b9   :  { %v13820_v51 = vadd.f32 %v10415_v35, %v8321_v54  ;;  %v10461_v35 = vld [vmem:[%s14101_s5 + $0x470] sm:$0xff]  ;;  %v10460_v54 = vld [vmem:[%s14101_s5 + $0x468] sm:$0xff] }
0x37bb   :  { %11863 = vmatprep.mubr.msk.f32.mxu0 %vm152_vm4, %v13820_v51 }
0x37bc   :  { %11864 = vmatmul.mubr.msk.f32.vlgmr.msra.gmra.mxu0 %vm152_vm4, %v13822_v39 }
0x37bd   :  { %11867 = vmatpush3.msra.mxu0 %v10426_v22  ;;  %11874 = vmatprep.mubr.msk.f32.mxu0 %vm152_vm4, %v13820_v51 }
0x37be   :  { %11868 = vmatprep.subr.mxu0 %v10425_v53 }
0x37bf   :  { %11869 = vmatpush3.msra.mxu0 %v10425_v53  ;;  %v10459_v53 = vld [vmem:[%s14101_s5 + $0x460] sm:$0xff] }
0x37c0   :  { %11870 = vmatprep.subr.mxu0 %v10424_v14 }
0x37c1   :  { %11871 = vmatpush3.msra.mxu0 %v10424_v14 }
0x37c2   :  { %11872 = vmatprep.subr.mxu0 %v10423_v41 }
0x37c3   :  { %11873 = vmatpush3.msra.mxu0 %v10423_v41 }
0x37c4   :  { %11875 = vmatmul.mubr.msk.f32.vlgmr.msra.gmra.mxu0 %vm152_vm4, %v13822_v39  ;;  %11877 = vmatprep.subr.mxu0 %v10433_v42 }
0x37c5   :  { %11878 = vmatpush3.msra.mxu0 %v10433_v42  ;;  %11885 = vmatprep.mubr.msk.f32.mxu0 %vm152_vm4, %v13820_v51 }
0x37c6   :  { %11879 = vmatprep.subr.mxu0 %v10432_v43 }
0x37c7   :  { %11880 = vmatpush3.msra.mxu0 %v10432_v43 }
0x37c8   :  { %11881 = vmatprep.subr.mxu0 %v10431_v44 }
0x37c9   :  { %11882 = vmatpush3.msra.mxu0 %v10431_v44 }
0x37ca   :  { %11883 = vmatprep.subr.mxu0 %v10430_v45 }
0x37cb   :  { %11884 = vmatpush3.msra.mxu0 %v10430_v45 }
0x37cc   :  { %11886 = vmatmul.mubr.msk.f32.vlgmr.msra.gmra.mxu0 %vm152_vm4, %v13822_v39  ;;  %11888 = vmatprep.subr.mxu0 %v12227_v9 }
0x37cd   :  { %11890 = vmatprep.mubr.msk.f32.mxu0 %vm12228_vm5, %v12227_v9 }
0x387c   :  { %v11865_v46 = vpop.f32.mrf.mxu0 }
0x387d   :  { %v8417_v58 = vadd.f32 %v11865_v46, %v10420_v48  ;;  %v10456_v46 = vld [vmem:[%s14102_s6 + $0x22] ss:$0 sm:$0xff] }
0x387e   :  { %v8411_v47 = vpop.f32.mrf.mxu0 }
0x387f   :  { %v8412_v38 = vadd.f32 %v10420_v48, %v8411_v47 }
0x3884   :  { %v11876_v40 = vpop.f32.mrf.mxu0 }
0x3885   :  { %v8502_v50 = vadd.f32 %v11876_v40, %v10427_v36 }
0x3886   :  { %v8496_v56 = vpop.f32.mrf.mxu0 }
0x3887   :  { %v8497_v57 = vadd.f32 %v10427_v36, %v8496_v56  ;;  %11894 = vmatpush3.xpose.msk.msra.mxu1 %vm483_vm6, %v8502_v50  ;;  %v10449_v36 = vld [vmem:[%s14102_s6 + $0x21] ss:$0 sm:$0xff] }
0x3888   :  { %11903 = vmatprep.subr.mxu1 %v12227_v9 }
0x3889   :  { %11889 = vmatpush3.xpose.msk.msra.mxu0 %vm483_vm6, %v8497_v57  ;;  %v10463_v57 = vld [vmem:[%s14102_s6 + $0x23] ss:$0 sm:$0xff] }
0x388a   :  { %11896 = vmatmul.mubr.msk.f32.vlgmr.msra.gmra.mxu1 %vm483_vm6, %v8417_v58  ;;  %11898 = vmatprep.subr.mxu0 %v12227_v9 }
0x388b   :  { %11905 = vmatprep.mubr.msk.f32.mxu1 %vm12228_vm5, %v12227_v9 }
0x388c   :  { %v11887_v60 = vpop.f32.mrf.mxu0  ;;  %11891 = vmatmul.mubr.msk.f32.vlgmr.msra.gmra.mxu0 %vm483_vm6, %v8412_v38 }
0x388d   :  { %v8587_v61 = vadd.f32 %v11887_v60, %v10434_v59  ;;  %11900 = vmatprep.mubr.msk.f32.mxu0 %vm12228_vm5, %v12227_v9 }
0x388e   :  { %v8581_v62 = vpop.f32.mrf.mxu0 }
0x388f   :  { %v8582_v37 = vadd.f32 %v10434_v59, %v8581_v62  ;;  %11904 = vmatpush3.msra.mxu1 %v8587_v61 }
0x3890   :  { %11919 = vmatprep.subr.mxu1 %v10455_v20 }
0x3891   :  { %11899 = vmatpush3.msra.mxu0 %v8582_v37 }
0x3892   :  { %11908 = vmatprep.subr.mxu0 %v10448_v21 }
0x394a   :  { %v8738_v63 = vpop.f32.mrf.mxu1 }
0x394b   :  { %v8743_v0 = vmul.f32 0.25, %v8738_v63 }
0x394c   :  { %v8662_v1 = vpop.f32.mrf.mxu0  ;;  %v11897_v2 = vpop.f32.mrf.mxu1 }
0x394d   :  { %v8742_v3 = vmul.f32 0.25, %v8662_v1  ;;  %v8745_v4 = vadd.f32 %v8743_v0, %v12420_v6 }
0x394e   :  { %v11892_v5 = vpop.f32.mrf.mxu0 }
0x394f   :  { %v8749_v8 = vsel %vm640_vm10, %v8745_v4, -inf  ;;  %v8744_v49 = vadd.f32 %v8742_v3, %v12422_v28 }
0x3950   :  { %8750 = vmax.xlane.f32.xlu1 %v8749_v8 }
0x3951   :  { %v8746_v55 = vsel %vm640_vm10, %v8744_v49, -inf }
0x3952   :  { %8747 = vmax.xlane.f32.xlu0 %v8746_v55 }
0x39d9   :  { %v8751_v10 = vpop.xlane.xlu1 %8750 }
0x39da   :  { %v8753_v11 = vsub.f32 %v8745_v4, %v8751_v10 }
0x39db   :  { %v8748_v12 = vpop.xlane.xlu0 %8747 }
0x39dc   :  { %v8756_v13 = vmul.f32 1.442695, %v8753_v11  ;;  %v8752_v52 = vsub.f32 %v8744_v49, %v8748_v12 }
0x39de   :  { %12176 = vpow2.f32 %v8756_v13  ;;  %v8754_v15 = vmul.f32 1.442695, %v8752_v52 }
0x39e0   :  { %12178 = vpow2.f32 %v8754_v15 }
0x39eb   :  { %v12177_v16 = vpop.eup %12176 }
0x39ec   :  { %v8761_v17 = vsel %vm640_vm10, %v12177_v16, 0.0 }
0x39ed   :  { %v12179_v18 = vpop.eup %12178  ;;  %8762 = vadd.xlane.f32.xlu1 %v8761_v17 }
0x39ee   :  { %v8758_v19 = vsel %vm640_vm10, %v12179_v18, 0.0 }
0x39ef   :  { %8759 = vadd.xlane.f32.xlu0 %v8758_v19 }
0x3a76   :  { %v8763_v22 = vpop.xlane.xlu1 %8762 }
0x3a77   :  { %12180 = vrcp.f32 %v8763_v22  ;;  %v10443_v22 = vld [vmem:[%s14103_s7 + $0xa0] sm:$0xff] }
0x3a78   :  { %v8760_v23 = vpop.xlane.xlu0 %8759 }
0x3a79   :  { %12182 = vrcp.f32 %v8760_v23  ;;  %v10473_v23 = vld [vmem:[%s14103_s7 + $0xb8] sm:$0xff] }
0x3a84   :  { %v12181_v24 = vpop.eup %12180 }
0x3a85   :  { %v8767_v25 = vmul.f32 %v12181_v24, %v12177_v16  ;;  %v10472_v24 = vld [vmem:[%s14103_s7 + $0xb0] sm:$0xff] }
0x3a86   :  { %v12183_v26 = vpop.eup %12182 }
0x3a87   :  { %11906 = vmatmul.mubr.msk.f32.vlgmr.msra.gmra.mxu1 %vm640_vm10, %v8767_v25  ;;  %v8766_v29 = vmul.f32 %v12183_v26, %v12179_v18 }
0x3a88   :  { %11920 = vmatpush3.msra.mxu1 %v10455_v20  ;;  %11927 = vmatprep.mubr.msk.f32.mxu1 %vm152_vm4, %v13820_v51 }
0x3a89   :  { %11921 = vmatprep.subr.mxu1 %v10454_v27  ;;  %11901 = vmatmul.mubr.msk.f32.vlgmr.msra.gmra.mxu0 %vm640_vm10, %v8766_v29 }
0x3a8a   :  { %11909 = vmatpush3.msra.mxu0 %v10448_v21  ;;  %11922 = vmatpush3.msra.mxu1 %v10454_v27 }
0x3a8b   :  { %11910 = vmatprep.subr.mxu0 %v10447_v30  ;;  %11916 = vmatprep.mubr.msk.f32.mxu0 %vm152_vm4, %v13820_v51 }
0x3a8c   :  { %11923 = vmatprep.subr.mxu1 %v10453_v31  ;;  %11911 = vmatpush3.msra.mxu0 %v10447_v30 }
0x3a8d   :  { %11924 = vmatpush3.msra.mxu1 %v10453_v31  ;;  %11912 = vmatprep.subr.mxu0 %v10446_v7 }
0x3a8e   :  { %11925 = vmatprep.subr.mxu1 %v10452_v32  ;;  %11913 = vmatpush3.msra.mxu0 %v10446_v7  ;;  %v10478_v7 = vld [vmem:[%s14107_s11 + $0x1e] ss:$0 sm:$0xff] }
0x3a8f   :  { %11926 = vmatpush3.msra.mxu1 %v10452_v32  ;;  %11914 = vmatprep.subr.mxu0 %v10445_v33 }
0x3a90   :  { %11928 = vmatmul.mubr.msk.f32.vlgmr.msra.gmra.mxu1 %vm152_vm4, %v13822_v39  ;;  %11915 = vmatpush3.msra.mxu0 %v10445_v33 }
0x3a91   :  { %11917 = vmatmul.mubr.msk.f32.vlgmr.msra.gmra.mxu0 %vm152_vm4, %v13822_v39  ;;  %11930 = vmatprep.subr.mxu0 %v10462_v34 }
0x3a92   :  { %11931 = vmatpush3.msra.mxu0 %v10462_v34  ;;  %11938 = vmatprep.mubr.msk.f32.mxu0 %vm152_vm4, %v13820_v51 }
0x3a93   :  { %11932 = vmatprep.subr.mxu0 %v10461_v35  ;;  %11941 = vmatprep.subr.mxu1 %v12227_v9 }
0x3a94   :  { %11933 = vmatpush3.msra.mxu0 %v10461_v35  ;;  %11943 = vmatprep.mubr.msk.f32.mxu1 %vm12228_vm5, %v12227_v9 }
0x3a95   :  { %11934 = vmatprep.subr.mxu0 %v10460_v54 }
0x3a96   :  { %11935 = vmatpush3.msra.mxu0 %v10460_v54 }
0x3a97   :  { %11936 = vmatprep.subr.mxu0 %v10459_v53 }
0x3a98   :  { %11937 = vmatpush3.msra.mxu0 %v10459_v53 }
0x3a99   :  { %11939 = vmatmul.mubr.msk.f32.vlgmr.msra.gmra.mxu0 %vm152_vm4, %v13822_v39  ;;  %11951 = vmatprep.subr.mxu0 %v12227_v9 }
0x3a9a   :  { %11953 = vmatprep.mubr.msk.f32.mxu0 %vm12228_vm5, %v12227_v9 }
0x3b47   :  { %v13941_v14 = vpop.f32.mrf.mxu1 }
0x3b49   :  { %v13943_v41 = vpop.f32.mrf.mxu0  ;;  %v11907_v42 = vpop.f32.mrf.mxu1 }
0x3b4b   :  { %v11902_v43 = vpop.f32.mrf.mxu0 }
0x3b50   :  { %v11929_v44 = vpop.f32.mrf.mxu1 }
0x3b51   :  { %v11918_v45 = vpop.f32.mrf.mxu0  ;;  %v9084_v56 = vadd.f32 %v11929_v44, %v10456_v46 }
0x3b52   :  { %v9078_v47 = vpop.f32.mrf.mxu1  ;;  %v8999_v38 = vadd.f32 %v11918_v45, %v10449_v36 }
0x3b53   :  { %v9079_v40 = vadd.f32 %v10456_v46, %v9078_v47  ;;  %v8993_v48 = vpop.f32.mrf.mxu0 }
0x3b54   :  { %v8994_v50 = vadd.f32 %v10449_v36, %v8993_v48 }
0x3b55   :  { %11942 = vmatpush3.xpose.msk.msra.mxu1 %vm483_vm6, %v9079_v40 }
0x3b56   :  { %11946 = vmatprep.subr.mxu1 %v12227_v9 }
0x3b58   :  { %11944 = vmatmul.mubr.msk.f32.vlgmr.msra.gmra.mxu1 %vm483_vm6, %v8994_v50 }
0x3b59   :  { %11947 = vmatpush3.xpose.msk.msra.mxu1 %vm483_vm6, %v9084_v56  ;;  %v11940_v58 = vpop.f32.mrf.mxu0  ;;  %11948 = vmatprep.mubr.msk.f32.mxu1 %vm12228_vm5, %v12227_v9 }
0x3b5a   :  { %v9169_v59 = vadd.f32 %v11940_v58, %v10463_v57  ;;  %11956 = vmatprep.subr.mxu1 %v12227_v9  ;;  %v10482_v58 = vld [vmem:[%s14104_s8 + $0xa8] sm:$0xff] }
0x3b5b   :  { %v9163_v60 = vpop.f32.mrf.mxu0 }
0x3b5c   :  { %v9164_v61 = vadd.f32 %v10463_v57, %v9163_v60  ;;  %11949 = vmatmul.mubr.msk.f32.vlgmr.msra.gmra.mxu1 %vm483_vm6, %v8999_v38  ;;  %v10483_v57 = vld [vmem:[%s14104_s8 + $0xb0] sm:$0xff]  ;;  %v10481_v38 = vld [vmem:[%s14104_s8 + $0xa0] sm:$0xff] }
0x3b5d   :  { %11957 = vmatpush3.msra.mxu1 %v9169_v59  ;;  %11958 = vmatprep.mubr.msk.f32.mxu1 %vm12228_vm5, %v12227_v9  ;;  %v10503_v59 = vld [vmem:[%s14106_s10 + $0x2f8] sm:$0xff]  ;;  %v10502_v60 = vld [vmem:[%s14106_s10 + $0x2f0] sm:$0xff] }
0x3b5e   :  { %11952 = vmatpush3.msra.mxu0 %v9164_v61  ;;  %v10501_v61 = vld [vmem:[%s14106_s10 + $0x2e8] sm:$0xff] }
0x3b5f   :  { %11961 = vmatprep.subr.mxu0 %v10473_v23 }
0x3c18   :  { %v9244_v62 = vpop.f32.mrf.mxu1 }
0x3c19   :  { %v9324_v37 = vmul.f32 0.25, %v9244_v62 }
0x3c1a   :  { %v11945_v63 = vpop.f32.mrf.mxu1 }
0x3c1b   :  { %v9326_v0 = vadd.f32 %v9324_v37, %v12422_v28 }
0x3c1c   :  { %v9320_v1 = vpop.f32.mrf.mxu1 }
0x3c1d   :  { %v9325_v2 = vmul.f32 0.25, %v9320_v1  ;;  %v9328_v3 = vsel %vm640_vm10, %v9326_v0, -inf }
0x3c1e   :  { %9329 = vmax.xlane.f32.xlu1 %v9328_v3  ;;  %v11950_v4 = vpop.f32.mrf.mxu1  ;;  %v10479_v3 = vld [vmem:[%s14107_s11 + $0x1f] ss:$0 sm:$0xff] }
0x3c1f   :  { %v9327_v5 = vadd.f32 %v9325_v2, %v12420_v6  ;;  %v10444_v6 = vld [vmem:[%s14103_s7 + $0xa8] sm:$0xff] }
0x3c20   :  { %11968 = vmatprep.subr.mxu1 %v10444_v6 }
0x3c21   :  { %v9331_v8 = vsel %vm640_vm10, %v9327_v5, -inf }
0x3c22   :  { %9332 = vmax.xlane.f32.xlu0 %v9331_v8 }
0x3ca7   :  { %v9330_v49 = vpop.xlane.xlu1 %9329 }
0x3ca8   :  { %v9334_v55 = vsub.f32 %v9326_v0, %v9330_v49 }
0x3caa   :  { %v9336_v9 = vmul.f32 1.442695, %v9334_v55 }
0x3cab   :  { %v9333_v10 = vpop.xlane.xlu0 %9332 }
0x3cac   :  { %12184 = vpow2.f32 %v9336_v9  ;;  %v9335_v11 = vsub.f32 %v9327_v5, %v9333_v10  ;;  %v10480_v9 = vld [vmem:[%s14107_s11 + $0x20] ss:$0 sm:$0xff] }
0x3cae   :  { %v9338_v12 = vmul.f32 1.442695, %v9335_v11 }
0x3cb0   :  { %12186 = vpow2.f32 %v9338_v12 }
0x3cb9   :  { %v12185_v28 = vpop.eup %12184 }
0x3cba   :  { %v9340_v13 = vsel %vm640_vm10, %v12185_v28, 0.0 }
0x3cbb   :  { %9341 = vadd.xlane.f32.xlu1 %v9340_v13  ;;  %v10499_v13 = vld [vmem:[%s14106_s10 + $0x2d8] sm:$0xff] }
0x3cbd   :  { %v12187_v52 = vpop.eup %12186 }
0x3cbe   :  { %v9343_v15 = vsel %vm640_vm10, %v12187_v52, 0.0 }
0x3cbf   :  { %9344 = vadd.xlane.f32.xlu0 %v9343_v15  ;;  %v10497_v15 = vld [vmem:[%s14106_s10 + $0x2c8] sm:$0xff] }
0x3d44   :  { %v9342_v16 = vpop.xlane.xlu1 %9341 }
0x3d45   :  { %12188 = vrcp.f32 %v9342_v16  ;;  %v10495_v16 = vld [vmem:[%s14106_s10 + $0x2b8] sm:$0xff] }
0x3d48   :  { %v9345_v17 = vpop.xlane.xlu0 %9344 }
0x3d49   :  { %12190 = vrcp.f32 %v9345_v17  ;;  %v10494_v17 = vld [vmem:[%s14106_s10 + $0x2b0] sm:$0xff] }
0x3d52   :  { %v12189_v18 = vpop.eup %12188 }
0x3d53   :  { %v9348_v19 = vmul.f32 %v12189_v18, %v12185_v28  ;;  %v10500_v28 = vld [vmem:[%s14106_s10 + $0x2e0] sm:$0xff]  ;;  %v10493_v18 = vld [vmem:[%s14106_s10 + $0x2a8] sm:$0xff] }
0x3d55   :  { %11954 = vmatmul.mubr.msk.f32.vlgmr.msra.gmra.mxu0 %vm640_vm10, %v9348_v19  ;;  %v10492_v19 = vld [vmem:[%s14106_s10 + $0x2a0] sm:$0xff] }
0x3d56   :  { %v12191_v20 = vpop.eup %12190  ;;  %11962 = vmatpush3.msra.mxu0 %v10473_v23  ;;  %v10488_v23 = vld [vmem:[%s14106_s10 + $0x280] sm:$0xff] }
0x3d57   :  { %v9349_v21 = vmul.f32 %v12191_v20, %v12187_v52  ;;  %11963 = vmatprep.subr.mxu0 %v10472_v24  ;;  %v10498_v52 = vld [vmem:[%s14106_s10 + $0x2d0] sm:$0xff]  ;;  %v10491_v20 = vld [vmem:[%s14106_s10 + $0x298] sm:$0xff] }
0x3d58   :  { %11964 = vmatpush3.msra.mxu0 %v10472_v24  ;;  %v10485_v24 = vld [vmem:[%s14105_s9 + $0x5] ss:$0 sm:$0xff] }
0x3d59   :  { %11959 = vmatmul.mubr.msk.f32.vlgmr.msra.gmra.mxu1 %vm640_vm10, %v9349_v21  ;;  %v10490_v21 = vld [vmem:[%s14106_s10 + $0x290] sm:$0xff] }
0x3d5a   :  { %11969 = vmatpush3.msra.mxu1 %v10444_v6  ;;  %11972 = vmatprep.mubr.msk.f32.mxu1 %vm483_vm6, %v13943_v41  ;;  %v10496_v6 = vld [vmem:[%s14106_s10 + $0x2c0] sm:$0xff] }
0x3d5b   :  { %11970 = vmatprep.subr.mxu1 %v10443_v22 }
0x3d5c   :  { %11971 = vmatpush3.msra.mxu1 %v10443_v22  ;;  %v10489_v22 = vld [vmem:[%s14106_s10 + $0x288] sm:$0xff] }
0x3d5d   :  { %11973 = vmatmul.mubr.msk.f32.vlgmr.msra.gmra.mxu1 %vm483_vm6, %v13941_v14  ;;  %11986 = vmatprep.subr.mxu1 %v10503_v59 }
0x3d5e   :  { %11987 = vmatpush3.msra.mxu1 %v10503_v59 }
0x3d5f   :  { %11988 = vmatprep.subr.mxu1 %v10502_v60 }
0x3d60   :  { %11989 = vmatpush3.msra.mxu1 %v10502_v60 }
0x3d61   :  { %11990 = vmatprep.subr.mxu1 %v10501_v61 }
0x3d62   :  { %11991 = vmatpush3.msra.mxu1 %v10501_v61 }
0x3d63   :  { %11992 = vmatprep.subr.mxu1 %v10500_v28 }
0x3d64   :  { %11993 = vmatpush3.msra.mxu1 %v10500_v28 }
0x3d65   :  { %11994 = vmatprep.subr.mxu1 %v10499_v13 }
0x3d66   :  { %11995 = vmatpush3.msra.mxu1 %v10499_v13 }
0x3d67   :  { %11996 = vmatprep.subr.mxu1 %v10498_v52 }
0x3d68   :  { %11997 = vmatpush3.msra.mxu1 %v10498_v52 }
0x3d69   :  { %11998 = vmatprep.subr.mxu1 %v10497_v15 }
0x3d6a   :  { %11999 = vmatpush3.msra.mxu1 %v10497_v15 }
0x3d6b   :  { %12000 = vmatprep.subr.mxu1 %v10496_v6 }
0x3d6c   :  { %12001 = vmatpush3.msra.mxu1 %v10496_v6 }
0x3d6d   :  { %12002 = vmatprep.subr.mxu1 %v10495_v16 }
0x3d6e   :  { %12003 = vmatpush3.msra.mxu1 %v10495_v16 }
0x3d6f   :  { %12004 = vmatprep.subr.mxu1 %v10494_v17 }
0x3d70   :  { %12005 = vmatpush3.msra.mxu1 %v10494_v17 }
0x3d71   :  { %12006 = vmatprep.subr.mxu1 %v10493_v18 }
0x3d72   :  { %12007 = vmatpush3.msra.mxu1 %v10493_v18 }
0x3d73   :  { %12008 = vmatprep.subr.mxu1 %v10492_v19 }
0x3d74   :  { %12009 = vmatpush3.msra.mxu1 %v10492_v19 }
0x3d75   :  { %12010 = vmatprep.subr.mxu1 %v10491_v20 }
0x3d76   :  { %12011 = vmatpush3.msra.mxu1 %v10491_v20 }
0x3d77   :  { %12012 = vmatprep.subr.mxu1 %v10490_v21 }
0x3d78   :  { %12013 = vmatpush3.msra.mxu1 %v10490_v21 }
0x3d79   :  { %12014 = vmatprep.subr.mxu1 %v10489_v22 }
0x3d7a   :  { %12015 = vmatpush3.msra.mxu1 %v10489_v22 }
0x3d7b   :  { %12016 = vmatprep.subr.mxu1 %v10488_v23 }
0x3d7c   :  { %12017 = vmatpush3.msra.mxu1 %v10488_v23 }
0x3e15   :  { %v9419_v25 = vpop.f32.mrf.mxu0 }
0x3e16   :  { %11965 = vmatprep.mubr.msk.f32.mxu0 %vm483_vm6, %v9419_v25 }
0x3e17   :  { %v11955_v26 = vpop.f32.mrf.mxu0 }
0x3e19   :  { %v9492_v27 = vpop.f32.mrf.mxu1 }
0x3e1a   :  { %11966 = vmatmul.mubr.msk.f32.vlgmr.msra.gmra.mxu0 %vm483_vm6, %v9492_v27 }
0x3e1b   :  { %v11960_v29 = vpop.f32.mrf.mxu1 }
0x3e1d   :  { %v11974_v30 = vpop.f32.mrf.mxu1 }
0x3e1f   :  { %v9652_v33 = vpop.f32.mrf.mxu1 }
0x3eda   :  { %v11967_v31 = vpop.f32.mrf.mxu0 }
0x3edb   :  { %v9658_v32 = vadd.f32 %v11974_v30, %v11967_v31 }
0x3edc   :  { %v9571_v34 = vpop.f32.mrf.mxu0 }
0x3edd   :  { %v9667_v35 = vadd.f32 %v10478_v7, %v9658_v32  ;;  %v9653_v54 = vadd.f32 %v9652_v33, %v9571_v34 }
0x3edf   :  { %v9666_v53 = vadd.f32 %v10478_v7, %v9653_v54  ;;  %v9669_v14 = vadd.f32 %v9667_v35, %v13822_v39 }
0x3ee1   :  { %v9675_v41 = vsel %vm152_vm4, %v9669_v14, 0.0  ;;  %v9668_v42 = vadd.f32 %v9666_v53, %v13820_v51  ;;  %v10484_v51 = vld [vmem:[%s14104_s8 + $0xb8] sm:$0xff] }
0x3ee2   :  { %9676 = vadd.xlane.f32.xlu0 %v9675_v41  ;;  %11975 = vmatprep.subr.mxu0 %v10484_v51  ;;  %v10504_v41 = vld [vmem:[%s14107_s11 + $0x21] ss:$0 sm:$0xff] }
0x3ee3   :  { %v9672_v43 = vsel %vm152_vm4, %v9668_v42, 0.0  ;;  %11976 = vmatpush3.msra.mxu0 %v10484_v51 }
0x3ee4   :  { %9673 = vadd.xlane.f32.xlu1 %v9672_v43  ;;  %11977 = vmatprep.subr.mxu0 %v10483_v57 }
0x3ee5   :  { %11978 = vmatpush3.msra.mxu0 %v10483_v57 }
0x3ee6   :  { %11979 = vmatprep.subr.mxu0 %v10482_v58 }
0x3ee7   :  { %11980 = vmatpush3.msra.mxu0 %v10482_v58 }
0x3ee8   :  { %11981 = vmatprep.subr.mxu0 %v10481_v38 }
0x3ee9   :  { %11982 = vmatpush3.msra.mxu0 %v10481_v38 }
0x3f6b   :  { %v9677_v44 = vpop.xlane.xlu0 %9676 }
0x3f6c   :  { %v9679_v45 = vmul.f32 0.03125, %v9677_v44 }
0x3f6d   :  { %v9674_v46 = vpop.xlane.xlu1 %9673 }
0x3f6e   :  { %v9681_v47 = vsub.f32 %v9669_v14, %v9679_v45  ;;  %v9678_v36 = vmul.f32 0.03125, %v9674_v46 }
0x3f70   :  { %v9680_v40 = vsub.f32 %v9668_v42, %v9678_v36  ;;  %v9683_v48 = vmul.f32 %v9681_v47, %v9681_v47  ;;  %v9697_v5 = vmul.f32 %v10479_v3, %v9681_v47 }
0x3f72   :  { %v9687_v50 = vsel %vm152_vm4, %v9683_v48, 0.0  ;;  %v9682_v56 = vmul.f32 %v9680_v40, %v9680_v40  ;;  %v9696_v8 = vmul.f32 %v10479_v3, %v9680_v40 }
0x3f73   :  { %9688 = vadd.xlane.f32.xlu0 %v9687_v50 }
0x3f74   :  { %v9684_v39 = vsel %vm152_vm4, %v9682_v56, 0.0 }
0x3f75   :  { %9685 = vadd.xlane.f32.xlu1 %v9684_v39 }
0x3ffc   :  { %v9689_v62 = vpop.xlane.xlu0 %9688 }
0x3ffd   :  { %v9691_v37 = vmul.f32 0.03125, %v9689_v62 }
0x3ffe   :  { %v9686_v63 = vpop.xlane.xlu1 %9685 }
0x3fff   :  { %v9699_v0 = vadd.f32 1e-12, %v9691_v37  ;;  %v9690_v1 = vmul.f32 0.03125, %v9686_v63 }
0x4001   :  { %12192 = vrsqrt.f32 %v9699_v0  ;;  %v9698_v2 = vadd.f32 1e-12, %v9690_v1 }
0x4003   :  { %12194 = vrsqrt.f32 %v9698_v2  ;;  %v10505_v2 = vld [vmem:[%s14107_s11 + $0x22] ss:$0 sm:$0xff] }
0x400e   :  { %v12193_v4 = vpop.eup %12192 }
0x400f   :  { %v9703_v55 = vmul.f32 %v12193_v4, %v9697_v5  ;;  %v10506_v5 = vld [vmem:[%s14107_s11 + $0x23] ss:$0 sm:$0xff] }
0x4010   :  { %v12195_v49 = vpop.eup %12194 }
0x4011   :  { %v9702_v10 = vmul.f32 %v12195_v49, %v9696_v8  ;;  %v14028_v12 = vadd.f32 %v10480_v9, %v9703_v55 }
0x4013   :  { %v14026_v11 = vadd.f32 %v10480_v9, %v9702_v10 }
0x4015   :  { %11983 = vmatprep.mubr.msk.f32.mxu0 %vm152_vm4, %v14026_v11 }
0x4016   :  { %11984 = vmatmul.mubr.msk.f32.vlgmr.msra.gmra.mxu0 %vm152_vm4, %v14028_v12 }
0x40d6   :  { %v11985_v25 = vpop.f32.mrf.mxu0 }
0x40d7   :  { %v9798_v26 = vadd.f32 %v11985_v25, %v10485_v24 }
0x40d8   :  { %v9792_v27 = vpop.f32.mrf.mxu0 }
0x40d9   :  { %v9804_v29 = vmul.f32 0.70710677, %v9798_v26  ;;  %v9793_v30 = vadd.f32 %v10485_v24, %v9792_v27  ;;  %v9802_v54 = vmul.f32 0.5, %v9798_v26 }
0x40db   :  { %12196 = verf.f32 %v9804_v29  ;;  %v9803_v31 = vmul.f32 0.70710677, %v9793_v30  ;;  %v9801_v34 = vmul.f32 0.5, %v9793_v30 }
0x40dd   :  { %12198 = verf.f32 %v9803_v31 }
0x40e8   :  { %v12197_v7 = vpop.eup %12196 }
0x40e9   :  { %v9808_v33 = vadd.f32 1.0, %v12197_v7 }
0x40ea   :  { %v12199_v32 = vpop.eup %12198 }
0x40eb   :  { %v9807_v35 = vadd.f32 1.0, %v12199_v32  ;;  %v9810_v14 = vmul.f32 %v9808_v33, %v9802_v54 }
0x40ed   :  { %v9809_v53 = vmul.f32 %v9807_v35, %v9801_v34 }
0x40ef   :  { %12018 = vmatprep.mubr.f32.mxu1 %v9809_v53 }
0x40f0   :  { %12019 = vmatmul.mubr.f32.vlgmr.msra.gmra.mxu1 %v9810_v14 }
0x41b0   :  { %v12020_v42 = vpop.f32.mrf.mxu1 }
0x41b1   :  { %v9905_v43 = vadd.f32 %v12020_v42, %v10504_v41 }
0x41b2   :  { %v9899_v44 = vpop.f32.mrf.mxu1 }
0x41b3   :  { %v9900_v45 = vadd.f32 %v10504_v41, %v9899_v44  ;;  %v9909_v46 = vadd.f32 %v9905_v43, %v14028_v12 }
0x41b5   :  { %v9908_v47 = vadd.f32 %v9900_v45, %v14026_v11  ;;  %v9915_v36 = vsel %vm152_vm4, %v9909_v46, 0.0 }
0x41b6   :  { %9916 = vadd.xlane.f32.xlu0 %v9915_v36 }
0x41b7   :  { %v9912_v40 = vsel %vm152_vm4, %v9908_v47, 0.0 }
0x41b8   :  { %9913 = vadd.xlane.f32.xlu1 %v9912_v40 }
0x423f   :  { %v9917_v48 = vpop.xlane.xlu0 %9916 }
0x4240   :  { %v9919_v50 = vmul.f32 0.03125, %v9917_v48 }
0x4241   :  { %v9914_v56 = vpop.xlane.xlu1 %9913 }
0x4242   :  { %v9921_v39 = vsub.f32 %v9909_v46, %v9919_v50  ;;  %v9918_v51 = vmul.f32 0.03125, %v9914_v56 }
0x4244   :  { %v9920_v57 = vsub.f32 %v9908_v47, %v9918_v51  ;;  %v9923_v58 = vmul.f32 %v9921_v39, %v9921_v39  ;;  %v9937_v3 = vmul.f32 %v10505_v2, %v9921_v39 }
0x4246   :  { %v9927_v38 = vsel %vm152_vm4, %v9923_v58, 0.0  ;;  %v9922_v59 = vmul.f32 %v9920_v57, %v9920_v57  ;;  %v9936_v8 = vmul.f32 %v10505_v2, %v9920_v57 }
0x4247   :  { %9928 = vadd.xlane.f32.xlu0 %v9927_v38 }
0x4248   :  { %v9924_v60 = vsel %vm152_vm4, %v9922_v59, 0.0 }
0x4249   :  { %9925 = vadd.xlane.f32.xlu1 %v9924_v60 }
0x42d0   :  { %v9929_v61 = vpop.xlane.xlu0 %9928 }
0x42d1   :  { %v9931_v62 = vmul.f32 0.03125, %v9929_v61 }
0x42d2   :  { %v9926_v37 = vpop.xlane.xlu1 %9925 }
0x42d3   :  { %v9939_v63 = vadd.f32 1e-12, %v9931_v62  ;;  %v9930_v0 = vmul.f32 0.03125, %v9926_v37 }
0x42d5   :  { %12200 = vrsqrt.f32 %v9939_v63  ;;  %v9938_v1 = vadd.f32 1e-12, %v9930_v0 }
0x42d7   :  { %12202 = vrsqrt.f32 %v9938_v1 }
0x42e2   :  { %v12201_v4 = vpop.eup %12200 }
0x42e3   :  { %v9943_v49 = vmul.f32 %v12201_v4, %v9937_v3 }
0x42e4   :  { %v12203_v55 = vpop.eup %12202 }
0x42e5   :  { %v9949_v9 = vadd.f32 %v10506_v5, %v9943_v49  ;;  %v9942_v10 = vmul.f32 %v12203_v55, %v9936_v8 }
0x42e7   :  { %9960 = vst.msk [vmem:[#allocation2 + $0x38] sm:$0xff] %vm152_vm4, %v9949_v9  ;;  %v9948_v11 = vadd.f32 %v10506_v5, %v9942_v10 }
0x42e9   :  { %9959 = vst.msk [vmem:[#allocation2 + $0x30] sm:$0xff] %vm152_vm4, %v9948_v11 }
0x42ea   :  { %12215 = shalt.err (!%p12212_p4)
}
0x42eb   :  { %s12230_s11 = smov 128   ;;  %s12231_s30 = smov 8  }
0x42ec   :  { %9972 = dma.vmem_to_hbm [thread:$0]  %s9967_s28, 1024, %s14108_s12, [#allocation3], %s12230_s11, %s12230_s11, %s12231_s30  }
0x42ed   :  { %12224 = dma.done.wait [#allocation3], 1024  }
0x42ee   :  { %12225 = vsyncadd [#allocation3], 4294966272 }
0x42ef   :  { %9976 = vsyncpa [#allocation3], 1 }

</bundles_post_ra>
